<compile_context>
chip_gen: v5e
topology: v5e:2x2
jax: 0.10.0
libtpu: 0.0.40
codegen_flags: <defaults>
</compile_context>

<pallas_src>
import numpy as np
import jax
import jax.numpy as jnp
from jax.experimental import pallas as pl
from jax.experimental.pallas import tpu as pltpu


# ----------------------------- config ---------------------------------------
class Config:
    num_conditions = 4
    image_size = 16          # image_size // 16 == 1  ->  adv_layer in = 512


_CHANNELS = [(3 + Config.num_conditions, 64), (64, 128), (128, 256), (256, 512)]
# Channel padding so every in-kernel lane concat / weight row block is aligned.
_CIN_PAD = [8, 128, 128, 256]
_COUT_PAD = [128, 128, 256, 512]
_BN_EPS = 1e-5


def _round8(v):
    return ((v + 7) // 8) * 8


# ------------------- constant stride-2 tap-gather matrices -------------------
def build_tap_gather(n, h, w, m_in, m_out_pad):
    """0/1 matrix G of shape (9*m_out_pad, m_in), bf16 (0/1 is exact).

    Row  t*m_out_pad + (nb*Ho*Wo + ho*Wo + wo)  selects the flattened input row
    feeding kernel tap t = kh*3+kw of output pixel (ho, wo) of a 3x3 / stride-2
    / pad-1 convolution. Rows whose tap falls into the zero padding (and all
    rows >= the real output count) are left all-zero.
    """
    ho_n, wo_n = h // 2, w // 2
    g = np.zeros((9 * m_out_pad, m_in), np.float32)
    for kh in range(3):
        for kw in range(3):
            t = kh * 3 + kw
            for nb in range(n):
                for ho in range(ho_n):
                    for wo in range(wo_n):
                        hi = 2 * ho - 1 + kh
                        wi = 2 * wo - 1 + kw
                        if 0 <= hi < h and 0 <= wi < w:
                            orow = nb * ho_n * wo_n + ho * wo_n + wo
                            irow = nb * h * w + hi * w + wi
                            g[t * m_out_pad + orow, irow] = 1.0
    return jnp.asarray(g, dtype=jnp.bfloat16)


def build_constants(n):
    """Gather matrices for layers 1-3 (layer 0 is im2col'd in the wrapper)."""
    consts = {}
    h = Config.image_size // 2          # layer-0 output feature map is 8x8
    m_in = n * h * h                    # layer-0 output row count (mult of 8)
    for li in range(1, 4):
        m_out = _round8(n * (h // 2) * (h // 2))
        consts[f"g{li}"] = build_tap_gather(n, h, h, m_in, m_out)
        m_in = m_out
        h //= 2
    return consts


# ----------------------------- fused Pallas kernel ---------------------------
def _discriminator_kernel(
        x0_ref, w0_ref, b0_ref, sc0_ref, nsc0_ref, sh0_ref,
        g1_ref, w1_ref, b1_ref, sc1_ref, nsc1_ref, sh1_ref,
        g2_ref, w2_ref, b2_ref, sc2_ref, nsc2_ref, sh2_ref,
        g3_ref, b3_ref, sc3_ref, nsc3_ref, sh3_ref,
        wl_ref, bl_ref, w3_hbm_ref,
        o_ref,
        w3_vmem, w3_sem):
    """4 x [Conv3x3/s2/p1 + bias + LeakyReLU(0.2) (+ eval BN)] + Linear + Sigmoid."""

    # Kick off the layer-3 weight DMA (largest input, 2.36 MB bf16) right away;
    # its HBM latency is hidden behind the compute of layers 0-2.
    w3_copy = pltpu.make_async_copy(w3_hbm_ref, w3_vmem, w3_sem)
    w3_copy.start()

    def bias_act_bn(acc, b_ref, sc_ref, nsc_ref, sh_ref):
        # bias + LeakyReLU(0.2) + eval-BatchNorm fused (0.2*scale precomputed);
        # Dropout2d(0.25) is identity in eval mode.  Kept in f32 (v5e VPU).
        z = acc + b_ref[...]
        return jnp.where(z > 0.0, z * sc_ref[...], z * nsc_ref[...]) + sh_ref[...]

    # ---- layer 0: im2col was done host-side -> a single bf16 matmul ---------
    acc = jnp.dot(x0_ref[...], w0_ref[...], preferred_element_type=jnp.float32)
    act = bias_act_bn(acc, b0_ref, sc0_ref, nsc0_ref, sh0_ref)   # (M0, 128) f32

    def conv_layer(act, g_ref, w_ref, b_ref, sc_ref, nsc_ref, sh_ref):
        # 1) one gather matmul relocates the stride-2 3x3 tap rows (G is 0/1),
        # 2) a lane-aligned concat builds the (m_out, 9*Cin) im2col block,
        # 3) one merged K = 9*Cin MXU contraction produces the conv output.
        m_out = g_ref.shape[0] // 9
        p = jnp.dot(g_ref[...], act.astype(jnp.bfloat16),
                    preferred_element_type=jnp.float32)          # (9*m_out, Cin)
        pm = jnp.concatenate(
            [p[t * m_out:(t + 1) * m_out, :] for t in range(9)], axis=1)
        acc = jnp.dot(pm.astype(jnp.bfloat16), w_ref[...],
                      preferred_element_type=jnp.float32)        # (m_out, Cout)
        return bias_act_bn(acc, b_ref, sc_ref, nsc_ref, sh_ref)

    act = conv_layer(act, g1_ref, w1_ref, b1_ref, sc1_ref, nsc1_ref, sh1_ref)
    act = conv_layer(act, g2_ref, w2_ref, b2_ref, sc2_ref, nsc2_ref, sh2_ref)

    w3_copy.wait()                        # layer-3 weight now resident in VMEM
    act = conv_layer(act, g3_ref, w3_vmem, b3_ref, sc3_ref, nsc3_ref, sh3_ref)

    # ---- head: Linear(512 -> 1) + exact Sigmoid ------------------------------
    logits = jnp.dot(act.astype(jnp.bfloat16), wl_ref[...],
                     preferred_element_type=jnp.float32) + bl_ref[...]
    o_ref[...] = (1.0 / (1.0 + jnp.exp(-logits))).astype(o_ref.dtype)
    # Padded batch rows (>= N) carry harmless finite garbage; sliced off outside.


# ----------------------------- parameters -----------------------------------
def init_params(key):
    nc = Config.num_conditions
    keys = jax.random.split(key, 11)
    p = {"emb": jax.random.normal(keys[0], (nc, nc), jnp.float32)}

    for li, (cin, cout) in enumerate(_CHANNELS):
        fan_in = 9 * cin
        bound = (1.0 / fan_in) ** 0.5
        w = jax.random.uniform(keys[1 + 2 * li], (3, 3, cin, cout),
                               jnp.float32, -bound, bound)
        b = jax.random.uniform(keys[2 + 2 * li], (cout,), jnp.float32,
                               -bound, bound)
        cin_p, cout_p = _CIN_PAD[li], _COUT_PAD[li]
        w = jnp.pad(w, ((0, 0), (0, 0), (0, cin_p - cin), (0, cout_p - cout)))
        # Merged (tap-major) weight layout: row = (kh*3+kw)*cin_p + c.
        p[f"w{li}"] = w.reshape(9 * cin_p, cout_p).astype(jnp.bfloat16)
        p[f"b{li}"] = jnp.pad(b, (0, cout_p - cout)).reshape(1, cout_p)

        if li == 0:                            # no BatchNorm after block 0
            scale = jnp.ones((cout,), jnp.float32)
            shift = jnp.zeros((cout,), jnp.float32)
        else:                                  # eval-mode BN, running stats
            gamma = jnp.ones((cout,), jnp.float32)
            beta = jnp.zeros((cout,), jnp.float32)
            run_mean = jnp.zeros((cout,), jnp.float32)
            run_var = jnp.ones((cout,), jnp.float32)
            scale = gamma / jnp.sqrt(run_var + _BN_EPS)
            shift = beta - run_mean * scale
        # Zero-padded channels stay exactly zero through bias/LeakyReLU/BN.
        scale = jnp.pad(scale, (0, cout_p - cout))
        shift = jnp.pad(shift, (0, cout_p - cout))
        p[f"sc{li}"] = scale.reshape(1, cout_p)
        p[f"nsc{li}"] = (0.2 * scale).reshape(1, cout_p)   # fused LeakyReLU*BN
        p[f"sh{li}"] = shift.reshape(1, cout_p)

    lin_in = 512 * (Config.image_size // 16) ** 2
    bound = (1.0 / lin_in) ** 0.5
    p["wl"] = jax.random.uniform(keys[9], (lin_in, 1), jnp.float32,
                                 -bound, bound).astype(jnp.bfloat16)
    p["bl"] = jax.random.uniform(keys[10], (1, 1), jnp.float32, -bound, bound)
    return p


# ----------------------------- forward --------------------------------------
@jax.jit
def discriminator_forward(params, consts, img_nchw, labels):
    """img_nchw: (N, 3, H, W) float32;  labels: (N,) int32  ->  (N, 1)."""
    nc = Config.num_conditions
    n, _, h, w = img_nchw.shape
    cin = 3 + nc
    cin_pad = _CIN_PAD[0]
    ho, wo = h // 2, w // 2

    # One-time input prep in XLA: embedding lookup, condition broadcast,
    # NCHW -> NHWC concat (matches torch.cat(dim=1)), channel pad 7 -> 8, and
    # the layer-0 im2col (3x3 / stride 2 / pad 1) so no layer-0 gather matrix
    # is ever DMA'd into the kernel.
    emb = params["emb"][labels]                                  # (N, nc)
    cond = jnp.broadcast_to(emb[:, None, None, :], (n, h, w, nc))
    x = jnp.transpose(img_nchw, (0, 2, 3, 1))                    # (N, H, W, 3)
    x = jnp.concatenate([x, cond], axis=-1)                      # (N, H, W, 7)
    x = jnp.pad(x, ((0, 0), (0, 0), (0, 0), (0, cin_pad - cin)))
    xp = jnp.pad(x, ((0, 0), (1, 1), (1, 1), (0, 0)))            # spatial pad 1
    patches = [xp[:, kh:kh + 2 * ho:2, kw:kw + 2 * wo:2, :]
               for kh in range(3) for kw in range(3)]            # 9x(N,Ho,Wo,8)
    x0 = jnp.concatenate(patches, axis=-1)                       # (N,Ho,Wo,72)
    x0 = x0.reshape(n * ho * wo, 9 * cin_pad).astype(jnp.bfloat16)

    m_final = _round8(n)

    ins = [x0,
           params["w0"], params["b0"], params["sc0"], params["nsc0"], params["sh0"],
           consts["g1"], params["w1"], params["b1"], params["sc1"], params["nsc1"], params["sh1"],
           consts["g2"], params["w2"], params["b2"], params["sc2"], params["nsc2"], params["sh2"],
           consts["g3"], params["b3"], params["sc3"], params["nsc3"], params["sh3"],
           params["wl"], params["bl"],
           params["w3"]]                                         # w3 last (HBM)

    in_specs = ([pl.BlockSpec(memory_space=pltpu.MemorySpace.VMEM)] * (len(ins) - 1)
                + [pl.BlockSpec(memory_space=pl.ANY)])           # w3 stays in HBM

    out = pl.pallas_call(
        _discriminator_kernel,
        out_shape=jax.ShapeDtypeStruct((m_final, 1), jnp.float32),
        in_specs=in_specs,
        out_specs=pl.BlockSpec(memory_space=pltpu.MemorySpace.VMEM),
        scratch_shapes=[
            pltpu.VMEM(params["w3"].shape, jnp.bfloat16),   # layer-3 weight buf
            pltpu.SemaphoreType.DMA,                        # its copy semaphore
        ],
        compiler_params=pltpu.CompilerParams(vmem_limit_bytes=16 * 1024 * 1024),
    )(*ins)
    return out[:n]


# ----------------------------- main -----------------------------------------
if __name__ == "__main__":
    key = jax.random.PRNGKey(0)
    k_param, k_img, k_lab = jax.random.split(key, 3)

    params = init_params(k_param)

    n = 2
    img = jax.random.normal(
        k_img, (n, 3, Config.image_size, Config.image_size), jnp.float32)
    labels = jax.random.randint(k_lab, (n,), 0, Config.num_conditions,
                                dtype=jnp.int32)

    consts = build_constants(n)        # bf16 stride-2 tap-gather matrices (L1-3)

    validity = discriminator_forward(params, consts, img, labels)
    jax.block_until_ready(validity)

    assert validity.shape == (n, 1)
    assert bool(jnp.all((validity >= 0.0) & (validity <= 1.0)))
    print("KERNEL_OK")
</pallas_src>

<mosaic_0001>
module attributes {stable_mosaic.version = 11 : i64} {
  func.func @_discriminator_kernel(%arg0: memref<128x72xbf16, #tpu.memory_space<vmem>>, %arg1: memref<72x128xbf16, #tpu.memory_space<vmem>>, %arg2: memref<1x128xf32, #tpu.memory_space<vmem>>, %arg3: memref<1x128xf32, #tpu.memory_space<vmem>>, %arg4: memref<1x128xf32, #tpu.memory_space<vmem>>, %arg5: memref<1x128xf32, #tpu.memory_space<vmem>>, %arg6: memref<288x128xbf16, #tpu.memory_space<vmem>>, %arg7: memref<1152x128xbf16, #tpu.memory_space<vmem>>, %arg8: memref<1x128xf32, #tpu.memory_space<vmem>>, %arg9: memref<1x128xf32, #tpu.memory_space<vmem>>, %arg10: memref<1x128xf32, #tpu.memory_space<vmem>>, %arg11: memref<1x128xf32, #tpu.memory_space<vmem>>, %arg12: memref<72x32xbf16, #tpu.memory_space<vmem>>, %arg13: memref<1152x256xbf16, #tpu.memory_space<vmem>>, %arg14: memref<1x256xf32, #tpu.memory_space<vmem>>, %arg15: memref<1x256xf32, #tpu.memory_space<vmem>>, %arg16: memref<1x256xf32, #tpu.memory_space<vmem>>, %arg17: memref<1x256xf32, #tpu.memory_space<vmem>>, %arg18: memref<72x8xbf16, #tpu.memory_space<vmem>>, %arg19: memref<1x512xf32, #tpu.memory_space<vmem>>, %arg20: memref<1x512xf32, #tpu.memory_space<vmem>>, %arg21: memref<1x512xf32, #tpu.memory_space<vmem>>, %arg22: memref<1x512xf32, #tpu.memory_space<vmem>>, %arg23: memref<512x1xbf16, #tpu.memory_space<vmem>>, %arg24: memref<1x1xf32, #tpu.memory_space<vmem>>, %arg25: memref<2304x512xbf16, #tpu.memory_space<any>>, %arg26: memref<8x1xf32, #tpu.memory_space<vmem>>, %arg27: memref<2304x512xbf16, #tpu.memory_space<vmem>>, %arg28: memref<!tpu.dma_semaphore, #tpu.memory_space<semaphore_mem>>) attributes {dimension_semantics = [], scalar_prefetch = 0 : i64, scratch_operands = 2 : i64, tpu.core_type = #tpu.core_type<tc>} {
    tpu.enqueue_dma source(%arg25 : memref<2304x512xbf16, #tpu.memory_space<any>>) target(%arg27 : memref<2304x512xbf16, #tpu.memory_space<vmem>>) target_semaphore(%arg28 : memref<!tpu.dma_semaphore, #tpu.memory_space<semaphore_mem>>)
    %c0 = arith.constant 0 : index
    %c0_0 = arith.constant 0 : index
    %0 = vector.load %arg0[%c0, %c0_0] : memref<128x72xbf16, #tpu.memory_space<vmem>>, vector<128x72xbf16>
    %c0_1 = arith.constant 0 : index
    %c0_2 = arith.constant 0 : index
    %1 = vector.load %arg1[%c0_1, %c0_2] : memref<72x128xbf16, #tpu.memory_space<vmem>>, vector<72x128xbf16>
    %cst = arith.constant dense<0.000000e+00> : vector<128x128xf32>
    %2 = tpu.matmul %0, %1, %cst {dimension_numbers = #tpu.dot_dimension_numbers<[1], [0], [0], [1], [0, 0, 1, 1], [], []>} : vector<128x72xbf16>, vector<72x128xbf16>, vector<128x128xf32> -> vector<128x128xf32>
    %c0_3 = arith.constant 0 : index
    %c0_4 = arith.constant 0 : index
    %3 = vector.load %arg2[%c0_3, %c0_4] : memref<1x128xf32, #tpu.memory_space<vmem>>, vector<1x128xf32>
    %4 = vector.broadcast %3 : vector<1x128xf32> to vector<128x128xf32>
    %5 = arith.addf %2, %4 : vector<128x128xf32>
    %cst_5 = arith.constant 0.000000e+00 : f32
    %6 = vector.broadcast %cst_5 : f32 to vector<128x128xf32>
    %7 = arith.cmpf ogt, %5, %6 : vector<128x128xf32>
    %c0_6 = arith.constant 0 : index
    %c0_7 = arith.constant 0 : index
    %8 = vector.load %arg3[%c0_6, %c0_7] : memref<1x128xf32, #tpu.memory_space<vmem>>, vector<1x128xf32>
    %9 = vector.broadcast %8 : vector<1x128xf32> to vector<128x128xf32>
    %10 = arith.mulf %5, %9 : vector<128x128xf32>
    %c0_8 = arith.constant 0 : index
    %c0_9 = arith.constant 0 : index
    %11 = vector.load %arg4[%c0_8, %c0_9] : memref<1x128xf32, #tpu.memory_space<vmem>>, vector<1x128xf32>
    %12 = vector.broadcast %11 : vector<1x128xf32> to vector<128x128xf32>
    %13 = arith.mulf %5, %12 : vector<128x128xf32>
    %14 = arith.select %7, %10, %13 : vector<128x128xi1>, vector<128x128xf32>
    %c0_10 = arith.constant 0 : index
    %c0_11 = arith.constant 0 : index
    %15 = vector.load %arg5[%c0_10, %c0_11] : memref<1x128xf32, #tpu.memory_space<vmem>>, vector<1x128xf32>
    %16 = vector.broadcast %15 : vector<1x128xf32> to vector<128x128xf32>
    %17 = arith.addf %14, %16 : vector<128x128xf32>
    %c0_12 = arith.constant 0 : index
    %c0_13 = arith.constant 0 : index
    %18 = vector.load %arg6[%c0_12, %c0_13] : memref<288x128xbf16, #tpu.memory_space<vmem>>, vector<288x128xbf16>
    %19 = arith.truncf %17 : vector<128x128xf32> to vector<128x128xbf16>
    %cst_14 = arith.constant dense<0.000000e+00> : vector<288x128xf32>
    %20 = tpu.matmul %18, %19, %cst_14 {dimension_numbers = #tpu.dot_dimension_numbers<[1], [0], [0], [1], [0, 0, 1, 1], [], []>} : vector<288x128xbf16>, vector<128x128xbf16>, vector<288x128xf32> -> vector<288x128xf32>
    %21 = vector.extract_strided_slice %20 {offsets = [0, 0], sizes = [32, 128], strides = [1, 1]} : vector<288x128xf32> to vector<32x128xf32>
    %22 = vector.extract_strided_slice %20 {offsets = [32, 0], sizes = [32, 128], strides = [1, 1]} : vector<288x128xf32> to vector<32x128xf32>
    %23 = vector.extract_strided_slice %20 {offsets = [64, 0], sizes = [32, 128], strides = [1, 1]} : vector<288x128xf32> to vector<32x128xf32>
    %24 = vector.extract_strided_slice %20 {offsets = [96, 0], sizes = [32, 128], strides = [1, 1]} : vector<288x128xf32> to vector<32x128xf32>
    %25 = vector.extract_strided_slice %20 {offsets = [128, 0], sizes = [32, 128], strides = [1, 1]} : vector<288x128xf32> to vector<32x128xf32>
    %26 = vector.extract_strided_slice %20 {offsets = [160, 0], sizes = [32, 128], strides = [1, 1]} : vector<288x128xf32> to vector<32x128xf32>
    %27 = vector.extract_strided_slice %20 {offsets = [192, 0], sizes = [32, 128], strides = [1, 1]} : vector<288x128xf32> to vector<32x128xf32>
    %28 = vector.extract_strided_slice %20 {offsets = [224, 0], sizes = [32, 128], strides = [1, 1]} : vector<288x128xf32> to vector<32x128xf32>
    %29 = vector.extract_strided_slice %20 {offsets = [256, 0], sizes = [32, 128], strides = [1, 1]} : vector<288x128xf32> to vector<32x128xf32>
    %30 = tpu.concatenate %21, %22, %23, %24, %25, %26, %27, %28, %29 in 1 : vector<32x128xf32>, vector<32x128xf32>, vector<32x128xf32>, vector<32x128xf32>, vector<32x128xf32>, vector<32x128xf32>, vector<32x128xf32>, vector<32x128xf32>, vector<32x128xf32> -> vector<32x1152xf32>
    %31 = arith.truncf %30 : vector<32x1152xf32> to vector<32x1152xbf16>
    %c0_15 = arith.constant 0 : index
    %c0_16 = arith.constant 0 : index
    %32 = vector.load %arg7[%c0_15, %c0_16] : memref<1152x128xbf16, #tpu.memory_space<vmem>>, vector<1152x128xbf16>
    %cst_17 = arith.constant dense<0.000000e+00> : vector<32x128xf32>
    %33 = tpu.matmul %31, %32, %cst_17 {dimension_numbers = #tpu.dot_dimension_numbers<[1], [0], [0], [1], [0, 0, 1, 1], [], []>} : vector<32x1152xbf16>, vector<1152x128xbf16>, vector<32x128xf32> -> vector<32x128xf32>
    %c0_18 = arith.constant 0 : index
    %c0_19 = arith.constant 0 : index
    %34 = vector.load %arg8[%c0_18, %c0_19] : memref<1x128xf32, #tpu.memory_space<vmem>>, vector<1x128xf32>
    %35 = vector.broadcast %34 : vector<1x128xf32> to vector<32x128xf32>
    %36 = arith.addf %33, %35 : vector<32x128xf32>
    %cst_20 = arith.constant 0.000000e+00 : f32
    %37 = vector.broadcast %cst_20 : f32 to vector<32x128xf32>
    %38 = arith.cmpf ogt, %36, %37 : vector<32x128xf32>
    %c0_21 = arith.constant 0 : index
    %c0_22 = arith.constant 0 : index
    %39 = vector.load %arg9[%c0_21, %c0_22] : memref<1x128xf32, #tpu.memory_space<vmem>>, vector<1x128xf32>
    %40 = vector.broadcast %39 : vector<1x128xf32> to vector<32x128xf32>
    %41 = arith.mulf %36, %40 : vector<32x128xf32>
    %c0_23 = arith.constant 0 : index
    %c0_24 = arith.constant 0 : index
    %42 = vector.load %arg10[%c0_23, %c0_24] : memref<1x128xf32, #tpu.memory_space<vmem>>, vector<1x128xf32>
    %43 = vector.broadcast %42 : vector<1x128xf32> to vector<32x128xf32>
    %44 = arith.mulf %36, %43 : vector<32x128xf32>
    %45 = arith.select %38, %41, %44 : vector<32x128xi1>, vector<32x128xf32>
    %c0_25 = arith.constant 0 : index
    %c0_26 = arith.constant 0 : index
    %46 = vector.load %arg11[%c0_25, %c0_26] : memref<1x128xf32, #tpu.memory_space<vmem>>, vector<1x128xf32>
    %47 = vector.broadcast %46 : vector<1x128xf32> to vector<32x128xf32>
    %48 = arith.addf %45, %47 : vector<32x128xf32>
    %c0_27 = arith.constant 0 : index
    %c0_28 = arith.constant 0 : index
    %49 = vector.load %arg12[%c0_27, %c0_28] : memref<72x32xbf16, #tpu.memory_space<vmem>>, vector<72x32xbf16>
    %50 = arith.truncf %48 : vector<32x128xf32> to vector<32x128xbf16>
    %cst_29 = arith.constant dense<0.000000e+00> : vector<72x128xf32>
    %51 = tpu.matmul %49, %50, %cst_29 {dimension_numbers = #tpu.dot_dimension_numbers<[1], [0], [0], [1], [0, 0, 1, 1], [], []>} : vector<72x32xbf16>, vector<32x128xbf16>, vector<72x128xf32> -> vector<72x128xf32>
    %52 = vector.extract_strided_slice %51 {offsets = [0, 0], sizes = [8, 128], strides = [1, 1]} : vector<72x128xf32> to vector<8x128xf32>
    %53 = vector.extract_strided_slice %51 {offsets = [8, 0], sizes = [8, 128], strides = [1, 1]} : vector<72x128xf32> to vector<8x128xf32>
    %54 = vector.extract_strided_slice %51 {offsets = [16, 0], sizes = [8, 128], strides = [1, 1]} : vector<72x128xf32> to vector<8x128xf32>
    %55 = vector.extract_strided_slice %51 {offsets = [24, 0], sizes = [8, 128], strides = [1, 1]} : vector<72x128xf32> to vector<8x128xf32>
    %56 = vector.extract_strided_slice %51 {offsets = [32, 0], sizes = [8, 128], strides = [1, 1]} : vector<72x128xf32> to vector<8x128xf32>
    %57 = vector.extract_strided_slice %51 {offsets = [40, 0], sizes = [8, 128], strides = [1, 1]} : vector<72x128xf32> to vector<8x128xf32>
    %58 = vector.extract_strided_slice %51 {offsets = [48, 0], sizes = [8, 128], strides = [1, 1]} : vector<72x128xf32> to vector<8x128xf32>
    %59 = vector.extract_strided_slice %51 {offsets = [56, 0], sizes = [8, 128], strides = [1, 1]} : vector<72x128xf32> to vector<8x128xf32>
    %60 = vector.extract_strided_slice %51 {offsets = [64, 0], sizes = [8, 128], strides = [1, 1]} : vector<72x128xf32> to vector<8x128xf32>
    %61 = tpu.concatenate %52, %53, %54, %55, %56, %57, %58, %59, %60 in 1 : vector<8x128xf32>, vector<8x128xf32>, vector<8x128xf32>, vector<8x128xf32>, vector<8x128xf32>, vector<8x128xf32>, vector<8x128xf32>, vector<8x128xf32>, vector<8x128xf32> -> vector<8x1152xf32>
    %62 = arith.truncf %61 : vector<8x1152xf32> to vector<8x1152xbf16>
    %c0_30 = arith.constant 0 : index
    %c0_31 = arith.constant 0 : index
    %63 = vector.load %arg13[%c0_30, %c0_31] : memref<1152x256xbf16, #tpu.memory_space<vmem>>, vector<1152x256xbf16>
    %cst_32 = arith.constant dense<0.000000e+00> : vector<8x256xf32>
    %64 = tpu.matmul %62, %63, %cst_32 {dimension_numbers = #tpu.dot_dimension_numbers<[1], [0], [0], [1], [0, 0, 1, 1], [], []>} : vector<8x1152xbf16>, vector<1152x256xbf16>, vector<8x256xf32> -> vector<8x256xf32>
    %c0_33 = arith.constant 0 : index
    %c0_34 = arith.constant 0 : index
    %65 = vector.load %arg14[%c0_33, %c0_34] : memref<1x256xf32, #tpu.memory_space<vmem>>, vector<1x256xf32>
    %66 = vector.broadcast %65 : vector<1x256xf32> to vector<8x256xf32>
    %67 = arith.addf %64, %66 : vector<8x256xf32>
    %cst_35 = arith.constant 0.000000e+00 : f32
    %68 = vector.broadcast %cst_35 : f32 to vector<8x256xf32>
    %69 = arith.cmpf ogt, %67, %68 : vector<8x256xf32>
    %c0_36 = arith.constant 0 : index
    %c0_37 = arith.constant 0 : index
    %70 = vector.load %arg15[%c0_36, %c0_37] : memref<1x256xf32, #tpu.memory_space<vmem>>, vector<1x256xf32>
    %71 = vector.broadcast %70 : vector<1x256xf32> to vector<8x256xf32>
    %72 = arith.mulf %67, %71 : vector<8x256xf32>
    %c0_38 = arith.constant 0 : index
    %c0_39 = arith.constant 0 : index
    %73 = vector.load %arg16[%c0_38, %c0_39] : memref<1x256xf32, #tpu.memory_space<vmem>>, vector<1x256xf32>
    %74 = vector.broadcast %73 : vector<1x256xf32> to vector<8x256xf32>
    %75 = arith.mulf %67, %74 : vector<8x256xf32>
    %76 = arith.select %69, %72, %75 : vector<8x256xi1>, vector<8x256xf32>
    %c0_40 = arith.constant 0 : index
    %c0_41 = arith.constant 0 : index
    %77 = vector.load %arg17[%c0_40, %c0_41] : memref<1x256xf32, #tpu.memory_space<vmem>>, vector<1x256xf32>
    %78 = vector.broadcast %77 : vector<1x256xf32> to vector<8x256xf32>
    %79 = arith.addf %76, %78 : vector<8x256xf32>
    tpu.wait_dma2 semaphore(%arg28 : memref<!tpu.dma_semaphore, #tpu.memory_space<semaphore_mem>>) src(%arg25 : memref<2304x512xbf16, #tpu.memory_space<any>>) dst(%arg27 : memref<2304x512xbf16, #tpu.memory_space<vmem>>)
    %c0_42 = arith.constant 0 : index
    %c0_43 = arith.constant 0 : index
    %80 = vector.load %arg18[%c0_42, %c0_43] : memref<72x8xbf16, #tpu.memory_space<vmem>>, vector<72x8xbf16>
    %81 = arith.truncf %79 : vector<8x256xf32> to vector<8x256xbf16>
    %cst_44 = arith.constant dense<0.000000e+00> : vector<72x256xf32>
    %82 = tpu.matmul %80, %81, %cst_44 {dimension_numbers = #tpu.dot_dimension_numbers<[1], [0], [0], [1], [0, 0, 1, 1], [], []>} : vector<72x8xbf16>, vector<8x256xbf16>, vector<72x256xf32> -> vector<72x256xf32>
    %83 = vector.extract_strided_slice %82 {offsets = [0, 0], sizes = [8, 256], strides = [1, 1]} : vector<72x256xf32> to vector<8x256xf32>
    %84 = vector.extract_strided_slice %82 {offsets = [8, 0], sizes = [8, 256], strides = [1, 1]} : vector<72x256xf32> to vector<8x256xf32>
    %85 = vector.extract_strided_slice %82 {offsets = [16, 0], sizes = [8, 256], strides = [1, 1]} : vector<72x256xf32> to vector<8x256xf32>
    %86 = vector.extract_strided_slice %82 {offsets = [24, 0], sizes = [8, 256], strides = [1, 1]} : vector<72x256xf32> to vector<8x256xf32>
    %87 = vector.extract_strided_slice %82 {offsets = [32, 0], sizes = [8, 256], strides = [1, 1]} : vector<72x256xf32> to vector<8x256xf32>
    %88 = vector.extract_strided_slice %82 {offsets = [40, 0], sizes = [8, 256], strides = [1, 1]} : vector<72x256xf32> to vector<8x256xf32>
    %89 = vector.extract_strided_slice %82 {offsets = [48, 0], sizes = [8, 256], strides = [1, 1]} : vector<72x256xf32> to vector<8x256xf32>
    %90 = vector.extract_strided_slice %82 {offsets = [56, 0], sizes = [8, 256], strides = [1, 1]} : vector<72x256xf32> to vector<8x256xf32>
    %91 = vector.extract_strided_slice %82 {offsets = [64, 0], sizes = [8, 256], strides = [1, 1]} : vector<72x256xf32> to vector<8x256xf32>
    %92 = tpu.concatenate %83, %84, %85, %86, %87, %88, %89, %90, %91 in 1 : vector<8x256xf32>, vector<8x256xf32>, vector<8x256xf32>, vector<8x256xf32>, vector<8x256xf32>, vector<8x256xf32>, vector<8x256xf32>, vector<8x256xf32>, vector<8x256xf32> -> vector<8x2304xf32>
    %93 = arith.truncf %92 : vector<8x2304xf32> to vector<8x2304xbf16>
    %c0_45 = arith.constant 0 : index
    %c0_46 = arith.constant 0 : index
    %94 = vector.load %arg27[%c0_45, %c0_46] : memref<2304x512xbf16, #tpu.memory_space<vmem>>, vector<2304x512xbf16>
    %cst_47 = arith.constant dense<0.000000e+00> : vector<8x512xf32>
    %95 = tpu.matmul %93, %94, %cst_47 {dimension_numbers = #tpu.dot_dimension_numbers<[1], [0], [0], [1], [0, 0, 1, 1], [], []>} : vector<8x2304xbf16>, vector<2304x512xbf16>, vector<8x512xf32> -> vector<8x512xf32>
    %c0_48 = arith.constant 0 : index
    %c0_49 = arith.constant 0 : index
    %96 = vector.load %arg19[%c0_48, %c0_49] : memref<1x512xf32, #tpu.memory_space<vmem>>, vector<1x512xf32>
    %97 = vector.broadcast %96 : vector<1x512xf32> to vector<8x512xf32>
    %98 = arith.addf %95, %97 : vector<8x512xf32>
    %cst_50 = arith.constant 0.000000e+00 : f32
    %99 = vector.broadcast %cst_50 : f32 to vector<8x512xf32>
    %100 = arith.cmpf ogt, %98, %99 : vector<8x512xf32>
    %c0_51 = arith.constant 0 : index
    %c0_52 = arith.constant 0 : index
    %101 = vector.load %arg20[%c0_51, %c0_52] : memref<1x512xf32, #tpu.memory_space<vmem>>, vector<1x512xf32>
    %102 = vector.broadcast %101 : vector<1x512xf32> to vector<8x512xf32>
    %103 = arith.mulf %98, %102 : vector<8x512xf32>
    %c0_53 = arith.constant 0 : index
    %c0_54 = arith.constant 0 : index
    %104 = vector.load %arg21[%c0_53, %c0_54] : memref<1x512xf32, #tpu.memory_space<vmem>>, vector<1x512xf32>
    %105 = vector.broadcast %104 : vector<1x512xf32> to vector<8x512xf32>
    %106 = arith.mulf %98, %105 : vector<8x512xf32>
    %107 = arith.select %100, %103, %106 : vector<8x512xi1>, vector<8x512xf32>
    %c0_55 = arith.constant 0 : index
    %c0_56 = arith.constant 0 : index
    %108 = vector.load %arg22[%c0_55, %c0_56] : memref<1x512xf32, #tpu.memory_space<vmem>>, vector<1x512xf32>
    %109 = vector.broadcast %108 : vector<1x512xf32> to vector<8x512xf32>
    %110 = arith.addf %107, %109 : vector<8x512xf32>
    %111 = arith.truncf %110 : vector<8x512xf32> to vector<8x512xbf16>
    %c0_57 = arith.constant 0 : index
    %c0_58 = arith.constant 0 : index
    %112 = vector.load %arg23[%c0_57, %c0_58] : memref<512x1xbf16, #tpu.memory_space<vmem>>, vector<512x1xbf16>
    %cst_59 = arith.constant dense<0.000000e+00> : vector<8x1xf32>
    %113 = tpu.matmul %111, %112, %cst_59 {dimension_numbers = #tpu.dot_dimension_numbers<[1], [0], [0], [1], [0, 0, 1, 1], [], []>} : vector<8x512xbf16>, vector<512x1xbf16>, vector<8x1xf32> -> vector<8x1xf32>
    %c0_60 = arith.constant 0 : index
    %c0_61 = arith.constant 0 : index
    %114 = vector.load %arg24[%c0_60, %c0_61] : memref<1x1xf32, #tpu.memory_space<vmem>>, vector<1x1xf32>
    %115 = vector.broadcast %114 : vector<1x1xf32> to vector<8x1xf32>
    %116 = arith.addf %113, %115 : vector<8x1xf32>
    %cst_62 = arith.constant 0.000000e+00 : f32
    %117 = vector.broadcast %cst_62 : f32 to vector<8x1xf32>
    %118 = arith.subf %117, %116 : vector<8x1xf32>
    %119 = math.exp %118 : vector<8x1xf32>
    %cst_63 = arith.constant 1.000000e+00 : f32
    %120 = vector.broadcast %cst_63 : f32 to vector<8x1xf32>
    %121 = arith.addf %120, %119 : vector<8x1xf32>
    %cst_64 = arith.constant 1.000000e+00 : f32
    %122 = vector.broadcast %cst_64 : f32 to vector<8x1xf32>
    %123 = arith.divf %122, %121 : vector<8x1xf32>
    %c0_65 = arith.constant 0 : index
    %c0_66 = arith.constant 0 : index
    %124 = vector.load %arg26[%c0_65, %c0_66] : memref<8x1xf32, #tpu.memory_space<vmem>>, vector<8x1xf32>
    tpu.vector_store %arg26[%c0_65, %c0_66], %123 {strides = array<i32>} : memref<8x1xf32, #tpu.memory_space<vmem>>, vector<8x1xf32>,
    return
  }
}

</mosaic_0001>

<bundles_post_ra>
// kernel: discriminator_forward.1
= control target key start
LH: loop header
LB: loop body
LE: loop exit
PB: predicated region body
PF: predicated region fallthrough
CT: control target
= control target key end

     0   :  { %s13553_s0 = inlined_call_operand.vmem [shape: bf16[128,72], index: 0, kind: input, shape index: {}]   ;;  %s13554_s1 = inlined_call_operand.hbm [shape: bf16[72,128], index: 1, kind: input, shape index: {}]   ;;  %s13555_s2 = inlined_call_operand.hbm [shape: f32[1,128], index: 2, kind: input, shape index: {}]   ;;  %s13556_s3 = inlined_call_operand.hbm [shape: f32[1,128], index: 3, kind: input, shape index: {}]   ;;  %s13557_s4 = inlined_call_operand.hbm [shape: f32[1,128], index: 4, kind: input, shape index: {}]   ;;  %s13558_s5 = inlined_call_operand.hbm [shape: f32[1,128], index: 5, kind: input, shape index: {}]   ;;  %s13559_s6 = inlined_call_operand.hbm [shape: bf16[288,128], index: 6, kind: input, shape index: {}]   ;;  %s13560_s7 = inlined_call_operand.hbm [shape: bf16[1152,128], index: 7, kind: input, shape index: {}]   ;;  %s13561_s8 = inlined_call_operand.hbm [shape: f32[1,128], index: 8, kind: input, shape index: {}]   ;;  %s13562_s9 = inlined_call_operand.hbm [shape: f32[1,128], index: 9, kind: input, shape index: {}]   ;;  %s13563_s10 = inlined_call_operand.hbm [shape: f32[1,128], index: 10, kind: input, shape index: {}]   ;;  %s13564_s11 = inlined_call_operand.hbm [shape: f32[1,128], index: 11, kind: input, shape index: {}]   ;;  %s13565_s12 = inlined_call_operand.vmem [shape: bf16[72,32], index: 12, kind: input, shape index: {}]   ;;  %s13566_s13 = inlined_call_operand.hbm [shape: bf16[1152,256], index: 13, kind: input, shape index: {}]   ;;  %s13567_s14 = inlined_call_operand.hbm [shape: f32[1,256], index: 14, kind: input, shape index: {}]   ;;  %s13568_s15 = inlined_call_operand.hbm [shape: f32[1,256], index: 15, kind: input, shape index: {}]   ;;  %s13569_s16 = inlined_call_operand.hbm [shape: f32[1,256], index: 16, kind: input, shape index: {}]   ;;  %s13570_s17 = inlined_call_operand.hbm [shape: f32[1,256], index: 17, kind: input, shape index: {}]   ;;  %s13571_s18 = inlined_call_operand.vmem [shape: bf16[72,8], index: 18, kind: input, shape index: {}]   ;;  %s13572_s19 = inlined_call_operand.hbm [shape: f32[1,512], index: 19, kind: input, shape index: {}]   ;;  %s13573_s20 = inlined_call_operand.hbm [shape: f32[1,512], index: 20, kind: input, shape index: {}]   ;;  %s13574_s21 = inlined_call_operand.hbm [shape: f32[1,512], index: 21, kind: input, shape index: {}]   ;;  %s13575_s22 = inlined_call_operand.hbm [shape: f32[1,512], index: 22, kind: input, shape index: {}]   ;;  %s13576_s23 = inlined_call_operand.vmem [shape: bf16[512,1], index: 23, kind: input, shape index: {}]   ;;  %s13577_s24 = inlined_call_operand.<no memory space> [shape: f32[1,1], index: 24, kind: input, shape index: {}]   ;;  %s13578_s25 = inlined_call_operand.hbm [shape: bf16[2304,512], index: 25, kind: input, shape index: {}]   ;;  %s13579_s26 = inlined_call_operand.vmem [shape: f32[8,1], index: 26, kind: output, shape index: {}]  }
   0x1   :  { %13582 = sst [smem:[#allocation52_spill]] %s13553_s0  ;;  %v31_v0 = vstv %s13577_s24 }
   0x2   :  { %13583 = sst [smem:[#allocation53_spill]] %s13554_s1  ;;  %32 = vst [vmem:[#allocation4] sm:$0x1] %v31_v0 }
   0x3   :  { %13584 = sst [smem:[#allocation54_spill]] %s13555_s2 }
   0x4   :  { %13585 = sst [smem:[#allocation55_spill]] %s13556_s3 }
   0x5   :  { %13586 = sst [smem:[#allocation56_spill]] %s13557_s4 }
   0x6   :  { %13587 = sst [smem:[#allocation57_spill]] %s13558_s5 }
   0x7   :  { %13588 = sst [smem:[#allocation58_spill]] %s13559_s6 }
   0x8   :  { %13589 = sst [smem:[#allocation59_spill]] %s13560_s7 }
   0x9   :  { %13590 = sst [smem:[#allocation60_spill]] %s13561_s8 }
   0xa   :  { %13591 = sst [smem:[#allocation61_spill]] %s13562_s9 }
   0xb   :  { %13592 = sst [smem:[#allocation62_spill]] %s13563_s10 }
   0xc   :  { %13593 = sst [smem:[#allocation63_spill]] %s13576_s23 }
   0xd   :  { %13594 = sst [smem:[#allocation64_spill]] %s13579_s26 }
   0xe   :  { %33 = vsyncpa [#allocation6], 0 }
   0xf   :  { %34 = vsyncpa [#allocation8], 0 }
  0x10   :  { %35 = vsyncpa [#allocation11], 0 }
  0x11   :  { %36 = vsyncpa [#allocation14], 0 }
  0x12   :  { %37 = vsyncpa [#allocation17], 0 }
  0x13   :  { %38 = vsyncpa [#allocation20], 0 }
  0x14   :  { %39 = vsyncpa [#allocation23], 0 }
  0x15   :  { %40 = vsyncpa [#allocation26], 0 }
  0x16   :  { %41 = vsyncpa [#allocation29], 0 }
  0x17   :  { %42 = vsyncpa [#allocation32], 0  ;;  %s13595_s8 = sld [smem:[#allocation54_spill]] }
  0x1d   :  { %s64_s4 = sshll.u32 %s13595_s8, 4  ;;  %s65_s4 = int_to_ptr.hbm [resolvable:$true] %s64_s4 }
  0x1e   :  { %43 = vsyncpa [#allocation35], 0  ;;  %s12775_s29 = smov [#allocation7]   ;;  %s13596_s30 = sld [smem:[#allocation56_spill]] }
  0x1f   :  { %s66_s0 = sshll.u32 %s12775_s29, 4  ;;  %s12776_s5 = smov [#allocation10]   ;;  %s67_s0 = int_to_ptr.vmem [resolvable:$true] %s66_s0 }
  0x20   :  { %69 = dma.hbm_to_vmem [thread:$0]  %s65_s4, 16, %s67_s0, [#allocation8]  }
  0x21   :  { %s88_s10 = sshll.u32 %s12776_s5, 4  ;;  %s13597_s27 = sld [smem:[#allocation58_spill]]  ;;  %s89_s10 = int_to_ptr.vmem [resolvable:$true] %s88_s10 }
  0x22   :  { %s12777_s7 = smov [#allocation13]   ;;  %s13598_s26 = sld [smem:[#allocation60_spill]] }
  0x23   :  { %s109_s28 = sshll.u32 %s12777_s7, 4  ;;  %s12778_s24 = smov 64   ;;  %s110_s28 = int_to_ptr.vmem [resolvable:$true] %s109_s28 }
  0x24   :  { %s86_s2 = sshll.u32 %s13596_s30, 4  ;;  %s12779_s9 = smov 4   ;;  %s87_s2 = int_to_ptr.hbm [resolvable:$true] %s86_s2 }
  0x25   :  { %91 = dma.hbm_to_vmem [thread:$0]  %s87_s2, 16, %s89_s10, [#allocation11]  }
  0x26   :  { %s12780_s4 = smov [#allocation16]   ;;  %s13599_s5 = sld [smem:[#allocation62_spill]] }
  0x27   :  { %s107_s3 = sshll.u32 %s13597_s27, 4  ;;  %s136_s0 = sshll.u32 %s12780_s4, 4  ;;  %s108_s3 = int_to_ptr.hbm [resolvable:$true] %s107_s3  ;;  %s137_s0 = int_to_ptr.vmem [resolvable:$true] %s136_s0 }
  0x28   :  { %s134_s23 = sshll.u32 %s13598_s26, 4  ;;  %s179_s26 = sshll.u32 %s13566_s13, 4  ;;  %s135_s23 = int_to_ptr.hbm [resolvable:$true] %s134_s23  ;;  %s180_s26 = int_to_ptr.hbm [resolvable:$true] %s179_s26 }
  0x29   :  { %115 = dma.hbm_to_vmem [thread:$0]  %s108_s3, 2304, %s110_s28, [#allocation14], %s12778_s24, %s12778_s24, %s12779_s9  }
  0x2a   :  { %139 = dma.hbm_to_vmem [thread:$0]  %s135_s23, 16, %s137_s0, [#allocation17]  }
  0x2b   :  { %s12781_s27 = smov [#allocation19]   ;;  %s12782_s3 = smov [#allocation22]  }
  0x2c   :  { %s156_s10 = sshll.u32 %s13599_s5, 4  ;;  %s158_s7 = sshll.u32 %s12781_s27, 4  ;;  %s157_s10 = int_to_ptr.hbm [resolvable:$true] %s156_s10  ;;  %s159_s7 = int_to_ptr.vmem [resolvable:$true] %s158_s7 }
  0x2d   :  { %161 = dma.hbm_to_vmem [thread:$0]  %s157_s10, 16, %s159_s7, [#allocation20]  }
  0x2e   :  { %s181_s28 = sshll.u32 %s12782_s3, 4  ;;  %s12783_s8 = smov 128   ;;  %s182_s28 = int_to_ptr.vmem [resolvable:$true] %s181_s28 }
  0x2f   :  { %s12784_s29 = smov 8   ;;  %s204_s2 = sshll.u32 %s13568_s15, 4  ;;  %s205_s2 = int_to_ptr.hbm [resolvable:$true] %s204_s2 }
  0x30   :  { %187 = dma.hbm_to_vmem [thread:$0]  %s180_s26, 18432, %s182_s28, [#allocation23], %s12783_s8, %s12783_s8, %s12784_s29  }
  0x31   :  { %s12785_s23 = smov [#allocation25]   ;;  %s226_s6 = sshll.u32 %s13570_s17, 4  ;;  %s227_s6 = int_to_ptr.hbm [resolvable:$true] %s226_s6 }
  0x32   :  { %s206_s0 = sshll.u32 %s12785_s23, 4  ;;  %s12786_s10 = smov [#allocation28]   ;;  %s207_s0 = int_to_ptr.vmem [resolvable:$true] %s206_s0 }
  0x33   :  { %209 = dma.hbm_to_vmem [thread:$0]  %s205_s2, 32, %s207_s0, [#allocation26]  }
  0x34   :  { %s228_s1 = sshll.u32 %s12786_s10, 4  ;;  %s250_s26 = sshll.u32 %s13573_s20, 4  ;;  %s229_s1 = int_to_ptr.vmem [resolvable:$true] %s228_s1  ;;  %s251_s26 = int_to_ptr.hbm [resolvable:$true] %s250_s26 }
  0x35   :  { %231 = dma.hbm_to_vmem [thread:$0]  %s227_s6, 32, %s229_s1, [#allocation29]  }
  0x36   :  { %s13600_s28 = sld [smem:[#allocation53_spill]]  ;;  %s12787_s29 = smov [#allocation31]  }
  0x37   :  { %s252_s4 = sshll.u32 %s12787_s29, 4  ;;  %s12788_s17 = smov [#allocation5]   ;;  %s253_s4 = int_to_ptr.vmem [resolvable:$true] %s252_s4 }
  0x38   :  { %255 = dma.hbm_to_vmem [thread:$0]  %s251_s26, 64, %s253_s4, [#allocation32]  }
  0x39   :  { %s52_s30 = sshll.u32 %s12788_s17, 4  ;;  %s13601_s0 = sld [smem:[#allocation55_spill]]  ;;  %s53_s30 = int_to_ptr.vmem [resolvable:$true] %s52_s30 }
  0x3a   :  { %s13602_s6 = sld [smem:[#allocation57_spill]]  ;;  %s12789_s1 = smov [#allocation9]  }
  0x3b   :  { %s77_s27 = sshll.u32 %s12789_s1, 4  ;;  %s12790_s7 = smov [#allocation12]   ;;  %s78_s27 = int_to_ptr.vmem [resolvable:$true] %s77_s27 }
  0x3c   :  { %s50_s8 = sshll.u32 %s13600_s28, 4  ;;  %s99_s26 = sshll.u32 %s12790_s7, 4  ;;  %s51_s8 = int_to_ptr.hbm [resolvable:$true] %s50_s8  ;;  %s100_s26 = int_to_ptr.vmem [resolvable:$true] %s99_s26 }
  0x3d   :  { %58 = dma.hbm_to_vmem [thread:$0]  %s51_s8, 576, %s53_s30, [#allocation6], %s12778_s24, %s12778_s24, %s12779_s9  }
  0x3e   :  { %s13603_s28 = sld [smem:[#allocation59_spill]]  ;;  %s12791_s2 = smov [#allocation15]  }
  0x3f   :  { %s75_s13 = sshll.u32 %s13601_s0, 4  ;;  %s13604_s17 = sld [smem:[#allocation61_spill]]  ;;  %s76_s13 = int_to_ptr.hbm [resolvable:$true] %s75_s13 }
  0x40   :  { %s97_s10 = sshll.u32 %s13602_s6, 4  ;;  %s122_s23 = sshll.u32 %s12791_s2, 4  ;;  %s98_s10 = int_to_ptr.hbm [resolvable:$true] %s97_s10  ;;  %s123_s23 = int_to_ptr.vmem [resolvable:$true] %s122_s23 }
  0x41   :  { %80 = dma.hbm_to_vmem [thread:$0]  %s76_s13, 16, %s78_s27, [#allocation8]  }
  0x42   :  { %102 = dma.hbm_to_vmem [thread:$0]  %s98_s10, 16, %s100_s26, [#allocation11]  }
  0x43   :  { %s12792_s0 = smov [#allocation18]   ;;  %s167_s6 = sshll.u32 %s13564_s11, 4  ;;  %s168_s6 = int_to_ptr.hbm [resolvable:$true] %s167_s6 }
  0x44   :  { %s120_s29 = sshll.u32 %s13603_s28, 4  ;;  %s147_s13 = sshll.u32 %s12792_s0, 4  ;;  %s121_s29 = int_to_ptr.hbm [resolvable:$true] %s120_s29  ;;  %s148_s13 = int_to_ptr.vmem [resolvable:$true] %s147_s13 }
  0x45   :  { %s145_s30 = sshll.u32 %s13604_s17, 4  ;;  %s193_s27 = sshll.u32 %s13567_s14, 4  ;;  %s146_s30 = int_to_ptr.hbm [resolvable:$true] %s145_s30  ;;  %s194_s27 = int_to_ptr.hbm [resolvable:$true] %s193_s27 }
  0x46   :  { %128 = dma.hbm_to_vmem [thread:$0]  %s121_s29, 9216, %s123_s23, [#allocation14], %s12778_s24, %s12778_s24, %s12779_s9  }
  0x47   :  { %150 = dma.hbm_to_vmem [thread:$0]  %s146_s30, 16, %s148_s13, [#allocation17]  }
  0x48   :  { %s12793_s7 = smov [#allocation21]   ;;  %s12794_s15 = smov [#allocation24]  }
  0x49   :  { %s169_s26 = sshll.u32 %s12793_s7, 4  ;;  %s195_s24 = sshll.u32 %s12794_s15, 4  ;;  %s170_s26 = int_to_ptr.vmem [resolvable:$true] %s169_s26  ;;  %s196_s24 = int_to_ptr.vmem [resolvable:$true] %s195_s24 }
  0x4a   :  { %172 = dma.hbm_to_vmem [thread:$0]  %s168_s6, 16, %s170_s26, [#allocation20]  }
  0x4b   :  { %s215_s28 = sshll.u32 %s13569_s16, 4  ;;  %s239_s4 = sshll.u32 %s13572_s19, 4  ;;  %s216_s28 = int_to_ptr.hbm [resolvable:$true] %s215_s28  ;;  %s240_s4 = int_to_ptr.hbm [resolvable:$true] %s239_s4 }
  0x4c   :  { %198 = dma.hbm_to_vmem [thread:$0]  %s194_s27, 32, %s196_s24, [#allocation23]  }
  0x4d   :  { %s12795_s8 = smov [#allocation27]   ;;  %s12796_s17 = smov [#allocation30]  }
  0x4e   :  { %s217_s14 = sshll.u32 %s12795_s8, 4  ;;  %s241_s30 = sshll.u32 %s12796_s17, 4  ;;  %s218_s14 = int_to_ptr.vmem [resolvable:$true] %s217_s14  ;;  %s242_s30 = int_to_ptr.vmem [resolvable:$true] %s241_s30 }
  0x4f   :  { %220 = dma.hbm_to_vmem [thread:$0]  %s216_s28, 32, %s218_s14, [#allocation26]  }
  0x50   :  { %s261_s0 = sshll.u32 %s13574_s21, 4  ;;  %s272_s20 = sshll.u32 %s13575_s22, 4  ;;  %s262_s0 = int_to_ptr.hbm [resolvable:$true] %s261_s0  ;;  %s273_s20 = int_to_ptr.hbm [resolvable:$true] %s272_s20 }
  0x51   :  { %244 = dma.hbm_to_vmem [thread:$0]  %s240_s4, 64, %s242_s30, [#allocation29]  }
  0x52   :  { %s12797_s5 = smov [#allocation33]   ;;  %s12798_s6 = smov [#allocation34]  }
  0x53   :  { %s263_s19 = sshll.u32 %s12797_s5, 4  ;;  %s274_s10 = sshll.u32 %s12798_s6, 4  ;;  %s264_s19 = int_to_ptr.vmem [resolvable:$true] %s263_s19  ;;  %s275_s10 = int_to_ptr.vmem [resolvable:$true] %s274_s10 }
  0x54   :  { %266 = dma.hbm_to_vmem [thread:$0]  %s262_s0, 64, %s264_s19, [#allocation32]  }
  0x55   :  { %277 = dma.hbm_to_vmem [thread:$0]  %s273_s20, 64, %s275_s10, [#allocation35]  }
  0x56   :  { %12751 = dma.done.wait [#allocation6], 576  }
  0x57   :  { %12752 = vsyncadd [#allocation6], 4294966720 }
  0x58   :  { %12753 = dma.done.wait [#allocation8], 32  }
  0x59   :  { %12754 = vsyncadd [#allocation8], 4294967264 }
  0x5a   :  { %12755 = dma.done.wait [#allocation11], 32  }
  0x5b   :  { %12756 = vsyncadd [#allocation11], 4294967264 }
  0x5c   :  { %12757 = dma.done.wait [#allocation14], 11520  }
  0x5d   :  { %12758 = vsyncadd [#allocation14], 4294955776 }
  0x5e   :  { %12759 = dma.done.wait [#allocation17], 32  }
  0x5f   :  { %12760 = vsyncadd [#allocation17], 4294967264 }
  0x60   :  { %12761 = dma.done.wait [#allocation20], 32  }
  0x61   :  { %12762 = vsyncadd [#allocation20], 4294967264 }
  0x62   :  { %12763 = dma.done.wait [#allocation23], 18464  }
  0x63   :  { %12764 = vsyncadd [#allocation23], 4294948832 }
  0x64   :  { %12765 = dma.done.wait [#allocation26], 64  }
  0x65   :  { %12766 = vsyncadd [#allocation26], 4294967232 }
  0x66   :  { %12767 = dma.done.wait [#allocation29], 96  }
  0x67   :  { %12768 = vsyncadd [#allocation29], 4294967200 }
  0x68   :  { %12769 = dma.done.wait [#allocation32], 128  }
  0x69   :  { %12770 = vsyncadd [#allocation32], 4294967168 }
  0x6a   :  { %12771 = dma.done.wait [#allocation35], 64  }
  0x6b   :  { %12772 = vsyncadd [#allocation35], 4294967232  ;;  %v400_v1 = vld [vmem:[#allocation5 + $0x20] sm:$0xf]  ;;  %vm497_vm0 = vcmask 1043456   ;;  %v11355_v5 = vld [vmem:[#allocation5 + $0x18] sm:$0xff] }
  0x6c   :  { %v462_v2 = vunpack.c.l.b16 %v400_v1  ;;  %v11354_v6 = vld [vmem:[#allocation5 + $0x10] sm:$0xff]  ;;  %v11353_v7 = vld [vmem:[#allocation5 + $0x8] sm:$0xff]  ;;  %v11352_v8 = vld [vmem:[#allocation5] sm:$0xff]  ;;  %s13605_s1 = sld [smem:[#allocation52_spill]]  ;;  %vm472_vm1 = vcmask 588800   ;;  %s370_s21 = sshll.u32 %s13578_s25, 4  ;;  %s371_s21 = int_to_ptr.hbm [resolvable:$true] %s370_s21 }
  0x6d   :  { %v13044_v32 = vld [vmem:[#allocation7] ss:$0 sm:$0xff]  ;;  %v13047_v34 = vld [vmem:[#allocation9] ss:$0 sm:$0xff]  ;;  %v13049_v35 = vld [vmem:[#allocation10] ss:$0 sm:$0xff] }
  0x6e   :  { %v467_v3 = vpack.c.b16 %v462_v2, %v462_v2  ;;  %v13065_v52 = vld [vmem:[#allocation12] ss:$0 sm:$0xff]  ;;  %s12799_s22 = smov [#allocation2]  }
  0x70   :  { %v499_v4 = vsel %vm497_vm0, %v467_v3, 0 }
  0x71   :  { %504 = vmatpush.bf16.msra.mxu0 %v499_v4 }
  0x72   :  { %v11344_v9 = vld [vmem:[%s13605_s1] sm:$0xff]  ;;  %v11345_v10 = vld [vmem:[%s13605_s1 + $0x8] sm:$0xff]  ;;  %v11346_v11 = vld [vmem:[%s13605_s1 + $0x10] sm:$0xff] }
  0x73   :  { %v11347_v12 = vld [vmem:[%s13605_s1 + $0x18] sm:$0xff]  ;;  %v11348_v13 = vld [vmem:[%s13605_s1 + $0x20] sm:$0xff]  ;;  %v11349_v14 = vld [vmem:[%s13605_s1 + $0x28] sm:$0xff] }
  0x74   :  { %v11350_v15 = vld [vmem:[%s13605_s1 + $0x30] sm:$0xff]  ;;  %v11351_v16 = vld [vmem:[%s13605_s1 + $0x38] sm:$0xff]  ;;  %s372_s1 = sshll.u32 %s12799_s22, 4  ;;  %s373_s1 = int_to_ptr.vmem [resolvable:$true] %s372_s1 }
  0x75   :  { %505 = vmatpush.bf16.msra.mxu0 %v11355_v5  ;;  %375 = dma.hbm_to_vmem [thread:$0]  %s371_s21, 73728, %s373_s1, [#allocation3] }
  0x79   :  { %506 = vmatpush.bf16.msra.mxu0 %v11354_v6 }
  0x7d   :  { %507 = vmatpush.bf16.msra.mxu0 %v11353_v7 }
  0x81   :  { %508 = vmatpush.bf16.msra.mxu0 %v11352_v8 }
  0x84   :  { %7920 = vmatmul.msk.bf16.vlgmr.msra.gmra.mxu0 %vm472_vm1, %v11344_v9 }
  0x94   :  { %7921 = vmatmul.msk.bf16.gmra.mxu0 %vm472_vm1, %v11345_v10 }
  0xa4   :  { %7922 = vmatmul.msk.bf16.gmra.mxu0 %vm472_vm1, %v11346_v11 }
  0xb4   :  { %7923 = vmatmul.msk.bf16.gmra.mxu0 %vm472_vm1, %v11347_v12 }
  0xc4   :  { %7924 = vmatmul.msk.bf16.gmra.mxu0 %vm472_vm1, %v11348_v13 }
  0xd4   :  { %7925 = vmatmul.msk.bf16.gmra.mxu0 %vm472_vm1, %v11349_v14 }
  0xe4   :  { %7926 = vmatmul.msk.bf16.gmra.mxu0 %vm472_vm1, %v11350_v15 }
  0xf4   :  { %7927 = vmatmul.msk.bf16.gmra.mxu0 %vm472_vm1, %v11351_v16 }
 0x101   :  { %v13032_v17 = vpop.f32.mrf.mxu0 }
 0x109   :  { %v13034_v18 = vpop.f32.mrf.mxu0 }
 0x111   :  { %v13036_v19 = vpop.f32.mrf.mxu0 }
 0x119   :  { %v13038_v20 = vpop.f32.mrf.mxu0 }
 0x121   :  { %v13040_v21 = vpop.f32.mrf.mxu0 }
 0x129   :  { %v13042_v22 = vpop.f32.mrf.mxu0 }
 0x12a   :  { %v523_v12 = vadd.f32 %v13044_v32, %v13042_v22 }
 0x12c   :  { %vm555_vm12 = vcmp.gt.f32.partialorder %v523_v12, 0.0 }
 0x131   :  { %v525_v23 = vpop.f32.mrf.mxu0 }
 0x132   :  { %v526_v6 = vadd.f32 %v13044_v32, %v525_v23  ;;  %v521_v23 = vadd.f32 %v13044_v32, %v13040_v21 }
 0x134   :  { %vm556_vm11 = vcmp.gt.f32.partialorder %v526_v6, 0.0  ;;  %vm554_vm13 = vcmp.gt.f32.partialorder %v521_v23, 0.0 }
 0x139   :  { %v527_v24 = vpop.f32.mrf.mxu0 }
 0x13a   :  { %v528_v1 = vadd.f32 %v13044_v32, %v527_v24  ;;  %v576_v24 = vmul.f32 %v13047_v34, %v526_v6 }
 0x13c   :  { %v577_v13 = vmul.f32 %v13047_v34, %v528_v1  ;;  %v597_v14 = vmul.f32 %v13049_v35, %v528_v1  ;;  %vm557_vm10 = vcmp.gt.f32.partialorder %v528_v1, 0.0  ;;  %v11359_v1 = vld [vmem:[#allocation13 + $0x18] sm:$0xff] }
 0x141   :  { %v530_v25 = vpop.f32.mrf.mxu0 }
 0x142   :  { %v531_v59 = vadd.f32 %v13044_v32, %v530_v25  ;;  %v596_v25 = vmul.f32 %v13049_v35, %v526_v6  ;;  %v11379_v6 = vld [vmem:[#allocation15 + $0x28] sm:$0xff] }
 0x144   :  { %v578_v7 = vmul.f32 %v13047_v34, %v531_v59  ;;  %v598_v8 = vmul.f32 %v13049_v35, %v531_v59  ;;  %vm558_vm9 = vcmp.gt.f32.partialorder %v531_v59, 0.0 }
 0x149   :  { %v532_v26 = vpop.f32.mrf.mxu0 }
 0x14a   :  { %v533_v51 = vadd.f32 %v13044_v32, %v532_v26  ;;  %v614_v26 = vsel %vm558_vm9, %v578_v7, %v598_v8  ;;  %v11377_v7 = vld [vmem:[#allocation15 + $0x18] sm:$0xff]  ;;  %v11376_v8 = vld [vmem:[#allocation15 + $0x10] sm:$0xff] }
 0x14b   :  { %v634_v21 = vadd.f32 %v13065_v52, %v614_v26 }
 0x14c   :  { %v579_v2 = vmul.f32 %v13047_v34, %v533_v51  ;;  %v599_v3 = vmul.f32 %v13049_v35, %v533_v51  ;;  %vm559_vm8 = vcmp.gt.f32.partialorder %v533_v51, 0.0 }
 0x14e   :  { %v615_v15 = vsel %vm559_vm8, %v579_v2, %v599_v3  ;;  %v11360_v2 = vld [vmem:[#allocation13 + $0x20] sm:$0xff]  ;;  %v11381_v3 = vld [vmem:[#allocation15 + $0x38] sm:$0xff] }
 0x14f   :  { %v635_v22 = vadd.f32 %v13065_v52, %v615_v15  ;;  %1491 = vmatpush.bf16.msra.mxu2 %v11381_v3  ;;  %v11387_v15 = vld [vmem:[#allocation15 + $0x68] sm:$0xff]  ;;  %v11408_v3 = vld [vmem:[#allocation15 + $0x110] sm:$0xff] }
 0x151   :  { %v535_v27 = vpop.f32.mrf.mxu0 }
 0x152   :  { %v536_v45 = vadd.f32 %v13044_v32, %v535_v27 }
 0x154   :  { %v580_v60 = vmul.f32 %v13047_v34, %v536_v45  ;;  %v600_v61 = vmul.f32 %v13049_v35, %v536_v45  ;;  %vm560_vm7 = vcmp.gt.f32.partialorder %v536_v45, 0.0 }
 0x156   :  { %v616_v9 = vsel %vm560_vm7, %v580_v60, %v600_v61  ;;  %vm1728_vm7 = vcmask 261120  }
 0x157   :  { %v636_v16 = vadd.f32 %v13065_v52, %v616_v9  ;;  %v11362_v9 = vld [vmem:[#allocation13 + $0x30] sm:$0xff] }
 0x159   :  { %v537_v28 = vpop.f32.mrf.mxu0 }
 0x15a   :  { %v538_v41 = vadd.f32 %v13044_v32, %v537_v28  ;;  %v518_v28 = vadd.f32 %v13044_v32, %v13038_v20 }
 0x15c   :  { %v581_v53 = vmul.f32 %v13047_v34, %v538_v41  ;;  %v601_v54 = vmul.f32 %v13049_v35, %v538_v41  ;;  %vm561_vm6 = vcmp.gt.f32.partialorder %v538_v41, 0.0  ;;  %v573_v41 = vmul.f32 %v13047_v34, %v518_v28 }
 0x15d   :  { %vm553_vm14 = vcmp.gt.f32.partialorder %v518_v28, 0.0 }
 0x15e   :  { %v617_v4 = vsel %vm561_vm6, %v581_v53, %v601_v54 }
 0x15f   :  { %v637_v11 = vadd.f32 %v13065_v52, %v617_v4  ;;  %v11380_v4 = vld [vmem:[#allocation15 + $0x30] sm:$0xff] }
 0x160   :  { %1492 = vmatpush.bf16.msra.mxu2 %v11380_v4  ;;  %v11370_v4 = vld [vmem:[#allocation13 + $0x70] sm:$0xff] }
 0x161   :  { %v540_v29 = vpop.f32.mrf.mxu0  ;;  %v683_v27 = vpack.c.bf16 %v637_v11, %v636_v16  ;;  %v11374_v11 = vld [vmem:[#allocation15] sm:$0xff] }
 0x162   :  { %v541_v37 = vadd.f32 %v13044_v32, %v540_v29  ;;  %v575_v29 = vmul.f32 %v13047_v34, %v523_v12  ;;  %v11386_v16 = vld [vmem:[#allocation15 + $0x60] sm:$0xff] }
 0x164   :  { %v582_v46 = vmul.f32 %v13047_v34, %v541_v37  ;;  %v602_v47 = vmul.f32 %v13049_v35, %v541_v37  ;;  %vm562_vm5 = vcmp.gt.f32.partialorder %v541_v37, 0.0  ;;  %v594_v37 = vmul.f32 %v13049_v35, %v521_v23  ;;  %1493 = vmatpush.bf16.msra.mxu2 %v11379_v6  ;;  %v11407_v6 = vld [vmem:[#allocation15 + $0x108] sm:$0xff] }
 0x166   :  { %v618_v62 = vsel %vm562_vm5, %v582_v46, %v602_v47 }
 0x167   :  { %v638_v5 = vadd.f32 %v13065_v52, %v618_v62 }
 0x169   :  { %v542_v30 = vpop.f32.mrf.mxu0 }
 0x16a   :  { %v543_v36 = vadd.f32 %v13044_v32, %v542_v30  ;;  %v595_v30 = vmul.f32 %v13049_v35, %v523_v12  ;;  %v11389_v12 = vld [vmem:[#allocation15 + $0x78] sm:$0xff] }
 0x16b   :  { %1510 = vmatpush.bf16.msra.mxu3 %v11389_v12 }
 0x16c   :  { %v583_v42 = vmul.f32 %v13047_v34, %v543_v36  ;;  %v603_v43 = vmul.f32 %v13049_v35, %v543_v36  ;;  %vm563_vm3 = vcmp.gt.f32.partialorder %v543_v36, 0.0  ;;  %v574_v36 = vmul.f32 %v13047_v34, %v521_v23  ;;  %v11385_v23 = vld [vmem:[#allocation15 + $0x58] sm:$0xff] }
 0x16e   :  { %v619_v56 = vsel %vm563_vm3, %v583_v42, %v603_v43  ;;  %v593_v42 = vmul.f32 %v13049_v35, %v518_v28  ;;  %v611_v43 = vsel %vm555_vm12, %v575_v29, %v595_v30  ;;  %v610_v47 = vsel %vm554_vm13, %v574_v36, %v594_v37  ;;  %v11397_v30 = vld [vmem:[#allocation15 + $0xb8] sm:$0xff]  ;;  %v11395_v36 = vld [vmem:[#allocation15 + $0xa8] sm:$0xff]  ;;  %v11394_v37 = vld [vmem:[#allocation15 + $0xa0] sm:$0xff] }
 0x16f   :  { %v639_v0 = vadd.f32 %v13065_v52, %v619_v56  ;;  %v630_v53 = vadd.f32 %v13065_v52, %v610_v47  ;;  %v11404_v47 = vld [vmem:[#allocation15 + $0xf0] sm:$0xff] }
 0x170   :  { %v609_v51 = vsel %vm553_vm14, %v573_v41, %v593_v42  ;;  %v11366_v41 = vld [vmem:[#allocation13 + $0x50] sm:$0xff] }
 0x171   :  { %v545_v31 = vpop.f32.mrf.mxu0  ;;  %v684_v10 = vpack.c.bf16 %v639_v0, %v638_v5  ;;  %v629_v56 = vadd.f32 %v13065_v52, %v609_v51  ;;  %v11358_v0 = vld [vmem:[#allocation13 + $0x10] sm:$0xff]  ;;  %v11361_v5 = vld [vmem:[#allocation13 + $0x28] sm:$0xff] }
 0x172   :  { %v546_v33 = vadd.f32 %v13044_v32, %v545_v31  ;;  %v613_v31 = vsel %vm557_vm10, %v577_v13, %v597_v14  ;;  %v11388_v13 = vld [vmem:[#allocation15 + $0x70] sm:$0xff]  ;;  %v11363_v14 = vld [vmem:[#allocation13 + $0x38] sm:$0xff] }
 0x173   :  { %v633_v20 = vadd.f32 %v13065_v52, %v613_v31  ;;  %1511 = vmatpush.bf16.msra.mxu3 %v11388_v13  ;;  %v11396_v31 = vld [vmem:[#allocation15 + $0xb0] sm:$0xff]  ;;  %v11419_v13 = vld [vmem:[#allocation15 + $0x168] sm:$0xff] }
 0x174   :  { %v584_v38 = vmul.f32 %v13047_v34, %v546_v33  ;;  %v604_v39 = vmul.f32 %v13049_v35, %v546_v33  ;;  %vm564_vm2 = vcmp.gt.f32.partialorder %v546_v33, 0.0  ;;  %v516_v33 = vadd.f32 %v13044_v32, %v13036_v19 }
 0x176   :  { %v620_v50 = vsel %vm564_vm2, %v584_v38, %v604_v39  ;;  %v612_v38 = vsel %vm556_vm11, %v576_v24, %v596_v25  ;;  %v682_v39 = vpack.c.bf16 %v635_v22, %v634_v21  ;;  %v572_v45 = vmul.f32 %v13047_v34, %v516_v33  ;;  %v11384_v24 = vld [vmem:[#allocation15 + $0x50] sm:$0xff]  ;;  %v11382_v22 = vld [vmem:[#allocation15 + $0x40] sm:$0xff]  ;;  %v11365_v21 = vld [vmem:[#allocation13 + $0x48] sm:$0xff] }
 0x177   :  { %v640_v57 = vadd.f32 %v13065_v52, %v620_v50  ;;  %v632_v19 = vadd.f32 %v13065_v52, %v612_v38  ;;  %v592_v46 = vmul.f32 %v13049_v35, %v516_v33  ;;  %vm552_vm15 = vcmp.gt.f32.partialorder %v516_v33, 0.0  ;;  %1512 = vmatpush.bf16.msra.mxu3 %v11387_v15  ;;  %v11364_v25 = vld [vmem:[#allocation13 + $0x40] sm:$0xff] }
 0x179   :  { %v547_v40 = vpop.f32.mrf.mxu0  ;;  %v608_v54 = vsel %vm552_vm15, %v572_v45, %v592_v46  ;;  %v11405_v46 = vld [vmem:[#allocation15 + $0xf8] sm:$0xff] }
 0x17a   :  { %v548_v44 = vadd.f32 %v13044_v32, %v547_v40  ;;  %v513_v40 = vadd.f32 %v13044_v32, %v13034_v18  ;;  %v631_v18 = vadd.f32 %v13065_v52, %v611_v43  ;;  %v11391_v43 = vld [vmem:[#allocation15 + $0x88] sm:$0xff] }
 0x17b   :  { %1513 = vmatpush.bf16.msra.mxu3 %v11386_v16 }
 0x17c   :  { %vm565_vm4 = vcmp.gt.f32.partialorder %v548_v44, 0.0  ;;  %v585_v48 = vmul.f32 %v13047_v34, %v548_v44  ;;  %v605_v49 = vmul.f32 %v13049_v35, %v548_v44  ;;  %v511_v44 = vadd.f32 %v13044_v32, %v13032_v17 }
 0x17d   :  { %v591_v50 = vmul.f32 %v13049_v35, %v513_v40  ;;  %vm551_vm1 = vcmp.gt.f32.partialorder %v513_v40, 0.0 }
 0x17e   :  { %v621_v55 = vsel %vm565_vm4, %v585_v48, %v605_v49  ;;  %v681_v48 = vpack.c.bf16 %v633_v20, %v632_v19  ;;  %v571_v49 = vmul.f32 %v13047_v34, %v513_v40  ;;  %v570_v17 = vmul.f32 %v13047_v34, %v511_v44  ;;  %v11356_v34 = vld [vmem:[#allocation13] sm:$0xff]  ;;  %v11393_v20 = vld [vmem:[#allocation15 + $0x98] sm:$0xff]  ;;  %v11390_v19 = vld [vmem:[#allocation15 + $0x80] sm:$0xff] }
 0x17f   :  { %v641_v58 = vadd.f32 %v13065_v52, %v621_v55  ;;  %v590_v32 = vmul.f32 %v13049_v35, %v511_v44  ;;  %vm550_vm2 = vcmp.gt.f32.partialorder %v511_v44, 0.0  ;;  %v680_v55 = vpack.c.bf16 %v631_v18, %v630_v53  ;;  %v11357_v35 = vld [vmem:[#allocation13 + $0x8] sm:$0xff]  ;;  %1514 = vmatpush.bf16.msra.mxu3 %v11385_v23  ;;  %v11392_v40 = vld [vmem:[#allocation15 + $0x90] sm:$0xff] }
 0x180   :  { %v11417_v23 = vld [vmem:[#allocation15 + $0x158] sm:$0xff] }
 0x181   :  { %v685_v63 = vpack.c.bf16 %v641_v58, %v640_v57  ;;  %v607_v57 = vsel %vm551_vm1, %v571_v49, %v591_v50  ;;  %v628_v58 = vadd.f32 %v13065_v52, %v608_v54  ;;  %v606_v59 = vsel %vm550_vm2, %v570_v17, %v590_v32  ;;  %v11403_v49 = vld [vmem:[#allocation15 + $0xe8] sm:$0xff]  ;;  %v11402_v50 = vld [vmem:[#allocation15 + $0xe0] sm:$0xff]  ;;  %v11401_v17 = vld [vmem:[#allocation15 + $0xd8] sm:$0xff] }
 0x182   :  { %v627_v61 = vadd.f32 %v13065_v52, %v607_v57  ;;  %v626_v62 = vadd.f32 %v13065_v52, %v606_v59  ;;  %v11378_v52 = vld [vmem:[#allocation15 + $0x20] sm:$0xff]  ;;  %v11400_v32 = vld [vmem:[#allocation15 + $0xd0] sm:$0xff] }
 0x183   :  { %794 = vmatpush.bf16.msra.mxu1 %v685_v63  ;;  %v679_v60 = vpack.c.bf16 %v629_v56, %v628_v58  ;;  %1494 = vmatpush.bf16.msra.mxu2 %v11378_v52  ;;  %v11368_v54 = vld [vmem:[#allocation13 + $0x60] sm:$0xff]  ;;  %v11399_v56 = vld [vmem:[#allocation15 + $0xc8] sm:$0xff]  ;;  %v11398_v57 = vld [vmem:[#allocation15 + $0xc0] sm:$0xff] }
 0x184   :  { %v678_v63 = vpack.c.bf16 %v627_v61, %v626_v62  ;;  %1515 = vmatpush.bf16.msra.mxu3 %v11384_v24  ;;  %v11412_v61 = vld [vmem:[#allocation15 + $0x130] sm:$0xff]  ;;  %v11369_v62 = vld [vmem:[#allocation13 + $0x68] sm:$0xff]  ;;  %v11406_v52 = vld [vmem:[#allocation15 + $0x100] sm:$0xff] }
 0x185   :  { %v11416_v24 = vld [vmem:[#allocation15 + $0x150] sm:$0xff] }
 0x187   :  { %795 = vmatpush.bf16.msra.mxu1 %v684_v10  ;;  %1495 = vmatpush.bf16.msra.mxu2 %v11377_v7  ;;  %v11375_v10 = vld [vmem:[#allocation15 + $0x8] sm:$0xff] }
 0x18b   :  { %796 = vmatpush.bf16.msra.mxu1 %v683_v27  ;;  %1496 = vmatpush.bf16.msra.mxu2 %v11376_v8  ;;  %v11383_v27 = vld [vmem:[#allocation15 + $0x48] sm:$0xff] }
 0x18c   :  { %1516 = vmatpush.bf16.msra.mxu3 %v11383_v27  ;;  %v11415_v27 = vld [vmem:[#allocation15 + $0x148] sm:$0xff] }
 0x18f   :  { %797 = vmatpush.bf16.msra.mxu1 %v682_v39  ;;  %1497 = vmatpush.bf16.msra.mxu2 %v11375_v10  ;;  %v11420_v10 = vld [vmem:[#allocation15 + $0x170] sm:$0xff] }
 0x190   :  { %1517 = vmatpush.bf16.msra.mxu3 %v11382_v22  ;;  %v11445_v22 = vld [vmem:[#allocation15 + $0x238] sm:$0xff] }
 0x191   :  { %1643 = vmatpush.bf16.msrb.mxu0 %v11445_v22 }
 0x193   :  { %798 = vmatpush.bf16.msra.mxu1 %v681_v48  ;;  %1498 = vmatpush.bf16.msra.mxu2 %v11374_v11  ;;  %v11367_v48 = vld [vmem:[#allocation13 + $0x58] sm:$0xff] }
 0x194   :  { %1548 = vmatpush.bf16.msrb.mxu3 %v11405_v46  ;;  %v11371_v11 = vld [vmem:[#allocation13 + $0x78] sm:$0xff]  ;;  %v11422_v46 = vld [vmem:[#allocation15 + $0x180] sm:$0xff] }
 0x197   :  { %799 = vmatpush.bf16.msra.mxu1 %v680_v55  ;;  %1529 = vmatpush.bf16.msrb.mxu2 %v11397_v30 }
 0x198   :  { %1549 = vmatpush.bf16.msrb.mxu3 %v11404_v47 }
 0x19b   :  { %800 = vmatpush.bf16.msra.mxu1 %v679_v60  ;;  %1530 = vmatpush.bf16.msrb.mxu2 %v11396_v31  ;;  %v11413_v60 = vld [vmem:[#allocation15 + $0x138] sm:$0xff] }
 0x19c   :  { %1550 = vmatpush.bf16.msrb.mxu3 %v11403_v49  ;;  %v11429_v31 = vld [vmem:[#allocation15 + $0x1b8] sm:$0xff] }
 0x19d   :  { %v11437_v49 = vld [vmem:[#allocation15 + $0x1f8] sm:$0xff] }
 0x19f   :  { %801 = vmatpush.bf16.msra.mxu1 %v678_v63  ;;  %1531 = vmatpush.bf16.msrb.mxu2 %v11395_v36 }
 0x1a0   :  { %1551 = vmatpush.bf16.msrb.mxu3 %v11402_v50 }
 0x1a2   :  { %802 = vmatmul.bf16.vlgmr.msra.gmra.mxu1 %v11356_v34  ;;  %v11411_v34 = vld [vmem:[#allocation15 + $0x128] sm:$0xff] }
 0x1a3   :  { %1532 = vmatpush.bf16.msrb.mxu2 %v11394_v37  ;;  %v11427_v37 = vld [vmem:[#allocation15 + $0x1a8] sm:$0xff] }
 0x1a4   :  { %1552 = vmatpush.bf16.msrb.mxu3 %v11401_v17 }
 0x1a7   :  { %1533 = vmatpush.bf16.msrb.mxu2 %v11393_v20 }
 0x1a8   :  { %1553 = vmatpush.bf16.msrb.mxu3 %v11400_v32 }
 0x1ab   :  { %1534 = vmatpush.bf16.msrb.mxu2 %v11392_v40 }
 0x1ac   :  { %1554 = vmatpush.bf16.msrb.mxu3 %v11399_v56  ;;  %v11442_v56 = vld [vmem:[#allocation15 + $0x220] sm:$0xff] }
 0x1af   :  { %1535 = vmatpush.bf16.msrb.mxu2 %v11391_v43 }
 0x1b0   :  { %1555 = vmatpush.bf16.msrb.mxu3 %v11398_v57 }
 0x1b2   :  { %807 = vmatmul.bf16.gmra.mxu1 %v11357_v35  ;;  %v11410_v35 = vld [vmem:[#allocation15 + $0x120] sm:$0xff] }
 0x1b3   :  { %1536 = vmatpush.bf16.msrb.mxu2 %v11390_v19  ;;  %v11423_v19 = vld [vmem:[#allocation15 + $0x188] sm:$0xff] }
 0x1c2   :  { %812 = vmatmul.bf16.gmra.mxu1 %v11358_v0 }
 0x1d2   :  { %817 = vmatmul.bf16.gmra.mxu1 %v11359_v1 }
 0x1e2   :  { %822 = vmatmul.bf16.gmra.mxu1 %v11360_v2  ;;  %v11409_v2 = vld [vmem:[#allocation15 + $0x118] sm:$0xff] }
 0x1f2   :  { %827 = vmatmul.bf16.gmra.mxu1 %v11361_v5 }
 0x202   :  { %832 = vmatmul.bf16.gmra.mxu1 %v11362_v9  ;;  %v11421_v9 = vld [vmem:[#allocation15 + $0x178] sm:$0xff] }
 0x212   :  { %837 = vmatmul.bf16.gmra.mxu1 %v11363_v14  ;;  %v11418_v14 = vld [vmem:[#allocation15 + $0x160] sm:$0xff] }
 0x21f   :  { %v803_v26 = vpop.f32.mrf.mxu1 }
 0x222   :  { %842 = vmatmul.bf16.gmra.mxu1 %v11364_v25  ;;  %v11372_v25 = vld [vmem:[#allocation13 + $0x80] sm:$0xff] }
 0x227   :  { %v805_v28 = vpop.f32.mrf.mxu1 }
 0x228   :  { %v893_v29 = vpack.c.bf16 %v805_v28, %v803_v26  ;;  %v11414_v28 = vld [vmem:[#allocation15 + $0x140] sm:$0xff] }
 0x22a   :  { %1499 = vmatmul.bf16.vlgmr.msra.gmra.mxu2 %v893_v29 }
 0x22b   :  { %1567 = vmatpush.bf16.msra.mxu2 %v11413_v60 }
 0x22f   :  { %v808_v33 = vpop.f32.mrf.mxu1  ;;  %1568 = vmatpush.bf16.msra.mxu2 %v11412_v61 }
 0x232   :  { %847 = vmatmul.bf16.gmra.mxu1 %v11365_v21  ;;  %v11428_v21 = vld [vmem:[#allocation15 + $0x1b0] sm:$0xff] }
 0x233   :  { %1569 = vmatpush.bf16.msra.mxu2 %v11411_v34 }
 0x237   :  { %v810_v38 = vpop.f32.mrf.mxu1  ;;  %1570 = vmatpush.bf16.msra.mxu2 %v11410_v35  ;;  %v11432_v35 = vld [vmem:[#allocation15 + $0x1d0] sm:$0xff] }
 0x238   :  { %v902_v39 = vpack.c.bf16 %v810_v38, %v808_v33  ;;  %v11373_v33 = vld [vmem:[#allocation13 + $0x88] sm:$0xff]  ;;  %v11444_v38 = vld [vmem:[#allocation15 + $0x230] sm:$0xff] }
 0x239   :  { %1644 = vmatpush.bf16.msrb.mxu0 %v11444_v38 }
 0x23a   :  { %1504 = vmatmul.bf16.gmra.mxu2 %v902_v39  ;;  %v11426_v39 = vld [vmem:[#allocation15 + $0x1a0] sm:$0xff] }
 0x23b   :  { %1571 = vmatpush.bf16.msra.mxu2 %v11409_v2  ;;  %v11431_v2 = vld [vmem:[#allocation15 + $0x1c8] sm:$0xff] }
 0x23f   :  { %v813_v42 = vpop.f32.mrf.mxu1  ;;  %1572 = vmatpush.bf16.msra.mxu2 %v11408_v3  ;;  %v11441_v3 = vld [vmem:[#allocation15 + $0x218] sm:$0xff] }
 0x242   :  { %852 = vmatmul.bf16.gmra.mxu1 %v11366_v41  ;;  %v11425_v41 = vld [vmem:[#allocation15 + $0x198] sm:$0xff] }
 0x243   :  { %1573 = vmatpush.bf16.msra.mxu2 %v11407_v6 }
 0x247   :  { %v815_v44 = vpop.f32.mrf.mxu1  ;;  %1574 = vmatpush.bf16.msra.mxu2 %v11406_v52 }
 0x248   :  { %v894_v45 = vpack.c.bf16 %v815_v44, %v813_v42  ;;  %v11424_v42 = vld [vmem:[#allocation15 + $0x190] sm:$0xff]  ;;  %v11443_v44 = vld [vmem:[#allocation15 + $0x228] sm:$0xff] }
 0x249   :  { %1645 = vmatpush.bf16.msrb.mxu0 %v11443_v44 }
 0x24a   :  { %1518 = vmatmul.bf16.vlgmr.msra.gmra.mxu3 %v894_v45 }
 0x24b   :  { %1586 = vmatpush.bf16.msra.mxu3 %v11421_v9 }
 0x24d   :  { %1646 = vmatpush.bf16.msrb.mxu0 %v11442_v56 }
 0x24f   :  { %v818_v18 = vpop.f32.mrf.mxu1  ;;  %1587 = vmatpush.bf16.msra.mxu3 %v11420_v10  ;;  %v11440_v10 = vld [vmem:[#allocation15 + $0x210] sm:$0xff] }
 0x251   :  { %1647 = vmatpush.bf16.msrb.mxu0 %v11441_v3  ;;  %v11526_v3 = vld [vmem:[#allocation22 + $0x264] sm:$0xf] }
 0x252   :  { %857 = vmatmul.bf16.gmra.mxu1 %v11367_v48  ;;  %v13122_v48 = vld [vmem:[#allocation16] ss:$0 sm:$0xff] }
 0x253   :  { %1588 = vmatpush.bf16.msra.mxu3 %v11419_v13 }
 0x255   :  { %1648 = vmatpush.bf16.msrb.mxu0 %v11440_v10 }
 0x257   :  { %v820_v51 = vpop.f32.mrf.mxu1  ;;  %1589 = vmatpush.bf16.msra.mxu3 %v11418_v14 }
 0x258   :  { %v903_v53 = vpack.c.bf16 %v820_v51, %v818_v18 }
 0x25a   :  { %1523 = vmatmul.bf16.gmra.mxu3 %v903_v53  ;;  %v11436_v53 = vld [vmem:[#allocation15 + $0x1f0] sm:$0xff] }
 0x25b   :  { %1590 = vmatpush.bf16.msra.mxu3 %v11417_v23  ;;  %v11439_v23 = vld [vmem:[#allocation15 + $0x208] sm:$0xff] }
 0x25c   :  { %1649 = vmatpush.bf16.msrb.mxu0 %v11439_v23 }
 0x25f   :  { %v823_v55 = vpop.f32.mrf.mxu1  ;;  %1591 = vmatpush.bf16.msra.mxu3 %v11416_v24 }
 0x262   :  { %862 = vmatmul.bf16.gmra.mxu1 %v11368_v54 }
 0x263   :  { %1592 = vmatpush.bf16.msra.mxu3 %v11415_v27 }
 0x267   :  { %v825_v58 = vpop.f32.mrf.mxu1  ;;  %1593 = vmatpush.bf16.msra.mxu3 %v11414_v28 }
 0x268   :  { %v895_v59 = vpack.c.bf16 %v825_v58, %v823_v55  ;;  %v11435_v55 = vld [vmem:[#allocation15 + $0x1e8] sm:$0xff]  ;;  %v11434_v58 = vld [vmem:[#allocation15 + $0x1e0] sm:$0xff] }
 0x26a   :  { %1537 = vmatmul.bf16.vlgmr.msrb.gmra.mxu2 %v895_v59 }
 0x26b   :  { %1605 = vmatpush.bf16.msrb.mxu2 %v11429_v31 }
 0x26f   :  { %v828_v63 = vpop.f32.mrf.mxu1  ;;  %1606 = vmatpush.bf16.msrb.mxu2 %v11428_v21 }
 0x272   :  { %867 = vmatmul.bf16.gmra.mxu1 %v11369_v62  ;;  %v11433_v62 = vld [vmem:[#allocation15 + $0x1d8] sm:$0xff] }
 0x273   :  { %1607 = vmatpush.bf16.msrb.mxu2 %v11427_v37 }
 0x277   :  { %v830_v0 = vpop.f32.mrf.mxu1  ;;  %1608 = vmatpush.bf16.msrb.mxu2 %v11426_v39 }
 0x278   :  { %v904_v1 = vpack.c.bf16 %v830_v0, %v828_v63 }
 0x27a   :  { %1542 = vmatmul.bf16.gmra.mxu2 %v904_v1 }
 0x27b   :  { %1609 = vmatpush.bf16.msrb.mxu2 %v11425_v41 }
 0x27f   :  { %v833_v5 = vpop.f32.mrf.mxu1  ;;  %1610 = vmatpush.bf16.msrb.mxu2 %v11424_v42 }
 0x282   :  { %872 = vmatmul.bf16.gmra.mxu1 %v11370_v4 }
 0x283   :  { %1611 = vmatpush.bf16.msrb.mxu2 %v11423_v19 }
 0x287   :  { %v835_v7 = vpop.f32.mrf.mxu1  ;;  %1612 = vmatpush.bf16.msrb.mxu2 %v11422_v46 }
 0x288   :  { %v896_v8 = vpack.c.bf16 %v835_v7, %v833_v5  ;;  %v11430_v5 = vld [vmem:[#allocation15 + $0x1c0] sm:$0xff] }
 0x28a   :  { %1556 = vmatmul.bf16.vlgmr.msrb.gmra.mxu3 %v896_v8 }
 0x28b   :  { %1624 = vmatpush.bf16.msrb.mxu3 %v11437_v49  ;;  %v8625_v49 = vld [vmem:[#allocation22 + $0x278] sm:$0xf0] }
 0x28f   :  { %v838_v12 = vpop.f32.mrf.mxu1  ;;  %1625 = vmatpush.bf16.msrb.mxu3 %v11436_v53 }
 0x292   :  { %877 = vmatmul.bf16.gmra.mxu1 %v11371_v11 }
 0x293   :  { %1626 = vmatpush.bf16.msrb.mxu3 %v11435_v55 }
 0x297   :  { %v840_v15 = vpop.f32.mrf.mxu1  ;;  %1627 = vmatpush.bf16.msrb.mxu3 %v11434_v58 }
 0x298   :  { %v905_v16 = vpack.c.bf16 %v840_v15, %v838_v12 }
 0x29a   :  { %1561 = vmatmul.bf16.gmra.mxu3 %v905_v16 }
 0x29b   :  { %1628 = vmatpush.bf16.msrb.mxu3 %v11433_v62 }
 0x29f   :  { %v843_v26 = vpop.f32.mrf.mxu1  ;;  %1629 = vmatpush.bf16.msrb.mxu3 %v11432_v35 }
 0x2a2   :  { %882 = vmatmul.bf16.gmra.mxu1 %v11372_v25  ;;  %v11438_v25 = vld [vmem:[#allocation15 + $0x200] sm:$0xff] }
 0x2a3   :  { %1630 = vmatpush.bf16.msrb.mxu3 %v11431_v2  ;;  %1650 = vmatpush.bf16.msrb.mxu0 %v11438_v25 }
 0x2a7   :  { %v845_v29 = vpop.f32.mrf.mxu1  ;;  %1631 = vmatpush.bf16.msrb.mxu3 %v11430_v5  ;;  %v8617_v5 = vld [vmem:[#allocation22 + $0x268] sm:$0xf0] }
 0x2a8   :  { %v897_v30 = vpack.c.bf16 %v845_v29, %v843_v26 }
 0x2aa   :  { %1575 = vmatmul.bf16.vlgmr.msra.gmra.mxu2 %v897_v30 }
 0x2ad   :  { %v1500_v45 = vpop.f32.mrf.mxu2 }
 0x2ae   :  { %v1501_v50 = vadd.f32 %v13122_v48, %v1500_v45 }
 0x2af   :  { %v848_v36 = vpop.f32.mrf.mxu1 }
 0x2b2   :  { %887 = vmatmul.bf16.gmra.mxu1 %v11373_v33 }
 0x2b5   :  { %v13125_v32 = vpop.f32.mrf.mxu2 }
 0x2b6   :  { %v1503_v56 = vadd.f32 %v13122_v48, %v13125_v32 }
 0x2b7   :  { %v850_v20 = vpop.f32.mrf.mxu1 }
 0x2b8   :  { %v906_v40 = vpack.c.bf16 %v850_v20, %v848_v36 }
 0x2ba   :  { %1580 = vmatmul.bf16.gmra.mxu2 %v906_v40 }
 0x2bd   :  { %v1505_v61 = vpop.f32.mrf.mxu2 }
 0x2be   :  { %v1506_v63 = vadd.f32 %v13122_v48, %v1505_v61 }
 0x2bf   :  { %v853_v43 = vpop.f32.mrf.mxu1 }
 0x2c5   :  { %v13130_v4 = vpop.f32.mrf.mxu2 }
 0x2c7   :  { %v855_v47 = vpop.f32.mrf.mxu1 }
 0x2c8   :  { %v898_v18 = vpack.c.bf16 %v855_v47, %v853_v43 }
 0x2ca   :  { %1594 = vmatmul.bf16.vlgmr.msra.gmra.mxu3 %v898_v18  ;;  %v11528_v18 = vld [vmem:[#allocation22 + $0x274] sm:$0xf] }
 0x2cd   :  { %v1519_v51 = vpop.f32.mrf.mxu3 }
 0x2ce   :  { %v1520_v17 = vadd.f32 %v1519_v51, %v1501_v50  ;;  %v8628_v51 = vor.u32 %v11528_v18, %v8625_v49  ;;  %v11524_v18 = vld [vmem:[#allocation22 + $0x254] sm:$0xf]  ;;  %v8609_v49 = vld [vmem:[#allocation22 + $0x258] sm:$0xf0] }
 0x2cf   :  { %v858_v54 = vpop.f32.mrf.mxu1 }
 0x2d0   :  { %2825 = vmatpush.bf16.msrb.mxu1 %v8628_v51 }
 0x2d5   :  { %v13127_v57 = vpop.f32.mrf.mxu3 }
 0x2d6   :  { %v1522_v58 = vadd.f32 %v13127_v57, %v1503_v56 }
 0x2d7   :  { %v860_v59 = vpop.f32.mrf.mxu1 }
 0x2d8   :  { %v907_v60 = vpack.c.bf16 %v860_v59, %v858_v54 }
 0x2da   :  { %1599 = vmatmul.bf16.gmra.mxu3 %v907_v60 }
 0x2dd   :  { %v1524_v34 = vpop.f32.mrf.mxu3 }
 0x2de   :  { %v1525_v0 = vadd.f32 %v1524_v34, %v1506_v63 }
 0x2df   :  { %v863_v1 = vpop.f32.mrf.mxu1 }
 0x2e5   :  { %v13132_v24 = vpop.f32.mrf.mxu3 }
 0x2e7   :  { %v865_v6 = vpop.f32.mrf.mxu1 }
 0x2e8   :  { %v899_v52 = vpack.c.bf16 %v865_v6, %v863_v1 }
 0x2ea   :  { %1613 = vmatmul.bf16.vlgmr.msrb.gmra.mxu2 %v899_v52 }
 0x2ed   :  { %v1538_v7 = vpop.f32.mrf.mxu2 }
 0x2ee   :  { %v1539_v8 = vadd.f32 %v1538_v7, %v1520_v17  ;;  %v12236_v7 = vld [vmem:[#allocation18] ss:$0 sm:$0xff] }
 0x2ef   :  { %v868_v9 = vpop.f32.mrf.mxu1 }
 0x2f5   :  { %v1540_v11 = vpop.f32.mrf.mxu2 }
 0x2f6   :  { %v1541_v60 = vadd.f32 %v1540_v11, %v1522_v58  ;;  %v11446_v58 = vld [vmem:[%s13565_s12] sm:$0xff] }
 0x2f7   :  { %v870_v12 = vpop.f32.mrf.mxu1 }
 0x2f8   :  { %v908_v13 = vpack.c.bf16 %v870_v12, %v868_v9  ;;  %v8620_v9 = vor.u32 %v11526_v3, %v8617_v5  ;;  %v1508_v12 = vadd.f32 %v13122_v48, %v13130_v4  ;;  %v8431_v3 = vld [vmem:[#allocation22 + $0xf0] sm:$0xf]  ;;  %v11481_v5 = vld [vmem:[#allocation22 + $0xf4] sm:$0xf0] }
 0x2fa   :  { %1618 = vmatmul.bf16.gmra.mxu2 %v908_v13  ;;  %2826 = vmatpush.bf16.msrb.mxu1 %v8620_v9  ;;  %v8351_v9 = vld [vmem:[#allocation22 + $0x50] sm:$0xf] }
 0x2fd   :  { %v1543_v14 = vpop.f32.mrf.mxu2 }
 0x2fe   :  { %v1544_v15 = vadd.f32 %v1543_v14, %v1525_v0 }
 0x2ff   :  { %v873_v16 = vpop.f32.mrf.mxu1 }
 0x305   :  { %v1545_v42 = vpop.f32.mrf.mxu2 }
 0x307   :  { %v875_v26 = vpop.f32.mrf.mxu1 }
 0x308   :  { %v900_v27 = vpack.c.bf16 %v875_v26, %v873_v16  ;;  %v1527_v16 = vadd.f32 %v13132_v24, %v1508_v12  ;;  %v12238_v26 = vld [vmem:[#allocation21] ss:$0 sm:$0xff] }
 0x30a   :  { %1632 = vmatmul.bf16.vlgmr.msrb.gmra.mxu3 %v900_v27 }
 0x30d   :  { %v1557_v22 = vpop.f32.mrf.mxu3 }
 0x30e   :  { %v1558_v28 = vadd.f32 %v1557_v22, %v1539_v8  ;;  %v12237_v8 = vld [vmem:[#allocation19] ss:$0 sm:$0xff] }
 0x30f   :  { %v878_v29 = vpop.f32.mrf.mxu1 }
 0x315   :  { %v1559_v30 = vpop.f32.mrf.mxu3 }
 0x316   :  { %v1560_v63 = vadd.f32 %v1559_v30, %v1541_v60  ;;  %v11448_v60 = vld [vmem:[%s13565_s12 + $0x10] sm:$0xff] }
 0x317   :  { %v880_v31 = vpop.f32.mrf.mxu1 }
 0x318   :  { %v909_v21 = vpack.c.bf16 %v880_v31, %v878_v29  ;;  %v1546_v29 = vadd.f32 %v1545_v42, %v1527_v16  ;;  %v8593_v16 = vld [vmem:[#allocation22 + $0x238] sm:$0xf0] }
 0x31a   :  { %1637 = vmatmul.bf16.gmra.mxu3 %v909_v21 }
 0x31d   :  { %v1562_v33 = vpop.f32.mrf.mxu3 }
 0x31e   :  { %v1563_v36 = vadd.f32 %v1562_v33, %v1544_v15 }
 0x31f   :  { %v883_v37 = vpop.f32.mrf.mxu1 }
 0x325   :  { %v1564_v43 = vpop.f32.mrf.mxu3 }
 0x327   :  { %v885_v38 = vpop.f32.mrf.mxu1 }
 0x328   :  { %v901_v39 = vpack.c.bf16 %v885_v38, %v883_v37  ;;  %v1565_v37 = vadd.f32 %v1564_v43, %v1546_v29  ;;  %v8335_v29 = vld [vmem:[#allocation22 + $0x30] sm:$0xf] }
 0x32a   :  { %1651 = vmatmul.bf16.vlgmr.msrb.gmra.mxu0 %v901_v39 }
 0x32d   :  { %v1576_v19 = vpop.f32.mrf.mxu2 }
 0x32e   :  { %v1577_v59 = vadd.f32 %v1576_v19, %v1558_v28 }
 0x32f   :  { %v888_v20 = vpop.f32.mrf.mxu1 }
 0x335   :  { %v1578_v45 = vpop.f32.mrf.mxu2 }
 0x336   :  { %v1579_v1 = vadd.f32 %v1578_v45, %v1560_v63  ;;  %v8367_v63 = vld [vmem:[#allocation22 + $0x70] sm:$0xf] }
 0x337   :  { %v890_v40 = vpop.f32.mrf.mxu1 }
 0x338   :  { %v910_v41 = vpack.c.bf16 %v890_v40, %v888_v20 }
 0x33a   :  { %1656 = vmatmul.bf16.gmra.mxu0 %v910_v41 }
 0x33d   :  { %v1581_v47 = vpop.f32.mrf.mxu2 }
 0x33e   :  { %v1582_v23 = vadd.f32 %v1581_v47, %v1563_v36 }
 0x345   :  { %v1583_v53 = vpop.f32.mrf.mxu2 }
 0x346   :  { %v1584_v39 = vadd.f32 %v1583_v53, %v1565_v37  ;;  %v11473_v37 = vld [vmem:[#allocation22 + $0xb4] sm:$0xf0] }
 0x34d   :  { %v1595_v44 = vpop.f32.mrf.mxu3 }
 0x34e   :  { %v1596_v61 = vadd.f32 %v1595_v44, %v1577_v59  ;;  %v11447_v59 = vld [vmem:[%s13565_s12 + $0x8] sm:$0xff] }
 0x355   :  { %v1597_v46 = vpop.f32.mrf.mxu3 }
 0x356   :  { %v1598_v6 = vadd.f32 %v1597_v46, %v1579_v1  ;;  %v11463_v1 = vld [vmem:[#allocation22 + $0x64] sm:$0xf0] }
 0x35d   :  { %v1600_v50 = vpop.f32.mrf.mxu3 }
 0x35e   :  { %v1601_v30 = vadd.f32 %v1600_v50, %v1582_v23  ;;  %v8612_v50 = vor.u32 %v11524_v18, %v8609_v49  ;;  %v8319_v18 = vld [vmem:[#allocation22 + $0x10] sm:$0xf]  ;;  %v11453_v49 = vld [vmem:[#allocation22 + $0x14] sm:$0xf0] }
 0x360   :  { %2827 = vmatpush.bf16.msrb.mxu1 %v8612_v50 }
 0x365   :  { %v1602_v17 = vpop.f32.mrf.mxu3 }
 0x366   :  { %v1603_v24 = vadd.f32 %v1602_v17, %v1584_v39  ;;  %v8679_v39 = vld [vmem:[#allocation22 + $0x2e0] sm:$0xf] }
 0x36d   :  { %v1614_v54 = vpop.f32.mrf.mxu2 }
 0x36e   :  { %v1615_v34 = vadd.f32 %v1614_v54, %v1596_v61  ;;  %v11522_v61 = vld [vmem:[#allocation22 + $0x244] sm:$0xf] }
 0x375   :  { %v1616_v62 = vpop.f32.mrf.mxu2 }
 0x376   :  { %v1617_v32 = vadd.f32 %v1616_v62, %v1598_v6  ;;  %v8601_v62 = vld [vmem:[#allocation22 + $0x248] sm:$0xf0] }
 0x37d   :  { %v1619_v13 = vpop.f32.mrf.mxu2 }
 0x37e   :  { %v1620_v48 = vadd.f32 %v1619_v13, %v1601_v30  ;;  %v11520_v13 = vld [vmem:[#allocation22 + $0x234] sm:$0xf]  ;;  %v11457_v30 = vld [vmem:[#allocation22 + $0x34] sm:$0xf0] }
 0x385   :  { %v1621_v40 = vpop.f32.mrf.mxu2 }
 0x386   :  { %v1622_v19 = vadd.f32 %v1621_v40, %v1603_v24  ;;  %v11455_v40 = vld [vmem:[#allocation22 + $0x24] sm:$0xf0] }
 0x387   :  { %v11543_v24 = vld [vmem:[#allocation22 + $0x2e4] sm:$0xf0] }
 0x38d   :  { %v1633_v55 = vpop.f32.mrf.mxu3 }
 0x38e   :  { %v1634_v2 = vadd.f32 %v1633_v55, %v1615_v34  ;;  %v8604_v34 = vor.u32 %v11522_v61, %v8601_v62  ;;  %v11497_v61 = vld [vmem:[#allocation22 + $0x174] sm:$0xf0] }
 0x390   :  { %2828 = vmatpush.bf16.msrb.mxu1 %v8604_v34  ;;  %v8375_v34 = vld [vmem:[#allocation22 + $0x80] sm:$0xf] }
 0x395   :  { %v1635_v35 = vpop.f32.mrf.mxu3 }
 0x396   :  { %v1636_v57 = vadd.f32 %v1635_v35, %v1617_v32  ;;  %v11465_v35 = vld [vmem:[#allocation22 + $0x74] sm:$0xf0] }
 0x397   :  { %v11461_v32 = vld [vmem:[#allocation22 + $0x54] sm:$0xf0] }
 0x398   :  { %v8352_v12 = vor.u32 %v11461_v32, %v8351_v9  ;;  %v8551_v9 = vld [vmem:[#allocation22 + $0x1e0] sm:$0xf]  ;;  %v11511_v32 = vld [vmem:[#allocation22 + $0x1e4] sm:$0xf0] }
 0x39d   :  { %v1638_v25 = vpop.f32.mrf.mxu3 }
 0x39e   :  { %v1639_v20 = vadd.f32 %v1638_v25, %v1620_v48  ;;  %v8596_v25 = vor.u32 %v11520_v13, %v8593_v16  ;;  %v11545_v48 = vld [vmem:[#allocation22 + $0x2f4] sm:$0xf0]  ;;  %v8543_v13 = vld [vmem:[#allocation22 + $0x1d0] sm:$0xf]  ;;  %v8471_v16 = vld [vmem:[#allocation22 + $0x140] sm:$0xf] }
 0x3a0   :  { %2829 = vmatpush.bf16.msrb.mxu1 %v8596_v25 }
 0x3a5   :  { %v1640_v41 = vpop.f32.mrf.mxu3 }
 0x3a6   :  { %v1641_v44 = vadd.f32 %v1640_v41, %v1622_v19  ;;  %v8391_v41 = vld [vmem:[#allocation22 + $0xa0] sm:$0xf]  ;;  %v8680_v19 = vor.u32 %v11543_v24, %v8679_v39  ;;  %v8447_v39 = vld [vmem:[#allocation22 + $0x110] sm:$0xf] }
 0x3a7   :  { %v1652_v0 = vpop.f32.mrf.mxu0  ;;  %v8655_v24 = vld [vmem:[#allocation22 + $0x2b0] sm:$0xf] }
 0x3a8   :  { %v1653_v52 = vadd.f32 %v1652_v0, %v1634_v2  ;;  %v8359_v0 = vld [vmem:[#allocation22 + $0x60] sm:$0xf]  ;;  %v8368_v2 = vor.u32 %v11465_v35, %v8367_v63  ;;  %v11467_v35 = vld [vmem:[#allocation22 + $0x84] sm:$0xf0] }
 0x3a9   :  { %v8360_v6 = vor.u32 %v11463_v1, %v8359_v0 }
 0x3aa   :  { %v1670_v10 = vmul.f32 %v12236_v7, %v1653_v52  ;;  %v1678_v11 = vmul.f32 %v12237_v8, %v1653_v52  ;;  %vm1662_vm3 = vcmp.gt.f32.partialorder %v1653_v52, 0.0  ;;  %2656 = vmatpush.bf16.msra.mxu3 %v8368_v2  ;;  %v8432_v52 = vor.u32 %v11481_v5, %v8431_v3  ;;  %v8559_v2 = vld [vmem:[#allocation22 + $0x1f0] sm:$0xf]  ;;  %v11513_v3 = vld [vmem:[#allocation22 + $0x1f4] sm:$0xf0] }
 0x3ac   :  { %v1682_v28 = vsel %vm1662_vm3, %v1670_v10, %v1678_v11  ;;  %2669 = vmatpush.bf16.msra.mxu0 %v8432_v52  ;;  %v8415_v10 = vld [vmem:[#allocation22 + $0xd0] sm:$0xf]  ;;  %v11477_v11 = vld [vmem:[#allocation22 + $0xd4] sm:$0xf0]  ;;  %v11495_v52 = vld [vmem:[#allocation22 + $0x164] sm:$0xf0] }
 0x3ad   :  { %v1690_v21 = vadd.f32 %v12238_v26, %v1682_v28  ;;  %v8416_v23 = vor.u32 %v11477_v11, %v8415_v10  ;;  %v8479_v10 = vld [vmem:[#allocation22 + $0x150] sm:$0xf]  ;;  %v11493_v11 = vld [vmem:[#allocation22 + $0x154] sm:$0xf0] }
 0x3ae   :  { %2657 = vmatpush.bf16.msra.mxu3 %v8360_v6  ;;  %v8487_v6 = vld [vmem:[#allocation22 + $0x160] sm:$0xf] }
 0x3af   :  { %v1654_v14 = vpop.f32.mrf.mxu0 }
 0x3b0   :  { %v1655_v15 = vadd.f32 %v1654_v14, %v1636_v57  ;;  %v8343_v14 = vld [vmem:[#allocation22 + $0x40] sm:$0xf] }
 0x3b2   :  { %vm1663_vm4 = vcmp.gt.f32.partialorder %v1655_v15, 0.0  ;;  %v1671_v27 = vmul.f32 %v12236_v7, %v1655_v15  ;;  %v1679_v22 = vmul.f32 %v12237_v8, %v1655_v15  ;;  %v11459_v15 = vld [vmem:[#allocation22 + $0x44] sm:$0xf0]  ;;  %2658 = vmatpush.bf16.msra.mxu3 %v8352_v12  ;;  %v8552_v12 = vor.u32 %v11511_v32, %v8551_v9  ;;  %v8855_v9 = vld [vmem:[#allocation22 + $0x440] sm:$0xf] }
 0x3b3   :  { %v8344_v28 = vor.u32 %v11459_v15, %v8343_v14  ;;  %v11509_v14 = vld [vmem:[#allocation22 + $0x1d4] sm:$0xf0]  ;;  %v8480_v15 = vor.u32 %v11493_v11, %v8479_v10  ;;  %v11587_v32 = vld [vmem:[#allocation22 + $0x444] sm:$0xf0]  ;;  %v8847_v10 = vld [vmem:[#allocation22 + $0x430] sm:$0xf] }
 0x3b4   :  { %v1683_v31 = vsel %vm1663_vm4, %v1671_v27, %v1679_v22  ;;  %v11475_v27 = vld [vmem:[#allocation22 + $0xc4] sm:$0xf0]  ;;  %v11449_v22 = vld [vmem:[%s13565_s12 + $0x18] sm:$0xff]  ;;  %v8544_v25 = vor.u32 %v11509_v14, %v8543_v13 }
 0x3b5   :  { %v1691_v33 = vadd.f32 %v12238_v26, %v1683_v31  ;;  %v11585_v11 = vld [vmem:[#allocation22 + $0x434] sm:$0xf0] }
 0x3b6   :  { %2659 = vmatpush.bf16.msra.mxu3 %v8344_v28  ;;  %v8463_v28 = vld [vmem:[#allocation22 + $0x130] sm:$0xf]  ;;  %v11529_v13 = vld [vmem:[#allocation22 + $0x274] sm:$0xf0]  ;;  %v8848_v14 = vor.u32 %v11585_v11, %v8847_v10 }
 0x3b7   :  { %v1657_v4 = vpop.f32.mrf.mxu0  ;;  %v1703_v38 = vpack.c.bf16 %v1691_v33, %v1690_v21  ;;  %v8687_v21 = vld [vmem:[#allocation22 + $0x2f0] sm:$0xf] }
 0x3b8   :  { %v1658_v36 = vadd.f32 %v1657_v4, %v1639_v20  ;;  %v8399_v33 = vld [vmem:[#allocation22 + $0xb0] sm:$0xf]  ;;  %v8336_v4 = vor.u32 %v11457_v30, %v8335_v29  ;;  %v8327_v20 = vld [vmem:[#allocation22 + $0x20] sm:$0xf]  ;;  %v11489_v29 = vld [vmem:[#allocation22 + $0x134] sm:$0xf0] }
 0x3ba   :  { %v1672_v45 = vmul.f32 %v12236_v7, %v1658_v36  ;;  %v1680_v46 = vmul.f32 %v12237_v8, %v1658_v36  ;;  %vm1664_vm5 = vcmp.gt.f32.partialorder %v1658_v36, 0.0  ;;  %v8400_v36 = vor.u32 %v11473_v37, %v8399_v33  ;;  %2660 = vmatpush.bf16.msra.mxu3 %v8336_v4  ;;  %v8455_v37 = vld [vmem:[#allocation22 + $0x120] sm:$0xf] }
 0x3bb   :  { %v8464_v33 = vor.u32 %v11489_v29, %v8463_v28 }
 0x3bc   :  { %v1684_v43 = vsel %vm1664_vm5, %v1672_v45, %v1680_v46  ;;  %v8671_v45 = vld [vmem:[#allocation22 + $0x2d0] sm:$0xf]  ;;  %v11541_v46 = vld [vmem:[#allocation22 + $0x2d4] sm:$0xf0] }
 0x3bd   :  { %v1692_v55 = vadd.f32 %v12238_v26, %v1684_v43  ;;  %v8383_v43 = vld [vmem:[#allocation22 + $0x90] sm:$0xf] }
 0x3bf   :  { %v1659_v42 = vpop.f32.mrf.mxu0 }
 0x3c0   :  { %v1660_v47 = vadd.f32 %v1659_v42, %v1641_v44  ;;  %v11471_v44 = vld [vmem:[#allocation22 + $0xa4] sm:$0xf0]  ;;  %v8328_v42 = vor.u32 %v11455_v40, %v8327_v20  ;;  %v11485_v20 = vld [vmem:[#allocation22 + $0x114] sm:$0xf0] }
 0x3c1   :  { %v8392_v50 = vor.u32 %v11471_v44, %v8391_v41  ;;  %v8448_v40 = vor.u32 %v11485_v20, %v8447_v39  ;;  %v11483_v44 = vld [vmem:[#allocation22 + $0x104] sm:$0xf0]  ;;  %v8577_v39 = vld [vmem:[#allocation22 + $0x218] sm:$0xf0] }
 0x3c2   :  { %vm1665_vm6 = vcmp.gt.f32.partialorder %v1660_v47, 0.0  ;;  %v1673_v51 = vmul.f32 %v12236_v7, %v1660_v47  ;;  %v1681_v54 = vmul.f32 %v12237_v8, %v1660_v47  ;;  %v8423_v7 = vld [vmem:[#allocation22 + $0xe0] sm:$0xf]  ;;  %v11479_v8 = vld [vmem:[#allocation22 + $0xe4] sm:$0xf0]  ;;  %2661 = vmatpush.bf16.msra.mxu3 %v8328_v42 }
 0x3c3   :  { %v8424_v57 = vor.u32 %v11479_v8, %v8423_v7  ;;  %v1702_v47 = vld [vmem:[%s13565_s12 + $0x20] sm:$0xf]  ;;  %v8376_v7 = vor.u32 %v11467_v35, %v8375_v34  ;;  %v8560_v8 = vor.u32 %v11513_v3, %v8559_v2  ;;  %v11503_v42 = vld [vmem:[#allocation22 + $0x1a4] sm:$0xf0]  ;;  %v8871_v3 = vld [vmem:[#allocation22 + $0x460] sm:$0xf] }
 0x3c4   :  { %v1685_v53 = vsel %vm1665_vm6, %v1673_v51, %v1681_v54  ;;  %v8672_v51 = vor.u32 %v11541_v46, %v8671_v45  ;;  %v11469_v54 = vld [vmem:[#allocation22 + $0x94] sm:$0xf0]  ;;  %v8519_v45 = vld [vmem:[#allocation22 + $0x1a0] sm:$0xf]  ;;  %v11531_v34 = vld [vmem:[#allocation22 + $0x284] sm:$0xf0] }
 0x3c5   :  { %v1693_v17 = vadd.f32 %v12238_v26, %v1685_v53  ;;  %2670 = vmatpush.bf16.msra.mxu0 %v8424_v57  ;;  %v8407_v26 = vld [vmem:[#allocation22 + $0xc0] sm:$0xf]  ;;  %v8384_v62 = vor.u32 %v11469_v54, %v8383_v43  ;;  %v8488_v57 = vor.u32 %v11495_v52, %v8487_v6  ;;  %v8511_v43 = vld [vmem:[#allocation22 + $0x190] sm:$0xf] }
 0x3c6   :  { %v8408_v31 = vor.u32 %v11475_v27, %v8407_v26  ;;  %v8663_v53 = vld [vmem:[#allocation22 + $0x2c0] sm:$0xf]  ;;  %v11507_v27 = vld [vmem:[#allocation22 + $0x1c4] sm:$0xf0]  ;;  %v8863_v52 = vld [vmem:[#allocation22 + $0x450] sm:$0xf] }
 0x3c7   :  { %v1704_v56 = vpack.c.bf16 %v1693_v17, %v1692_v55  ;;  %v11539_v55 = vld [vmem:[#allocation22 + $0x2c4] sm:$0xf0]  ;;  %v1722_v17 = vunpack.c.l.b16 %v1702_v47  ;;  %v8535_v26 = vld [vmem:[#allocation22 + $0x1c0] sm:$0xf]  ;;  %v8520_v47 = vor.u32 %v11503_v42, %v8519_v45 }
 0x3c8   :  { %v8664_v63 = vor.u32 %v11539_v55, %v8663_v53  ;;  %v8536_v30 = vor.u32 %v11507_v27, %v8535_v26  ;;  %v8639_v53 = vld [vmem:[#allocation22 + $0x290] sm:$0xf]  ;;  %v11533_v55 = vld [vmem:[#allocation22 + $0x294] sm:$0xf0]  ;;  %v8615_v27 = vld [vmem:[#allocation22 + $0x260] sm:$0xf] }
 0x3c9   :  { %1750 = vmatpush.bf16.msra.mxu2 %v1704_v56  ;;  %2671 = vmatpush.bf16.msra.mxu0 %v8416_v23  ;;  %v8320_v56 = vor.u32 %v11453_v49, %v8319_v18  ;;  %v1727_v0 = vpack.c.b16 %v1722_v17, %v1722_v17  ;;  %v11491_v23 = vld [vmem:[#allocation22 + $0x144] sm:$0xf0]  ;;  %v8647_v18 = vld [vmem:[#allocation22 + $0x2a0] sm:$0xf]  ;;  %v8640_v17 = vor.u32 %v11533_v55, %v8639_v53  ;;  %v11521_v55 = vld [vmem:[#allocation22 + $0x234] sm:$0xf0] }
 0x3ca   :  { %v11535_v49 = vld [vmem:[#allocation22 + $0x2a4] sm:$0xf0]  ;;  %v8743_v42 = vld [vmem:[#allocation22 + $0x360] sm:$0xf] }
 0x3cb   :  { %2662 = vmatpush.bf16.msra.mxu3 %v8320_v56  ;;  %v8503_v56 = vld [vmem:[#allocation22 + $0x180] sm:$0xf] }
 0x3cd   :  { %1751 = vmatpush.bf16.msra.mxu2 %v1703_v38  ;;  %v8688_v38 = vor.u32 %v11545_v48, %v8687_v21  ;;  %2672 = vmatpush.bf16.msra.mxu0 %v8408_v31  ;;  %v8527_v31 = vld [vmem:[#allocation22 + $0x1b0] sm:$0xf]  ;;  %v11505_v21 = vld [vmem:[#allocation22 + $0x1b4] sm:$0xf0]  ;;  %v11487_v48 = vld [vmem:[#allocation22 + $0x124] sm:$0xf0] }
 0x3ce   :  { %v8528_v4 = vor.u32 %v11505_v21, %v8527_v31  ;;  %v8831_v31 = vld [vmem:[#allocation22 + $0x410] sm:$0xf]  ;;  %v11581_v21 = vld [vmem:[#allocation22 + $0x414] sm:$0xf0] }
 0x3d0   :  { %8304 = vmatmul.msk.bf16.vlgmr.msra.gmra.mxu2 %vm1728_vm7, %v11446_v58  ;;  %v8311_v58 = vld [vmem:[#allocation22] sm:$0xf] }
 0x3d1   :  { %2721 = vmatpush.bf16.msrb.mxu2 %v8688_v38  ;;  %2673 = vmatpush.bf16.msra.mxu0 %v8400_v36  ;;  %v8456_v38 = vor.u32 %v11487_v48, %v8455_v37  ;;  %v11537_v36 = vld [vmem:[#allocation22 + $0x2b4] sm:$0xf0]  ;;  %v8751_v37 = vld [vmem:[#allocation22 + $0x370] sm:$0xf] }
 0x3d2   :  { %v8656_v41 = vor.u32 %v11537_v36, %v8655_v24  ;;  %v11561_v48 = vld [vmem:[#allocation22 + $0x374] sm:$0xf0]  ;;  %v8599_v36 = vld [vmem:[#allocation22 + $0x240] sm:$0xf] }
 0x3d3   :  { %v8752_v24 = vor.u32 %v11561_v48, %v8751_v37  ;;  %v8807_v48 = vld [vmem:[#allocation22 + $0x3e0] sm:$0xf] }
 0x3d5   :  { %2722 = vmatpush.bf16.msrb.mxu2 %v8680_v19  ;;  %2674 = vmatpush.bf16.msra.mxu0 %v8392_v50  ;;  %v8439_v19 = vld [vmem:[#allocation22 + $0x100] sm:$0xf]  ;;  %v8648_v50 = vor.u32 %v11535_v49, %v8647_v18  ;;  %v11514_v49 = vld [vmem:[#allocation22 + $0x204] sm:$0xf] }
 0x3d6   :  { %v8440_v46 = vor.u32 %v11483_v44, %v8439_v19  ;;  %v8823_v19 = vld [vmem:[#allocation22 + $0x400] sm:$0xf]  ;;  %v11579_v44 = vld [vmem:[#allocation22 + $0x404] sm:$0xf0] }
 0x3d7   :  { %v8824_v18 = vor.u32 %v11579_v44, %v8823_v19  ;;  %v11547_v44 = vld [vmem:[#allocation22 + $0x304] sm:$0xf0] }
 0x3d9   :  { %2723 = vmatpush.bf16.msrb.mxu2 %v8672_v51  ;;  %2675 = vmatpush.bf16.msra.mxu0 %v8384_v62  ;;  %v11501_v51 = vld [vmem:[#allocation22 + $0x194] sm:$0xf0] }
 0x3da   :  { %v8512_v54 = vor.u32 %v11501_v51, %v8511_v43 }
 0x3dd   :  { %2724 = vmatpush.bf16.msrb.mxu2 %v8664_v63  ;;  %2676 = vmatpush.bf16.msra.mxu0 %v8376_v7  ;;  %v8631_v63 = vld [vmem:[#allocation22 + $0x280] sm:$0xf]  ;;  %v11589_v7 = vld [vmem:[#allocation22 + $0x454] sm:$0xf0] }
 0x3de   :  { %v8632_v35 = vor.u32 %v11531_v34, %v8631_v63  ;;  %v11519_v63 = vld [vmem:[#allocation22 + $0x224] sm:$0xf0]  ;;  %v8727_v34 = vld [vmem:[#allocation22 + $0x340] sm:$0xf] }
 0x3e0   :  { %8305 = vmatmul.msk.bf16.gmra.mxu2 %vm1728_vm7, %v11447_v59  ;;  %v11451_v59 = vld [vmem:[#allocation22 + $0x4] sm:$0xf0] }
 0x3e1   :  { %v8312_v1 = vor.u32 %v11451_v59, %v8311_v58  ;;  %2695 = vmatpush.bf16.msrb.mxu0 %v8560_v8  ;;  %2725 = vmatpush.bf16.msrb.mxu2 %v8656_v41  ;;  %v11499_v58 = vld [vmem:[#allocation22 + $0x184] sm:$0xf0]  ;;  %v11518_v59 = vld [vmem:[#allocation22 + $0x224] sm:$0xf]  ;;  %v8864_v8 = vor.u32 %v11589_v7, %v8863_v52  ;;  %v11517_v52 = vld [vmem:[#allocation22 + $0x214] sm:$0xf0] }
 0x3e2   :  { %v8719_v7 = vld [vmem:[#allocation22 + $0x330] sm:$0xf] }
 0x3e3   :  { %2663 = vmatpush.bf16.msra.mxu3 %v8312_v1  ;;  %v11593_v1 = vld [vmem:[#allocation22 + $0x474] sm:$0xf0] }
 0x3e5   :  { %2696 = vmatpush.bf16.msrb.mxu0 %v8552_v12  ;;  %2726 = vmatpush.bf16.msrb.mxu2 %v8648_v50  ;;  %v8623_v12 = vld [vmem:[#allocation22 + $0x270] sm:$0xf]  ;;  %v8569_v50 = vld [vmem:[#allocation22 + $0x208] sm:$0xf0] }
 0x3e6   :  { %v8572_v53 = vor.u32 %v11514_v49, %v8569_v50  ;;  %v11584_v49 = vld [vmem:[#allocation22 + $0x434] sm:$0xf] }
 0x3e9   :  { %2697 = vmatpush.bf16.msrb.mxu0 %v8544_v25  ;;  %2727 = vmatpush.bf16.msrb.mxu2 %v8640_v17  ;;  %v11583_v25 = vld [vmem:[#allocation22 + $0x424] sm:$0xf0]  ;;  %v8735_v17 = vld [vmem:[#allocation22 + $0x350] sm:$0xf] }
 0x3ed   :  { %2698 = vmatpush.bf16.msrb.mxu0 %v8536_v30  ;;  %2728 = vmatpush.bf16.msrb.mxu2 %v8632_v35  ;;  %v8607_v30 = vld [vmem:[#allocation22 + $0x250] sm:$0xf]  ;;  %v11555_v35 = vld [vmem:[#allocation22 + $0x344] sm:$0xf0] }
 0x3f0   :  { %8306 = vmatmul.msk.bf16.gmra.mxu2 %vm1728_vm7, %v11448_v60  ;;  %v8495_v60 = vld [vmem:[#allocation22 + $0x170] sm:$0xf] }
 0x3f1   :  { %v8496_v5 = vor.u32 %v11497_v61, %v8495_v60  ;;  %2699 = vmatpush.bf16.msrb.mxu0 %v8528_v4  ;;  %v8585_v60 = vld [vmem:[#allocation22 + $0x228] sm:$0xf0]  ;;  %v8504_v61 = vor.u32 %v11499_v58, %v8503_v56  ;;  %v8832_v4 = vor.u32 %v11581_v21, %v8831_v31  ;;  %v11557_v56 = vld [vmem:[#allocation22 + $0x354] sm:$0xf0]  ;;  %v8703_v21 = vld [vmem:[#allocation22 + $0x310] sm:$0xf] }
 0x3f2   :  { %v8588_v62 = vor.u32 %v11518_v59, %v8585_v60  ;;  %v8736_v60 = vor.u32 %v11557_v56, %v8735_v17  ;;  %v8791_v17 = vld [vmem:[#allocation22 + $0x3c0] sm:$0xf]  ;;  %v11571_v56 = vld [vmem:[#allocation22 + $0x3c4] sm:$0xf0] }
 0x3f3   :  { %2682 = vmatpush.bf16.msrb.mxu3 %v8496_v5  ;;  %v11591_v5 = vld [vmem:[#allocation22 + $0x464] sm:$0xf0] }
 0x3f4   :  { %2830 = vmatpush.bf16.msrb.mxu1 %v8588_v62  ;;  %v8872_v6 = vor.u32 %v11591_v5, %v8871_v3  ;;  %v8728_v3 = vor.u32 %v11555_v35, %v8727_v34  ;;  %v8575_v5 = vld [vmem:[#allocation22 + $0x210] sm:$0xf]  ;;  %v8792_v35 = vor.u32 %v11571_v56, %v8791_v17  ;;  %v11486_v17 = vld [vmem:[#allocation22 + $0x124] sm:$0xf]  ;;  %v8457_v56 = vld [vmem:[#allocation22 + $0x128] sm:$0xf0] }
 0x3f5   :  { %2700 = vmatpush.bf16.msrb.mxu0 %v8520_v47  ;;  %v11559_v47 = vld [vmem:[#allocation22 + $0x364] sm:$0xf0]  ;;  %v8576_v10 = vor.u32 %v11517_v52, %v8575_v5  ;;  %v8489_v5 = vld [vmem:[#allocation22 + $0x168] sm:$0xf0]  ;;  %v11569_v52 = vld [vmem:[#allocation22 + $0x3b4] sm:$0xf0] }
 0x3f6   :  { %v8744_v51 = vor.u32 %v11559_v47, %v8743_v42  ;;  %v11573_v42 = vld [vmem:[#allocation22 + $0x3d4] sm:$0xf0]  ;;  %v11464_v47 = vld [vmem:[#allocation22 + $0x74] sm:$0xf] }
 0x3f7   :  { %2683 = vmatpush.bf16.msrb.mxu3 %v8488_v57  ;;  %v8856_v57 = vor.u32 %v11587_v32, %v8855_v9  ;;  %v11590_v9 = vld [vmem:[#allocation22 + $0x464] sm:$0xf]  ;;  %v8873_v32 = vld [vmem:[#allocation22 + $0x468] sm:$0xf0] }
 0x3f9   :  { %2701 = vmatpush.bf16.msrb.mxu0 %v8512_v54  ;;  %v8591_v54 = vld [vmem:[#allocation22 + $0x230] sm:$0xf] }
 0x3fa   :  { %v8592_v59 = vor.u32 %v11521_v55, %v8591_v54  ;;  %v8497_v55 = vld [vmem:[#allocation22 + $0x178] sm:$0xf0] }
 0x3fb   :  { %2684 = vmatpush.bf16.msrb.mxu3 %v8480_v15 }
 0x3fd   :  { %2702 = vmatpush.bf16.msrb.mxu0 %v8504_v61  ;;  %v8583_v61 = vld [vmem:[#allocation22 + $0x220] sm:$0xf] }
 0x400   :  { %8307 = vmatmul.msk.bf16.gmra.mxu2 %vm1728_vm7, %v11449_v22  ;;  %v8472_v22 = vor.u32 %v11491_v23, %v8471_v16  ;;  %v8624_v16 = vor.u32 %v11529_v13, %v8623_v12  ;;  %v8839_v23 = vld [vmem:[#allocation22 + $0x420] sm:$0xf]  ;;  %v8876_v13 = vor.u32 %v11590_v9, %v8873_v32  ;;  %v8353_v9 = vld [vmem:[#allocation22 + $0x58] sm:$0xf0]  ;;  %v11580_v32 = vld [vmem:[#allocation22 + $0x414] sm:$0xf] }
 0x401   :  { %v8840_v28 = vor.u32 %v11583_v25, %v8839_v23  ;;  %v8567_v12 = vld [vmem:[#allocation22 + $0x200] sm:$0xf]  ;;  %v11551_v23 = vld [vmem:[#allocation22 + $0x324] sm:$0xf0]  ;;  %v8815_v25 = vld [vmem:[#allocation22 + $0x3f0] sm:$0xf] }
 0x402   :  { %2685 = vmatpush.bf16.msrb.mxu3 %v8472_v22  ;;  %v11527_v22 = vld [vmem:[#allocation22 + $0x264] sm:$0xf0] }
 0x403   :  { %v8616_v29 = vor.u32 %v11527_v22, %v8615_v27  ;;  %v11577_v27 = vld [vmem:[#allocation22 + $0x3f4] sm:$0xf0] }
 0x404   :  { %v8816_v31 = vor.u32 %v11577_v27, %v8815_v25  ;;  %v11458_v27 = vld [vmem:[#allocation22 + $0x44] sm:$0xf] }
 0x406   :  { %2686 = vmatpush.bf16.msrb.mxu3 %v8464_v33  ;;  %v11525_v33 = vld [vmem:[#allocation22 + $0x254] sm:$0xf0] }
 0x40a   :  { %2687 = vmatpush.bf16.msrb.mxu3 %v8456_v38  ;;  %v11516_v38 = vld [vmem:[#allocation22 + $0x214] sm:$0xf] }
 0x40b   :  { %v8580_v41 = vor.u32 %v11516_v38, %v8577_v39  ;;  %v11586_v38 = vld [vmem:[#allocation22 + $0x444] sm:$0xf]  ;;  %v8857_v39 = vld [vmem:[#allocation22 + $0x448] sm:$0xf0] }
 0x40d   :  { %2831 = vmatpush.bf16.msrb.mxu1 %v8580_v41 }
 0x40e   :  { %2688 = vmatpush.bf16.msrb.mxu3 %v8448_v40  ;;  %v8608_v40 = vor.u32 %v11525_v33, %v8607_v30  ;;  %v8865_v30 = vld [vmem:[#allocation22 + $0x458] sm:$0xf0]  ;;  %v11549_v33 = vld [vmem:[#allocation22 + $0x314] sm:$0xf0] }
 0x410   :  { %8308 = vmatmul.msk.bf16.gmra.mxu2 %vm1728_vm7, %v1727_v0  ;;  %v8879_v0 = vld [vmem:[#allocation22 + $0x470] sm:$0xf] }
 0x411   :  { %v8880_v2 = vor.u32 %v11593_v1, %v8879_v0  ;;  %2832 = vmatpush.bf16.msrb.mxu1 %v8572_v53  ;;  %v11592_v0 = vld [vmem:[#allocation22 + $0x474] sm:$0xf]  ;;  %v8881_v1 = vld [vmem:[#allocation22 + $0x478] sm:$0xf0] }
 0x412   :  { %2689 = vmatpush.bf16.msrb.mxu3 %v8440_v46  ;;  %v11523_v46 = vld [vmem:[#allocation22 + $0x244] sm:$0xf0] }
 0x413   :  { %2760 = vmatpush.bf16.msra.mxu2 %v8880_v2  ;;  %v8600_v43 = vor.u32 %v11523_v46, %v8599_v36  ;;  %v8584_v2 = vor.u32 %v11519_v63, %v8583_v61  ;;  %v8860_v36 = vor.u32 %v11586_v38, %v8857_v39  ;;  %v8799_v46 = vld [vmem:[#allocation22 + $0x3d0] sm:$0xf]  ;;  %v11582_v61 = vld [vmem:[#allocation22 + $0x424] sm:$0xf] }
 0x414   :  { %v8800_v54 = vor.u32 %v11573_v42, %v8799_v46  ;;  %v8767_v38 = vld [vmem:[#allocation22 + $0x390] sm:$0xf]  ;;  %v8465_v46 = vld [vmem:[#allocation22 + $0x138] sm:$0xf0]  ;;  %v8759_v42 = vld [vmem:[#allocation22 + $0x380] sm:$0xf] }
 0x417   :  { %2761 = vmatpush.bf16.msra.mxu2 %v8872_v6  ;;  %v8884_v6 = vor.u32 %v11592_v0, %v8881_v1  ;;  %v11494_v0 = vld [vmem:[#allocation22 + $0x164] sm:$0xf]  ;;  %v8841_v1 = vld [vmem:[#allocation22 + $0x428] sm:$0xf0] }
 0x419   :  { %2877 = vmatpush.bf16.msra.mxu1 %v8884_v6  ;;  %v8783_v6 = vld [vmem:[#allocation22 + $0x3b0] sm:$0xf] }
 0x41b   :  { %2762 = vmatpush.bf16.msra.mxu2 %v8864_v8  ;;  %v11553_v8 = vld [vmem:[#allocation22 + $0x334] sm:$0xf0] }
 0x41c   :  { %v8720_v11 = vor.u32 %v11553_v8, %v8719_v7  ;;  %v8844_v7 = vor.u32 %v11582_v61, %v8841_v1  ;;  %v11460_v8 = vld [vmem:[#allocation22 + $0x54] sm:$0xf]  ;;  %v11478_v61 = vld [vmem:[#allocation22 + $0xe4] sm:$0xf] }
 0x41d   :  { %2878 = vmatpush.bf16.msra.mxu1 %v8876_v13  ;;  %v8356_v13 = vor.u32 %v11460_v8, %v8353_v9  ;;  %v11484_v1 = vld [vmem:[#allocation22 + $0x114] sm:$0xf]  ;;  %v8417_v8 = vld [vmem:[#allocation22 + $0xd8] sm:$0xf0] }
 0x41e   :  { %v11512_v9 = vld [vmem:[#allocation22 + $0x1f4] sm:$0xf] }
 0x41f   :  { %2763 = vmatpush.bf16.msra.mxu2 %v8856_v57 }
 0x423   :  { %2764 = vmatpush.bf16.msra.mxu2 %v8848_v14 }
 0x427   :  { %2765 = vmatpush.bf16.msra.mxu2 %v8840_v28 }
 0x42b   :  { %2766 = vmatpush.bf16.msra.mxu2 %v8832_v4  ;;  %v11575_v4 = vld [vmem:[#allocation22 + $0x3e4] sm:$0xf0] }
 0x42c   :  { %v8808_v19 = vor.u32 %v11575_v4, %v8807_v48  ;;  %v11490_v48 = vld [vmem:[#allocation22 + $0x144] sm:$0xf]  ;;  %v8473_v4 = vld [vmem:[#allocation22 + $0x148] sm:$0xf0] }
 0x42f   :  { %2767 = vmatpush.bf16.msra.mxu2 %v8824_v18  ;;  %v8369_v18 = vld [vmem:[#allocation22 + $0x78] sm:$0xf0] }
 0x430   :  { %v8372_v53 = vor.u32 %v11464_v47, %v8369_v18  ;;  %v11563_v47 = vld [vmem:[#allocation22 + $0x384] sm:$0xf0]  ;;  %v11454_v18 = vld [vmem:[#allocation22 + $0x24] sm:$0xf] }
 0x453   :  { %v1753_v15 = vpop.f32.mrf.mxu2 }
 0x454   :  { %v13160_v26 = vpack.c.bf16 %v1753_v15, %v1753_v15  ;;  %v11515_v15 = vld [vmem:[#allocation22 + $0x204] sm:$0xf0] }
 0x455   :  { %v8568_v22 = vor.u32 %v11515_v15, %v8567_v12  ;;  %v8784_v12 = vor.u32 %v11569_v52, %v8783_v6  ;;  %v8481_v15 = vld [vmem:[#allocation22 + $0x158] sm:$0xf0]  ;;  %v11450_v6 = vld [vmem:[#allocation22 + $0x4] sm:$0xf]  ;;  %v8313_v52 = vld [vmem:[#allocation22 + $0x8] sm:$0xf0] }
 0x456   :  { %2664 = vmatmul.bf16.vlgmr.msra.gmra.mxu3 %v13160_v26 }
 0x457   :  { %2708 = vmatpush.bf16.msra.mxu3 %v8624_v16  ;;  %v8711_v16 = vld [vmem:[#allocation22 + $0x320] sm:$0xf] }
 0x458   :  { %v8712_v28 = vor.u32 %v11551_v23, %v8711_v16  ;;  %v8775_v16 = vld [vmem:[#allocation22 + $0x3a0] sm:$0xf]  ;;  %v11567_v23 = vld [vmem:[#allocation22 + $0x3a4] sm:$0xf0] }
 0x45b   :  { %2709 = vmatpush.bf16.msra.mxu3 %v8616_v29  ;;  %v1755_v20 = vpop.f32.mrf.mxu2  ;;  %v11588_v29 = vld [vmem:[#allocation22 + $0x454] sm:$0xf] }
 0x45c   :  { %v13163_v45 = vpack.c.bf16 %v1755_v20, %v1755_v20  ;;  %v8868_v37 = vor.u32 %v11588_v29, %v8865_v30 }
 0x45e   :  { %2677 = vmatmul.bf16.vlgmr.msra.gmra.mxu0 %v13163_v45  ;;  %2879 = vmatpush.bf16.msra.mxu1 %v8868_v37 }
 0x45f   :  { %2710 = vmatpush.bf16.msra.mxu3 %v8608_v40  ;;  %2734 = vmatpush.bf16.msra.mxu0 %v8752_v24  ;;  %v8704_v40 = vor.u32 %v11549_v33, %v8703_v21  ;;  %v8695_v24 = vld [vmem:[#allocation22 + $0x300] sm:$0xf]  ;;  %v8825_v21 = vld [vmem:[#allocation22 + $0x408] sm:$0xf0] }
 0x460   :  { %v8696_v50 = vor.u32 %v11547_v44, %v8695_v24  ;;  %v8337_v24 = vld [vmem:[#allocation22 + $0x38] sm:$0xf0]  ;;  %v11488_v44 = vld [vmem:[#allocation22 + $0x134] sm:$0xf] }
 0x462   :  { %2880 = vmatpush.bf16.msra.mxu1 %v8860_v36  ;;  %v8476_v36 = vor.u32 %v11490_v48, %v8473_v4  ;;  %v11558_v4 = vld [vmem:[#allocation22 + $0x364] sm:$0xf] }
 0x463   :  { %2711 = vmatpush.bf16.msra.mxu3 %v8600_v43  ;;  %2735 = vmatpush.bf16.msra.mxu0 %v8744_v51  ;;  %v1758_v58 = vpop.f32.mrf.mxu2  ;;  %v11496_v43 = vld [vmem:[#allocation22 + $0x174] sm:$0xf]  ;;  %v8849_v51 = vld [vmem:[#allocation22 + $0x438] sm:$0xf0] }
 0x464   :  { %v13166_v62 = vpack.c.bf16 %v1758_v58, %v1758_v58  ;;  %v8852_v58 = vor.u32 %v11584_v49, %v8849_v51  ;;  %v8500_v34 = vor.u32 %v11496_v43, %v8497_v55  ;;  %v8329_v49 = vld [vmem:[#allocation22 + $0x28] sm:$0xf0]  ;;  %v8433_v43 = vld [vmem:[#allocation22 + $0xf8] sm:$0xf0] }
 0x465   :  { %v8332_v55 = vor.u32 %v11454_v18, %v8329_v49  ;;  %v8393_v18 = vld [vmem:[#allocation22 + $0xa8] sm:$0xf0]  ;;  %v11506_v49 = vld [vmem:[#allocation22 + $0x1c4] sm:$0xf] }
 0x466   :  { %2690 = vmatmul.bf16.vlgmr.msrb.gmra.mxu3 %v13166_v62  ;;  %2881 = vmatpush.bf16.msra.mxu1 %v8852_v58 }
 0x467   :  { %2712 = vmatpush.bf16.msra.mxu3 %v8592_v59  ;;  %2736 = vmatpush.bf16.msra.mxu0 %v8736_v60  ;;  %v11462_v59 = vld [vmem:[#allocation22 + $0x64] sm:$0xf]  ;;  %v8361_v60 = vld [vmem:[#allocation22 + $0x68] sm:$0xf0] }
 0x46a   :  { %2882 = vmatpush.bf16.msra.mxu1 %v8844_v7  ;;  %v11476_v7 = vld [vmem:[#allocation22 + $0xd4] sm:$0xf] }
 0x46b   :  { %2713 = vmatpush.bf16.msra.mxu3 %v8584_v2  ;;  %2737 = vmatpush.bf16.msra.mxu0 %v8728_v3  ;;  %v1760_v57 = vpop.f32.mrf.mxu2  ;;  %v8364_v3 = vor.u32 %v11462_v59, %v8361_v60  ;;  %v11452_v59 = vld [vmem:[#allocation22 + $0x14] sm:$0xf]  ;;  %v8321_v60 = vld [vmem:[#allocation22 + $0x18] sm:$0xf0] }
 0x46c   :  { %v13169_v14 = vpack.c.bf16 %v1760_v57, %v1760_v57  ;;  %v8492_v57 = vor.u32 %v11494_v0, %v8489_v5  ;;  %v8324_v0 = vor.u32 %v11452_v59, %v8321_v60 }
 0x46e   :  { %2703 = vmatmul.bf16.vlgmr.msrb.gmra.mxu0 %v13169_v14 }
 0x46f   :  { %2714 = vmatpush.bf16.msra.mxu3 %v8576_v10  ;;  %2738 = vmatpush.bf16.msra.mxu0 %v8720_v11  ;;  %v11492_v10 = vld [vmem:[#allocation22 + $0x154] sm:$0xf]  ;;  %v8833_v11 = vld [vmem:[#allocation22 + $0x418] sm:$0xf0] }
 0x470   :  { %v8836_v25 = vor.u32 %v11580_v32, %v8833_v11  ;;  %v8484_v30 = vor.u32 %v11492_v10, %v8481_v15  ;;  %v8561_v32 = vld [vmem:[#allocation22 + $0x1f8] sm:$0xf0]  ;;  %v8441_v15 = vld [vmem:[#allocation22 + $0x108] sm:$0xf0] }
 0x472   :  { %2883 = vmatpush.bf16.msra.mxu1 %v8836_v25  ;;  %v11560_v25 = vld [vmem:[#allocation22 + $0x374] sm:$0xf] }
 0x473   :  { %2715 = vmatpush.bf16.msra.mxu3 %v8568_v22  ;;  %2739 = vmatpush.bf16.msra.mxu0 %v8712_v28  ;;  %v1763_v20 = vpop.f32.mrf.mxu2  ;;  %v8345_v22 = vld [vmem:[#allocation22 + $0x48] sm:$0xf0]  ;;  %v11578_v28 = vld [vmem:[#allocation22 + $0x404] sm:$0xf] }
 0x474   :  { %v1781_v41 = vpack.c.bf16 %v1763_v20, %v1763_v20  ;;  %v8348_v37 = vor.u32 %v11458_v27, %v8345_v22  ;;  %v8828_v39 = vor.u32 %v11578_v28, %v8825_v21  ;;  %v11565_v20 = vld [vmem:[#allocation22 + $0x394] sm:$0xf0]  ;;  %v8753_v27 = vld [vmem:[#allocation22 + $0x378] sm:$0xf0]  ;;  %v11474_v22 = vld [vmem:[#allocation22 + $0xc4] sm:$0xf] }
 0x475   :  { %v8409_v28 = vld [vmem:[#allocation22 + $0xc8] sm:$0xf0]  ;;  %v8756_v21 = vor.u32 %v11560_v25, %v8753_v27  ;;  %v8705_v25 = vld [vmem:[#allocation22 + $0x318] sm:$0xf0] }
 0x476   :  { %2716 = vmatmul.bf16.vlgmr.msra.gmra.mxu3 %v1781_v41  ;;  %2833 = vmatmul.bf16.vlgmr.msrb.gmra.mxu1 %v1781_v41  ;;  %v8768_v41 = vor.u32 %v11565_v20, %v8767_v38  ;;  %v8745_v38 = vld [vmem:[#allocation22 + $0x368] sm:$0xf0]  ;;  %v8401_v20 = vld [vmem:[#allocation22 + $0xb8] sm:$0xf0] }
 0x477   :  { %2747 = vmatpush.bf16.msrb.mxu3 %v8816_v31  ;;  %2740 = vmatpush.bf16.msra.mxu0 %v8704_v40  ;;  %v8776_v31 = vor.u32 %v11567_v23, %v8775_v16  ;;  %v11456_v40 = vld [vmem:[#allocation22 + $0x34] sm:$0xf]  ;;  %v8420_v16 = vor.u32 %v11476_v7, %v8417_v8  ;;  %v8564_v23 = vor.u32 %v11512_v9, %v8561_v32  ;;  %v11550_v32 = vld [vmem:[#allocation22 + $0x324] sm:$0xf] }
 0x478   :  { %2884 = vmatpush.bf16.msra.mxu1 %v8828_v39  ;;  %v11472_v39 = vld [vmem:[#allocation22 + $0xb4] sm:$0xf] }
 0x47b   :  { %2748 = vmatpush.bf16.msrb.mxu3 %v8808_v19  ;;  %2741 = vmatpush.bf16.msra.mxu0 %v8696_v50  ;;  %v1765_v63 = vpop.f32.mrf.mxu2  ;;  %v8340_v19 = vor.u32 %v11456_v40, %v8337_v24  ;;  %v11480_v50 = vld [vmem:[#allocation22 + $0xf4] sm:$0xf]  ;;  %v8545_v24 = vld [vmem:[#allocation22 + $0x1d8] sm:$0xf0] }
 0x47c   :  { %v13172_v2 = vpack.c.bf16 %v1765_v63, %v1765_v63  ;;  %v8436_v58 = vor.u32 %v11480_v50, %v8433_v43  ;;  %v8425_v63 = vld [vmem:[#allocation22 + $0xe8] sm:$0xf0]  ;;  %v11508_v40 = vld [vmem:[#allocation22 + $0x1d4] sm:$0xf] }
 0x47d   :  { %v8428_v5 = vor.u32 %v11478_v61, %v8425_v63  ;;  %v8537_v50 = vld [vmem:[#allocation22 + $0x1c8] sm:$0xf0]  ;;  %v11552_v63 = vld [vmem:[#allocation22 + $0x334] sm:$0xf] }
 0x47e   :  { %2729 = vmatmul.bf16.vlgmr.msrb.gmra.mxu2 %v13172_v2 }
 0x47f   :  { %2749 = vmatpush.bf16.msrb.mxu3 %v8800_v54  ;;  %2773 = vmatpush.bf16.msrb.mxu0 %v8372_v53  ;;  %v8468_v54 = vor.u32 %v11488_v44, %v8465_v46  ;;  %v8760_v53 = vor.u32 %v11563_v47, %v8759_v42  ;;  %v8548_v44 = vor.u32 %v11508_v40, %v8545_v24  ;;  %v11556_v46 = vld [vmem:[#allocation22 + $0x354] sm:$0xf]  ;;  %v8737_v42 = vld [vmem:[#allocation22 + $0x358] sm:$0xf0]  ;;  %v11470_v47 = vld [vmem:[#allocation22 + $0xa4] sm:$0xf] }
 0x480   :  { %2799 = vmatpush.bf16.msrb.mxu2 %v8500_v34  ;;  %v8740_v43 = vor.u32 %v11556_v46, %v8737_v42  ;;  %v11538_v40 = vld [vmem:[#allocation22 + $0x2c4] sm:$0xf]  ;;  %v8665_v24 = vld [vmem:[#allocation22 + $0x2c8] sm:$0xf0]  ;;  %v11536_v46 = vld [vmem:[#allocation22 + $0x2b4] sm:$0xf] }
 0x481   :  { %v8657_v42 = vld [vmem:[#allocation22 + $0x2b8] sm:$0xf0] }
 0x483   :  { %2750 = vmatpush.bf16.msrb.mxu3 %v8792_v35  ;;  %2774 = vmatpush.bf16.msrb.mxu0 %v8364_v3  ;;  %v1768_v29 = vpop.f32.mrf.mxu2  ;;  %v8460_v35 = vor.u32 %v11486_v17, %v8457_v56  ;;  %v8449_v3 = vld [vmem:[#allocation22 + $0x118] sm:$0xf0]  ;;  %v11504_v56 = vld [vmem:[#allocation22 + $0x1b4] sm:$0xf] }
 0x484   :  { %2800 = vmatpush.bf16.msrb.mxu2 %v8492_v57  ;;  %v13175_v33 = vpack.c.bf16 %v1768_v29, %v1768_v29  ;;  %v8452_v10 = vor.u32 %v11484_v1, %v8449_v3  ;;  %v11510_v29 = vld [vmem:[#allocation22 + $0x1e4] sm:$0xf]  ;;  %v8385_v17 = vld [vmem:[#allocation22 + $0x98] sm:$0xf0]  ;;  %v8377_v1 = vld [vmem:[#allocation22 + $0x88] sm:$0xf0] }
 0x485   :  { %v11502_v3 = vld [vmem:[#allocation22 + $0x1a4] sm:$0xf] }
 0x486   :  { %2742 = vmatmul.bf16.vlgmr.msra.gmra.mxu0 %v13175_v33 }
 0x487   :  { %2751 = vmatpush.bf16.msrb.mxu3 %v8784_v12  ;;  %2775 = vmatpush.bf16.msrb.mxu0 %v8356_v13  ;;  %v8316_v12 = vor.u32 %v11450_v6, %v8313_v52  ;;  %v11482_v13 = vld [vmem:[#allocation22 + $0x104] sm:$0xf]  ;;  %v11544_v6 = vld [vmem:[#allocation22 + $0x2f4] sm:$0xf]  ;;  %v8689_v52 = vld [vmem:[#allocation22 + $0x2f8] sm:$0xf0] }
 0x488   :  { %2801 = vmatpush.bf16.msrb.mxu2 %v8484_v30  ;;  %v8553_v30 = vld [vmem:[#allocation22 + $0x1e8] sm:$0xf0] }
 0x489   :  { %v8556_v48 = vor.u32 %v11510_v29, %v8553_v30  ;;  %v11540_v29 = vld [vmem:[#allocation22 + $0x2d4] sm:$0xf]  ;;  %v8673_v30 = vld [vmem:[#allocation22 + $0x2d8] sm:$0xf0] }
 0x48b   :  { %2752 = vmatpush.bf16.msrb.mxu3 %v8776_v31  ;;  %2776 = vmatpush.bf16.msrb.mxu0 %v8348_v37  ;;  %v1770_v51 = vpop.f32.mrf.mxu2  ;;  %v8444_v31 = vor.u32 %v11482_v13, %v8441_v15  ;;  %v8412_v37 = vor.u32 %v11474_v22, %v8409_v28  ;;  %v11542_v13 = vld [vmem:[#allocation22 + $0x2e4] sm:$0xf]  ;;  %v8681_v15 = vld [vmem:[#allocation22 + $0x2e8] sm:$0xf0] }
 0x48c   :  { %2802 = vmatpush.bf16.msrb.mxu2 %v8476_v36  ;;  %v13178_v34 = vpack.c.bf16 %v1770_v51, %v1770_v51  ;;  %v8396_v51 = vor.u32 %v11470_v47, %v8393_v18  ;;  %v8684_v27 = vor.u32 %v11542_v13, %v8681_v15  ;;  %v11498_v22 = vld [vmem:[#allocation22 + $0x184] sm:$0xf]  ;;  %v8505_v28 = vld [vmem:[#allocation22 + $0x188] sm:$0xf0]  ;;  %v11572_v47 = vld [vmem:[#allocation22 + $0x3d4] sm:$0xf] }
 0x48d   :  { %v8801_v18 = vld [vmem:[#allocation22 + $0x3d8] sm:$0xf0] }
 0x48f   :  { %2753 = vmatpush.bf16.msrb.mxu3 %v8768_v41  ;;  %2777 = vmatpush.bf16.msrb.mxu0 %v8340_v19  ;;  %v8748_v41 = vor.u32 %v11558_v4, %v8745_v38  ;;  %v8404_v19 = vor.u32 %v11472_v39, %v8401_v20  ;;  %v11546_v4 = vld [vmem:[#allocation22 + $0x304] sm:$0xf]  ;;  %v8697_v38 = vld [vmem:[#allocation22 + $0x308] sm:$0xf0]  ;;  %v8676_v39 = vor.u32 %v11540_v29, %v8673_v30 }
 0x490   :  { %2803 = vmatpush.bf16.msrb.mxu2 %v8468_v54  ;;  %v11554_v54 = vld [vmem:[#allocation22 + $0x344] sm:$0xf] }
 0x493   :  { %2754 = vmatpush.bf16.msrb.mxu3 %v8760_v53  ;;  %2778 = vmatpush.bf16.msrb.mxu0 %v8332_v55  ;;  %v1773_v57 = vpop.f32.mrf.mxu2  ;;  %v8729_v53 = vld [vmem:[#allocation22 + $0x348] sm:$0xf0]  ;;  %v11468_v55 = vld [vmem:[#allocation22 + $0x94] sm:$0xf] }
 0x494   :  { %2804 = vmatpush.bf16.msrb.mxu2 %v8460_v35  ;;  %v1785_v11 = vpack.c.bf16 %v1773_v57, %v1773_v57  ;;  %v8732_v59 = vor.u32 %v11554_v54, %v8729_v53  ;;  %v8388_v60 = vor.u32 %v11468_v55, %v8385_v17  ;;  %v8721_v35 = vld [vmem:[#allocation22 + $0x338] sm:$0xf0]  ;;  %v8713_v57 = vld [vmem:[#allocation22 + $0x328] sm:$0xf0]  ;;  %v11532_v17 = vld [vmem:[#allocation22 + $0x294] sm:$0xf] }
 0x495   :  { %v8724_v7 = vor.u32 %v11552_v63, %v8721_v35  ;;  %v8793_v54 = vld [vmem:[#allocation22 + $0x3c8] sm:$0xf0]  ;;  %v11566_v35 = vld [vmem:[#allocation22 + $0x3a4] sm:$0xf] }
 0x496   :  { %2755 = vmatmul.bf16.vlgmr.msrb.gmra.mxu3 %v13178_v34  ;;  %2768 = vmatmul.bf16.vlgmr.msra.gmra.mxu2 %v1785_v11  ;;  %v8633_v63 = vld [vmem:[#allocation22 + $0x288] sm:$0xf0] }
 0x497   :  { %2786 = vmatpush.bf16.msra.mxu3 %v8436_v58  ;;  %2779 = vmatpush.bf16.msrb.mxu0 %v8324_v0  ;;  %v8529_v58 = vld [vmem:[#allocation22 + $0x1b8] sm:$0xf0]  ;;  %v11466_v0 = vld [vmem:[#allocation22 + $0x84] sm:$0xf] }
 0x498   :  { %2885 = vmatmul.bf16.vlgmr.msra.gmra.mxu1 %v1785_v11  ;;  %2805 = vmatpush.bf16.msrb.mxu2 %v8452_v10  ;;  %v8532_v61 = vor.u32 %v11504_v56, %v8529_v58  ;;  %v8380_v8 = vor.u32 %v11466_v0, %v8377_v1  ;;  %v8692_v10 = vor.u32 %v11544_v6, %v8689_v52  ;;  %v11500_v11 = vld [vmem:[#allocation22 + $0x194] sm:$0xf]  ;;  %v8641_v56 = vld [vmem:[#allocation22 + $0x298] sm:$0xf0]  ;;  %v8777_v0 = vld [vmem:[#allocation22 + $0x3a8] sm:$0xf0] }
 0x499   :  { %v11568_v58 = vld [vmem:[#allocation22 + $0x3b4] sm:$0xf]  ;;  %v8780_v1 = vor.u32 %v11566_v35, %v8777_v0  ;;  %v11562_v52 = vld [vmem:[#allocation22 + $0x384] sm:$0xf] }
 0x49b   :  { %2787 = vmatpush.bf16.msra.mxu3 %v8428_v5  ;;  %2780 = vmatpush.bf16.msrb.mxu0 %v8316_v12  ;;  %v1775_v36 = vpop.f32.mrf.mxu2  ;;  %v8521_v5 = vld [vmem:[#allocation22 + $0x1a8] sm:$0xf0]  ;;  %v8513_v12 = vld [vmem:[#allocation22 + $0x198] sm:$0xf0] }
 0x49c   :  { %2806 = vmatpush.bf16.msrb.mxu2 %v8444_v31  ;;  %v8524_v9 = vor.u32 %v11502_v3, %v8521_v5  ;;  %v11576_v31 = vld [vmem:[#allocation22 + $0x3f4] sm:$0xf]  ;;  %v11574_v36 = vld [vmem:[#allocation22 + $0x3e4] sm:$0xf]  ;;  %v8769_v5 = vld [vmem:[#allocation22 + $0x398] sm:$0xf0] }
 0x49d   :  { %v11564_v3 = vld [vmem:[#allocation22 + $0x394] sm:$0xf] }
 0x49e   :  { %2781 = vmatmul.bf16.vlgmr.msrb.gmra.mxu0 %v13160_v26  ;;  %v8540_v26 = vor.u32 %v11506_v49, %v8537_v50  ;;  %v8660_v49 = vor.u32 %v11536_v46, %v8657_v42  ;;  %v8804_v50 = vor.u32 %v11572_v47, %v8801_v18  ;;  %v8772_v6 = vor.u32 %v11564_v3, %v8769_v5 }
 0x49f   :  { %2788 = vmatpush.bf16.msra.mxu3 %v8420_v16  ;;  %2812 = vmatpush.bf16.msra.mxu0 %v8564_v23  ;;  %v8516_v16 = vor.u32 %v11500_v11, %v8513_v12  ;;  %v11548_v23 = vld [vmem:[#allocation22 + $0x314] sm:$0xf] }
 0x4a0   :  { %2851 = vmatpush.bf16.msra.mxu2 %v8756_v21  ;;  %v8817_v21 = vld [vmem:[#allocation22 + $0x3f8] sm:$0xf0] }
 0x4a1   :  { %v8820_v20 = vor.u32 %v11576_v31, %v8817_v21 }
 0x4a3   :  { %2789 = vmatpush.bf16.msra.mxu3 %v8412_v37  ;;  %2813 = vmatpush.bf16.msra.mxu0 %v8556_v48  ;;  %v8708_v37 = vor.u32 %v11548_v23, %v8705_v25  ;;  %v8508_v48 = vor.u32 %v11498_v22, %v8505_v28 }
 0x4a4   :  { %2852 = vmatpush.bf16.msra.mxu2 %v8748_v41  ;;  %v8809_v41 = vld [vmem:[#allocation22 + $0x3e8] sm:$0xf0] }
 0x4a6   :  { %2807 = vmatmul.bf16.vlgmr.msrb.gmra.mxu2 %v13166_v62  ;;  %v8716_v62 = vor.u32 %v11550_v32, %v8713_v57 }
 0x4a7   :  { %2790 = vmatpush.bf16.msra.mxu3 %v8404_v19  ;;  %2814 = vmatpush.bf16.msra.mxu0 %v8548_v44  ;;  %v8700_v19 = vor.u32 %v11546_v4, %v8697_v38  ;;  %v8668_v44 = vor.u32 %v11538_v40, %v8665_v24  ;;  %v2900_v40 = vld [vmem:[#allocation27] sm:$0x3] }
 0x4a8   :  { %2853 = vmatpush.bf16.msra.mxu2 %v8740_v43  ;;  %v11534_v43 = vld [vmem:[#allocation22 + $0x2a4] sm:$0xf] }
 0x4ab   :  { %2791 = vmatpush.bf16.msra.mxu3 %v8396_v51  ;;  %2815 = vmatpush.bf16.msra.mxu0 %v8540_v26  ;;  %v8649_v51 = vld [vmem:[#allocation22 + $0x2a8] sm:$0xf0]  ;;  %v11570_v26 = vld [vmem:[#allocation22 + $0x3c4] sm:$0xf] }
 0x4ac   :  { %2854 = vmatpush.bf16.msra.mxu2 %v8732_v59  ;;  %v8652_v53 = vor.u32 %v11534_v43, %v8649_v51  ;;  %v8796_v55 = vor.u32 %v11570_v26, %v8793_v54  ;;  %v8785_v59 = vld [vmem:[#allocation22 + $0x3b8] sm:$0xf0] }
 0x4af   :  { %2792 = vmatpush.bf16.msra.mxu3 %v8388_v60  ;;  %2816 = vmatpush.bf16.msra.mxu0 %v8532_v61  ;;  %v8788_v60 = vor.u32 %v11568_v58, %v8785_v59  ;;  %v11530_v61 = vld [vmem:[#allocation22 + $0x284] sm:$0xf] }
 0x4b0   :  { %2855 = vmatpush.bf16.msra.mxu2 %v8724_v7  ;;  %v8761_v7 = vld [vmem:[#allocation22 + $0x388] sm:$0xf0] }
 0x4b3   :  { %2793 = vmatpush.bf16.msra.mxu3 %v8380_v8  ;;  %2817 = vmatpush.bf16.msra.mxu0 %v8524_v9  ;;  %v8764_v8 = vor.u32 %v11562_v52, %v8761_v7  ;;  %v1930_v9 = vld [vmem:[#allocation24] sm:$0x3] }
 0x4b4   :  { %2856 = vmatpush.bf16.msra.mxu2 %v8716_v62  ;;  %v1932_v32 = vperm.slane %v1930_v9, 0 }
 0x4b6   :  { %2794 = vmatmul.bf16.vlgmr.msra.gmra.mxu3 %v13163_v45  ;;  %v8812_v45 = vor.u32 %v11574_v36, %v8809_v41 }
 0x4b7   :  { %2838 = vmatpush.bf16.msrb.mxu3 %v8692_v10  ;;  %2818 = vmatpush.bf16.msra.mxu0 %v8516_v16 }
 0x4b8   :  { %2857 = vmatpush.bf16.msra.mxu2 %v8708_v37 }
 0x4bb   :  { %2839 = vmatpush.bf16.msrb.mxu3 %v8684_v27  ;;  %2819 = vmatpush.bf16.msra.mxu0 %v8508_v48 }
 0x4bc   :  { %2858 = vmatpush.bf16.msra.mxu2 %v8700_v19 }
 0x4be   :  { %2820 = vmatmul.bf16.vlgmr.msra.gmra.mxu0 %v13169_v14  ;;  %v8644_v14 = vor.u32 %v11532_v17, %v8641_v56 }
 0x4bf   :  { %2840 = vmatpush.bf16.msrb.mxu3 %v8676_v39  ;;  %2864 = vmatpush.bf16.msrb.mxu0 %v8820_v20  ;;  %v2892_v20 = vld [vmem:[#allocation25] sm:$0x3] }
 0x4c0   :  { %2859 = vmatmul.bf16.vlgmr.msra.gmra.mxu2 %v13175_v33  ;;  %v8636_v33 = vor.u32 %v11530_v61, %v8633_v63  ;;  %v2894_v19 = vperm.slane %v2892_v20, 0 }
 0x4c3   :  { %2841 = vmatpush.bf16.msrb.mxu3 %v8668_v44  ;;  %2865 = vmatpush.bf16.msrb.mxu0 %v8812_v45  ;;  %v2902_v44 = vperm.slane %v2900_v40, 0  ;;  %v2910_v45 = vld [vmem:[#allocation28] sm:$0x3] }
 0x4c4   :  { %v2912_v47 = vperm.slane %v2910_v45, 0 }
 0x4c7   :  { %2842 = vmatpush.bf16.msrb.mxu3 %v8660_v49  ;;  %2866 = vmatpush.bf16.msrb.mxu0 %v8804_v50 }
 0x4cb   :  { %2843 = vmatpush.bf16.msrb.mxu3 %v8652_v53  ;;  %2867 = vmatpush.bf16.msrb.mxu0 %v8796_v55 }
 0x4cf   :  { %2844 = vmatpush.bf16.msrb.mxu3 %v8644_v14  ;;  %2868 = vmatpush.bf16.msrb.mxu0 %v8788_v60  ;;  %v1933_v14 = vperm.slane %v1930_v9, 1 }
 0x4d3   :  { %2845 = vmatpush.bf16.msrb.mxu3 %v8636_v33  ;;  %2869 = vmatpush.bf16.msrb.mxu0 %v8780_v1 }
 0x4d6   :  { %2846 = vmatmul.bf16.vlgmr.msrb.gmra.mxu3 %v13172_v2 }
 0x4d7   :  { %2870 = vmatpush.bf16.msrb.mxu0 %v8772_v6 }
 0x4d9   :  { %v2665_v57 = vpop.f32.mrf.mxu3 }
 0x4da   :  { %v2666_v10 = vadd.f32 %v2665_v57, %v1932_v32  ;;  %v2895_v32 = vperm.slane %v2892_v20, 1  ;;  %v2903_v57 = vperm.slane %v2900_v40, 1 }
 0x4db   :  { %2871 = vmatpush.bf16.msrb.mxu0 %v8764_v8  ;;  %v2678_v11 = vpop.f32.mrf.mxu0 }
 0x4dc   :  { %v2679_v12 = vadd.f32 %v2678_v11, %v2666_v10  ;;  %v2913_v11 = vperm.slane %v2910_v45, 1 }
 0x4de   :  { %2872 = vmatmul.bf16.vlgmr.msrb.gmra.mxu0 %v13178_v34 }
 0x4e1   :  { %v2667_v2 = vpop.f32.mrf.mxu3 }
 0x4e3   :  { %v2680_v13 = vpop.f32.mrf.mxu0 }
 0x4e9   :  { %v2691_v15 = vpop.f32.mrf.mxu3 }
 0x4ea   :  { %v2692_v62 = vadd.f32 %v2691_v15, %v2679_v12 }
 0x4eb   :  { %v2704_v16 = vpop.f32.mrf.mxu0 }
 0x4ec   :  { %v2705_v34 = vadd.f32 %v2704_v16, %v2692_v62 }
 0x4f1   :  { %v2693_v23 = vpop.f32.mrf.mxu3 }
 0x4f3   :  { %v2706_v25 = vpop.f32.mrf.mxu0  ;;  %v2834_v27 = vpop.f32.mrf.mxu1 }
 0x4f9   :  { %v2717_v22 = vpop.f32.mrf.mxu3 }
 0x4fa   :  { %v2718_v28 = vadd.f32 %v2717_v22, %v2705_v34 }
 0x4fb   :  { %v2836_v29 = vpop.f32.mrf.mxu1 }
 0x501   :  { %v2730_v30 = vpop.f32.mrf.mxu2  ;;  %v2719_v31 = vpop.f32.mrf.mxu3 }
 0x502   :  { %v2731_v21 = vadd.f32 %v2730_v30, %v2718_v28 }
 0x503   :  { %v2743_v37 = vpop.f32.mrf.mxu0 }
 0x504   :  { %v2744_v48 = vadd.f32 %v2743_v37, %v2731_v21 }
 0x509   :  { %v2732_v4 = vpop.f32.mrf.mxu2 }
 0x50b   :  { %v2745_v38 = vpop.f32.mrf.mxu0 }
 0x515   :  { %v2886_v39 = vpop.f32.mrf.mxu1 }
 0x519   :  { %v2756_v24 = vpop.f32.mrf.mxu3  ;;  %v2769_v46 = vpop.f32.mrf.mxu2 }
 0x51a   :  { %v2757_v36 = vadd.f32 %v2756_v24, %v2744_v48 }
 0x51b   :  { %v2782_v41 = vpop.f32.mrf.mxu0 }
 0x51c   :  { %v2770_v42 = vadd.f32 %v2769_v46, %v2757_v36  ;;  %v2783_v63 = vadd.f32 %v2782_v41, %v1933_v14 }
 0x51d   :  { %v2888_v18 = vpop.f32.mrf.mxu1 }
 0x51e   :  { %vm2890_vm8 = vcmp.gt.f32.partialorder %v2770_v42, 0.0  ;;  %v2898_v49 = vmul.f32 %v2894_v19, %v2770_v42  ;;  %v2906_v50 = vmul.f32 %v2902_v44, %v2770_v42 }
 0x520   :  { %v2908_v43 = vsel %vm2890_vm8, %v2898_v49, %v2906_v50 }
 0x521   :  { %v2758_v51 = vpop.f32.mrf.mxu3  ;;  %v2916_v26 = vadd.f32 %v2912_v47, %v2908_v43  ;;  %v2771_v53 = vpop.f32.mrf.mxu2 }
 0x523   :  { %v2784_v54 = vpop.f32.mrf.mxu0 }
 0x529   :  { %v2808_v55 = vpop.f32.mrf.mxu2 }
 0x531   :  { %v2810_v17 = vpop.f32.mrf.mxu2 }
 0x539   :  { %v2795_v56 = vpop.f32.mrf.mxu3 }
 0x53a   :  { %v2796_v35 = vadd.f32 %v2795_v56, %v2783_v63 }
 0x53b   :  { %v2821_v58 = vpop.f32.mrf.mxu0 }
 0x53c   :  { %v2809_v33 = vadd.f32 %v2808_v55, %v2796_v35 }
 0x53e   :  { %v2822_v1 = vadd.f32 %v2821_v58, %v2809_v33 }
 0x540   :  { %v2835_v3 = vadd.f32 %v2834_v27, %v2822_v1 }
 0x541   :  { %v2797_v59 = vpop.f32.mrf.mxu3 }
 0x543   :  { %v2823_v60 = vpop.f32.mrf.mxu0  ;;  %v2860_v61 = vpop.f32.mrf.mxu2 }
 0x54b   :  { %v2862_v0 = vpop.f32.mrf.mxu2 }
 0x559   :  { %v2847_v5 = vpop.f32.mrf.mxu3 }
 0x55a   :  { %v2848_v6 = vadd.f32 %v2847_v5, %v2835_v3 }
 0x55b   :  { %v2873_v52 = vpop.f32.mrf.mxu0 }
 0x55c   :  { %v2861_v7 = vadd.f32 %v2860_v61, %v2848_v6 }
 0x55e   :  { %v2874_v8 = vadd.f32 %v2873_v52, %v2861_v7 }
 0x560   :  { %v2887_v10 = vadd.f32 %v2886_v39, %v2874_v8 }
 0x561   :  { %v2849_v12 = vpop.f32.mrf.mxu3 }
 0x562   :  { %vm2891_vm9 = vcmp.gt.f32.partialorder %v2887_v10, 0.0  ;;  %v2899_v9 = vmul.f32 %v2895_v32, %v2887_v10  ;;  %v2907_v2 = vmul.f32 %v2903_v57, %v2887_v10 }
 0x563   :  { %v2875_v13 = vpop.f32.mrf.mxu0 }
 0x564   :  { %v2909_v15 = vsel %vm2891_vm9, %v2899_v9, %v2907_v2 }
 0x565   :  { %v2917_v62 = vadd.f32 %v2913_v11, %v2909_v15 }
 0x566   :  { %12773 = dma.done.wait [#allocation3], 73728 }
 0x567   :  { %12774 = vsyncadd [#allocation3], 4294893568  ;;  %v2931_v16 = vpack.c.bf16 %v2916_v26, %v2916_v26  ;;  %v2932_v34 = vpack.c.bf16 %v2917_v62, %v2917_v62  ;;  %vm2956_vm10 = vcmask 64512   ;;  %v11594_v27 = vld [vmem:[%s13571_s18] sm:$0xff]  ;;  %v11595_v22 = vld [vmem:[%s13571_s18 + $0x8] sm:$0xff]  ;;  %s13606_s4 = sld [smem:[#allocation63_spill]] }
 0x568   :  { %v9025_v28 = vld [vmem:[#allocation2 + $0xe0] sm:$0xf]  ;;  %v11628_v29 = vld [vmem:[#allocation2 + $0xec] sm:$0xf0]  ;;  %vm7849_vm2 = vcmask 7168   ;;  %s13607_s30 = sld [smem:[#allocation64_spill]] }
 0x569   :  { %v2973_v23 = vsel %vm497_vm0, %v2931_v16, 0  ;;  %v2976_v25 = vsel %vm497_vm0, %v2932_v34, 0  ;;  %v9153_v30 = vld [vmem:[#allocation2 + $0x1e0] sm:$0xf]  ;;  %v9026_v31 = vor.u32 %v11628_v29, %v9025_v28  ;;  %v11660_v21 = vld [vmem:[#allocation2 + $0x1ec] sm:$0xf0] }
 0x56a   :  { %2985 = vmatpush.bf16.msra.mxu3 %v2973_v23  ;;  %3018 = vmatpush.bf16.msrb.mxu2 %v2976_v25  ;;  %v9009_v37 = vld [vmem:[#allocation2 + $0xc0] sm:$0xf]  ;;  %v11624_v48 = vld [vmem:[#allocation2 + $0xcc] sm:$0xf0]  ;;  %v9154_v4 = vor.u32 %v11660_v21, %v9153_v30  ;;  %v11597_v28 = vld [vmem:[%s13571_s18 + $0x18] sm:$0xff] }
 0x56b   :  { %v9137_v38 = vld [vmem:[#allocation2 + $0x1c0] sm:$0xf]  ;;  %v11656_v39 = vld [vmem:[#allocation2 + $0x1cc] sm:$0xf0]  ;;  %6528 = vmatpush.bf16.msra.mxu0 %v9026_v31  ;;  %v9010_v20 = vor.u32 %v11624_v48, %v9009_v37 }
 0x56c   :  { %6541 = vmatpush.bf16.msrb.mxu1 %v9154_v4  ;;  %v9138_v40 = vor.u32 %v11656_v39, %v9137_v38  ;;  %v8993_v24 = vld [vmem:[#allocation2 + $0xa0] sm:$0xf]  ;;  %v11620_v36 = vld [vmem:[#allocation2 + $0xac] sm:$0xf0] }
 0x56d   :  { %8901 = vmatmul.msk.bf16.vlgmr.msra.gmra.mxu3 %vm2956_vm10, %v11594_v27  ;;  %8906 = vmatmul.msk.bf16.vlgmr.msrb.gmra.mxu2 %vm2956_vm10, %v11594_v27  ;;  %v9121_v41 = vld [vmem:[#allocation2 + $0x1a0] sm:$0xf]  ;;  %v11652_v19 = vld [vmem:[#allocation2 + $0x1ac] sm:$0xf0]  ;;  %v8994_v44 = vor.u32 %v11620_v36, %v8993_v24 }
 0x56e   :  { %v9122_v45 = vor.u32 %v11652_v19, %v9121_v41  ;;  %v11596_v46 = vld [vmem:[%s13571_s18 + $0x10] sm:$0xff]  ;;  %v8977_v42 = vld [vmem:[#allocation2 + $0x80] sm:$0xf] }
 0x56f   :  { %6529 = vmatpush.bf16.msra.mxu0 %v9010_v20  ;;  %v11616_v47 = vld [vmem:[#allocation2 + $0x8c] sm:$0xf0]  ;;  %v9105_v18 = vld [vmem:[#allocation2 + $0x180] sm:$0xf] }
 0x570   :  { %6542 = vmatpush.bf16.msrb.mxu1 %v9138_v40  ;;  %v8978_v49 = vor.u32 %v11616_v47, %v8977_v42  ;;  %v11648_v50 = vld [vmem:[#allocation2 + $0x18c] sm:$0xf0]  ;;  %v8961_v43 = vld [vmem:[#allocation2 + $0x60] sm:$0xf] }
 0x571   :  { %v11612_v51 = vld [vmem:[#allocation2 + $0x6c] sm:$0xf0]  ;;  %v9106_v26 = vor.u32 %v11648_v50, %v9105_v18  ;;  %v9089_v54 = vld [vmem:[#allocation2 + $0x160] sm:$0xf] }
 0x572   :  { %v11644_v53 = vld [vmem:[#allocation2 + $0x16c] sm:$0xf0]  ;;  %v9537_v55 = vld [vmem:[#allocation2 + $0x4e0] sm:$0xf]  ;;  %v8962_v17 = vor.u32 %v11612_v51, %v8961_v43 }
 0x573   :  { %6530 = vmatpush.bf16.msra.mxu0 %v8994_v44  ;;  %v11756_v56 = vld [vmem:[#allocation2 + $0x4ec] sm:$0xf0]  ;;  %v9665_v58 = vld [vmem:[#allocation2 + $0x5e0] sm:$0xf]  ;;  %v9090_v14 = vor.u32 %v11644_v53, %v9089_v54 }
 0x574   :  { %6543 = vmatpush.bf16.msrb.mxu1 %v9122_v45  ;;  %v11788_v59 = vld [vmem:[#allocation2 + $0x5ec] sm:$0xf0]  ;;  %v9538_v60 = vor.u32 %v11756_v56, %v9537_v55  ;;  %v8945_v63 = vld [vmem:[#allocation2 + $0x40] sm:$0xf] }
 0x575   :  { %v9666_v61 = vor.u32 %v11788_v59, %v9665_v58  ;;  %v11608_v35 = vld [vmem:[#allocation2 + $0x4c] sm:$0xf0]  ;;  %v9073_v0 = vld [vmem:[#allocation2 + $0x140] sm:$0xf] }
 0x576   :  { %v11640_v33 = vld [vmem:[#allocation2 + $0x14c] sm:$0xf0]  ;;  %v9521_v1 = vld [vmem:[#allocation2 + $0x4c0] sm:$0xf]  ;;  %6580 = vmatpush.bf16.msrb.mxu3 %v9538_v60  ;;  %v8946_v7 = vor.u32 %v11608_v35, %v8945_v63 }
 0x577   :  { %6531 = vmatpush.bf16.msra.mxu0 %v8978_v49  ;;  %v11752_v3 = vld [vmem:[#allocation2 + $0x4cc] sm:$0xf0]  ;;  %6593 = vmatpush.bf16.msra.mxu2 %v9666_v61  ;;  %v9649_v6 = vld [vmem:[#allocation2 + $0x5c0] sm:$0xf]  ;;  %v9074_v10 = vor.u32 %v11640_v33, %v9073_v0 }
 0x578   :  { %6544 = vmatpush.bf16.msrb.mxu1 %v9106_v26  ;;  %v9522_v5 = vor.u32 %v11752_v3, %v9521_v1  ;;  %v11784_v52 = vld [vmem:[#allocation2 + $0x5cc] sm:$0xf0]  ;;  %v8929_v32 = vld [vmem:[#allocation2 + $0x20] sm:$0xf] }
 0x579   :  { %v9650_v8 = vor.u32 %v11784_v52, %v9649_v6  ;;  %v11604_v57 = vld [vmem:[#allocation2 + $0x2c] sm:$0xf0]  ;;  %v9505_v11 = vld [vmem:[#allocation2 + $0x4a0] sm:$0xf] }
 0x57a   :  { %v11748_v12 = vld [vmem:[#allocation2 + $0x4ac] sm:$0xf0]  ;;  %v9633_v9 = vld [vmem:[#allocation2 + $0x5a0] sm:$0xf]  ;;  %6581 = vmatpush.bf16.msrb.mxu3 %v9522_v5  ;;  %v8930_v23 = vor.u32 %v11604_v57, %v8929_v32 }
 0x57b   :  { %6532 = vmatpush.bf16.msra.mxu0 %v8962_v17  ;;  %v11780_v2 = vld [vmem:[#allocation2 + $0x5ac] sm:$0xf0]  ;;  %6594 = vmatpush.bf16.msra.mxu2 %v9650_v8  ;;  %v9057_v13 = vld [vmem:[#allocation2 + $0x120] sm:$0xf]  ;;  %v9506_v62 = vor.u32 %v11748_v12, %v9505_v11 }
 0x57c   :  { %6545 = vmatpush.bf16.msrb.mxu1 %v9090_v14  ;;  %v11636_v15 = vld [vmem:[#allocation2 + $0x12c] sm:$0xf0]  ;;  %v9634_v16 = vor.u32 %v11780_v2, %v9633_v9  ;;  %v9489_v34 = vld [vmem:[#allocation2 + $0x480] sm:$0xf] }
 0x57d   :  { %8902 = vmatmul.msk.bf16.gmra.mxu3 %vm2956_vm10, %v11595_v22  ;;  %8907 = vmatmul.msk.bf16.gmra.mxu2 %vm2956_vm10, %v11595_v22  ;;  %v11744_v25 = vld [vmem:[#allocation2 + $0x48c] sm:$0xf0]  ;;  %v9617_v27 = vld [vmem:[#allocation2 + $0x580] sm:$0xf]  ;;  %v9058_v31 = vor.u32 %v11636_v15, %v9057_v13 }
 0x57e   :  { %v11776_v22 = vld [vmem:[#allocation2 + $0x58c] sm:$0xf0]  ;;  %v8913_v29 = vld [vmem:[#allocation2] sm:$0xf]  ;;  %6582 = vmatpush.bf16.msrb.mxu3 %v9506_v62  ;;  %v9490_v38 = vor.u32 %v11744_v25, %v9489_v34 }
 0x57f   :  { %6533 = vmatpush.bf16.msra.mxu0 %v8946_v7  ;;  %v11600_v30 = vld [vmem:[#allocation2 + $0xc] sm:$0xf0]  ;;  %v9281_v21 = vld [vmem:[#allocation2 + $0x2e0] sm:$0xf]  ;;  %6595 = vmatpush.bf16.msra.mxu2 %v9634_v16  ;;  %v9618_v39 = vor.u32 %v11776_v22, %v9617_v27 }
 0x580   :  { %6546 = vmatpush.bf16.msrb.mxu1 %v9074_v10  ;;  %v11692_v37 = vld [vmem:[#allocation2 + $0x2ec] sm:$0xf0]  ;;  %v9041_v48 = vld [vmem:[#allocation2 + $0x100] sm:$0xf]  ;;  %v8914_v40 = vor.u32 %v11600_v30, %v8913_v29 }
 0x581   :  { %v11632_v4 = vld [vmem:[#allocation2 + $0x10c] sm:$0xf0]  ;;  %v9409_v20 = vld [vmem:[#allocation2 + $0x3e0] sm:$0xf]  ;;  %v9282_v19 = vor.u32 %v11692_v37, %v9281_v21 }
 0x582   :  { %v11724_v24 = vld [vmem:[#allocation2 + $0x3ec] sm:$0xf0]  ;;  %v9473_v36 = vld [vmem:[#allocation2 + $0x460] sm:$0xf]  ;;  %6583 = vmatpush.bf16.msrb.mxu3 %v9490_v38 }
 0x583   :  { %6534 = vmatpush.bf16.msra.mxu0 %v8930_v23  ;;  %v11740_v41 = vld [vmem:[#allocation2 + $0x46c] sm:$0xf0]  ;;  %v9601_v44 = vld [vmem:[#allocation2 + $0x560] sm:$0xf]  ;;  %6596 = vmatpush.bf16.msra.mxu2 %v9618_v39  ;;  %v9410_v18 = vor.u32 %v11724_v24, %v9409_v20 }
 0x584   :  { %v11772_v45 = vld [vmem:[#allocation2 + $0x56c] sm:$0xf0]  ;;  %6547 = vmatpush.bf16.msrb.mxu1 %v9058_v31  ;;  %v9265_v42 = vld [vmem:[#allocation2 + $0x2c0] sm:$0xf]  ;;  %v9474_v49 = vor.u32 %v11740_v41, %v9473_v36 }
 0x585   :  { %v11688_v47 = vld [vmem:[#allocation2 + $0x2cc] sm:$0xf0]  ;;  %v9393_v50 = vld [vmem:[#allocation2 + $0x3c0] sm:$0xf]  ;;  %v9602_v43 = vor.u32 %v11772_v45, %v9601_v44 }
 0x586   :  { %v11720_v51 = vld [vmem:[#allocation2 + $0x3cc] sm:$0xf0]  ;;  %v9457_v26 = vld [vmem:[#allocation2 + $0x440] sm:$0xf]  ;;  %v9266_v53 = vor.u32 %v11688_v47, %v9265_v42  ;;  %6584 = vmatpush.bf16.msrb.mxu3 %v9474_v49 }
 0x587   :  { %6535 = vmatpush.bf16.msra.mxu0 %v8914_v40  ;;  %v11736_v54 = vld [vmem:[#allocation2 + $0x44c] sm:$0xf0]  ;;  %v9585_v55 = vld [vmem:[#allocation2 + $0x540] sm:$0xf]  ;;  %v9394_v14 = vor.u32 %v11720_v51, %v9393_v50  ;;  %6597 = vmatpush.bf16.msra.mxu2 %v9602_v43 }
 0x588   :  { %v11768_v17 = vld [vmem:[#allocation2 + $0x54c] sm:$0xf0]  ;;  %v2930_v56 = vld [vmem:[%s13571_s18 + $0x20] sm:$0xf]  ;;  %v9458_v60 = vor.u32 %v11736_v54, %v9457_v26 }
 0x589   :  { %v9249_v58 = vld [vmem:[#allocation2 + $0x2a0] sm:$0xf]  ;;  %v11684_v59 = vld [vmem:[#allocation2 + $0x2ac] sm:$0xf0]  ;;  %v9586_v63 = vor.u32 %v11768_v17, %v9585_v55  ;;  %v2950_v1 = vunpack.c.l.b16 %v2930_v56 }
 0x58a   :  { %v9377_v61 = vld [vmem:[#allocation2 + $0x3a0] sm:$0xf]  ;;  %v11716_v35 = vld [vmem:[#allocation2 + $0x3ac] sm:$0xf0]  ;;  %v9250_v3 = vor.u32 %v11684_v59, %v9249_v58  ;;  %6585 = vmatpush.bf16.msrb.mxu3 %v9458_v60 }
 0x58b   :  { %6554 = vmatpush.bf16.msrb.mxu0 %v9282_v19  ;;  %v9441_v0 = vld [vmem:[#allocation2 + $0x420] sm:$0xf]  ;;  %v11732_v33 = vld [vmem:[#allocation2 + $0x42c] sm:$0xf0]  ;;  %v9378_v7 = vor.u32 %v11716_v35, %v9377_v61  ;;  %6598 = vmatpush.bf16.msra.mxu2 %v9586_v63  ;;  %v2955_v13 = vpack.c.b16 %v2950_v1, %v2950_v1 }
 0x58c   :  { %v9569_v5 = vld [vmem:[#allocation2 + $0x520] sm:$0xf]  ;;  %v11764_v6 = vld [vmem:[#allocation2 + $0x52c] sm:$0xf0]  ;;  %v9442_v8 = vor.u32 %v11732_v33, %v9441_v0 }
 0x58d   :  { %8903 = vmatmul.msk.bf16.gmra.mxu3 %vm2956_vm10, %v11596_v46  ;;  %8908 = vmatmul.msk.bf16.gmra.mxu2 %vm2956_vm10, %v11596_v46  ;;  %v9042_v46 = vor.u32 %v11632_v4, %v9041_v48  ;;  %v9233_v52 = vld [vmem:[#allocation2 + $0x280] sm:$0xf]  ;;  %v11680_v32 = vld [vmem:[#allocation2 + $0x28c] sm:$0xf0]  ;;  %v9570_v11 = vor.u32 %v11764_v6, %v9569_v5 }
 0x58e   :  { %v9361_v57 = vld [vmem:[#allocation2 + $0x380] sm:$0xf]  ;;  %v11712_v10 = vld [vmem:[#allocation2 + $0x38c] sm:$0xf0]  ;;  %v9234_v34 = vor.u32 %v11680_v32, %v9233_v52  ;;  %6586 = vmatpush.bf16.msrb.mxu3 %v9442_v8 }
 0x58f   :  { %6548 = vmatpush.bf16.msrb.mxu1 %v9042_v46  ;;  %6555 = vmatpush.bf16.msrb.mxu0 %v9266_v53  ;;  %v9425_v12 = vld [vmem:[#allocation2 + $0x400] sm:$0xf]  ;;  %v11728_v9 = vld [vmem:[#allocation2 + $0x40c] sm:$0xf0]  ;;  %v9362_v27 = vor.u32 %v11712_v10, %v9361_v57 }
 0x590   :  { %v9553_v2 = vld [vmem:[#allocation2 + $0x500] sm:$0xf]  ;;  %v11760_v15 = vld [vmem:[#allocation2 + $0x50c] sm:$0xf0]  ;;  %v9426_v22 = vor.u32 %v11728_v9, %v9425_v12  ;;  %6599 = vmatpush.bf16.msra.mxu2 %v9570_v11 }
 0x591   :  { %v10049_v62 = vld [vmem:[#allocation2 + $0x8e0] sm:$0xf]  ;;  %v11884_v16 = vld [vmem:[#allocation2 + $0x8ec] sm:$0xf0]  ;;  %v9554_v30 = vor.u32 %v11760_v15, %v9553_v2 }
 0x592   :  { %v10177_v23 = vld [vmem:[#allocation2 + $0x9e0] sm:$0xf]  ;;  %v11916_v25 = vld [vmem:[#allocation2 + $0x9ec] sm:$0xf0]  ;;  %v10050_v37 = vor.u32 %v11884_v16, %v10049_v62  ;;  %6587 = vmatpush.bf16.msrb.mxu3 %v9426_v22 }
 0x593   :  { %6567 = vmatpush.bf16.msra.mxu1 %v9410_v18  ;;  %6556 = vmatpush.bf16.msrb.mxu0 %v9250_v3  ;;  %v11676_v29 = vld [vmem:[#allocation2 + $0x26c] sm:$0xf0]  ;;  %v9345_v31 = vld [vmem:[#allocation2 + $0x360] sm:$0xf]  ;;  %v10178_v48 = vor.u32 %v11916_v25, %v10177_v23 }
 0x594   :  { %v11708_v21 = vld [vmem:[#allocation2 + $0x36c] sm:$0xf0]  ;;  %v10033_v4 = vld [vmem:[#allocation2 + $0x8c0] sm:$0xf]  ;;  %6600 = vmatpush.bf16.msra.mxu2 %v9554_v30 }
 0x595   :  { %v11880_v38 = vld [vmem:[#allocation2 + $0x8cc] sm:$0xf0]  ;;  %v10161_v20 = vld [vmem:[#allocation2 + $0x9c0] sm:$0xf]  ;;  %v9346_v24 = vor.u32 %v11708_v21, %v9345_v31 }
 0x596   :  { %v11912_v40 = vld [vmem:[#allocation2 + $0x9cc] sm:$0xf0]  ;;  %v9201_v36 = vld [vmem:[#allocation2 + $0x240] sm:$0xf]  ;;  %6632 = vmatpush.bf16.msra.mxu3 %v10050_v37  ;;  %v10034_v45 = vor.u32 %v11880_v38, %v10033_v4 }
 0x597   :  { %6568 = vmatpush.bf16.msra.mxu1 %v9394_v14  ;;  %6557 = vmatpush.bf16.msrb.mxu0 %v9234_v34  ;;  %v11672_v41 = vld [vmem:[#allocation2 + $0x24c] sm:$0xf0]  ;;  %v9329_v19 = vld [vmem:[#allocation2 + $0x340] sm:$0xf]  ;;  %v10162_v46 = vor.u32 %v11912_v40, %v10161_v20 }
 0x598   :  { %v11704_v44 = vld [vmem:[#allocation2 + $0x34c] sm:$0xf0]  ;;  %6645 = vmatpush.bf16.msrb.mxu2 %v10178_v48  ;;  %v10017_v42 = vld [vmem:[#allocation2 + $0x8a0] sm:$0xf]  ;;  %v9202_v18 = vor.u32 %v11672_v41, %v9201_v36 }
 0x599   :  { %v11876_v47 = vld [vmem:[#allocation2 + $0x8ac] sm:$0xf0]  ;;  %v10145_v49 = vld [vmem:[#allocation2 + $0x9a0] sm:$0xf]  ;;  %v9330_v43 = vor.u32 %v11704_v44, %v9329_v19 }
 0x59a   :  { %v11908_v50 = vld [vmem:[#allocation2 + $0x9ac] sm:$0xf0]  ;;  %v9185_v51 = vld [vmem:[#allocation2 + $0x220] sm:$0xf]  ;;  %6633 = vmatpush.bf16.msra.mxu3 %v10034_v45  ;;  %v10018_v55 = vor.u32 %v11876_v47, %v10017_v42 }
 0x59b   :  { %6569 = vmatpush.bf16.msra.mxu1 %v9378_v7  ;;  %v11668_v26 = vld [vmem:[#allocation2 + $0x22c] sm:$0xf0]  ;;  %v9313_v54 = vld [vmem:[#allocation2 + $0x320] sm:$0xf]  ;;  %v10146_v17 = vor.u32 %v11908_v50, %v10145_v49 }
 0x59c   :  { %v11700_v53 = vld [vmem:[#allocation2 + $0x32c] sm:$0xf0]  ;;  %6646 = vmatpush.bf16.msrb.mxu2 %v10162_v46  ;;  %v9186_v56 = vor.u32 %v11668_v26, %v9185_v51  ;;  %v9169_v59 = vld [vmem:[#allocation2 + $0x200] sm:$0xf] }
 0x59d   :  { %8904 = vmatmul.msk.bf16.gmra.mxu3 %vm2956_vm10, %v11597_v28  ;;  %8909 = vmatmul.msk.bf16.gmra.mxu2 %vm2956_vm10, %v11597_v28  ;;  %v9217_v28 = vld [vmem:[#allocation2 + $0x260] sm:$0xf]  ;;  %v9314_v58 = vor.u32 %v11700_v53, %v9313_v54  ;;  %v11664_v14 = vld [vmem:[#allocation2 + $0x20c] sm:$0xf0] }
 0x59e   :  { %v9218_v39 = vor.u32 %v11676_v29, %v9217_v28  ;;  %6634 = vmatpush.bf16.msra.mxu3 %v10018_v55  ;;  %v9297_v60 = vld [vmem:[#allocation2 + $0x300] sm:$0xf]  ;;  %v9170_v61 = vor.u32 %v11664_v14, %v9169_v59  ;;  %v11696_v63 = vld [vmem:[#allocation2 + $0x30c] sm:$0xf0] }
 0x59f   :  { %6570 = vmatpush.bf16.msra.mxu1 %v9362_v27  ;;  %v10001_v35 = vld [vmem:[#allocation2 + $0x880] sm:$0xf]  ;;  %v11872_v0 = vld [vmem:[#allocation2 + $0x88c] sm:$0xf0]  ;;  %v9298_v33 = vor.u32 %v11696_v63, %v9297_v60 }
 0x5a0   :  { %6558 = vmatpush.bf16.msrb.mxu0 %v9218_v39  ;;  %6647 = vmatpush.bf16.msrb.mxu2 %v10146_v17  ;;  %v10002_v1 = vor.u32 %v11872_v0, %v10001_v35  ;;  %v10129_v3 = vld [vmem:[#allocation2 + $0x980] sm:$0xf]  ;;  %v11904_v5 = vld [vmem:[#allocation2 + $0x98c] sm:$0xf0] }
 0x5a1   :  { %v10130_v6 = vor.u32 %v11904_v5, %v10129_v3  ;;  %v9985_v52 = vld [vmem:[#allocation2 + $0x860] sm:$0xf]  ;;  %v11868_v7 = vld [vmem:[#allocation2 + $0x86c] sm:$0xf0] }
 0x5a2   :  { %6635 = vmatpush.bf16.msra.mxu3 %v10002_v1  ;;  %v10113_v8 = vld [vmem:[#allocation2 + $0x960] sm:$0xf]  ;;  %v9986_v32 = vor.u32 %v11868_v7, %v9985_v52  ;;  %v11900_v57 = vld [vmem:[#allocation2 + $0x96c] sm:$0xf0] }
 0x5a3   :  { %6571 = vmatpush.bf16.msra.mxu1 %v9346_v24  ;;  %v10114_v10 = vor.u32 %v11900_v57, %v10113_v8  ;;  %v9969_v11 = vld [vmem:[#allocation2 + $0x840] sm:$0xf]  ;;  %v11864_v12 = vld [vmem:[#allocation2 + $0x84c] sm:$0xf0] }
 0x5a4   :  { %6559 = vmatpush.bf16.msrb.mxu0 %v9202_v18  ;;  %6648 = vmatpush.bf16.msrb.mxu2 %v10130_v6  ;;  %v10097_v9 = vld [vmem:[#allocation2 + $0x940] sm:$0xf]  ;;  %v9970_v2 = vor.u32 %v11864_v12, %v9969_v11  ;;  %v11860_v16 = vld [vmem:[#allocation2 + $0x82c] sm:$0xf0] }
 0x5a5   :  { %v9953_v62 = vld [vmem:[#allocation2 + $0x820] sm:$0xf]  ;;  %v11892_v25 = vld [vmem:[#allocation2 + $0x92c] sm:$0xf0] }
 0x5a6   :  { %6636 = vmatpush.bf16.msra.mxu3 %v9986_v32  ;;  %v10081_v34 = vld [vmem:[#allocation2 + $0x920] sm:$0xf]  ;;  %v9954_v23 = vor.u32 %v11860_v16, %v9953_v62  ;;  %v11856_v28 = vld [vmem:[#allocation2 + $0x80c] sm:$0xf0] }
 0x5a7   :  { %6572 = vmatpush.bf16.msra.mxu1 %v9330_v43  ;;  %v10082_v27 = vor.u32 %v11892_v25, %v10081_v34  ;;  %v9937_v22 = vld [vmem:[#allocation2 + $0x800] sm:$0xf]  ;;  %v11888_v31 = vld [vmem:[#allocation2 + $0x90c] sm:$0xf0] }
 0x5a8   :  { %6560 = vmatpush.bf16.msrb.mxu0 %v9186_v56  ;;  %6649 = vmatpush.bf16.msrb.mxu2 %v10114_v10  ;;  %v10065_v29 = vld [vmem:[#allocation2 + $0x900] sm:$0xf]  ;;  %v9938_v30 = vor.u32 %v11856_v28, %v9937_v22  ;;  %v11820_v48 = vld [vmem:[#allocation2 + $0x6ec] sm:$0xf0] }
 0x5a9   :  { %v10066_v21 = vor.u32 %v11888_v31, %v10065_v29  ;;  %v9793_v37 = vld [vmem:[#allocation2 + $0x6e0] sm:$0xf]  ;;  %v11852_v38 = vld [vmem:[#allocation2 + $0x7ec] sm:$0xf0] }
 0x5aa   :  { %6637 = vmatpush.bf16.msra.mxu3 %v9970_v2  ;;  %v9921_v4 = vld [vmem:[#allocation2 + $0x7e0] sm:$0xf]  ;;  %v9794_v40 = vor.u32 %v11820_v48, %v9793_v37  ;;  %v11816_v44 = vld [vmem:[#allocation2 + $0x6cc] sm:$0xf0] }
 0x5ab   :  { %6573 = vmatpush.bf16.msra.mxu1 %v9314_v58  ;;  %v9922_v24 = vor.u32 %v11852_v38, %v9921_v4  ;;  %v9777_v36 = vld [vmem:[#allocation2 + $0x6c0] sm:$0xf]  ;;  %v11848_v46 = vld [vmem:[#allocation2 + $0x7cc] sm:$0xf0] }
 0x5ac   :  { %6561 = vmatpush.bf16.msrb.mxu0 %v9170_v61  ;;  %v9905_v45 = vld [vmem:[#allocation2 + $0x7c0] sm:$0xf]  ;;  %v9778_v42 = vor.u32 %v11816_v44, %v9777_v36  ;;  %v11812_v49 = vld [vmem:[#allocation2 + $0x6ac] sm:$0xf0] }
 0x5ad   :  { %8905 = vmatmul.msk.bf16.gmra.mxu3 %vm2956_vm10, %v2955_v13  ;;  %8910 = vmatmul.msk.bf16.gmra.mxu2 %vm2956_vm10, %v2955_v13  ;;  %v11896_v13 = vld [vmem:[#allocation2 + $0x94c] sm:$0xf0]  ;;  %v9906_v47 = vor.u32 %v11848_v46, %v9905_v45  ;;  %v9761_v18 = vld [vmem:[#allocation2 + $0x6a0] sm:$0xf] }
 0x5ae   :  { %v10098_v15 = vor.u32 %v11896_v13, %v10097_v9  ;;  %6638 = vmatpush.bf16.msra.mxu3 %v9954_v23  ;;  %v9889_v50 = vld [vmem:[#allocation2 + $0x7a0] sm:$0xf]  ;;  %v11844_v43 = vld [vmem:[#allocation2 + $0x7ac] sm:$0xf0]  ;;  %v9762_v54 = vor.u32 %v11812_v49, %v9761_v18 }
 0x5af   :  { %6574 = vmatpush.bf16.msra.mxu1 %v9298_v33  ;;  %v9890_v53 = vor.u32 %v11844_v43, %v9889_v50  ;;  %v9745_v55 = vld [vmem:[#allocation2 + $0x680] sm:$0xf]  ;;  %v11808_v17 = vld [vmem:[#allocation2 + $0x68c] sm:$0xf0] }
 0x5b0   :  { %6650 = vmatpush.bf16.msrb.mxu2 %v10098_v15  ;;  %v9873_v56 = vld [vmem:[#allocation2 + $0x780] sm:$0xf]  ;;  %v11840_v58 = vld [vmem:[#allocation2 + $0x78c] sm:$0xf0]  ;;  %v9746_v59 = vor.u32 %v11808_v17, %v9745_v55 }
 0x5b1   :  { %v9874_v14 = vor.u32 %v11840_v58, %v9873_v56  ;;  %v9729_v60 = vld [vmem:[#allocation2 + $0x660] sm:$0xf]  ;;  %v11804_v61 = vld [vmem:[#allocation2 + $0x66c] sm:$0xf0] }
 0x5b2   :  { %6639 = vmatpush.bf16.msra.mxu3 %v9938_v30  ;;  %v9857_v63 = vld [vmem:[#allocation2 + $0x760] sm:$0xf]  ;;  %v11836_v35 = vld [vmem:[#allocation2 + $0x76c] sm:$0xf0]  ;;  %v9730_v52 = vor.u32 %v11804_v61, %v9729_v60 }
 0x5b3   :  { %v10561_v0 = vld [vmem:[#allocation2 + $0xce0] sm:$0xf]  ;;  %v12012_v33 = vld [vmem:[#allocation2 + $0xcec] sm:$0xf0]  ;;  %v9858_v7 = vor.u32 %v11836_v35, %v9857_v63 }
 0x5b4   :  { %6651 = vmatpush.bf16.msrb.mxu2 %v10082_v27  ;;  %v10689_v1 = vld [vmem:[#allocation2 + $0xde0] sm:$0xf]  ;;  %v12044_v3 = vld [vmem:[#allocation2 + $0xdec] sm:$0xf0]  ;;  %v10562_v9 = vor.u32 %v12012_v33, %v10561_v0 }
 0x5b5   :  { %v9713_v11 = vld [vmem:[#allocation2 + $0x640] sm:$0xf]  ;;  %v11800_v12 = vld [vmem:[#allocation2 + $0x64c] sm:$0xf0]  ;;  %v10690_v2 = vor.u32 %v12044_v3, %v10689_v1 }
 0x5b6   :  { %v9841_v13 = vld [vmem:[#allocation2 + $0x740] sm:$0xf]  ;;  %v11832_v15 = vld [vmem:[#allocation2 + $0x74c] sm:$0xf0]  ;;  %v9714_v25 = vor.u32 %v11800_v12, %v9713_v11 }
 0x5b7   :  { %v10545_v62 = vld [vmem:[#allocation2 + $0xcc0] sm:$0xf]  ;;  %v12008_v16 = vld [vmem:[#allocation2 + $0xccc] sm:$0xf0]  ;;  %v9842_v27 = vor.u32 %v11832_v15, %v9841_v13 }
 0x5b8   :  { %6652 = vmatpush.bf16.msrb.mxu2 %v10066_v21  ;;  %v10673_v34 = vld [vmem:[#allocation2 + $0xdc0] sm:$0xf]  ;;  %v12040_v23 = vld [vmem:[#allocation2 + $0xdcc] sm:$0xf0]  ;;  %v10546_v29 = vor.u32 %v12008_v16, %v10545_v62 }
 0x5b9   :  { %v9697_v22 = vld [vmem:[#allocation2 + $0x620] sm:$0xf]  ;;  %v11796_v28 = vld [vmem:[#allocation2 + $0x62c] sm:$0xf0]  ;;  %v10674_v30 = vor.u32 %v12040_v23, %v10673_v34 }
 0x5ba   :  { %v9825_v31 = vld [vmem:[#allocation2 + $0x720] sm:$0xf]  ;;  %v11828_v21 = vld [vmem:[#allocation2 + $0x72c] sm:$0xf0] }
 0x5bb   :  { %v10529_v37 = vld [vmem:[#allocation2 + $0xca0] sm:$0xf]  ;;  %v12004_v48 = vld [vmem:[#allocation2 + $0xcac] sm:$0xf0] }
 0x5bc   :  { %v10657_v4 = vld [vmem:[#allocation2 + $0xda0] sm:$0xf]  ;;  %v12036_v38 = vld [vmem:[#allocation2 + $0xdac] sm:$0xf0]  ;;  %v10530_v46 = vor.u32 %v12004_v48, %v10529_v37 }
 0x5bd   :  { %v9681_v36 = vld [vmem:[#allocation2 + $0x600] sm:$0xf]  ;;  %v11792_v44 = vld [vmem:[#allocation2 + $0x60c] sm:$0xf0] }
 0x5be   :  { %v9809_v45 = vld [vmem:[#allocation2 + $0x700] sm:$0xf]  ;;  %v12000_v49 = vld [vmem:[#allocation2 + $0xc8c] sm:$0xf0]  ;;  %v9682_v55 = vor.u32 %v11792_v44, %v9681_v36 }
 0x5bf   :  { %v10513_v18 = vld [vmem:[#allocation2 + $0xc80] sm:$0xf]  ;;  %v12032_v43 = vld [vmem:[#allocation2 + $0xd8c] sm:$0xf0] }
 0x5c0   :  { %v10641_v50 = vld [vmem:[#allocation2 + $0xd80] sm:$0xf]  ;;  %v10514_v56 = vor.u32 %v12000_v49, %v10513_v18  ;;  %v12028_v35 = vld [vmem:[#allocation2 + $0xd6c] sm:$0xf0] }
 0x5c1   :  { %v10642_v58 = vor.u32 %v12032_v43, %v10641_v50  ;;  %v10625_v63 = vld [vmem:[#allocation2 + $0xd60] sm:$0xf]  ;;  %v11992_v15 = vld [vmem:[#allocation2 + $0xc4c] sm:$0xf0] }
 0x5c2   :  { %v10289_v0 = vld [vmem:[#allocation2 + $0xac0] sm:$0xf]  ;;  %v12024_v23 = vld [vmem:[#allocation2 + $0xd4c] sm:$0xf0] }
 0x5c3   :  { %v10481_v13 = vld [vmem:[#allocation2 + $0xc40] sm:$0xf]  ;;  %v12016_v43 = vld [vmem:[#allocation2 + $0xd0c] sm:$0xf0] }
 0x5c4   :  { %v10609_v34 = vld [vmem:[#allocation2 + $0xd40] sm:$0xf] }
 0x5c5   :  { %v10577_v18 = vld [vmem:[#allocation2 + $0xd00] sm:$0xf] }
 0x5f0   :  { %v2987_v39 = vpop.f32.mrf.mxu3  ;;  %v3020_v20 = vpop.f32.mrf.mxu2 }
 0x5f1   :  { %v13218_v41 = vpack.c.bf16 %v2987_v39, %v2987_v39  ;;  %v13220_v19 = vpack.c.bf16 %v3020_v20, %v3020_v20 }
 0x5f3   :  { %6536 = vmatmul.bf16.vlgmr.msra.gmra.mxu0 %v13218_v41  ;;  %6549 = vmatmul.bf16.vlgmr.msrb.gmra.mxu1 %v13220_v19 }
 0x5f4   :  { %6606 = vmatpush.bf16.msra.mxu0 %v9794_v40  ;;  %6619 = vmatpush.bf16.msrb.mxu1 %v9922_v24  ;;  %v9698_v40 = vor.u32 %v11796_v28, %v9697_v22  ;;  %v9826_v24 = vor.u32 %v11828_v21, %v9825_v31  ;;  %v10401_v22 = vld [vmem:[#allocation2 + $0xba0] sm:$0xf]  ;;  %v11972_v28 = vld [vmem:[#allocation2 + $0xbac] sm:$0xf0] }
 0x5f5   :  { %v10465_v31 = vld [vmem:[#allocation2 + $0xc20] sm:$0xf]  ;;  %v11988_v21 = vld [vmem:[#allocation2 + $0xc2c] sm:$0xf0]  ;;  %v10402_v48 = vor.u32 %v11972_v28, %v10401_v22 }
 0x5f8   :  { %6607 = vmatpush.bf16.msra.mxu0 %v9778_v42  ;;  %6620 = vmatpush.bf16.msrb.mxu1 %v9906_v47  ;;  %v2989_v51 = vpop.f32.mrf.mxu3  ;;  %v3022_v26 = vpop.f32.mrf.mxu2  ;;  %v10658_v42 = vor.u32 %v12036_v38, %v10657_v4  ;;  %v11824_v47 = vld [vmem:[#allocation2 + $0x70c] sm:$0xf0]  ;;  %v10593_v4 = vld [vmem:[#allocation2 + $0xd20] sm:$0xf] }
 0x5f9   :  { %v13224_v8 = vpack.c.bf16 %v2989_v51, %v2989_v51  ;;  %v13226_v32 = vpack.c.bf16 %v3022_v26, %v3022_v26  ;;  %v10305_v51 = vld [vmem:[#allocation2 + $0xae0] sm:$0xf]  ;;  %v11948_v26 = vld [vmem:[#allocation2 + $0xaec] sm:$0xf0]  ;;  %v9810_v17 = vor.u32 %v11824_v47, %v9809_v45  ;;  %v10466_v45 = vor.u32 %v11988_v21, %v10465_v31 }
 0x5fa   :  { %v10306_v60 = vor.u32 %v11948_v26, %v10305_v51  ;;  %v12020_v38 = vld [vmem:[#allocation2 + $0xd2c] sm:$0xf0]  ;;  %v10241_v51 = vld [vmem:[#allocation2 + $0xa60] sm:$0xf] }
 0x5fb   :  { %v11984_v47 = vld [vmem:[#allocation2 + $0xc0c] sm:$0xf0]  ;;  %v11041_v31 = vld [vmem:[#allocation2 + $0x10a0] sm:$0xf] }
 0x5fc   :  { %6608 = vmatpush.bf16.msra.mxu0 %v9762_v54  ;;  %6621 = vmatpush.bf16.msrb.mxu1 %v9890_v53  ;;  %v10433_v54 = vld [vmem:[#allocation2 + $0xbe0] sm:$0xf]  ;;  %v11980_v53 = vld [vmem:[#allocation2 + $0xbec] sm:$0xf0] }
 0x5fd   :  { %v10434_v61 = vor.u32 %v11980_v53, %v10433_v54  ;;  %v11932_v26 = vld [vmem:[#allocation2 + $0xa6c] sm:$0xf0]  ;;  %v10369_v54 = vld [vmem:[#allocation2 + $0xb60] sm:$0xf] }
 0x5fe   :  { %v11964_v53 = vld [vmem:[#allocation2 + $0xb6c] sm:$0xf0] }
 0x5ff   :  { %v12132_v21 = vld [vmem:[#allocation2 + $0x10ac] sm:$0xf0] }
 0x600   :  { %6609 = vmatpush.bf16.msra.mxu0 %v9746_v59  ;;  %6622 = vmatpush.bf16.msrb.mxu1 %v9874_v14  ;;  %v2992_v5 = vpop.f32.mrf.mxu3  ;;  %v3025_v6 = vpop.f32.mrf.mxu2  ;;  %v10497_v59 = vld [vmem:[#allocation2 + $0xc60] sm:$0xf]  ;;  %v11996_v14 = vld [vmem:[#allocation2 + $0xc6c] sm:$0xf0] }
 0x601   :  { %v13228_v57 = vpack.c.bf16 %v2992_v5, %v2992_v5  ;;  %v13230_v10 = vpack.c.bf16 %v3025_v6, %v3025_v6  ;;  %v11944_v5 = vld [vmem:[#allocation2 + $0xacc] sm:$0xf0]  ;;  %v10417_v6 = vld [vmem:[#allocation2 + $0xbc0] sm:$0xf] }
 0x602   :  { %v10290_v62 = vor.u32 %v11944_v5, %v10289_v0  ;;  %v11960_v5 = vld [vmem:[#allocation2 + $0xb4c] sm:$0xf0] }
 0x603   :  { %6562 = vmatmul.bf16.vlgmr.msrb.gmra.mxu0 %v13224_v8  ;;  %6575 = vmatmul.bf16.vlgmr.msra.gmra.mxu1 %v13226_v32 }
 0x604   :  { %6588 = vmatmul.bf16.vlgmr.msrb.gmra.mxu3 %v13228_v57  ;;  %6601 = vmatmul.bf16.vlgmr.msra.gmra.mxu2 %v13230_v10 }
 0x605   :  { %6610 = vmatpush.bf16.msra.mxu0 %v9730_v52  ;;  %6623 = vmatpush.bf16.msrb.mxu1 %v9858_v7  ;;  %v11976_v52 = vld [vmem:[#allocation2 + $0xbcc] sm:$0xf0] }
 0x606   :  { %6684 = vmatpush.bf16.msrb.mxu3 %v10562_v9  ;;  %6697 = vmatpush.bf16.msra.mxu2 %v10690_v2  ;;  %v10498_v9 = vor.u32 %v11996_v14, %v10497_v59  ;;  %v10626_v2 = vor.u32 %v12028_v35, %v10625_v63  ;;  %v10418_v16 = vor.u32 %v11976_v52, %v10417_v6  ;;  %v10225_v63 = vld [vmem:[#allocation2 + $0xa40] sm:$0xf]  ;;  %v11928_v35 = vld [vmem:[#allocation2 + $0xa4c] sm:$0xf0] }
 0x607   :  { %v10578_v14 = vor.u32 %v12016_v43, %v10577_v18  ;;  %v11057_v6 = vld [vmem:[#allocation2 + $0x10c0] sm:$0xf]  ;;  %v12160_v43 = vld [vmem:[#allocation2 + $0x118c] sm:$0xf0] }
 0x608   :  { %v2994_v39 = vpop.f32.mrf.mxu3  ;;  %v3027_v20 = vpop.f32.mrf.mxu2 }
 0x609   :  { %6611 = vmatpush.bf16.msra.mxu0 %v9714_v25  ;;  %6624 = vmatpush.bf16.msrb.mxu1 %v9842_v27  ;;  %v13236_v33 = vpack.c.bf16 %v2994_v39, %v2994_v39  ;;  %v13238_v7 = vpack.c.bf16 %v3027_v20, %v3027_v20  ;;  %v10273_v25 = vld [vmem:[#allocation2 + $0xaa0] sm:$0xf]  ;;  %v11940_v27 = vld [vmem:[#allocation2 + $0xaac] sm:$0xf0] }
 0x60a   :  { %6685 = vmatpush.bf16.msrb.mxu3 %v10546_v29  ;;  %6698 = vmatpush.bf16.msra.mxu2 %v10674_v30  ;;  %v10482_v29 = vor.u32 %v11992_v15, %v10481_v13  ;;  %v10610_v30 = vor.u32 %v12024_v23, %v10609_v34  ;;  %v10274_v37 = vor.u32 %v11940_v27, %v10273_v25  ;;  %v10257_v39 = vld [vmem:[#allocation2 + $0xa80] sm:$0xf]  ;;  %v11936_v20 = vld [vmem:[#allocation2 + $0xa8c] sm:$0xf0] }
 0x60b   :  { %v10258_v49 = vor.u32 %v11936_v20, %v10257_v39  ;;  %v11185_v13 = vld [vmem:[#allocation2 + $0x11c0] sm:$0xf]  ;;  %v12168_v15 = vld [vmem:[#allocation2 + $0x11cc] sm:$0xf0]  ;;  %v10226_v34 = vor.u32 %v11928_v35, %v10225_v63 }
 0x60c   :  { %v10209_v25 = vld [vmem:[#allocation2 + $0xa20] sm:$0xf]  ;;  %v11924_v27 = vld [vmem:[#allocation2 + $0xa2c] sm:$0xf0]  ;;  %v11186_v28 = vor.u32 %v12168_v15, %v11185_v13 }
 0x60d   :  { %6612 = vmatpush.bf16.msra.mxu0 %v9698_v40  ;;  %6625 = vmatpush.bf16.msrb.mxu1 %v9826_v24  ;;  %v10385_v40 = vld [vmem:[#allocation2 + $0xb80] sm:$0xf]  ;;  %v11968_v24 = vld [vmem:[#allocation2 + $0xb8c] sm:$0xf0] }
 0x60e   :  { %6686 = vmatpush.bf16.msrb.mxu3 %v10530_v46  ;;  %6699 = vmatpush.bf16.msra.mxu2 %v10658_v42  ;;  %v10594_v46 = vor.u32 %v12020_v38, %v10593_v4  ;;  %v10449_v42 = vld [vmem:[#allocation2 + $0xc00] sm:$0xf]  ;;  %v10386_v50 = vor.u32 %v11968_v24, %v10385_v40  ;;  %v10210_v4 = vor.u32 %v11924_v27, %v10209_v25  ;;  %v11920_v20 = vld [vmem:[#allocation2 + $0xa0c] sm:$0xf0] }
 0x60f   :  { %v10450_v59 = vor.u32 %v11984_v47, %v10449_v42  ;;  %v10193_v39 = vld [vmem:[#allocation2 + $0xa00] sm:$0xf]  ;;  %v11042_v24 = vor.u32 %v12132_v21, %v11041_v31  ;;  %v12128_v47 = vld [vmem:[#allocation2 + $0x108c] sm:$0xf0] }
 0x610   :  { %v2997_v1 = vpop.f32.mrf.mxu3  ;;  %v3030_v3 = vpop.f32.mrf.mxu2  ;;  %v10321_v40 = vld [vmem:[#allocation2 + $0xb00] sm:$0xf]  ;;  %v12156_v35 = vld [vmem:[#allocation2 + $0x116c] sm:$0xf0] }
 0x611   :  { %6613 = vmatpush.bf16.msra.mxu0 %v9682_v55  ;;  %6626 = vmatpush.bf16.msrb.mxu1 %v9810_v17  ;;  %v13240_v11 = vpack.c.bf16 %v2997_v1, %v2997_v1  ;;  %v13242_v12 = vpack.c.bf16 %v3030_v3, %v3030_v3  ;;  %v11073_v55 = vld [vmem:[#allocation2 + $0x10e0] sm:$0xf]  ;;  %v12140_v17 = vld [vmem:[#allocation2 + $0x10ec] sm:$0xf0] }
 0x612   :  { %6687 = vmatpush.bf16.msrb.mxu3 %v10514_v56  ;;  %6700 = vmatpush.bf16.msra.mxu2 %v10642_v58  ;;  %v11201_v56 = vld [vmem:[#allocation2 + $0x11e0] sm:$0xf]  ;;  %v12172_v58 = vld [vmem:[#allocation2 + $0x11ec] sm:$0xf0]  ;;  %v11074_v0 = vor.u32 %v12140_v17, %v11073_v55  ;;  %v10194_v55 = vor.u32 %v11920_v20, %v10193_v39 }
 0x613   :  { %v11202_v1 = vor.u32 %v12172_v58, %v11201_v56  ;;  %v10353_v3 = vld [vmem:[#allocation2 + $0xb40] sm:$0xf]  ;;  %v12120_v15 = vld [vmem:[#allocation2 + $0x104c] sm:$0xf0] }
 0x614   :  { %6614 = vmatmul.bf16.vlgmr.msra.gmra.mxu0 %v13236_v33  ;;  %6640 = vmatmul.bf16.vlgmr.msra.gmra.mxu3 %v13240_v11  ;;  %v10354_v23 = vor.u32 %v11960_v5, %v10353_v3  ;;  %v11025_v42 = vld [vmem:[#allocation2 + $0x1080] sm:$0xf]  ;;  %v12072_v5 = vld [vmem:[#allocation2 + $0xecc] sm:$0xf0] }
 0x615   :  { %6658 = vmatpush.bf16.msrb.mxu0 %v10306_v60  ;;  %6671 = vmatpush.bf16.msra.mxu1 %v10434_v61  ;;  %v10242_v60 = vor.u32 %v11932_v26, %v10241_v51  ;;  %v10370_v61 = vor.u32 %v11964_v53, %v10369_v54  ;;  %v10817_v51 = vld [vmem:[#allocation2 + $0xee0] sm:$0xf]  ;;  %v12076_v26 = vld [vmem:[#allocation2 + $0xeec] sm:$0xf0]  ;;  %v11026_v56 = vor.u32 %v12128_v47, %v11025_v42 }
 0x616   :  { %6627 = vmatmul.bf16.vlgmr.msrb.gmra.mxu1 %v13238_v7  ;;  %6653 = vmatmul.bf16.vlgmr.msrb.gmra.mxu2 %v13242_v12  ;;  %v10945_v54 = vld [vmem:[#allocation2 + $0xfe0] sm:$0xf]  ;;  %v12108_v53 = vld [vmem:[#allocation2 + $0xfec] sm:$0xf0] }
 0x617   :  { %6688 = vmatpush.bf16.msrb.mxu3 %v10498_v9  ;;  %6701 = vmatpush.bf16.msra.mxu2 %v10626_v2  ;;  %v12136_v2 = vld [vmem:[#allocation2 + $0x10cc] sm:$0xf0]  ;;  %v11137_v63 = vld [vmem:[#allocation2 + $0x1160] sm:$0xf] }
 0x618   :  { %v13248_v36 = vpop.f32.mrf.mxu3  ;;  %v13250_v44 = vpop.f32.mrf.mxu2  ;;  %v11058_v22 = vor.u32 %v12136_v2, %v11057_v6  ;;  %v10929_v6 = vld [vmem:[#allocation2 + $0xfc0] sm:$0xf]  ;;  %v11138_v2 = vor.u32 %v12156_v35, %v11137_v63  ;;  %v12152_v27 = vld [vmem:[#allocation2 + $0x114c] sm:$0xf0]  ;;  %v11722_v63 = vld [vmem:[#allocation2 + $0x3e4] sm:$0xf] }
 0x619   :  { %6659 = vmatpush.bf16.msrb.mxu0 %v10290_v62  ;;  %6672 = vmatpush.bf16.msra.mxu1 %v10418_v16  ;;  %v13268_v3 = vpack.c.bf16 %v13250_v44, %v13250_v44  ;;  %v10993_v13 = vld [vmem:[#allocation2 + $0x1040] sm:$0xf]  ;;  %v12148_v20 = vld [vmem:[#allocation2 + $0x112c] sm:$0xf0]  ;;  %v9411_v35 = vld [vmem:[#allocation2 + $0x3f0] sm:$0xf0] }
 0x61a   :  { %v11121_v25 = vld [vmem:[#allocation2 + $0x1140] sm:$0xf]  ;;  %v10994_v31 = vor.u32 %v12120_v15, %v10993_v13  ;;  %v9414_v15 = vor.u32 %v11722_v63, %v9411_v35 }
 0x61b   :  { %6689 = vmatpush.bf16.msrb.mxu3 %v10482_v29  ;;  %6702 = vmatpush.bf16.msra.mxu2 %v10610_v30  ;;  %v10337_v29 = vld [vmem:[#allocation2 + $0xb20] sm:$0xf]  ;;  %v11956_v30 = vld [vmem:[#allocation2 + $0xb2c] sm:$0xf0]  ;;  %v11122_v21 = vor.u32 %v12152_v27, %v11121_v25  ;;  %v11686_v25 = vld [vmem:[#allocation2 + $0x2c4] sm:$0xf] }
 0x61c   :  { %v10338_v38 = vor.u32 %v11956_v30, %v10337_v29  ;;  %v10913_v29 = vld [vmem:[#allocation2 + $0xfa0] sm:$0xf]  ;;  %v12100_v30 = vld [vmem:[#allocation2 + $0xfac] sm:$0xf0]  ;;  %v9267_v27 = vld [vmem:[#allocation2 + $0x2d0] sm:$0xf0] }
 0x61d   :  { %6660 = vmatpush.bf16.msrb.mxu0 %v10274_v37  ;;  %6673 = vmatpush.bf16.msra.mxu1 %v10402_v48  ;;  %v11169_v37 = vld [vmem:[#allocation2 + $0x11a0] sm:$0xf]  ;;  %v12164_v48 = vld [vmem:[#allocation2 + $0x11ac] sm:$0xf0] }
 0x61e   :  { %v11105_v39 = vld [vmem:[#allocation2 + $0x1120] sm:$0xf] }
 0x61f   :  { %6690 = vmatpush.bf16.msrb.mxu3 %v10466_v45  ;;  %6703 = vmatpush.bf16.msra.mxu2 %v10594_v46  ;;  %v11170_v45 = vor.u32 %v12164_v48, %v11169_v37  ;;  %v11952_v46 = vld [vmem:[#allocation2 + $0xb0c] sm:$0xf0]  ;;  %v10977_v37 = vld [vmem:[#allocation2 + $0x1020] sm:$0xf]  ;;  %v11106_v47 = vor.u32 %v12148_v20, %v11105_v39 }
 0x620   :  { %v3002_v52 = vpop.f32.mrf.mxu3  ;;  %v3035_v9 = vpop.f32.mrf.mxu2  ;;  %v10322_v17 = vor.u32 %v11952_v46, %v10321_v40  ;;  %v12116_v48 = vld [vmem:[#allocation2 + $0x102c] sm:$0xf0]  ;;  %v10769_v40 = vld [vmem:[#allocation2 + $0xe80] sm:$0xf] }
 0x621   :  { %6661 = vmatpush.bf16.msrb.mxu0 %v10258_v49  ;;  %6674 = vmatpush.bf16.msra.mxu1 %v10386_v50  ;;  %v13252_v62 = vpack.c.bf16 %v3002_v52, %v3002_v52  ;;  %v13254_v16 = vpack.c.bf16 %v3035_v9, %v3035_v9  ;;  %v11153_v50 = vld [vmem:[#allocation2 + $0x1180] sm:$0xf]  ;;  %v12104_v52 = vld [vmem:[#allocation2 + $0xfcc] sm:$0xf0]  ;;  %v10978_v42 = vor.u32 %v12116_v48, %v10977_v37 }
 0x622   :  { %v11154_v58 = vor.u32 %v12160_v43, %v11153_v50  ;;  %v10930_v44 = vor.u32 %v12104_v52, %v10929_v6  ;;  %v12096_v46 = vld [vmem:[#allocation2 + $0xf8c] sm:$0xf0]  ;;  %v10961_v50 = vld [vmem:[#allocation2 + $0x1000] sm:$0xf] }
 0x623   :  { %6691 = vmatpush.bf16.msrb.mxu3 %v10450_v59  ;;  %6704 = vmatpush.bf16.msra.mxu2 %v10578_v14  ;;  %v11009_v59 = vld [vmem:[#allocation2 + $0x1060] sm:$0xf]  ;;  %v12124_v14 = vld [vmem:[#allocation2 + $0x106c] sm:$0xf0] }
 0x624   :  { %v11010_v9 = vor.u32 %v12124_v14, %v11009_v59  ;;  %v12112_v43 = vld [vmem:[#allocation2 + $0x100c] sm:$0xf0]  ;;  %v10881_v59 = vld [vmem:[#allocation2 + $0xf60] sm:$0xf] }
 0x625   :  { %6662 = vmatpush.bf16.msrb.mxu0 %v10242_v60  ;;  %6675 = vmatpush.bf16.msra.mxu1 %v10370_v61  ;;  %v10818_v60 = vor.u32 %v12076_v26, %v10817_v51  ;;  %v10946_v61 = vor.u32 %v12108_v53, %v10945_v54  ;;  %v11089_v51 = vld [vmem:[#allocation2 + $0x1100] sm:$0xf]  ;;  %v12092_v14 = vld [vmem:[#allocation2 + $0xf6c] sm:$0xf0] }
 0x626   :  { %6692 = vmatmul.bf16.vlgmr.msrb.gmra.mxu3 %v13252_v62  ;;  %6705 = vmatmul.bf16.vlgmr.msra.gmra.mxu2 %v13254_v16  ;;  %v10882_v52 = vor.u32 %v12092_v14, %v10881_v59  ;;  %v10721_v37 = vld [vmem:[#allocation2 + $0xe20] sm:$0xf]  ;;  %v12052_v48 = vld [vmem:[#allocation2 + $0xe2c] sm:$0xf0]  ;;  %v11658_v59 = vld [vmem:[#allocation2 + $0x1e4] sm:$0xf] }
 0x627   :  { %6736 = vmatpush.bf16.msra.mxu3 %v11074_v0  ;;  %6749 = vmatpush.bf16.msrb.mxu2 %v11202_v1  ;;  %v10801_v0 = vld [vmem:[#allocation2 + $0xec0] sm:$0xf]  ;;  %v13264_v1 = vpack.c.bf16 %v13248_v36, %v13248_v36  ;;  %v12084_v20 = vld [vmem:[#allocation2 + $0xf2c] sm:$0xf0]  ;;  %v9155_v14 = vld [vmem:[#allocation2 + $0x1f0] sm:$0xf0] }
 0x628   :  { %v13258_v18 = vpop.f32.mrf.mxu3  ;;  %v13260_v49 = vpop.f32.mrf.mxu2  ;;  %v10802_v36 = vor.u32 %v12072_v5, %v10801_v0  ;;  %v10962_v0 = vor.u32 %v12112_v43, %v10961_v50  ;;  %v10849_v39 = vld [vmem:[#allocation2 + $0xf20] sm:$0xf] }
 0x629   :  { %6663 = vmatpush.bf16.msrb.mxu0 %v10226_v34  ;;  %6676 = vmatpush.bf16.msra.mxu1 %v10354_v23  ;;  %v10833_v50 = vld [vmem:[#allocation2 + $0xf00] sm:$0xf] }
 0x62b   :  { %6737 = vmatpush.bf16.msra.mxu3 %v11058_v22  ;;  %6750 = vmatpush.bf16.msrb.mxu2 %v11186_v28  ;;  %v10785_v22 = vld [vmem:[#allocation2 + $0xea0] sm:$0xf]  ;;  %v12068_v28 = vld [vmem:[#allocation2 + $0xeac] sm:$0xf0] }
 0x62d   :  { %6664 = vmatpush.bf16.msrb.mxu0 %v10210_v4  ;;  %6677 = vmatpush.bf16.msra.mxu1 %v10338_v38  ;;  %v10786_v4 = vor.u32 %v12068_v28, %v10785_v22  ;;  %v10914_v38 = vor.u32 %v12100_v30, %v10913_v29  ;;  %v11718_v22 = vld [vmem:[#allocation2 + $0x3c4] sm:$0xf]  ;;  %v9395_v28 = vld [vmem:[#allocation2 + $0x3d0] sm:$0xf0] }
 0x62f   :  { %6738 = vmatpush.bf16.msra.mxu3 %v11042_v24  ;;  %6751 = vmatpush.bf16.msrb.mxu2 %v11170_v45  ;;  %v12064_v24 = vld [vmem:[#allocation2 + $0xe8c] sm:$0xf0]  ;;  %v10897_v45 = vld [vmem:[#allocation2 + $0xf80] sm:$0xf] }
 0x630   :  { %v13270_v34 = vpop.f32.mrf.mxu3  ;;  %v13272_v23 = vpop.f32.mrf.mxu2  ;;  %v10770_v53 = vor.u32 %v12064_v24, %v10769_v40  ;;  %v9251_v40 = vld [vmem:[#allocation2 + $0x2b0] sm:$0xf0]  ;;  %v11714_v24 = vld [vmem:[#allocation2 + $0x3a4] sm:$0xf] }
 0x631   :  { %6665 = vmatpush.bf16.msrb.mxu0 %v10194_v55  ;;  %6678 = vmatpush.bf16.msra.mxu1 %v10322_v17  ;;  %v10898_v55 = vor.u32 %v12096_v46, %v10897_v45  ;;  %v12144_v17 = vld [vmem:[#allocation2 + $0x110c] sm:$0xf0]  ;;  %v13278_v29 = vpack.c.bf16 %v13270_v34, %v13270_v34  ;;  %v13282_v30 = vpack.c.bf16 %v13272_v23, %v13272_v23  ;;  %v11682_v34 = vld [vmem:[#allocation2 + $0x2a4] sm:$0xf]  ;;  %v9379_v45 = vld [vmem:[#allocation2 + $0x3b0] sm:$0xf0] }
 0x632   :  { %v11090_v5 = vor.u32 %v12144_v17, %v11089_v51  ;;  %v10722_v23 = vor.u32 %v12052_v48, %v10721_v37  ;;  %v10850_v46 = vor.u32 %v12084_v20, %v10849_v39  ;;  %v9254_v43 = vor.u32 %v11682_v34, %v9251_v40  ;;  %v9363_v17 = vld [vmem:[#allocation2 + $0x390] sm:$0xf0]  ;;  %v11702_v48 = vld [vmem:[#allocation2 + $0x344] sm:$0xf] }
 0x633   :  { %6739 = vmatpush.bf16.msra.mxu3 %v11026_v56  ;;  %6752 = vmatpush.bf16.msrb.mxu2 %v11154_v58  ;;  %v10753_v56 = vld [vmem:[#allocation2 + $0xe60] sm:$0xf]  ;;  %v12060_v58 = vld [vmem:[#allocation2 + $0xe6c] sm:$0xf0]  ;;  %v9382_v51 = vor.u32 %v11714_v24, %v9379_v45  ;;  %v11650_v39 = vld [vmem:[#allocation2 + $0x1a4] sm:$0xf] }
 0x634   :  { %6666 = vmatmul.bf16.vlgmr.msrb.gmra.mxu0 %v13264_v1  ;;  %6679 = vmatmul.bf16.vlgmr.msra.gmra.mxu1 %v13268_v3  ;;  %v10754_v6 = vor.u32 %v12060_v58, %v10753_v56  ;;  %v11626_v56 = vld [vmem:[#allocation2 + $0xe4] sm:$0xf]  ;;  %v9027_v58 = vld [vmem:[#allocation2 + $0xf0] sm:$0xf0] }
 0x635   :  { %6710 = vmatpush.bf16.msra.mxu0 %v10818_v60  ;;  %6723 = vmatpush.bf16.msrb.mxu1 %v10946_v61  ;;  %v11690_v60 = vld [vmem:[#allocation2 + $0x2e4] sm:$0xf]  ;;  %v9283_v61 = vld [vmem:[#allocation2 + $0x2f0] sm:$0xf0] }
 0x636   :  { %v9286_v13 = vor.u32 %v11690_v60, %v9283_v61  ;;  %v9123_v20 = vld [vmem:[#allocation2 + $0x1b0] sm:$0xf0]  ;;  %v11666_v24 = vld [vmem:[#allocation2 + $0x224] sm:$0xf] }
 0x637   :  { %6740 = vmatpush.bf16.msra.mxu3 %v11010_v9  ;;  %6753 = vmatpush.bf16.msrb.mxu2 %v11138_v2  ;;  %v10737_v9 = vld [vmem:[#allocation2 + $0xe40] sm:$0xf]  ;;  %v12056_v2 = vld [vmem:[#allocation2 + $0xe4c] sm:$0xf0]  ;;  %v9187_v45 = vld [vmem:[#allocation2 + $0x230] sm:$0xf0] }
 0x638   :  { %v3009_v26 = vpop.f32.mrf.mxu3  ;;  %v3042_v54 = vpop.f32.mrf.mxu2 }
 0x639   :  { %6711 = vmatpush.bf16.msra.mxu0 %v10802_v36  ;;  %6724 = vmatpush.bf16.msrb.mxu1 %v10930_v44  ;;  %v10865_v36 = vld [vmem:[#allocation2 + $0xf40] sm:$0xf]  ;;  %v12088_v44 = vld [vmem:[#allocation2 + $0xf4c] sm:$0xf0]  ;;  %v11678_v54 = vld [vmem:[#allocation2 + $0x284] sm:$0xf] }
 0x63a   :  { %v12080_v26 = vld [vmem:[#allocation2 + $0xf0c] sm:$0xf0] }
 0x63b   :  { %6741 = vmatpush.bf16.msra.mxu3 %v10994_v31  ;;  %6754 = vmatpush.bf16.msrb.mxu2 %v11122_v21  ;;  %v10738_v31 = vor.u32 %v12056_v2, %v10737_v9  ;;  %v10866_v21 = vor.u32 %v12088_v44, %v10865_v36  ;;  %v10834_v61 = vor.u32 %v12080_v26, %v10833_v50  ;;  %v11706_v9 = vld [vmem:[#allocation2 + $0x364] sm:$0xf]  ;;  %v9347_v2 = vld [vmem:[#allocation2 + $0x370] sm:$0xf0] }
 0x63c   :  { %v13292_v36 = vpack.c.bf16 %v13260_v49, %v13260_v49  ;;  %v9011_v44 = vld [vmem:[#allocation2 + $0xd0] sm:$0xf0]  ;;  %v11614_v50 = vld [vmem:[#allocation2 + $0x84] sm:$0xf] }
 0x63d   :  { %6712 = vmatpush.bf16.msra.mxu0 %v10786_v4  ;;  %6725 = vmatpush.bf16.msrb.mxu1 %v10914_v38  ;;  %v9270_v4 = vor.u32 %v11686_v25, %v9267_v27  ;;  %v9398_v38 = vor.u32 %v11718_v22, %v9395_v28  ;;  %v11654_v25 = vld [vmem:[#allocation2 + $0x1c4] sm:$0xf]  ;;  %v9139_v27 = vld [vmem:[#allocation2 + $0x1d0] sm:$0xf0]  ;;  %v9350_v28 = vor.u32 %v11706_v9, %v9347_v2 }
 0x63e   :  { %v8995_v49 = vld [vmem:[#allocation2 + $0xb0] sm:$0xf0] }
 0x63f   :  { %6742 = vmatpush.bf16.msra.mxu3 %v10978_v42  ;;  %6755 = vmatpush.bf16.msrb.mxu2 %v11106_v47  ;;  %v10705_v42 = vld [vmem:[#allocation2 + $0xe00] sm:$0xf]  ;;  %v12048_v47 = vld [vmem:[#allocation2 + $0xe0c] sm:$0xf0]  ;;  %v9107_v26 = vld [vmem:[#allocation2 + $0x190] sm:$0xf0] }
 0x640   :  { %v10706_v60 = vor.u32 %v12048_v47, %v10705_v42  ;;  %v11698_v42 = vld [vmem:[#allocation2 + $0x324] sm:$0xf]  ;;  %v9315_v47 = vld [vmem:[#allocation2 + $0x330] sm:$0xf0] }
 0x641   :  { %6713 = vmatpush.bf16.msra.mxu0 %v10770_v53  ;;  %6726 = vmatpush.bf16.msrb.mxu1 %v10898_v55  ;;  %v9235_v53 = vld [vmem:[#allocation2 + $0x290] sm:$0xf0]  ;;  %v11710_v55 = vld [vmem:[#allocation2 + $0x384] sm:$0xf] }
 0x642   :  { %v9238_v63 = vor.u32 %v11678_v54, %v9235_v53  ;;  %v9366_v35 = vor.u32 %v11710_v55, %v9363_v17  ;;  %v9190_v54 = vor.u32 %v11666_v24, %v9187_v45  ;;  %v9318_v53 = vor.u32 %v11698_v42, %v9315_v47  ;;  %v11662_v55 = vld [vmem:[#allocation2 + $0x204] sm:$0xf]  ;;  %v9171_v17 = vld [vmem:[#allocation2 + $0x210] sm:$0xf0] }
 0x643   :  { %6743 = vmatpush.bf16.msra.mxu3 %v10962_v0  ;;  %6756 = vmatpush.bf16.msrb.mxu2 %v11090_v5  ;;  %v11674_v0 = vld [vmem:[#allocation2 + $0x264] sm:$0xf]  ;;  %v9219_v5 = vld [vmem:[#allocation2 + $0x270] sm:$0xf0]  ;;  %v9174_v9 = vor.u32 %v11662_v55, %v9171_v17 }
 0x644   :  { %v9222_v22 = vor.u32 %v11674_v0, %v9219_v5  ;;  %v11818_v0 = vld [vmem:[#allocation2 + $0x6e4] sm:$0xf]  ;;  %v9795_v5 = vld [vmem:[#allocation2 + $0x6f0] sm:$0xf0] }
 0x645   :  { %6714 = vmatpush.bf16.msra.mxu0 %v10754_v6  ;;  %6727 = vmatpush.bf16.msrb.mxu1 %v10882_v52  ;;  %v9030_v6 = vor.u32 %v11626_v56, %v9027_v58  ;;  %v9158_v52 = vor.u32 %v11658_v59, %v9155_v14  ;;  %v11694_v56 = vld [vmem:[#allocation2 + $0x304] sm:$0xf]  ;;  %v9299_v14 = vld [vmem:[#allocation2 + $0x310] sm:$0xf0] }
 0x646   :  { %6744 = vmatmul.bf16.vlgmr.msra.gmra.mxu3 %v13278_v29  ;;  %6757 = vmatmul.bf16.vlgmr.msrb.gmra.mxu2 %v13282_v30  ;;  %v9302_v2 = vor.u32 %v11694_v56, %v9299_v14  ;;  %v11634_v24 = vld [vmem:[#allocation2 + $0x124] sm:$0xf]  ;;  %v9059_v45 = vld [vmem:[#allocation2 + $0x130] sm:$0xf0] }
 0x647   :  { %6788 = vmatpush.bf16.msrb.mxu3 %v9286_v13  ;;  %6801 = vmatpush.bf16.msra.mxu2 %v9414_v15  ;;  %v11622_v13 = vld [vmem:[#allocation2 + $0xc4] sm:$0xf]  ;;  %v13288_v15 = vpack.c.bf16 %v13258_v18, %v13258_v18  ;;  %v9142_v18 = vor.u32 %v11654_v25, %v9139_v27  ;;  %v8947_v27 = vld [vmem:[#allocation2 + $0x50] sm:$0xf0] }
 0x648   :  { %v9014_v37 = vor.u32 %v11622_v13, %v9011_v44  ;;  %v11606_v25 = vld [vmem:[#allocation2 + $0x44] sm:$0xf]  ;;  %v9891_v47 = vld [vmem:[#allocation2 + $0x7b0] sm:$0xf0] }
 0x649   :  { %6715 = vmatpush.bf16.msra.mxu0 %v10738_v31  ;;  %6728 = vmatpush.bf16.msrb.mxu1 %v10866_v21  ;;  %v11670_v31 = vld [vmem:[#allocation2 + $0x244] sm:$0xf]  ;;  %v9203_v21 = vld [vmem:[#allocation2 + $0x250] sm:$0xf0] }
 0x64a   :  { %v9206_v34 = vor.u32 %v11670_v31, %v9203_v21  ;;  %v11638_v31 = vld [vmem:[#allocation2 + $0x144] sm:$0xf]  ;;  %v9075_v21 = vld [vmem:[#allocation2 + $0x150] sm:$0xf0] }
 0x64b   :  { %6789 = vmatpush.bf16.msrb.mxu3 %v9270_v4  ;;  %6802 = vmatpush.bf16.msra.mxu2 %v9398_v38  ;;  %v9331_v4 = vld [vmem:[#allocation2 + $0x350] sm:$0xf0]  ;;  %v11618_v38 = vld [vmem:[#allocation2 + $0xa4] sm:$0xf] }
 0x64c   :  { %v9334_v40 = vor.u32 %v11702_v48, %v9331_v4  ;;  %v11846_v48 = vld [vmem:[#allocation2 + $0x7c4] sm:$0xf]  ;;  %v9907_v4 = vld [vmem:[#allocation2 + $0x7d0] sm:$0xf0] }
 0x64d   :  { %6716 = vmatpush.bf16.msra.mxu0 %v10722_v23  ;;  %6729 = vmatpush.bf16.msrb.mxu1 %v10850_v46  ;;  %v8998_v23 = vor.u32 %v11618_v38, %v8995_v49  ;;  %v9126_v46 = vor.u32 %v11650_v39, %v9123_v20  ;;  %v8950_v38 = vor.u32 %v11606_v25, %v8947_v27  ;;  %v11602_v39 = vld [vmem:[#allocation2 + $0x24] sm:$0xf]  ;;  %v8931_v20 = vld [vmem:[#allocation2 + $0x30] sm:$0xf0] }
 0x64e   :  { %v9078_v49 = vor.u32 %v11638_v31, %v9075_v21  ;;  %v11842_v42 = vld [vmem:[#allocation2 + $0x7a4] sm:$0xf]  ;;  %v9043_v17 = vld [vmem:[#allocation2 + $0x110] sm:$0xf0] }
 0x64f   :  { %6790 = vmatpush.bf16.msrb.mxu3 %v9254_v43  ;;  %6803 = vmatpush.bf16.msra.mxu2 %v9382_v51  ;;  %v8979_v43 = vld [vmem:[#allocation2 + $0x90] sm:$0xf0]  ;;  %v11646_v51 = vld [vmem:[#allocation2 + $0x184] sm:$0xf]  ;;  %v9894_v55 = vor.u32 %v11842_v42, %v9891_v47 }
 0x650   :  { %v8982_v58 = vor.u32 %v11614_v50, %v8979_v43  ;;  %v9110_v59 = vor.u32 %v11646_v51, %v9107_v26  ;;  %v8934_v50 = vor.u32 %v11602_v39, %v8931_v20  ;;  %v9062_v43 = vor.u32 %v11634_v24, %v9059_v45  ;;  %v11598_v51 = vld [vmem:[#allocation2 + $0x4] sm:$0xf]  ;;  %v8915_v26 = vld [vmem:[#allocation2 + $0x10] sm:$0xf0] }
 0x651   :  { %6717 = vmatpush.bf16.msra.mxu0 %v10706_v60  ;;  %6730 = vmatpush.bf16.msrb.mxu1 %v10834_v61  ;;  %v11610_v60 = vld [vmem:[#allocation2 + $0x64] sm:$0xf]  ;;  %v8963_v61 = vld [vmem:[#allocation2 + $0x70] sm:$0xf0] }
 0x652   :  { %v8966_v13 = vor.u32 %v11610_v60, %v8963_v61  ;;  %v11806_v56 = vld [vmem:[#allocation2 + $0x684] sm:$0xf]  ;;  %v9875_v14 = vld [vmem:[#allocation2 + $0x790] sm:$0xf0] }
 0x653   :  { %6791 = vmatpush.bf16.msrb.mxu3 %v9238_v63  ;;  %6804 = vmatpush.bf16.msra.mxu2 %v9366_v35  ;;  %v11642_v63 = vld [vmem:[#allocation2 + $0x164] sm:$0xf]  ;;  %v9091_v35 = vld [vmem:[#allocation2 + $0x170] sm:$0xf0] }
 0x654   :  { %6718 = vmatmul.bf16.vlgmr.msra.gmra.mxu0 %v13288_v15  ;;  %6731 = vmatmul.bf16.vlgmr.msrb.gmra.mxu1 %v13292_v36  ;;  %v9094_v44 = vor.u32 %v11642_v63, %v9091_v35  ;;  %v11754_v60 = vld [vmem:[#allocation2 + $0x4e4] sm:$0xf]  ;;  %v9539_v61 = vld [vmem:[#allocation2 + $0x4f0] sm:$0xf0] }
 0x655   :  { %6762 = vmatpush.bf16.msrb.mxu0 %v9030_v6  ;;  %6775 = vmatpush.bf16.msra.mxu1 %v9158_v52  ;;  %v11850_v6 = vld [vmem:[#allocation2 + $0x7e4] sm:$0xf]  ;;  %v9923_v52 = vld [vmem:[#allocation2 + $0x7f0] sm:$0xf0] }
 0x656   :  { %v11786_v63 = vld [vmem:[#allocation2 + $0x5e4] sm:$0xf]  ;;  %v9667_v35 = vld [vmem:[#allocation2 + $0x5f0] sm:$0xf0] }
 0x657   :  { %6792 = vmatpush.bf16.msrb.mxu3 %v9222_v22  ;;  %6805 = vmatpush.bf16.msra.mxu2 %v9350_v28  ;;  %v9798_v22 = vor.u32 %v11818_v0, %v9795_v5  ;;  %v9926_v28 = vor.u32 %v11850_v6, %v9923_v52  ;;  %v8918_v0 = vor.u32 %v11598_v51, %v8915_v26  ;;  %v9859_v27 = vld [vmem:[#allocation2 + $0x770] sm:$0xf0]  ;;  %v11782_v31 = vld [vmem:[#allocation2 + $0x5c4] sm:$0xf] }
 0x658   :  { %v9670_v25 = vor.u32 %v11786_v63, %v9667_v35  ;;  %v9651_v21 = vld [vmem:[#allocation2 + $0x5d0] sm:$0xf0]  ;;  %v11794_v51 = vld [vmem:[#allocation2 + $0x624] sm:$0xf] }
 0x659   :  { %6763 = vmatpush.bf16.msrb.mxu0 %v9014_v37  ;;  %6776 = vmatpush.bf16.msra.mxu1 %v9142_v18  ;;  %v11814_v37 = vld [vmem:[#allocation2 + $0x6c4] sm:$0xf]  ;;  %v9779_v18 = vld [vmem:[#allocation2 + $0x6d0] sm:$0xf0]  ;;  %v9654_v20 = vor.u32 %v11782_v31, %v9651_v21 }
 0x65a   :  { %v9507_v45 = vld [vmem:[#allocation2 + $0x4b0] sm:$0xf0]  ;;  %v11978_v31 = vld [vmem:[#allocation2 + $0xbe4] sm:$0xf] }
 0x65b   :  { %6793 = vmatpush.bf16.msrb.mxu3 %v9206_v34  ;;  %6806 = vmatpush.bf16.msra.mxu2 %v9334_v40  ;;  %v9782_v34 = vor.u32 %v11814_v37, %v9779_v18  ;;  %v9910_v40 = vor.u32 %v11846_v48, %v9907_v4  ;;  %v3638_v37 = vld [vmem:[#allocation30] sm:$0xf]  ;;  %v11798_v4 = vld [vmem:[#allocation2 + $0x644] sm:$0xf]  ;;  %v9699_v26 = vld [vmem:[#allocation2 + $0x630] sm:$0xf0] }
 0x65c   :  { %v3640_v24 = vperm.slane %v3638_v37, 0  ;;  %v9702_v63 = vor.u32 %v11794_v51, %v9699_v26  ;;  %v10435_v21 = vld [vmem:[#allocation2 + $0xbf0] sm:$0xf0]  ;;  %v11730_v51 = vld [vmem:[#allocation2 + $0x424] sm:$0xf] }
 0x65d   :  { %6764 = vmatpush.bf16.msrb.mxu0 %v8998_v23  ;;  %6777 = vmatpush.bf16.msra.mxu1 %v9126_v46  ;;  %v11810_v23 = vld [vmem:[#allocation2 + $0x6a4] sm:$0xf]  ;;  %v9763_v46 = vld [vmem:[#allocation2 + $0x6b0] sm:$0xf0] }
 0x65e   :  { %v9443_v26 = vld [vmem:[#allocation2 + $0x430] sm:$0xf0] }
 0x65f   :  { %6794 = vmatpush.bf16.msrb.mxu3 %v9190_v54  ;;  %6807 = vmatpush.bf16.msra.mxu2 %v9318_v53  ;;  %v11630_v54 = vld [vmem:[#allocation2 + $0x104] sm:$0xf]  ;;  %v9766_v53 = vor.u32 %v11810_v23, %v9763_v46  ;;  %v9635_v46 = vld [vmem:[#allocation2 + $0x5b0] sm:$0xf0] }
 0x660   :  { %v9046_v5 = vor.u32 %v11630_v54, %v9043_v17  ;;  %v11778_v23 = vld [vmem:[#allocation2 + $0x5a4] sm:$0xf] }
 0x661   :  { %6765 = vmatpush.bf16.msrb.mxu0 %v8982_v58  ;;  %6778 = vmatpush.bf16.msra.mxu1 %v9110_v59  ;;  %v9747_v58 = vld [vmem:[#allocation2 + $0x690] sm:$0xf0]  ;;  %v11838_v59 = vld [vmem:[#allocation2 + $0x784] sm:$0xf] }
 0x662   :  { %v9750_v6 = vor.u32 %v11806_v56, %v9747_v58  ;;  %v9878_v52 = vor.u32 %v11838_v59, %v9875_v14  ;;  %v11826_v17 = vld [vmem:[#allocation2 + $0x724] sm:$0xf]  ;;  %v9827_v56 = vld [vmem:[#allocation2 + $0x730] sm:$0xf0] }
 0x663   :  { %6795 = vmatpush.bf16.msrb.mxu3 %v9174_v9  ;;  %6808 = vmatpush.bf16.msra.mxu2 %v9302_v2  ;;  %v11802_v9 = vld [vmem:[#allocation2 + $0x664] sm:$0xf]  ;;  %v9731_v2 = vld [vmem:[#allocation2 + $0x670] sm:$0xf0]  ;;  %v9830_v35 = vor.u32 %v11826_v17, %v9827_v56 }
 0x664   :  { %v9734_v18 = vor.u32 %v11802_v9, %v9731_v2  ;;  %v11742_v58 = vld [vmem:[#allocation2 + $0x484] sm:$0xf]  ;;  %v9491_v59 = vld [vmem:[#allocation2 + $0x490] sm:$0xf0] }
 0x665   :  { %6766 = vmatpush.bf16.msrb.mxu0 %v8966_v13  ;;  %6779 = vmatpush.bf16.msra.mxu1 %v9094_v44  ;;  %v11834_v13 = vld [vmem:[#allocation2 + $0x764] sm:$0xf]  ;;  %v9542_v44 = vor.u32 %v11754_v60, %v9539_v61  ;;  %v9619_v60 = vld [vmem:[#allocation2 + $0x590] sm:$0xf0] }
 0x666   :  { %6796 = vmatmul.bf16.vlgmr.msrb.gmra.mxu3 %v13224_v8  ;;  %6809 = vmatmul.bf16.vlgmr.msra.gmra.mxu2 %v13226_v32  ;;  %v9862_v48 = vor.u32 %v11834_v13, %v9859_v27  ;;  %v11774_v14 = vld [vmem:[#allocation2 + $0x584] sm:$0xf]  ;;  %v9811_v2 = vld [vmem:[#allocation2 + $0x710] sm:$0xf0] }
 0x667   :  { %6840 = vmatpush.bf16.msra.mxu3 %v9798_v22  ;;  %6853 = vmatpush.bf16.msrb.mxu2 %v9926_v28  ;;  %v11750_v22 = vld [vmem:[#allocation2 + $0x4c4] sm:$0xf]  ;;  %v9523_v28 = vld [vmem:[#allocation2 + $0x4d0] sm:$0xf0]  ;;  %v9622_v9 = vor.u32 %v11774_v14, %v9619_v60 }
 0x668   :  { %v9526_v39 = vor.u32 %v11750_v22, %v9523_v28  ;;  %v11738_v13 = vld [vmem:[#allocation2 + $0x464] sm:$0xf]  ;;  %v9603_v27 = vld [vmem:[#allocation2 + $0x570] sm:$0xf0] }
 0x669   :  { %6767 = vmatpush.bf16.msrb.mxu0 %v8950_v38  ;;  %6780 = vmatpush.bf16.msra.mxu1 %v9078_v49  ;;  %v9715_v38 = vld [vmem:[#allocation2 + $0x650] sm:$0xf0]  ;;  %v11830_v49 = vld [vmem:[#allocation2 + $0x744] sm:$0xf] }
 0x66a   :  { %v9718_v42 = vor.u32 %v11798_v4, %v9715_v38  ;;  %v11946_v22 = vld [vmem:[#allocation2 + $0xae4] sm:$0xf]  ;;  %v10307_v28 = vld [vmem:[#allocation2 + $0xaf0] sm:$0xf0] }
 0x66b   :  { %6841 = vmatpush.bf16.msra.mxu3 %v9782_v34  ;;  %6854 = vmatpush.bf16.msrb.mxu2 %v9910_v40  ;;  %v9843_v34 = vld [vmem:[#allocation2 + $0x750] sm:$0xf0]  ;;  %v11746_v40 = vld [vmem:[#allocation2 + $0x4a4] sm:$0xf] }
 0x66c   :  { %v9846_v47 = vor.u32 %v11830_v49, %v9843_v34  ;;  %v9510_v54 = vor.u32 %v11746_v40, %v9507_v45  ;;  %v10310_v34 = vor.u32 %v11946_v22, %v10307_v28  ;;  %v10438_v40 = vor.u32 %v11978_v31, %v10435_v21  ;;  %v9587_v45 = vld [vmem:[#allocation2 + $0x550] sm:$0xf0]  ;;  %v11938_v56 = vld [vmem:[#allocation2 + $0xaa4] sm:$0xf] }
 0x66d   :  { %6768 = vmatpush.bf16.msrb.mxu0 %v8934_v50  ;;  %6781 = vmatpush.bf16.msra.mxu1 %v9062_v43  ;;  %v9571_v17 = vld [vmem:[#allocation2 + $0x530] sm:$0xf0]  ;;  %v11966_v28 = vld [vmem:[#allocation2 + $0xb84] sm:$0xf] }
 0x66e   :  { %v10403_v14 = vld [vmem:[#allocation2 + $0xbb0] sm:$0xf0]  ;;  %v11882_v21 = vld [vmem:[#allocation2 + $0x8e4] sm:$0xf] }
 0x66f   :  { %6842 = vmatpush.bf16.msra.mxu3 %v9766_v53  ;;  %6855 = vmatpush.bf16.msrb.mxu2 %v9894_v55  ;;  %v9638_v53 = vor.u32 %v11778_v23, %v9635_v46  ;;  %v11942_v23 = vld [vmem:[#allocation2 + $0xac4] sm:$0xf]  ;;  %v10291_v46 = vld [vmem:[#allocation2 + $0xad0] sm:$0xf0] }
 0x670   :  { %v6537_v50 = vpop.f32.mrf.mxu0  ;;  %v6550_v43 = vpop.f32.mrf.mxu1  ;;  %v10387_v31 = vld [vmem:[#allocation2 + $0xb90] sm:$0xf0] }
 0x671   :  { %6769 = vmatpush.bf16.msrb.mxu0 %v8918_v0  ;;  %6782 = vmatpush.bf16.msra.mxu1 %v9046_v5  ;;  %v6538_v55 = vadd.f32 %v6537_v50, %v3640_v24  ;;  %v11790_v0 = vld [vmem:[#allocation2 + $0x604] sm:$0xf]  ;;  %v9683_v5 = vld [vmem:[#allocation2 + $0x610] sm:$0xf0] }
 0x672   :  { %v9686_v37 = vor.u32 %v11790_v0, %v9683_v5  ;;  %v11766_v24 = vld [vmem:[#allocation2 + $0x544] sm:$0xf] }
 0x673   :  { %6843 = vmatpush.bf16.msra.mxu3 %v9750_v6  ;;  %6856 = vmatpush.bf16.msrb.mxu2 %v9878_v52  ;;  %v13300_v61 = vadd.f32 %v6550_v43, %v6538_v55  ;;  %v11822_v6 = vld [vmem:[#allocation2 + $0x704] sm:$0xf]  ;;  %v9494_v52 = vor.u32 %v11742_v58, %v9491_v59  ;;  %v9590_v43 = vor.u32 %v11766_v24, %v9587_v45  ;;  %v10275_v58 = vld [vmem:[#allocation2 + $0xab0] sm:$0xf0] }
 0x674   :  { %6770 = vmatmul.bf16.vlgmr.msrb.gmra.mxu0 %v13218_v41  ;;  %6783 = vmatmul.bf16.vlgmr.msra.gmra.mxu1 %v13220_v19  ;;  %v11762_v55 = vld [vmem:[#allocation2 + $0x524] sm:$0xf] }
 0x675   :  { %6814 = vmatpush.bf16.msra.mxu0 %v9542_v44  ;;  %6827 = vmatpush.bf16.msrb.mxu1 %v9670_v25  ;;  %v9475_v44 = vld [vmem:[#allocation2 + $0x470] sm:$0xf0]  ;;  %v11770_v25 = vld [vmem:[#allocation2 + $0x564] sm:$0xf]  ;;  %v9574_v0 = vor.u32 %v11762_v55, %v9571_v17 }
 0x676   :  { %v9478_v38 = vor.u32 %v11738_v13, %v9475_v44  ;;  %v9606_v49 = vor.u32 %v11770_v25, %v9603_v27  ;;  %v11970_v59 = vld [vmem:[#allocation2 + $0xba4] sm:$0xf]  ;;  %v9555_v44 = vld [vmem:[#allocation2 + $0x510] sm:$0xf0] }
 0x677   :  { %6844 = vmatpush.bf16.msra.mxu3 %v9734_v18  ;;  %6857 = vmatpush.bf16.msrb.mxu2 %v9862_v48  ;;  %v9814_v18 = vor.u32 %v11822_v6, %v9811_v2  ;;  %v11726_v6 = vld [vmem:[#allocation2 + $0x404] sm:$0xf]  ;;  %v10278_v2 = vor.u32 %v11938_v56, %v10275_v58  ;;  %v10406_v13 = vor.u32 %v11970_v59, %v10403_v14  ;;  %v10259_v27 = vld [vmem:[#allocation2 + $0xa90] sm:$0xf0] }
 0x678   :  { %v6539_v48 = vpop.f32.mrf.mxu0  ;;  %v6552_v4 = vpop.f32.mrf.mxu1  ;;  %v11934_v25 = vld [vmem:[#allocation2 + $0xa84] sm:$0xf]  ;;  %v10227_v58 = vld [vmem:[#allocation2 + $0xa50] sm:$0xf0] }
 0x679   :  { %6815 = vmatpush.bf16.msra.mxu0 %v9526_v39  ;;  %6828 = vmatpush.bf16.msrb.mxu1 %v9654_v20  ;;  %v11734_v39 = vld [vmem:[#allocation2 + $0x444] sm:$0xf]  ;;  %v9459_v20 = vld [vmem:[#allocation2 + $0x450] sm:$0xf0] }
 0x67a   :  { %v9462_v50 = vor.u32 %v11734_v39, %v9459_v20  ;;  %v10179_v48 = vld [vmem:[#allocation2 + $0x9f0] sm:$0xf0]  ;;  %v11930_v39 = vld [vmem:[#allocation2 + $0xa64] sm:$0xf] }
 0x67b   :  { %6845 = vmatpush.bf16.msra.mxu3 %v9718_v42  ;;  %6858 = vmatpush.bf16.msrb.mxu2 %v9846_v47  ;;  %v11974_v42 = vld [vmem:[#allocation2 + $0xbc4] sm:$0xf]  ;;  %v10419_v47 = vld [vmem:[#allocation2 + $0xbd0] sm:$0xf0] }
 0x67c   :  { %v10243_v20 = vld [vmem:[#allocation2 + $0xa70] sm:$0xf0]  ;;  %v11962_v45 = vld [vmem:[#allocation2 + $0xb64] sm:$0xf] }
 0x67d   :  { %6816 = vmatpush.bf16.msra.mxu0 %v9510_v54  ;;  %6829 = vmatpush.bf16.msrb.mxu1 %v9638_v53  ;;  %v10294_v54 = vor.u32 %v11942_v23, %v10291_v46  ;;  %v10422_v53 = vor.u32 %v11974_v42, %v10419_v47  ;;  %v10371_v23 = vld [vmem:[#allocation2 + $0xb70] sm:$0xf0]  ;;  %v11878_v42 = vld [vmem:[#allocation2 + $0x8c4] sm:$0xf] }
 0x67e   :  { %v10374_v55 = vor.u32 %v11962_v45, %v10371_v23  ;;  %v11926_v56 = vld [vmem:[#allocation2 + $0xa44] sm:$0xf]  ;;  %v10323_v23 = vld [vmem:[#allocation2 + $0xb10] sm:$0xf0] }
 0x67f   :  { %6846 = vmatpush.bf16.msra.mxu3 %v9702_v63  ;;  %6859 = vmatpush.bf16.msrb.mxu2 %v9830_v35  ;;  %v9446_v35 = vor.u32 %v11730_v51, %v9443_v26  ;;  %v10035_v51 = vld [vmem:[#allocation2 + $0x8d0] sm:$0xf0]  ;;  %v11910_v26 = vld [vmem:[#allocation2 + $0x9c4] sm:$0xf] }
 0x680   :  { %v6563_v60 = vpop.f32.mrf.mxu0  ;;  %v6576_v63 = vpop.f32.mrf.mxu1  ;;  %v10038_v59 = vor.u32 %v11878_v42, %v10035_v51  ;;  %v9987_v42 = vld [vmem:[#allocation2 + $0x870] sm:$0xf0]  ;;  %v12074_v51 = vld [vmem:[#allocation2 + $0xee4] sm:$0xf] }
 0x681   :  { %6817 = vmatpush.bf16.msra.mxu0 %v9494_v52  ;;  %6830 = vmatpush.bf16.msrb.mxu1 %v9622_v9  ;;  %v6564_v5 = vadd.f32 %v6563_v60, %v13300_v61  ;;  %v9427_v52 = vld [vmem:[#allocation2 + $0x410] sm:$0xf0]  ;;  %v11758_v9 = vld [vmem:[#allocation2 + $0x504] sm:$0xf] }
 0x682   :  { %v9430_v61 = vor.u32 %v11726_v6, %v9427_v52  ;;  %v9558_v4 = vor.u32 %v11758_v9, %v9555_v44  ;;  %v11958_v60 = vld [vmem:[#allocation2 + $0xb44] sm:$0xf]  ;;  %v10147_v6 = vld [vmem:[#allocation2 + $0x9b0] sm:$0xf0]  ;;  %v10230_v52 = vor.u32 %v11926_v56, %v10227_v58 }
 0x683   :  { %6847 = vmatpush.bf16.msra.mxu3 %v9686_v37  ;;  %6860 = vmatpush.bf16.msrb.mxu2 %v9814_v18  ;;  %v6577_v22 = vadd.f32 %v6576_v63, %v6564_v5  ;;  %v10051_v37 = vld [vmem:[#allocation2 + $0x8f0] sm:$0xf0]  ;;  %v11914_v18 = vld [vmem:[#allocation2 + $0x9e4] sm:$0xf] }
 0x684   :  { %v10355_v63 = vld [vmem:[#allocation2 + $0xb50] sm:$0xf0]  ;;  %v11906_v5 = vld [vmem:[#allocation2 + $0x9a4] sm:$0xf] }
 0x685   :  { %6818 = vmatpush.bf16.msra.mxu0 %v9478_v38  ;;  %6831 = vmatpush.bf16.msrb.mxu1 %v9606_v49  ;;  %v10262_v38 = vor.u32 %v11934_v25, %v10259_v27  ;;  %v10390_v49 = vor.u32 %v11966_v28, %v10387_v31  ;;  %v10358_v9 = vor.u32 %v11958_v60, %v10355_v63  ;;  %v10339_v28 = vld [vmem:[#allocation2 + $0xb30] sm:$0xf0] }
 0x686   :  { %6848 = vmatmul.bf16.vlgmr.msra.gmra.mxu3 %v13236_v33  ;;  %6861 = vmatmul.bf16.vlgmr.msrb.gmra.mxu2 %v13238_v7  ;;  %v10150_v25 = vor.u32 %v11906_v5, %v10147_v6  ;;  %v9971_v60 = vld [vmem:[#allocation2 + $0x850] sm:$0xf0]  ;;  %v11894_v6 = vld [vmem:[#allocation2 + $0x944] sm:$0xf] }
 0x687   :  { %6892 = vmatpush.bf16.msrb.mxu3 %v10310_v34  ;;  %6905 = vmatpush.bf16.msra.mxu2 %v10438_v40  ;;  %v10054_v34 = vor.u32 %v11882_v21, %v10051_v37  ;;  %v10182_v40 = vor.u32 %v11914_v18, %v10179_v48  ;;  %v6589_v24 = vpop.f32.mrf.mxu3  ;;  %v6602_v46 = vpop.f32.mrf.mxu2  ;;  %v11870_v21 = vld [vmem:[#allocation2 + $0x884] sm:$0xf]  ;;  %v10003_v37 = vld [vmem:[#allocation2 + $0x890] sm:$0xf0] }
 0x688   :  { %v6590_v47 = vadd.f32 %v6589_v24, %v6577_v22  ;;  %v11954_v22 = vld [vmem:[#allocation2 + $0xb24] sm:$0xf]  ;;  %v10131_v48 = vld [vmem:[#allocation2 + $0x990] sm:$0xf0]  ;;  %v10006_v24 = vor.u32 %v11870_v21, %v10003_v37 }
 0x689   :  { %6819 = vmatpush.bf16.msra.mxu0 %v9462_v50  ;;  %6832 = vmatpush.bf16.msrb.mxu1 %v9590_v43  ;;  %v6565_v50 = vpop.f32.mrf.mxu0  ;;  %v6578_v43 = vpop.f32.mrf.mxu1  ;;  %v11902_v18 = vld [vmem:[#allocation2 + $0x984] sm:$0xf]  ;;  %v9955_v37 = vld [vmem:[#allocation2 + $0x830] sm:$0xf0] }
 0x68a   :  { %v6603_v17 = vadd.f32 %v6602_v46, %v6590_v47  ;;  %v10134_v45 = vor.u32 %v11902_v18, %v10131_v48  ;;  %v11866_v46 = vld [vmem:[#allocation2 + $0x864] sm:$0xf]  ;;  %v10115_v43 = vld [vmem:[#allocation2 + $0x970] sm:$0xf0] }
 0x68b   :  { %6893 = vmatpush.bf16.msrb.mxu3 %v10294_v54  ;;  %6906 = vmatpush.bf16.msra.mxu2 %v10422_v53  ;;  %v10163_v54 = vld [vmem:[#allocation2 + $0x9d0] sm:$0xf0]  ;;  %v10246_v53 = vor.u32 %v11930_v39, %v10243_v20  ;;  %v11918_v20 = vld [vmem:[#allocation2 + $0xa04] sm:$0xf]  ;;  %v9990_v56 = vor.u32 %v11866_v46, %v9987_v42 }
 0x68c   :  { %v10166_v14 = vor.u32 %v11910_v26, %v10163_v54  ;;  %v11898_v50 = vld [vmem:[#allocation2 + $0x964] sm:$0xf]  ;;  %v10819_v26 = vld [vmem:[#allocation2 + $0xef0] sm:$0xf0] }
 0x68d   :  { %6820 = vmatpush.bf16.msra.mxu0 %v9446_v35  ;;  %6833 = vmatpush.bf16.msrb.mxu1 %v9574_v0  ;;  %v11874_v35 = vld [vmem:[#allocation2 + $0x8a4] sm:$0xf]  ;;  %v10019_v0 = vld [vmem:[#allocation2 + $0x8b0] sm:$0xf0]  ;;  %v10118_v58 = vor.u32 %v11898_v50, %v10115_v43  ;;  %v10822_v63 = vor.u32 %v12074_v51, %v10819_v26 }
 0x68e   :  { %v10022_v44 = vor.u32 %v11874_v35, %v10019_v0  ;;  %v12106_v54 = vld [vmem:[#allocation2 + $0xfe4] sm:$0xf]  ;;  %v10067_v50 = vld [vmem:[#allocation2 + $0x910] sm:$0xf0] }
 0x68f   :  { %6894 = vmatpush.bf16.msrb.mxu3 %v10278_v2  ;;  %6907 = vmatpush.bf16.msra.mxu2 %v10406_v13  ;;  %v11922_v2 = vld [vmem:[#allocation2 + $0xa24] sm:$0xf]  ;;  %v10211_v13 = vld [vmem:[#allocation2 + $0xa30] sm:$0xf0]  ;;  %v6591_v27 = vpop.f32.mrf.mxu3  ;;  %v6604_v31 = vpop.f32.mrf.mxu2 }
 0x690   :  { %v11858_v21 = vld [vmem:[#allocation2 + $0x824] sm:$0xf]  ;;  %v10771_v51 = vld [vmem:[#allocation2 + $0xe90] sm:$0xf0] }
 0x691   :  { %6821 = vmatpush.bf16.msra.mxu0 %v9430_v61  ;;  %6834 = vmatpush.bf16.msrb.mxu1 %v9558_v4  ;;  %v6615_v61 = vpop.f32.mrf.mxu0  ;;  %v10214_v4 = vor.u32 %v11922_v2, %v10211_v13  ;;  %v10803_v2 = vld [vmem:[#allocation2 + $0xed0] sm:$0xf0]  ;;  %v12102_v13 = vld [vmem:[#allocation2 + $0xfc4] sm:$0xf] }
 0x692   :  { %v12062_v43 = vld [vmem:[#allocation2 + $0xe84] sm:$0xf] }
 0x693   :  { %6895 = vmatpush.bf16.msrb.mxu3 %v10262_v38  ;;  %6908 = vmatpush.bf16.msra.mxu2 %v10390_v49  ;;  %v10342_v38 = vor.u32 %v11954_v22, %v10339_v28  ;;  %v6616_v49 = vadd.f32 %v6615_v61, %v6603_v17  ;;  %v6628_v39 = vpop.f32.mrf.mxu1  ;;  %v11890_v61 = vld [vmem:[#allocation2 + $0x924] sm:$0xf] }
 0x694   :  { %6822 = vmatmul.bf16.vlgmr.msra.gmra.mxu0 %v13228_v57  ;;  %6835 = vmatmul.bf16.vlgmr.msrb.gmra.mxu1 %v13230_v10 }
 0x695   :  { %6866 = vmatpush.bf16.msrb.mxu0 %v10054_v34  ;;  %6879 = vmatpush.bf16.msra.mxu1 %v10182_v40  ;;  %v10195_v34 = vld [vmem:[#allocation2 + $0xa10] sm:$0xf0]  ;;  %v11950_v40 = vld [vmem:[#allocation2 + $0xb04] sm:$0xf]  ;;  %v6629_v47 = vadd.f32 %v6628_v39, %v6616_v49 }
 0x696   :  { %v10326_v17 = vor.u32 %v11950_v40, %v10323_v23  ;;  %v10787_v49 = vld [vmem:[#allocation2 + $0xeb0] sm:$0xf0]  ;;  %v12098_v39 = vld [vmem:[#allocation2 + $0xfa4] sm:$0xf] }
 0x697   :  { %6896 = vmatpush.bf16.msrb.mxu3 %v10246_v53  ;;  %6909 = vmatpush.bf16.msra.mxu2 %v10374_v55  ;;  %v10947_v53 = vld [vmem:[#allocation2 + $0xff0] sm:$0xf0]  ;;  %v10198_v55 = vor.u32 %v11918_v20, %v10195_v34  ;;  %v9958_v34 = vor.u32 %v11858_v21, %v9955_v37  ;;  %v11886_v23 = vld [vmem:[#allocation2 + $0x904] sm:$0xf] }
 0x698   :  { %v10950_v35 = vor.u32 %v12106_v54, %v10947_v53  ;;  %v10915_v20 = vld [vmem:[#allocation2 + $0xfb0] sm:$0xf0]  ;;  %v12094_v54 = vld [vmem:[#allocation2 + $0xf84] sm:$0xf] }
 0x699   :  { %6867 = vmatpush.bf16.msrb.mxu0 %v10038_v59  ;;  %6880 = vmatpush.bf16.msra.mxu1 %v10166_v14  ;;  %v6641_v59 = vpop.f32.mrf.mxu3  ;;  %v11862_v14 = vld [vmem:[#allocation2 + $0x844] sm:$0xf]  ;;  %v6654_v5 = vpop.f32.mrf.mxu2  ;;  %v10899_v53 = vld [vmem:[#allocation2 + $0xf90] sm:$0xf0] }
 0x69a   :  { %v6642_v0 = vadd.f32 %v6641_v59, %v6629_v47  ;;  %v9974_v28 = vor.u32 %v11862_v14, %v9971_v60  ;;  %v10918_v47 = vor.u32 %v12098_v39, %v10915_v20  ;;  %v10070_v14 = vor.u32 %v11886_v23, %v10067_v50  ;;  %v10739_v21 = vld [vmem:[#allocation2 + $0xe50] sm:$0xf0]  ;;  %v12034_v20 = vld [vmem:[#allocation2 + $0xda4] sm:$0xf] }
 0x69b   :  { %6897 = vmatpush.bf16.msrb.mxu3 %v10230_v52  ;;  %6910 = vmatpush.bf16.msra.mxu2 %v10358_v9  ;;  %v10099_v52 = vld [vmem:[#allocation2 + $0x950] sm:$0xf0]  ;;  %v12070_v9 = vld [vmem:[#allocation2 + $0xec4] sm:$0xf]  ;;  %v6630_v22 = vpop.f32.mrf.mxu1  ;;  %v10774_v60 = vor.u32 %v12062_v43, %v10771_v51 }
 0x69c   :  { %v13307_v27 = vadd.f32 %v6654_v5, %v6642_v0  ;;  %v10102_v31 = vor.u32 %v11894_v6, %v10099_v52  ;;  %v10806_v18 = vor.u32 %v12070_v9, %v10803_v2  ;;  %v10755_v0 = vld [vmem:[#allocation2 + $0xe70] sm:$0xf0]  ;;  %v12090_v52 = vld [vmem:[#allocation2 + $0xf64] sm:$0xf] }
 0x69d   :  { %6868 = vmatpush.bf16.msrb.mxu0 %v10022_v44  ;;  %6881 = vmatpush.bf16.msra.mxu1 %v10150_v25  ;;  %v10931_v44 = vld [vmem:[#allocation2 + $0xfd0] sm:$0xf0]  ;;  %v6617_v25 = vpop.f32.mrf.mxu0  ;;  %v12006_v2 = vld [vmem:[#allocation2 + $0xcc4] sm:$0xf] }
 0x69e   :  { %v10934_v48 = vor.u32 %v12102_v13, %v10931_v44  ;;  %v10883_v9 = vld [vmem:[#allocation2 + $0xf70] sm:$0xf0]  ;;  %v12038_v44 = vld [vmem:[#allocation2 + $0xdc4] sm:$0xf] }
 0x69f   :  { %6898 = vmatpush.bf16.msrb.mxu3 %v10214_v4  ;;  %6911 = vmatpush.bf16.msra.mxu2 %v10342_v38  ;;  %v10083_v4 = vld [vmem:[#allocation2 + $0x930] sm:$0xf0]  ;;  %v12066_v38 = vld [vmem:[#allocation2 + $0xea4] sm:$0xf] }
 0x6a0   :  { %v10086_v40 = vor.u32 %v11890_v61, %v10083_v4  ;;  %v10790_v42 = vor.u32 %v12066_v38, %v10787_v49  ;;  %v10547_v13 = vld [vmem:[#allocation2 + $0xcd0] sm:$0xf0]  ;;  %v12086_v4 = vld [vmem:[#allocation2 + $0xf44] sm:$0xf] }
 0x6a1   :  { %6869 = vmatpush.bf16.msrb.mxu0 %v10006_v24  ;;  %6882 = vmatpush.bf16.msra.mxu1 %v10134_v45  ;;  %v11854_v24 = vld [vmem:[#allocation2 + $0x804] sm:$0xf]  ;;  %v9939_v45 = vld [vmem:[#allocation2 + $0x810] sm:$0xf0]  ;;  %v6643_v46 = vpop.f32.mrf.mxu3  ;;  %v6656_v26 = vpop.f32.mrf.mxu2 }
 0x6a2   :  { %v9942_v59 = vor.u32 %v11854_v24, %v9939_v45  ;;  %v10675_v25 = vld [vmem:[#allocation2 + $0xdd0] sm:$0xf0]  ;;  %v12002_v49 = vld [vmem:[#allocation2 + $0xca4] sm:$0xf] }
 0x6a3   :  { %6899 = vmatpush.bf16.msrb.mxu3 %v10198_v55  ;;  %6912 = vmatpush.bf16.msra.mxu2 %v10326_v17  ;;  %v12010_v55 = vld [vmem:[#allocation2 + $0xce4] sm:$0xf]  ;;  %v10563_v17 = vld [vmem:[#allocation2 + $0xcf0] sm:$0xf0]  ;;  %v10678_v61 = vor.u32 %v12038_v44, %v10675_v25  ;;  %v9033_v25 = vld [vmem:[#allocation2 + $0xe8] sm:$0xf] }
 0x6a4   :  { %v10566_v5 = vor.u32 %v12010_v55, %v10563_v17  ;;  %v10867_v38 = vld [vmem:[#allocation2 + $0xf50] sm:$0xf0]  ;;  %v12050_v45 = vld [vmem:[#allocation2 + $0xe24] sm:$0xf] }
 0x6a5   :  { %6870 = vmatpush.bf16.msrb.mxu0 %v9990_v56  ;;  %6883 = vmatpush.bf16.msra.mxu1 %v10118_v58  ;;  %v12042_v56 = vld [vmem:[#allocation2 + $0xde4] sm:$0xf]  ;;  %v10691_v58 = vld [vmem:[#allocation2 + $0xdf0] sm:$0xf0]  ;;  %v10870_v24 = vor.u32 %v12086_v4, %v10867_v38 }
 0x6a6   :  { %6900 = vmatmul.bf16.vlgmr.msrb.gmra.mxu3 %v13264_v1  ;;  %6913 = vmatmul.bf16.vlgmr.msra.gmra.mxu2 %v13268_v3  ;;  %v10694_v6 = vor.u32 %v12042_v56, %v10691_v58  ;;  %v10531_v39 = vld [vmem:[#allocation2 + $0xcb0] sm:$0xf0]  ;;  %v11998_v43 = vld [vmem:[#allocation2 + $0xc84] sm:$0xf] }
 0x6a7   :  { %6944 = vmatpush.bf16.msra.mxu3 %v10822_v63  ;;  %6957 = vmatpush.bf16.msrb.mxu2 %v10950_v35  ;;  %v10902_v63 = vor.u32 %v12094_v54, %v10899_v53  ;;  %v12058_v35 = vld [vmem:[#allocation2 + $0xe64] sm:$0xf]  ;;  %v10723_v23 = vld [vmem:[#allocation2 + $0xe30] sm:$0xf0]  ;;  %v10534_v46 = vor.u32 %v12002_v49, %v10531_v39 }
 0x6a8   :  { %v10758_v22 = vor.u32 %v12058_v35, %v10755_v0  ;;  %v10851_v50 = vld [vmem:[#allocation2 + $0xf30] sm:$0xf0]  ;;  %v12030_v26 = vld [vmem:[#allocation2 + $0xd84] sm:$0xf]  ;;  %v10726_v56 = vor.u32 %v12050_v45, %v10723_v23  ;;  %v9017_v45 = vld [vmem:[#allocation2 + $0xc8] sm:$0xf] }
 0x6a9   :  { %6871 = vmatpush.bf16.msrb.mxu0 %v9974_v28  ;;  %6884 = vmatpush.bf16.msra.mxu1 %v10102_v31  ;;  %v10886_v28 = vor.u32 %v12090_v52, %v10883_v9  ;;  %v12054_v31 = vld [vmem:[#allocation2 + $0xe44] sm:$0xf]  ;;  %v6693_v37 = vpop.f32.mrf.mxu3  ;;  %v10515_v51 = vld [vmem:[#allocation2 + $0xc90] sm:$0xf0]  ;;  %v11625_v23 = vld [vmem:[#allocation2 + $0xd4] sm:$0xf0] }
 0x6aa   :  { %v10643_v54 = vld [vmem:[#allocation2 + $0xd90] sm:$0xf0]  ;;  %v10518_v0 = vor.u32 %v11998_v43, %v10515_v51  ;;  %v11994_v52 = vld [vmem:[#allocation2 + $0xc64] sm:$0xf] }
 0x6ab   :  { %6945 = vmatpush.bf16.msra.mxu3 %v10806_v18  ;;  %6958 = vmatpush.bf16.msrb.mxu2 %v10934_v48  ;;  %v13311_v18 = vpop.f32.mrf.mxu2  ;;  %v10550_v48 = vor.u32 %v12006_v2, %v10547_v13  ;;  %v10499_v9 = vld [vmem:[#allocation2 + $0xc70] sm:$0xf0]  ;;  %v12026_v13 = vld [vmem:[#allocation2 + $0xd64] sm:$0xf] }
 0x6ac   :  { %v10627_v44 = vld [vmem:[#allocation2 + $0xd70] sm:$0xf0]  ;;  %v11990_v38 = vld [vmem:[#allocation2 + $0xc44] sm:$0xf] }
 0x6ad   :  { %6872 = vmatpush.bf16.msrb.mxu0 %v9958_v34  ;;  %6885 = vmatpush.bf16.msra.mxu1 %v10086_v40  ;;  %v10659_v34 = vld [vmem:[#allocation2 + $0xdb0] sm:$0xf0]  ;;  %v10742_v40 = vor.u32 %v12054_v31, %v10739_v21  ;;  %v10630_v4 = vor.u32 %v12026_v13, %v10627_v44  ;;  %v11986_v51 = vld [vmem:[#allocation2 + $0xc24] sm:$0xf]  ;;  %v9113_v13 = vld [vmem:[#allocation2 + $0x188] sm:$0xf] }
 0x6ae   :  { %v10483_v49 = vld [vmem:[#allocation2 + $0xc50] sm:$0xf0]  ;;  %v11649_v44 = vld [vmem:[#allocation2 + $0x194] sm:$0xf0] }
 0x6af   :  { %6946 = vmatpush.bf16.msra.mxu3 %v10790_v42  ;;  %6959 = vmatpush.bf16.msrb.mxu2 %v10918_v47  ;;  %v10662_v42 = vor.u32 %v12034_v20, %v10659_v34  ;;  %v12082_v47 = vld [vmem:[#allocation2 + $0xf24] sm:$0xf] }
 0x6b0   :  { %v10854_v58 = vor.u32 %v12082_v47, %v10851_v50  ;;  %v10486_v50 = vor.u32 %v11990_v38, %v10483_v49  ;;  %v11613_v38 = vld [vmem:[#allocation2 + $0x74] sm:$0xf0] }
 0x6b1   :  { %6873 = vmatpush.bf16.msrb.mxu0 %v9942_v59  ;;  %6886 = vmatpush.bf16.msra.mxu1 %v10070_v14  ;;  %v6667_v53 = vpop.f32.mrf.mxu0  ;;  %v6680_v55 = vpop.f32.mrf.mxu1  ;;  %v12046_v59 = vld [vmem:[#allocation2 + $0xe04] sm:$0xf]  ;;  %v10707_v14 = vld [vmem:[#allocation2 + $0xe10] sm:$0xf0] }
 0x6b2   :  { %v6668_v17 = vadd.f32 %v6667_v53, %v13307_v27  ;;  %v9161_v27 = vld [vmem:[#allocation2 + $0x1e8] sm:$0xf]  ;;  %v10710_v21 = vor.u32 %v12046_v59, %v10707_v14  ;;  %v12018_v53 = vld [vmem:[#allocation2 + $0xd24] sm:$0xf]  ;;  %v11653_v59 = vld [vmem:[#allocation2 + $0x1b4] sm:$0xf0] }
 0x6b3   :  { %6947 = vmatpush.bf16.msra.mxu3 %v10774_v60  ;;  %6960 = vmatpush.bf16.msrb.mxu2 %v10902_v63  ;;  %v12078_v60 = vld [vmem:[#allocation2 + $0xf04] sm:$0xf]  ;;  %v6695_v63 = vpop.f32.mrf.mxu3  ;;  %v6708_v35 = vpop.f32.mrf.mxu2 }
 0x6b4   :  { %6874 = vmatmul.bf16.vlgmr.msrb.gmra.mxu0 %v13240_v11  ;;  %6887 = vmatmul.bf16.vlgmr.msra.gmra.mxu1 %v13242_v12  ;;  %v6681_v2 = vadd.f32 %v6680_v55, %v6668_v17  ;;  %v10595_v55 = vld [vmem:[#allocation2 + $0xd30] sm:$0xf0]  ;;  %v9001_v17 = vld [vmem:[#allocation2 + $0xa8] sm:$0xf]  ;;  %v11982_v63 = vld [vmem:[#allocation2 + $0xc04] sm:$0xf] }
 0x6b5   :  { %6918 = vmatpush.bf16.msra.mxu0 %v10566_v5  ;;  %6931 = vmatpush.bf16.msrb.mxu1 %v10694_v6  ;;  %v10646_v5 = vor.u32 %v12030_v26, %v10643_v54  ;;  %v10835_v6 = vld [vmem:[#allocation2 + $0xf10] sm:$0xf0] }
 0x6b6   :  { %v6694_v31 = vadd.f32 %v6693_v37, %v6681_v2  ;;  %v10467_v26 = vld [vmem:[#allocation2 + $0xc30] sm:$0xf0]  ;;  %v11617_v2 = vld [vmem:[#allocation2 + $0x94] sm:$0xf0] }
 0x6b7   :  { %6948 = vmatpush.bf16.msra.mxu3 %v10758_v22  ;;  %6961 = vmatpush.bf16.msrb.mxu2 %v10886_v28  ;;  %v11629_v22 = vld [vmem:[#allocation2 + $0xf4] sm:$0xf0]  ;;  %v10470_v14 = vor.u32 %v11986_v51, %v10467_v26  ;;  %v10451_v35 = vld [vmem:[#allocation2 + $0xc10] sm:$0xf0] }
 0x6b8   :  { %v11661_v28 = vld [vmem:[#allocation2 + $0x1f4] sm:$0xf0]  ;;  %v9034_v39 = vor.u32 %v11629_v22, %v9033_v25  ;;  %v13317_v34 = vadd.f32 %v13311_v18, %v6694_v31  ;;  %v9018_v18 = vor.u32 %v11625_v23, %v9017_v45  ;;  %v12138_v25 = vld [vmem:[#allocation2 + $0x10e4] sm:$0xf]  ;;  %v11075_v22 = vld [vmem:[#allocation2 + $0x10f0] sm:$0xf0]  ;;  %v10454_v31 = vor.u32 %v11982_v63, %v10451_v35 }
 0x6b9   :  { %6919 = vmatpush.bf16.msra.mxu0 %v10550_v48  ;;  %6932 = vmatpush.bf16.msrb.mxu1 %v10678_v61  ;;  %v10838_v48 = vor.u32 %v12078_v60, %v10835_v6  ;;  %v10502_v61 = vor.u32 %v11994_v52, %v10499_v9  ;;  %v9162_v20 = vor.u32 %v11661_v28, %v9161_v27  ;;  %v6669_v37 = vpop.f32.mrf.mxu0  ;;  %v6682_v47 = vpop.f32.mrf.mxu1  ;;  %v10579_v52 = vld [vmem:[#allocation2 + $0xd10] sm:$0xf0]  ;;  %v8985_v9 = vld [vmem:[#allocation2 + $0x88] sm:$0xf]  ;;  %v12170_v27 = vld [vmem:[#allocation2 + $0x11e4] sm:$0xf] }
 0x6ba   :  { %v10598_v60 = vor.u32 %v12018_v53, %v10595_v55  ;;  %v11203_v28 = vld [vmem:[#allocation2 + $0x11f0] sm:$0xf0]  ;;  %v11078_v49 = vor.u32 %v12138_v25, %v11075_v22  ;;  %v12166_v23 = vld [vmem:[#allocation2 + $0x11c4] sm:$0xf]  ;;  %v8953_v47 = vld [vmem:[#allocation2 + $0x48] sm:$0xf] }
 0x6bb   :  { %6949 = vmatpush.bf16.msra.mxu3 %v10742_v40  ;;  %6962 = vmatpush.bf16.msrb.mxu2 %v10870_v24  ;;  %v12022_v40 = vld [vmem:[#allocation2 + $0xd44] sm:$0xf]  ;;  %v10611_v24 = vld [vmem:[#allocation2 + $0xd50] sm:$0xf0]  ;;  %v11641_v53 = vld [vmem:[#allocation2 + $0x154] sm:$0xf0] }
 0x6bc   :  { %v10614_v43 = vor.u32 %v12022_v40, %v10611_v24  ;;  %v11645_v40 = vld [vmem:[#allocation2 + $0x174] sm:$0xf0]  ;;  %v12134_v24 = vld [vmem:[#allocation2 + $0x10c4] sm:$0xf]  ;;  %v11059_v45 = vld [vmem:[#allocation2 + $0x10d0] sm:$0xf0] }
 0x6bd   :  { %6920 = vmatpush.bf16.msra.mxu0 %v10534_v46  ;;  %6933 = vmatpush.bf16.msrb.mxu1 %v10662_v42  ;;  %v9145_v46 = vld [vmem:[#allocation2 + $0x1c8] sm:$0xf]  ;;  %v11657_v42 = vld [vmem:[#allocation2 + $0x1d4] sm:$0xf0]  ;;  %v11062_v26 = vor.u32 %v12134_v24, %v11059_v45  ;;  %v12130_v55 = vld [vmem:[#allocation2 + $0x10a4] sm:$0xf] }
 0x6be   :  { %v9146_v54 = vor.u32 %v11657_v42, %v9145_v46  ;;  %v11187_v46 = vld [vmem:[#allocation2 + $0x11d0] sm:$0xf0]  ;;  %v11605_v63 = vld [vmem:[#allocation2 + $0x34] sm:$0xf0]  ;;  %v12154_v45 = vld [vmem:[#allocation2 + $0x1164] sm:$0xf] }
 0x6bf   :  { %6950 = vmatpush.bf16.msra.mxu3 %v10726_v56  ;;  %6963 = vmatpush.bf16.msrb.mxu2 %v10854_v58  ;;  %v11621_v56 = vld [vmem:[#allocation2 + $0xb4] sm:$0xf0]  ;;  %v9129_v58 = vld [vmem:[#allocation2 + $0x1a8] sm:$0xf] }
 0x6c0   :  { %v9130_v6 = vor.u32 %v11653_v59, %v9129_v58  ;;  %v11171_v58 = vld [vmem:[#allocation2 + $0x11b0] sm:$0xf0] }
 0x6c1   :  { %6921 = vmatpush.bf16.msra.mxu0 %v10518_v0  ;;  %6934 = vmatpush.bf16.msrb.mxu1 %v10646_v5  ;;  %v12014_v0 = vld [vmem:[#allocation2 + $0xd04] sm:$0xf]  ;;  %v9002_v5 = vor.u32 %v11621_v56, %v9001_v17  ;;  %v11043_v17 = vld [vmem:[#allocation2 + $0x10b0] sm:$0xf0] }
 0x6c2   :  { %v12162_v56 = vld [vmem:[#allocation2 + $0x11a4] sm:$0xf]  ;;  %v11046_v35 = vor.u32 %v12130_v55, %v11043_v17  ;;  %v10995_v55 = vld [vmem:[#allocation2 + $0x1050] sm:$0xf0] }
 0x6c3   :  { %6951 = vmatpush.bf16.msra.mxu3 %v10710_v21  ;;  %6964 = vmatpush.bf16.msrb.mxu2 %v10838_v48  ;;  %v10582_v21 = vor.u32 %v12014_v0, %v10579_v52  ;;  %v8986_v48 = vor.u32 %v11617_v2, %v8985_v9  ;;  %v11174_v0 = vor.u32 %v12162_v56, %v11171_v58  ;;  %v12126_v52 = vld [vmem:[#allocation2 + $0x1084] sm:$0xf]  ;;  %v11027_v9 = vld [vmem:[#allocation2 + $0x1090] sm:$0xf0] }
 0x6c4   :  { %v12158_v2 = vld [vmem:[#allocation2 + $0x1184] sm:$0xf] }
 0x6c5   :  { %6922 = vmatpush.bf16.msra.mxu0 %v10502_v61  ;;  %6935 = vmatpush.bf16.msrb.mxu1 %v10630_v4  ;;  %v9114_v61 = vor.u32 %v11649_v44, %v9113_v13  ;;  %v8969_v4 = vld [vmem:[#allocation2 + $0x68] sm:$0xf]  ;;  %v11155_v13 = vld [vmem:[#allocation2 + $0x1190] sm:$0xf0] }
 0x6c6   :  { %6952 = vmatmul.bf16.vlgmr.msra.gmra.mxu3 %v13288_v15  ;;  %6965 = vmatmul.bf16.vlgmr.msrb.gmra.mxu2 %v13292_v36  ;;  %v8970_v42 = vor.u32 %v11613_v38, %v8969_v4  ;;  %v11030_v38 = vor.u32 %v12126_v52, %v11027_v9  ;;  %v12114_v9 = vld [vmem:[#allocation2 + $0x1024] sm:$0xf] }
 0x6c7   :  { %6996 = vmatpush.bf16.msrb.mxu3 %v9034_v39  ;;  %7009 = vmatpush.bf16.msra.mxu2 %v9162_v20  ;;  %v11206_v39 = vor.u32 %v12170_v27, %v11203_v28  ;;  %v9097_v20 = vld [vmem:[#allocation2 + $0x168] sm:$0xf] }
 0x6c8   :  { %v9098_v37 = vor.u32 %v11645_v40, %v9097_v20  ;;  %v12122_v20 = vld [vmem:[#allocation2 + $0x1064] sm:$0xf]  ;;  %v11011_v40 = vld [vmem:[#allocation2 + $0x1070] sm:$0xf0] }
 0x6c9   :  { %6923 = vmatpush.bf16.msra.mxu0 %v10486_v50  ;;  %6936 = vmatpush.bf16.msrb.mxu1 %v10614_v43  ;;  %v11609_v50 = vld [vmem:[#allocation2 + $0x54] sm:$0xf0]  ;;  %v6745_v43 = vpop.f32.mrf.mxu3  ;;  %v13321_v51 = vpop.f32.mrf.mxu2 }
 0x6ca   :  { %v8954_v59 = vor.u32 %v11609_v50, %v8953_v47 }
 0x6cb   :  { %6997 = vmatpush.bf16.msrb.mxu3 %v9018_v18  ;;  %7010 = vmatpush.bf16.msra.mxu2 %v9146_v54  ;;  %v11190_v18 = vor.u32 %v12166_v23, %v11187_v46  ;;  %v9081_v54 = vld [vmem:[#allocation2 + $0x148] sm:$0xf]  ;;  %v11139_v23 = vld [vmem:[#allocation2 + $0x1170] sm:$0xf0] }
 0x6cc   :  { %v9545_v46 = vld [vmem:[#allocation2 + $0x4e8] sm:$0xf] }
 0x6cd   :  { %6924 = vmatpush.bf16.msra.mxu0 %v10470_v14  ;;  %6937 = vmatpush.bf16.msrb.mxu1 %v10598_v60  ;;  %v9082_v14 = vor.u32 %v11641_v53, %v9081_v54  ;;  %v8937_v60 = vld [vmem:[#allocation2 + $0x28] sm:$0xf]  ;;  %v11142_v54 = vor.u32 %v12154_v45, %v11139_v23  ;;  %v12118_v53 = vld [vmem:[#allocation2 + $0x1044] sm:$0xf]  ;;  %v11777_v23 = vld [vmem:[#allocation2 + $0x594] sm:$0xf0] }
 0x6ce   :  { %v8938_v27 = vor.u32 %v11605_v63, %v8937_v60  ;;  %v9529_v60 = vld [vmem:[#allocation2 + $0x4c8] sm:$0xf]  ;;  %v11753_v63 = vld [vmem:[#allocation2 + $0x4d4] sm:$0xf0] }
 0x6cf   :  { %6998 = vmatpush.bf16.msrb.mxu3 %v9002_v5  ;;  %7011 = vmatpush.bf16.msra.mxu2 %v9130_v6  ;;  %v9065_v5 = vld [vmem:[#allocation2 + $0x128] sm:$0xf]  ;;  %v11637_v6 = vld [vmem:[#allocation2 + $0x134] sm:$0xf0] }
 0x6d0   :  { %v9066_v28 = vor.u32 %v11637_v6, %v9065_v5  ;;  %v10998_v6 = vor.u32 %v12118_v53, %v10995_v55  ;;  %v9625_v45 = vld [vmem:[#allocation2 + $0x588] sm:$0xf]  ;;  %v11741_v53 = vld [vmem:[#allocation2 + $0x474] sm:$0xf0] }
 0x6d1   :  { %6925 = vmatpush.bf16.msra.mxu0 %v10454_v31  ;;  %6938 = vmatpush.bf16.msrb.mxu1 %v10582_v21  ;;  %v6719_v44 = vpop.f32.mrf.mxu0  ;;  %v6732_v25 = vpop.f32.mrf.mxu1  ;;  %v8921_v31 = vld [vmem:[#allocation2 + $0x8] sm:$0xf]  ;;  %v11601_v21 = vld [vmem:[#allocation2 + $0x14] sm:$0xf0] }
 0x6d2   :  { %v6720_v22 = vadd.f32 %v6719_v44, %v13317_v34  ;;  %v6760_v4 = vpop.f32.mrf.mxu2  ;;  %v9673_v34 = vld [vmem:[#allocation2 + $0x5e8] sm:$0xf]  ;;  %v8922_v50 = vor.u32 %v11601_v21, %v8921_v31  ;;  %v12146_v44 = vld [vmem:[#allocation2 + $0x1124] sm:$0xf]  ;;  %v11781_v31 = vld [vmem:[#allocation2 + $0x5b4] sm:$0xf0] }
 0x6d3   :  { %6999 = vmatpush.bf16.msrb.mxu3 %v8986_v48  ;;  %7012 = vmatpush.bf16.msra.mxu2 %v9114_v61  ;;  %v9049_v48 = vld [vmem:[#allocation2 + $0x108] sm:$0xf]  ;;  %v6747_v61 = vpop.f32.mrf.mxu3  ;;  %v10963_v4 = vld [vmem:[#allocation2 + $0x1010] sm:$0xf0] }
 0x6d4   :  { %6926 = vmatmul.bf16.vlgmr.msra.gmra.mxu0 %v13252_v62  ;;  %6939 = vmatmul.bf16.vlgmr.msrb.gmra.mxu1 %v13254_v16  ;;  %v6733_v24 = vadd.f32 %v6732_v25, %v6720_v22  ;;  %v11107_v25 = vld [vmem:[#allocation2 + $0x1130] sm:$0xf0]  ;;  %v9513_v22 = vld [vmem:[#allocation2 + $0x4a8] sm:$0xf]  ;;  %v12110_v61 = vld [vmem:[#allocation2 + $0x1004] sm:$0xf] }
 0x6d5   :  { %6970 = vmatpush.bf16.msrb.mxu0 %v11078_v49  ;;  %6983 = vmatpush.bf16.msra.mxu1 %v11206_v39  ;;  %v11158_v49 = vor.u32 %v12158_v2, %v11155_v13  ;;  %v11633_v39 = vld [vmem:[#allocation2 + $0x114] sm:$0xf0]  ;;  %v10979_v2 = vld [vmem:[#allocation2 + $0x1030] sm:$0xf0] }
 0x6d6   :  { %v6746_v47 = vadd.f32 %v6745_v43, %v6733_v24  ;;  %v10982_v21 = vor.u32 %v12114_v9, %v10979_v2  ;;  %v11745_v24 = vld [vmem:[#allocation2 + $0x494] sm:$0xf0] }
 0x6d7   :  { %7000 = vmatpush.bf16.msrb.mxu3 %v8970_v42  ;;  %7013 = vmatpush.bf16.msra.mxu2 %v9098_v37  ;;  %v11757_v42 = vld [vmem:[#allocation2 + $0x4f4] sm:$0xf0] }
 0x6d8   :  { %v11789_v37 = vld [vmem:[#allocation2 + $0x5f4] sm:$0xf0]  ;;  %v9546_v17 = vor.u32 %v11757_v42, %v9545_v46  ;;  %v13327_v58 = vadd.f32 %v13321_v51, %v6746_v47  ;;  %v9530_v51 = vor.u32 %v11753_v63, %v9529_v60  ;;  %v9289_v46 = vld [vmem:[#allocation2 + $0x2e8] sm:$0xf]  ;;  %v10966_v47 = vor.u32 %v12110_v61, %v10963_v4 }
 0x6d9   :  { %6971 = vmatpush.bf16.msrb.mxu0 %v11062_v26  ;;  %6984 = vmatpush.bf16.msra.mxu1 %v11190_v18  ;;  %v9050_v26 = vor.u32 %v11633_v39, %v9049_v48  ;;  %v11014_v18 = vor.u32 %v12122_v20, %v11011_v40  ;;  %v9674_v56 = vor.u32 %v11789_v37, %v9673_v34  ;;  %v6721_v43 = vpop.f32.mrf.mxu0  ;;  %v6734_v5 = vpop.f32.mrf.mxu1  ;;  %v11091_v20 = vld [vmem:[#allocation2 + $0x1110] sm:$0xf0]  ;;  %v9497_v40 = vld [vmem:[#allocation2 + $0x488] sm:$0xf]  ;;  %v11693_v42 = vld [vmem:[#allocation2 + $0x2f4] sm:$0xf0] }
 0x6da   :  { %v11110_v48 = vor.u32 %v12146_v44, %v11107_v25  ;;  %v9417_v34 = vld [vmem:[#allocation2 + $0x3e8] sm:$0xf]  ;;  %v11725_v37 = vld [vmem:[#allocation2 + $0x3f4] sm:$0xf0]  ;;  %v9290_v55 = vor.u32 %v11693_v42, %v9289_v46  ;;  %vm7464_vm0 = vcmp.gt.f32.partialorder %v13327_v58, 0.0 }
 0x6db   :  { %7001 = vmatpush.bf16.msrb.mxu3 %v8954_v59  ;;  %7014 = vmatpush.bf16.msra.mxu2 %v9082_v14  ;;  %v12150_v59 = vld [vmem:[#allocation2 + $0x1144] sm:$0xf]  ;;  %v11123_v14 = vld [vmem:[#allocation2 + $0x1150] sm:$0xf0]  ;;  %v11689_v60 = vld [vmem:[#allocation2 + $0x2d4] sm:$0xf0] }
 0x6dc   :  { %v11126_v52 = vor.u32 %v12150_v59, %v11123_v14  ;;  %v11773_v59 = vld [vmem:[#allocation2 + $0x574] sm:$0xf0]  ;;  %v9273_v14 = vld [vmem:[#allocation2 + $0x2c8] sm:$0xf] }
 0x6dd   :  { %6972 = vmatpush.bf16.msrb.mxu0 %v11046_v35  ;;  %6985 = vmatpush.bf16.msra.mxu1 %v11174_v0  ;;  %v9657_v35 = vld [vmem:[#allocation2 + $0x5c8] sm:$0xf]  ;;  %v11785_v0 = vld [vmem:[#allocation2 + $0x5d4] sm:$0xf0]  ;;  %v9274_v2 = vor.u32 %v11689_v60, %v9273_v14 }
 0x6de   :  { %v9658_v13 = vor.u32 %v11785_v0, %v9657_v35  ;;  %v9401_v63 = vld [vmem:[#allocation2 + $0x3c8] sm:$0xf]  ;;  %v11721_v35 = vld [vmem:[#allocation2 + $0x3d4] sm:$0xf0] }
 0x6df   :  { %7002 = vmatpush.bf16.msrb.mxu3 %v8938_v27  ;;  %7015 = vmatpush.bf16.msra.mxu2 %v9066_v28  ;;  %v11749_v27 = vld [vmem:[#allocation2 + $0x4b4] sm:$0xf0]  ;;  %v9641_v28 = vld [vmem:[#allocation2 + $0x5a8] sm:$0xf] }
 0x6e0   :  { %v9642_v39 = vor.u32 %v11781_v31, %v9641_v28  ;;  %v11737_v9 = vld [vmem:[#allocation2 + $0x454] sm:$0xf0]  ;;  %v9257_v25 = vld [vmem:[#allocation2 + $0x2a8] sm:$0xf] }
 0x6e1   :  { %6973 = vmatpush.bf16.msrb.mxu0 %v11030_v38  ;;  %6986 = vmatpush.bf16.msra.mxu1 %v11158_v49  ;;  %v12142_v38 = vld [vmem:[#allocation2 + $0x1104] sm:$0xf]  ;;  %v9514_v49 = vor.u32 %v11749_v27, %v9513_v22  ;;  %v11769_v44 = vld [vmem:[#allocation2 + $0x554] sm:$0xf0]  ;;  %v9385_v27 = vld [vmem:[#allocation2 + $0x3a8] sm:$0xf] }
 0x6e2   :  { %v11685_v22 = vld [vmem:[#allocation2 + $0x2b4] sm:$0xf0]  ;;  %v9449_v4 = vld [vmem:[#allocation2 + $0x428] sm:$0xf] }
 0x6e3   :  { %7003 = vmatpush.bf16.msrb.mxu3 %v8922_v50  ;;  %7016 = vmatpush.bf16.msra.mxu2 %v9050_v26  ;;  %v11094_v50 = vor.u32 %v12142_v38, %v11091_v20  ;;  %v9498_v26 = vor.u32 %v11745_v24, %v9497_v40  ;;  %v11717_v28 = vld [vmem:[#allocation2 + $0x3b4] sm:$0xf0]  ;;  %v9577_v20 = vld [vmem:[#allocation2 + $0x528] sm:$0xf] }
 0x6e4   :  { %v11733_v38 = vld [vmem:[#allocation2 + $0x434] sm:$0xf0]  ;;  %v9241_v24 = vld [vmem:[#allocation2 + $0x288] sm:$0xf] }
 0x6e5   :  { %6974 = vmatpush.bf16.msrb.mxu0 %v11014_v18  ;;  %6987 = vmatpush.bf16.msra.mxu1 %v11142_v54  ;;  %v9626_v18 = vor.u32 %v11777_v23, %v9625_v45  ;;  %v9481_v54 = vld [vmem:[#allocation2 + $0x468] sm:$0xf]  ;;  %v11765_v40 = vld [vmem:[#allocation2 + $0x534] sm:$0xf0] }
 0x6e6   :  { %7004 = vmatmul.bf16.vlgmr.msrb.gmra.mxu3 %v13218_v41  ;;  %7017 = vmatmul.bf16.vlgmr.msra.gmra.mxu2 %v13220_v19  ;;  %v9482_v0 = vor.u32 %v11741_v53, %v9481_v54  ;;  %v11681_v45 = vld [vmem:[#allocation2 + $0x294] sm:$0xf0]  ;;  %v9369_v23 = vld [vmem:[#allocation2 + $0x388] sm:$0xf] }
 0x6e7   :  { %7048 = vmatpush.bf16.msra.mxu3 %v9546_v17  ;;  %7061 = vmatpush.bf16.msrb.mxu2 %v9674_v56  ;;  %v9418_v17 = vor.u32 %v11725_v37, %v9417_v34  ;;  %v9609_v56 = vld [vmem:[#allocation2 + $0x568] sm:$0xf]  ;;  %v11713_v46 = vld [vmem:[#allocation2 + $0x394] sm:$0xf0] }
 0x6e8   :  { %v9610_v43 = vor.u32 %v11773_v59, %v9609_v56  ;;  %v9433_v54 = vld [vmem:[#allocation2 + $0x408] sm:$0xf]  ;;  %v11729_v53 = vld [vmem:[#allocation2 + $0x414] sm:$0xf0]  ;;  %v9370_v56 = vor.u32 %v11713_v46, %v9369_v23 }
 0x6e9   :  { %6975 = vmatpush.bf16.msrb.mxu0 %v10998_v6  ;;  %6988 = vmatpush.bf16.msra.mxu1 %v11126_v52  ;;  %v6797_v5 = vpop.f32.mrf.mxu3  ;;  %v13331_v6 = vpop.f32.mrf.mxu2  ;;  %v9465_v52 = vld [vmem:[#allocation2 + $0x448] sm:$0xf]  ;;  %v11761_v59 = vld [vmem:[#allocation2 + $0x514] sm:$0xf0] }
 0x6ea   :  { %v9466_v31 = vor.u32 %v11737_v9, %v9465_v52  ;;  %v9225_v14 = vld [vmem:[#allocation2 + $0x268] sm:$0xf]  ;;  %v11677_v60 = vld [vmem:[#allocation2 + $0x274] sm:$0xf0] }
 0x6eb   :  { %7049 = vmatpush.bf16.msra.mxu3 %v9530_v51  ;;  %7062 = vmatpush.bf16.msrb.mxu2 %v9658_v13  ;;  %v9402_v51 = vor.u32 %v11721_v35, %v9401_v63  ;;  %v9593_v13 = vld [vmem:[#allocation2 + $0x548] sm:$0xf]  ;;  %v11885_v52 = vld [vmem:[#allocation2 + $0x8f4] sm:$0xf0] }
 0x6ec   :  { %v9353_v35 = vld [vmem:[#allocation2 + $0x368] sm:$0xf]  ;;  %v11669_v46 = vld [vmem:[#allocation2 + $0x234] sm:$0xf0] }
 0x6ed   :  { %6976 = vmatpush.bf16.msrb.mxu0 %v10982_v21  ;;  %6989 = vmatpush.bf16.msra.mxu1 %v11110_v48  ;;  %v9594_v21 = vor.u32 %v11769_v44, %v9593_v13  ;;  %v12244_v48 = vld [vmem:[#allocation30] sm:$0xf]  ;;  %v10185_v9 = vld [vmem:[#allocation2 + $0x9e8] sm:$0xf]  ;;  %v9434_v13 = vor.u32 %v11729_v53, %v9433_v54 }
 0x6ee   :  { %v3641_v61 = vperm.slane %v12244_v48, 1  ;;  %v9337_v48 = vld [vmem:[#allocation2 + $0x348] sm:$0xf] }
 0x6ef   :  { %7050 = vmatpush.bf16.msra.mxu3 %v9514_v49  ;;  %7063 = vmatpush.bf16.msrb.mxu2 %v9642_v39  ;;  %v9258_v49 = vor.u32 %v11685_v22, %v9257_v25  ;;  %v9386_v39 = vor.u32 %v11717_v28, %v9385_v27  ;;  %v9226_v25 = vor.u32 %v11677_v60, %v9225_v14  ;;  %v9209_v27 = vld [vmem:[#allocation2 + $0x248] sm:$0xf]  ;;  %v11673_v28 = vld [vmem:[#allocation2 + $0x254] sm:$0xf0] }
 0x6f0   :  { %v9193_v23 = vld [vmem:[#allocation2 + $0x228] sm:$0xf]  ;;  %v11697_v60 = vld [vmem:[#allocation2 + $0x314] sm:$0xf0] }
 0x6f1   :  { %6977 = vmatpush.bf16.msrb.mxu0 %v10966_v47  ;;  %6990 = vmatpush.bf16.msra.mxu1 %v11094_v50  ;;  %v6771_v42 = vpop.f32.mrf.mxu0  ;;  %v6784_v34 = vpop.f32.mrf.mxu1  ;;  %v9450_v47 = vor.u32 %v11733_v38, %v9449_v4  ;;  %v9578_v50 = vor.u32 %v11765_v40, %v9577_v20  ;;  %v10041_v4 = vld [vmem:[#allocation2 + $0x8c8] sm:$0xf]  ;;  %v11913_v40 = vld [vmem:[#allocation2 + $0x9d4] sm:$0xf0]  ;;  %v9194_v54 = vor.u32 %v11669_v46, %v9193_v23 }
 0x6f2   :  { %v6772_v37 = vadd.f32 %v6771_v42, %v3641_v61  ;;  %v11705_v61 = vld [vmem:[#allocation2 + $0x354] sm:$0xf0]  ;;  %v10169_v20 = vld [vmem:[#allocation2 + $0x9c8] sm:$0xf] }
 0x6f3   :  { %7051 = vmatpush.bf16.msra.mxu3 %v9498_v26  ;;  %7064 = vmatpush.bf16.msrb.mxu2 %v9626_v18  ;;  %v6799_v26 = vpop.f32.mrf.mxu3  ;;  %v6812_v18 = vpop.f32.mrf.mxu2  ;;  %v9977_v23 = vld [vmem:[#allocation2 + $0x848] sm:$0xf]  ;;  %v11865_v46 = vld [vmem:[#allocation2 + $0x854] sm:$0xf0] }
 0x6f4   :  { %6978 = vmatmul.bf16.vlgmr.msrb.gmra.mxu0 %v13278_v29  ;;  %6991 = vmatmul.bf16.vlgmr.msra.gmra.mxu1 %v13282_v30  ;;  %v6785_v63 = vadd.f32 %v6784_v34, %v6772_v37  ;;  %v10170_v34 = vor.u32 %v11913_v40, %v10169_v20  ;;  %v9321_v37 = vld [vmem:[#allocation2 + $0x328] sm:$0xf]  ;;  %v11909_v18 = vld [vmem:[#allocation2 + $0x9b4] sm:$0xf0] }
 0x6f5   :  { %7022 = vmatpush.bf16.msra.mxu0 %v9290_v55  ;;  %7035 = vmatpush.bf16.msrb.mxu1 %v9418_v17  ;;  %v9561_v55 = vld [vmem:[#allocation2 + $0x508] sm:$0xf]  ;;  %v9242_v17 = vor.u32 %v11681_v45, %v9241_v24  ;;  %v9210_v24 = vor.u32 %v11673_v28, %v9209_v27  ;;  %v9338_v45 = vor.u32 %v11705_v61, %v9337_v48  ;;  %v11869_v28 = vld [vmem:[#allocation2 + $0x874] sm:$0xf0] }
 0x6f6   :  { %v9562_v44 = vor.u32 %v11761_v59, %v9561_v55  ;;  %v10153_v26 = vld [vmem:[#allocation2 + $0x9a8] sm:$0xf]  ;;  %v11901_v61 = vld [vmem:[#allocation2 + $0x974] sm:$0xf0] }
 0x6f7   :  { %7052 = vmatpush.bf16.msra.mxu3 %v9482_v0  ;;  %7065 = vmatpush.bf16.msrb.mxu2 %v9610_v43  ;;  %v11709_v0 = vld [vmem:[#allocation2 + $0x374] sm:$0xf0]  ;;  %v10057_v43 = vld [vmem:[#allocation2 + $0x8e8] sm:$0xf]  ;;  %v10154_v14 = vor.u32 %v11909_v18, %v10153_v26 }
 0x6f8   :  { %v9354_v22 = vor.u32 %v11709_v0, %v9353_v35  ;;  %v9177_v55 = vld [vmem:[#allocation2 + $0x208] sm:$0xf]  ;;  %v11873_v35 = vld [vmem:[#allocation2 + $0x894] sm:$0xf0] }
 0x6f9   :  { %7023 = vmatpush.bf16.msra.mxu0 %v9274_v2  ;;  %7036 = vmatpush.bf16.msrb.mxu1 %v9402_v51  ;;  %v11917_v2 = vld [vmem:[#allocation2 + $0x9f4] sm:$0xf0]  ;;  %v6798_v51 = vadd.f32 %v6797_v5, %v6785_v63  ;;  %v6786_v5 = vpop.f32.mrf.mxu1  ;;  %v10009_v63 = vld [vmem:[#allocation2 + $0x888] sm:$0xf] }
 0x6fa   :  { %v10137_v0 = vld [vmem:[#allocation2 + $0x988] sm:$0xf]  ;;  %v11845_v18 = vld [vmem:[#allocation2 + $0x7b4] sm:$0xf0] }
 0x6fb   :  { %7053 = vmatpush.bf16.msra.mxu3 %v9466_v31  ;;  %7066 = vmatpush.bf16.msrb.mxu2 %v9594_v21  ;;  %v10058_v31 = vor.u32 %v11885_v52, %v10057_v43  ;;  %v10186_v21 = vor.u32 %v11917_v2, %v10185_v9  ;;  %v13336_v38 = vadd.f32 %v13331_v6, %v6798_v51  ;;  %v11701_v6 = vld [vmem:[#allocation2 + $0x334] sm:$0xf0]  ;;  %v9801_v52 = vld [vmem:[#allocation2 + $0x6e8] sm:$0xf] }
 0x6fc   :  { %v9322_v53 = vor.u32 %v11701_v6, %v9321_v37  ;;  %v11905_v43 = vld [vmem:[#allocation2 + $0x994] sm:$0xf0]  ;;  %v9929_v2 = vld [vmem:[#allocation2 + $0x7e8] sm:$0xf] }
 0x6fd   :  { %7024 = vmatpush.bf16.msra.mxu0 %v9258_v49  ;;  %7037 = vmatpush.bf16.msrb.mxu1 %v9386_v39  ;;  %v6773_v49 = vpop.f32.mrf.mxu0  ;;  %v11881_v39 = vld [vmem:[#allocation2 + $0x8d4] sm:$0xf0]  ;;  %v9993_v27 = vld [vmem:[#allocation2 + $0x868] sm:$0xf] }
 0x6fe   :  { %v10042_v42 = vor.u32 %v11881_v39, %v10041_v4  ;;  %v11821_v9 = vld [vmem:[#allocation2 + $0x6f4] sm:$0xf0]  ;;  %v10121_v48 = vld [vmem:[#allocation2 + $0x968] sm:$0xf]  ;;  %v9994_v20 = vor.u32 %v11869_v28, %v9993_v27 }
 0x6ff   :  { %7054 = vmatpush.bf16.msra.mxu3 %v9450_v47  ;;  %7067 = vmatpush.bf16.msrb.mxu2 %v9578_v50  ;;  %v10025_v47 = vld [vmem:[#allocation2 + $0x8a8] sm:$0xf]  ;;  %v11877_v50 = vld [vmem:[#allocation2 + $0x8b4] sm:$0xf0]  ;;  %v10122_v40 = vor.u32 %v11901_v61, %v10121_v48 }
 0x700   :  { %v10026_v59 = vor.u32 %v11877_v50, %v10025_v47  ;;  %v11853_v51 = vld [vmem:[#allocation2 + $0x7f4] sm:$0xf0]  ;;  %v9785_v4 = vld [vmem:[#allocation2 + $0x6c8] sm:$0xf] }
 0x701   :  { %7025 = vmatpush.bf16.msra.mxu0 %v9242_v17  ;;  %7038 = vmatpush.bf16.msrb.mxu1 %v9370_v56  ;;  %v11665_v17 = vld [vmem:[#allocation2 + $0x214] sm:$0xf0]  ;;  %v9305_v56 = vld [vmem:[#allocation2 + $0x308] sm:$0xf] }
 0x702   :  { %v11817_v49 = vld [vmem:[#allocation2 + $0x6d4] sm:$0xf0]  ;;  %v9913_v5 = vld [vmem:[#allocation2 + $0x7c8] sm:$0xf] }
 0x703   :  { %7055 = vmatpush.bf16.msra.mxu3 %v9434_v13  ;;  %7068 = vmatpush.bf16.msrb.mxu2 %v9562_v44  ;;  %v9178_v13 = vor.u32 %v11665_v17, %v9177_v55  ;;  %v9306_v44 = vor.u32 %v11697_v60, %v9305_v56  ;;  %v11849_v39 = vld [vmem:[#allocation2 + $0x7d4] sm:$0xf0]  ;;  %v10105_v37 = vld [vmem:[#allocation2 + $0x948] sm:$0xf] }
 0x704   :  { %v11897_v6 = vld [vmem:[#allocation2 + $0x954] sm:$0xf0]  ;;  %v9769_v47 = vld [vmem:[#allocation2 + $0x6a8] sm:$0xf] }
 0x705   :  { %7026 = vmatpush.bf16.msra.mxu0 %v9226_v25  ;;  %7039 = vmatpush.bf16.msrb.mxu1 %v9354_v22  ;;  %v10010_v25 = vor.u32 %v11873_v35, %v10009_v63  ;;  %v10138_v22 = vor.u32 %v11905_v43, %v10137_v0  ;;  %v11813_v50 = vld [vmem:[#allocation2 + $0x6b4] sm:$0xf0]  ;;  %v9897_v26 = vld [vmem:[#allocation2 + $0x7a8] sm:$0xf] }
 0x706   :  { %7056 = vmatmul.bf16.vlgmr.msra.gmra.mxu3 %v13228_v57  ;;  %7069 = vmatmul.bf16.vlgmr.msrb.gmra.mxu2 %v13230_v10  ;;  %v9961_v55 = vld [vmem:[#allocation2 + $0x828] sm:$0xf]  ;;  %v11861_v17 = vld [vmem:[#allocation2 + $0x834] sm:$0xf0]  ;;  %v9770_v56 = vor.u32 %v11813_v50, %v9769_v47 }
 0x707   :  { %7100 = vmatpush.bf16.msrb.mxu3 %v10058_v31  ;;  %7113 = vmatpush.bf16.msra.mxu2 %v10186_v21  ;;  %v9802_v31 = vor.u32 %v11821_v9, %v9801_v52  ;;  %v9930_v21 = vor.u32 %v11853_v51, %v9929_v2  ;;  %v11893_v60 = vld [vmem:[#allocation2 + $0x934] sm:$0xf0]  ;;  %v9753_v63 = vld [vmem:[#allocation2 + $0x688] sm:$0xf]  ;;  %v9962_v51 = vor.u32 %v11861_v17, %v9961_v55 }
 0x708   :  { %v11809_v35 = vld [vmem:[#allocation2 + $0x694] sm:$0xf0]  ;;  %v9881_v0 = vld [vmem:[#allocation2 + $0x788] sm:$0xf] }
 0x709   :  { %7027 = vmatpush.bf16.msra.mxu0 %v9210_v24  ;;  %7040 = vmatpush.bf16.msrb.mxu1 %v9338_v45  ;;  %v6849_v24 = vpop.f32.mrf.mxu3  ;;  %v13340_v45 = vpop.f32.mrf.mxu2  ;;  %v11841_v43 = vld [vmem:[#allocation2 + $0x794] sm:$0xf0]  ;;  %v10073_v28 = vld [vmem:[#allocation2 + $0x908] sm:$0xf] }
 0x70a   :  { %v11857_v27 = vld [vmem:[#allocation2 + $0x814] sm:$0xf0]  ;;  %v9737_v61 = vld [vmem:[#allocation2 + $0x668] sm:$0xf] }
 0x70b   :  { %7101 = vmatpush.bf16.msrb.mxu3 %v10042_v42  ;;  %7114 = vmatpush.bf16.msra.mxu2 %v10170_v34  ;;  %v9786_v42 = vor.u32 %v11817_v49, %v9785_v4  ;;  %v9914_v34 = vor.u32 %v11849_v39, %v9913_v5  ;;  %v11889_v48 = vld [vmem:[#allocation2 + $0x914] sm:$0xf0]  ;;  %v9865_v5 = vld [vmem:[#allocation2 + $0x768] sm:$0xf] }
 0x70c   :  { %v11805_v4 = vld [vmem:[#allocation2 + $0x674] sm:$0xf0]  ;;  %v9721_v47 = vld [vmem:[#allocation2 + $0x648] sm:$0xf] }
 0x70d   :  { %7028 = vmatpush.bf16.msra.mxu0 %v9194_v54  ;;  %7041 = vmatpush.bf16.msrb.mxu1 %v9322_v53  ;;  %v9978_v54 = vor.u32 %v11865_v46, %v9977_v23  ;;  %v10106_v53 = vor.u32 %v11897_v6, %v10105_v37  ;;  %v11837_v39 = vld [vmem:[#allocation2 + $0x774] sm:$0xf0]  ;;  %v9738_v37 = vor.u32 %v11805_v4, %v9737_v61  ;;  %v10553_v55 = vld [vmem:[#allocation2 + $0xcc8] sm:$0xf] }
 0x70e   :  { %v12045_v23 = vld [vmem:[#allocation2 + $0xdf4] sm:$0xf0]  ;;  %v9866_v6 = vor.u32 %v11837_v39, %v9865_v5  ;;  %v10649_v39 = vld [vmem:[#allocation2 + $0xd88] sm:$0xf] }
 0x70f   :  { %7102 = vmatpush.bf16.msrb.mxu3 %v10026_v59  ;;  %7115 = vmatpush.bf16.msra.mxu2 %v10154_v14  ;;  %v9898_v59 = vor.u32 %v11845_v18, %v9897_v26  ;;  %v10089_v14 = vld [vmem:[#allocation2 + $0x928] sm:$0xf]  ;;  %v11801_v50 = vld [vmem:[#allocation2 + $0x654] sm:$0xf0] }
 0x710   :  { %v11825_v4 = vld [vmem:[#allocation2 + $0x714] sm:$0xf0] }
 0x711   :  { %7029 = vmatpush.bf16.msra.mxu0 %v9178_v13  ;;  %7042 = vmatpush.bf16.msrb.mxu1 %v9306_v44  ;;  %v6823_v52 = vpop.f32.mrf.mxu0  ;;  %v6836_v9 = vpop.f32.mrf.mxu1  ;;  %v10090_v13 = vor.u32 %v11893_v60, %v10089_v14  ;;  %v10681_v14 = vld [vmem:[#allocation2 + $0xdc8] sm:$0xf]  ;;  %v12041_v60 = vld [vmem:[#allocation2 + $0xdd4] sm:$0xf0] }
 0x712   :  { %v6824_v2 = vadd.f32 %v6823_v52, %v13336_v38  ;;  %v6851_v44 = vpop.f32.mrf.mxu3  ;;  %v10697_v38 = vld [vmem:[#allocation2 + $0xde8] sm:$0xf]  ;;  %v12001_v5 = vld [vmem:[#allocation2 + $0xc94] sm:$0xf0] }
 0x713   :  { %7103 = vmatpush.bf16.msrb.mxu3 %v10010_v25  ;;  %7116 = vmatpush.bf16.msra.mxu2 %v10138_v22  ;;  %v6864_v25 = vpop.f32.mrf.mxu2  ;;  %v9945_v22 = vld [vmem:[#allocation2 + $0x808] sm:$0xf]  ;;  %v10698_v18 = vor.u32 %v12045_v23, %v10697_v38  ;;  %v11949_v38 = vld [vmem:[#allocation2 + $0xaf4] sm:$0xf0] }
 0x714   :  { %7030 = vmatmul.bf16.vlgmr.msra.gmra.mxu0 %v13224_v8  ;;  %7043 = vmatmul.bf16.vlgmr.msrb.gmra.mxu1 %v13226_v32  ;;  %v6837_v49 = vadd.f32 %v6836_v9, %v6824_v2  ;;  %v10682_v9 = vor.u32 %v12041_v60, %v10681_v14  ;;  %v9833_v2 = vld [vmem:[#allocation2 + $0x728] sm:$0xf]  ;;  %v12037_v25 = vld [vmem:[#allocation2 + $0xdb4] sm:$0xf0] }
 0x715   :  { %7074 = vmatpush.bf16.msrb.mxu0 %v9802_v31  ;;  %7087 = vmatpush.bf16.msra.mxu1 %v9930_v21  ;;  %v9754_v31 = vor.u32 %v11809_v35, %v9753_v63  ;;  %v9882_v21 = vor.u32 %v11841_v43, %v9881_v0  ;;  %v9722_v63 = vor.u32 %v11801_v50, %v9721_v47  ;;  %v9705_v0 = vld [vmem:[#allocation2 + $0x628] sm:$0xf]  ;;  %v11797_v43 = vld [vmem:[#allocation2 + $0x634] sm:$0xf0] }
 0x716   :  { %v6850_v46 = vadd.f32 %v6849_v24, %v6837_v49  ;;  %v10665_v44 = vld [vmem:[#allocation2 + $0xda8] sm:$0xf]  ;;  %v11997_v50 = vld [vmem:[#allocation2 + $0xc74] sm:$0xf0] }
 0x717   :  { %7104 = vmatpush.bf16.msrb.mxu3 %v9994_v20  ;;  %7117 = vmatpush.bf16.msra.mxu2 %v10122_v40  ;;  %v10569_v20 = vld [vmem:[#allocation2 + $0xce8] sm:$0xf]  ;;  %v12013_v40 = vld [vmem:[#allocation2 + $0xcf4] sm:$0xf0]  ;;  %v10666_v61 = vor.u32 %v12037_v25, %v10665_v44 }
 0x718   :  { %v10570_v26 = vor.u32 %v12013_v40, %v10569_v20  ;;  %v13346_v17 = vadd.f32 %v13340_v45, %v6850_v46  ;;  %v11829_v45 = vld [vmem:[#allocation2 + $0x734] sm:$0xf0]  ;;  %v10521_v49 = vld [vmem:[#allocation2 + $0xc88] sm:$0xf] }
 0x719   :  { %7075 = vmatpush.bf16.msrb.mxu0 %v9786_v42  ;;  %7088 = vmatpush.bf16.msra.mxu1 %v9914_v34  ;;  %v9946_v42 = vor.u32 %v11857_v27, %v9945_v22  ;;  %v10074_v34 = vor.u32 %v11889_v48, %v10073_v28  ;;  %v6838_v24 = vpop.f32.mrf.mxu1  ;;  %v9706_v22 = vor.u32 %v11797_v43, %v9705_v0  ;;  %v9689_v28 = vld [vmem:[#allocation2 + $0x608] sm:$0xf]  ;;  %v12033_v20 = vld [vmem:[#allocation2 + $0xd94] sm:$0xf0] }
 0x71a   :  { %v9834_v27 = vor.u32 %v11829_v45, %v9833_v2  ;;  %v10313_v40 = vld [vmem:[#allocation2 + $0xae8] sm:$0xf]  ;;  %v11981_v46 = vld [vmem:[#allocation2 + $0xbf4] sm:$0xf0] }
 0x71b   :  { %7105 = vmatpush.bf16.msrb.mxu3 %v9978_v54  ;;  %7118 = vmatpush.bf16.msra.mxu2 %v10106_v53  ;;  %v9849_v54 = vld [vmem:[#allocation2 + $0x748] sm:$0xf]  ;;  %v11833_v53 = vld [vmem:[#allocation2 + $0x754] sm:$0xf0] }
 0x71c   :  { %v9850_v35 = vor.u32 %v11833_v53, %v9849_v54  ;;  %v10441_v23 = vld [vmem:[#allocation2 + $0xbe8] sm:$0xf]  ;;  %v12029_v53 = vld [vmem:[#allocation2 + $0xd74] sm:$0xf0] }
 0x71d   :  { %7076 = vmatpush.bf16.msrb.mxu0 %v9770_v56  ;;  %7089 = vmatpush.bf16.msra.mxu1 %v9898_v59  ;;  %v6825_v56 = vpop.f32.mrf.mxu0  ;;  %v12009_v59 = vld [vmem:[#allocation2 + $0xcd4] sm:$0xf0]  ;;  %v10505_v47 = vld [vmem:[#allocation2 + $0xc68] sm:$0xf] }
 0x71e   :  { %v10554_v52 = vor.u32 %v12009_v59, %v10553_v55  ;;  %v10633_v54 = vld [vmem:[#allocation2 + $0xd68] sm:$0xf]  ;;  %v11945_v56 = vld [vmem:[#allocation2 + $0xad4] sm:$0xf0]  ;;  %v10506_v14 = vor.u32 %v11997_v50, %v10505_v47 }
 0x71f   :  { %7106 = vmatpush.bf16.msrb.mxu3 %v9962_v51  ;;  %7119 = vmatpush.bf16.msra.mxu2 %v10090_v13  ;;  %v10537_v51 = vld [vmem:[#allocation2 + $0xca8] sm:$0xf]  ;;  %v12005_v13 = vld [vmem:[#allocation2 + $0xcb4] sm:$0xf0]  ;;  %v10634_v60 = vor.u32 %v12029_v53, %v10633_v54 }
 0x720   :  { %v10538_v48 = vor.u32 %v12005_v13, %v10537_v51  ;;  %v10297_v55 = vld [vmem:[#allocation2 + $0xac8] sm:$0xf]  ;;  %v11977_v59 = vld [vmem:[#allocation2 + $0xbd4] sm:$0xf0] }
 0x721   :  { %7077 = vmatpush.bf16.msrb.mxu0 %v9754_v31  ;;  %7090 = vmatpush.bf16.msra.mxu1 %v9882_v21  ;;  %v11793_v31 = vld [vmem:[#allocation2 + $0x614] sm:$0xf0]  ;;  %v9817_v21 = vld [vmem:[#allocation2 + $0x708] sm:$0xf] }
 0x722   :  { %v10425_v24 = vld [vmem:[#allocation2 + $0xbc8] sm:$0xf]  ;;  %v11993_v43 = vld [vmem:[#allocation2 + $0xc54] sm:$0xf0] }
 0x723   :  { %7107 = vmatpush.bf16.msrb.mxu3 %v9946_v42  ;;  %7120 = vmatpush.bf16.msra.mxu2 %v10074_v34  ;;  %v9690_v42 = vor.u32 %v11793_v31, %v9689_v28  ;;  %v9818_v34 = vor.u32 %v11825_v4, %v9817_v21  ;;  %v10489_v0 = vld [vmem:[#allocation2 + $0xc48] sm:$0xf]  ;;  %v12025_v45 = vld [vmem:[#allocation2 + $0xd54] sm:$0xf0] }
 0x724   :  { %v10617_v2 = vld [vmem:[#allocation2 + $0xd48] sm:$0xf]  ;;  %v11941_v13 = vld [vmem:[#allocation2 + $0xab4] sm:$0xf0] }
 0x725   :  { %7078 = vmatpush.bf16.msrb.mxu0 %v9738_v37  ;;  %7091 = vmatpush.bf16.msra.mxu1 %v9866_v6  ;;  %v10522_v37 = vor.u32 %v12001_v5, %v10521_v49  ;;  %v10650_v6 = vor.u32 %v12033_v20, %v10649_v39  ;;  %v10281_v51 = vld [vmem:[#allocation2 + $0xaa8] sm:$0xf]  ;;  %v11973_v25 = vld [vmem:[#allocation2 + $0xbb4] sm:$0xf0] }
 0x726   :  { %7108 = vmatmul.bf16.vlgmr.msrb.gmra.mxu3 %v13240_v11  ;;  %7121 = vmatmul.bf16.vlgmr.msra.gmra.mxu2 %v13242_v12  ;;  %v10409_v44 = vld [vmem:[#allocation2 + $0xba8] sm:$0xf]  ;;  %v11989_v31 = vld [vmem:[#allocation2 + $0xc34] sm:$0xf0]  ;;  %v10282_v21 = vor.u32 %v11941_v13, %v10281_v51 }
 0x727   :  { %7152 = vmatpush.bf16.msra.mxu3 %v10570_v26  ;;  %7165 = vmatpush.bf16.msrb.mxu2 %v10698_v18  ;;  %v10314_v26 = vor.u32 %v11949_v38, %v10313_v40  ;;  %v10442_v18 = vor.u32 %v11981_v46, %v10441_v23  ;;  %v10473_v28 = vld [vmem:[#allocation2 + $0xc28] sm:$0xf]  ;;  %v12021_v4 = vld [vmem:[#allocation2 + $0xd34] sm:$0xf0] }
 0x728   :  { %v10265_v49 = vld [vmem:[#allocation2 + $0xa88] sm:$0xf]  ;;  %v11937_v5 = vld [vmem:[#allocation2 + $0xa94] sm:$0xf0]  ;;  %v10474_v46 = vor.u32 %v11989_v31, %v10473_v28 }
 0x729   :  { %7079 = vmatpush.bf16.msrb.mxu0 %v9722_v63  ;;  %7092 = vmatpush.bf16.msra.mxu1 %v9850_v35  ;;  %v6901_v63 = vpop.f32.mrf.mxu3  ;;  %v13350_v35 = vpop.f32.mrf.mxu2  ;;  %v10393_v39 = vld [vmem:[#allocation2 + $0xb88] sm:$0xf]  ;;  %v11969_v20 = vld [vmem:[#allocation2 + $0xb94] sm:$0xf0] }
 0x72a   :  { %v11985_v47 = vld [vmem:[#allocation2 + $0xc14] sm:$0xf0]  ;;  %v10585_v50 = vld [vmem:[#allocation2 + $0xd08] sm:$0xf] }
 0x72b   :  { %7153 = vmatpush.bf16.msra.mxu3 %v10554_v52  ;;  %7166 = vmatpush.bf16.msrb.mxu2 %v10682_v9  ;;  %v10298_v52 = vor.u32 %v11945_v56, %v10297_v55  ;;  %v10426_v9 = vor.u32 %v11977_v59, %v10425_v24  ;;  %v12017_v54 = vld [vmem:[#allocation2 + $0xd14] sm:$0xf0]  ;;  %v10249_v53 = vld [vmem:[#allocation2 + $0xa68] sm:$0xf] }
 0x72c   :  { %v11933_v55 = vld [vmem:[#allocation2 + $0xa74] sm:$0xf0]  ;;  %v10377_v24 = vld [vmem:[#allocation2 + $0xb68] sm:$0xf] }
 0x72d   :  { %7080 = vmatpush.bf16.msrb.mxu0 %v9706_v22  ;;  %7093 = vmatpush.bf16.msra.mxu1 %v9834_v27  ;;  %v10490_v22 = vor.u32 %v11993_v43, %v10489_v0  ;;  %v10618_v27 = vor.u32 %v12025_v45, %v10617_v2  ;;  %v11965_v59 = vld [vmem:[#allocation2 + $0xb74] sm:$0xf0]  ;;  %v10250_v2 = vor.u32 %v11933_v55, %v10249_v53  ;;  %v10233_v51 = vld [vmem:[#allocation2 + $0xa48] sm:$0xf] }
 0x72e   :  { %v12173_v0 = vld [vmem:[#allocation2 + $0x11f4] sm:$0xf0]  ;;  %v10378_v45 = vor.u32 %v11965_v59, %v10377_v24  ;;  %v11065_v28 = vld [vmem:[#allocation2 + $0x10c8] sm:$0xf] }
 0x72f   :  { %7154 = vmatpush.bf16.msra.mxu3 %v10538_v48  ;;  %7167 = vmatpush.bf16.msrb.mxu2 %v10666_v61  ;;  %v10410_v48 = vor.u32 %v11973_v25, %v10409_v44  ;;  %v10601_v61 = vld [vmem:[#allocation2 + $0xd28] sm:$0xf]  ;;  %v11929_v13 = vld [vmem:[#allocation2 + $0xa54] sm:$0xf0] }
 0x730   :  { %v11953_v55 = vld [vmem:[#allocation2 + $0xb14] sm:$0xf0]  ;;  %v11161_v59 = vld [vmem:[#allocation2 + $0x1188] sm:$0xf] }
 0x731   :  { %7081 = vmatpush.bf16.msrb.mxu0 %v9690_v42  ;;  %7094 = vmatpush.bf16.msra.mxu1 %v9818_v34  ;;  %v6875_v40 = vpop.f32.mrf.mxu0  ;;  %v6888_v38 = vpop.f32.mrf.mxu1  ;;  %v10602_v42 = vor.u32 %v12021_v4, %v10601_v61  ;;  %v11193_v61 = vld [vmem:[#allocation2 + $0x11c8] sm:$0xf]  ;;  %v12169_v4 = vld [vmem:[#allocation2 + $0x11d4] sm:$0xf0] }
 0x732   :  { %v6876_v23 = vadd.f32 %v6875_v40, %v13346_v17  ;;  %v6903_v34 = vpop.f32.mrf.mxu3  ;;  %v11209_v17 = vld [vmem:[#allocation2 + $0x11e8] sm:$0xf]  ;;  %v12129_v24 = vld [vmem:[#allocation2 + $0x1094] sm:$0xf0] }
 0x733   :  { %7155 = vmatpush.bf16.msra.mxu3 %v10522_v37  ;;  %7168 = vmatpush.bf16.msrb.mxu2 %v10650_v6  ;;  %v6916_v37 = vpop.f32.mrf.mxu2  ;;  %v10457_v6 = vld [vmem:[#allocation2 + $0xc08] sm:$0xf]  ;;  %v11210_v25 = vor.u32 %v12173_v0, %v11209_v17  ;;  %v12077_v17 = vld [vmem:[#allocation2 + $0xef4] sm:$0xf0] }
 0x734   :  { %7082 = vmatmul.bf16.vlgmr.msrb.gmra.mxu0 %v13236_v33  ;;  %7095 = vmatmul.bf16.vlgmr.msra.gmra.mxu1 %v13238_v7  ;;  %v6889_v56 = vadd.f32 %v6888_v38, %v6876_v23  ;;  %v11194_v38 = vor.u32 %v12169_v4, %v11193_v61  ;;  %v10345_v23 = vld [vmem:[#allocation2 + $0xb28] sm:$0xf]  ;;  %v12165_v37 = vld [vmem:[#allocation2 + $0x11b4] sm:$0xf0] }
 0x735   :  { %7126 = vmatpush.bf16.msra.mxu0 %v10314_v26  ;;  %7139 = vmatpush.bf16.msrb.mxu1 %v10442_v18  ;;  %v10266_v26 = vor.u32 %v11937_v5, %v10265_v49  ;;  %v10394_v18 = vor.u32 %v11969_v20, %v10393_v39  ;;  %v10234_v49 = vor.u32 %v11929_v13, %v10233_v51  ;;  %v10217_v39 = vld [vmem:[#allocation2 + $0xa28] sm:$0xf]  ;;  %v11925_v20 = vld [vmem:[#allocation2 + $0xa34] sm:$0xf0] }
 0x736   :  { %v6902_v43 = vadd.f32 %v6901_v63, %v6889_v56  ;;  %v11177_v34 = vld [vmem:[#allocation2 + $0x11a8] sm:$0xf]  ;;  %v12125_v13 = vld [vmem:[#allocation2 + $0x1074] sm:$0xf0] }
 0x737   :  { %7156 = vmatpush.bf16.msra.mxu3 %v10506_v14  ;;  %7169 = vmatpush.bf16.msrb.mxu2 %v10634_v60  ;;  %v11081_v14 = vld [vmem:[#allocation2 + $0x10e8] sm:$0xf]  ;;  %v12141_v60 = vld [vmem:[#allocation2 + $0x10f4] sm:$0xf0]  ;;  %v11178_v53 = vor.u32 %v12165_v37, %v11177_v34 }
 0x738   :  { %v11082_v44 = vor.u32 %v12141_v60, %v11081_v14  ;;  %v13356_v31 = vadd.f32 %v13350_v35, %v6902_v43  ;;  %v11957_v35 = vld [vmem:[#allocation2 + $0xb34] sm:$0xf0]  ;;  %v11033_v56 = vld [vmem:[#allocation2 + $0x1088] sm:$0xf] }
 0x739   :  { %7127 = vmatpush.bf16.msra.mxu0 %v10298_v52  ;;  %7140 = vmatpush.bf16.msrb.mxu1 %v10426_v9  ;;  %v10458_v52 = vor.u32 %v11985_v47, %v10457_v6  ;;  %v10586_v9 = vor.u32 %v12017_v54, %v10585_v50  ;;  %v6890_v63 = vpop.f32.mrf.mxu1  ;;  %v10218_v6 = vor.u32 %v11925_v20, %v10217_v39  ;;  %v10201_v50 = vld [vmem:[#allocation2 + $0xa08] sm:$0xf]  ;;  %v12161_v14 = vld [vmem:[#allocation2 + $0x1194] sm:$0xf0] }
 0x73a   :  { %v10346_v47 = vor.u32 %v11957_v35, %v10345_v23  ;;  %v10825_v60 = vld [vmem:[#allocation2 + $0xee8] sm:$0xf]  ;;  %v12109_v43 = vld [vmem:[#allocation2 + $0xff4] sm:$0xf0] }
 0x73b   :  { %7157 = vmatpush.bf16.msra.mxu3 %v10490_v22  ;;  %7170 = vmatpush.bf16.msrb.mxu2 %v10618_v27  ;;  %v10361_v22 = vld [vmem:[#allocation2 + $0xb48] sm:$0xf]  ;;  %v11961_v27 = vld [vmem:[#allocation2 + $0xb54] sm:$0xf0] }
 0x73c   :  { %v10362_v5 = vor.u32 %v11961_v27, %v10361_v22  ;;  %v10953_v0 = vld [vmem:[#allocation2 + $0xfe8] sm:$0xf]  ;;  %v12157_v27 = vld [vmem:[#allocation2 + $0x1174] sm:$0xf0] }
 0x73d   :  { %7128 = vmatpush.bf16.msra.mxu0 %v10282_v21  ;;  %7141 = vmatpush.bf16.msrb.mxu1 %v10410_v48  ;;  %v6877_v21 = vpop.f32.mrf.mxu0  ;;  %v12137_v48 = vld [vmem:[#allocation2 + $0x10d4] sm:$0xf0]  ;;  %v11017_v51 = vld [vmem:[#allocation2 + $0x1068] sm:$0xf] }
 0x73e   :  { %v11066_v40 = vor.u32 %v12137_v48, %v11065_v28  ;;  %v11145_v22 = vld [vmem:[#allocation2 + $0x1168] sm:$0xf]  ;;  %v12073_v21 = vld [vmem:[#allocation2 + $0xed4] sm:$0xf0]  ;;  %v11018_v61 = vor.u32 %v12125_v13, %v11017_v51 }
 0x73f   :  { %7158 = vmatpush.bf16.msra.mxu3 %v10474_v46  ;;  %7171 = vmatpush.bf16.msrb.mxu2 %v10602_v42  ;;  %v11049_v46 = vld [vmem:[#allocation2 + $0x10a8] sm:$0xf]  ;;  %v12133_v42 = vld [vmem:[#allocation2 + $0x10b4] sm:$0xf0]  ;;  %v11146_v4 = vor.u32 %v12157_v27, %v11145_v22 }
 0x740   :  { %v11050_v54 = vor.u32 %v12133_v42, %v11049_v46  ;;  %v10809_v28 = vld [vmem:[#allocation2 + $0xec8] sm:$0xf]  ;;  %v12105_v48 = vld [vmem:[#allocation2 + $0xfd4] sm:$0xf0] }
 0x741   :  { %7129 = vmatpush.bf16.msra.mxu0 %v10266_v26  ;;  %7142 = vmatpush.bf16.msrb.mxu1 %v10394_v18  ;;  %v11921_v26 = vld [vmem:[#allocation2 + $0xa14] sm:$0xf0]  ;;  %v10329_v18 = vld [vmem:[#allocation2 + $0xb08] sm:$0xf] }
 0x742   :  { %v10937_v63 = vld [vmem:[#allocation2 + $0xfc8] sm:$0xf]  ;;  %v12121_v20 = vld [vmem:[#allocation2 + $0x1054] sm:$0xf0] }
 0x743   :  { %7159 = vmatpush.bf16.msra.mxu3 %v10458_v52  ;;  %7172 = vmatpush.bf16.msrb.mxu2 %v10586_v9  ;;  %v10202_v52 = vor.u32 %v11921_v26, %v10201_v50  ;;  %v10330_v9 = vor.u32 %v11953_v55, %v10329_v18  ;;  %v11001_v39 = vld [vmem:[#allocation2 + $0x1048] sm:$0xf]  ;;  %v12153_v35 = vld [vmem:[#allocation2 + $0x1154] sm:$0xf0] }
 0x744   :  { %v11129_v23 = vld [vmem:[#allocation2 + $0x1148] sm:$0xf]  ;;  %v12069_v42 = vld [vmem:[#allocation2 + $0xeb4] sm:$0xf0] }
 0x745   :  { %7130 = vmatpush.bf16.msra.mxu0 %v10250_v2  ;;  %7143 = vmatpush.bf16.msrb.mxu1 %v10378_v45  ;;  %v11034_v2 = vor.u32 %v12129_v24, %v11033_v56  ;;  %v11162_v45 = vor.u32 %v12161_v14, %v11161_v59  ;;  %v10793_v46 = vld [vmem:[#allocation2 + $0xea8] sm:$0xf]  ;;  %v12101_v37 = vld [vmem:[#allocation2 + $0xfb4] sm:$0xf0] }
 0x746   :  { %7160 = vmatmul.bf16.vlgmr.msra.gmra.mxu3 %v13252_v62  ;;  %7173 = vmatmul.bf16.vlgmr.msrb.gmra.mxu2 %v13254_v16  ;;  %v10921_v34 = vld [vmem:[#allocation2 + $0xfa8] sm:$0xf]  ;;  %v12117_v26 = vld [vmem:[#allocation2 + $0x1034] sm:$0xf0]  ;;  %v10794_v18 = vor.u32 %v12069_v42, %v10793_v46 }
 0x747   :  { %7204 = vmatpush.bf16.msrb.mxu3 %v11082_v44  ;;  %7217 = vmatpush.bf16.msra.mxu2 %v11210_v25  ;;  %v10826_v44 = vor.u32 %v12077_v17, %v10825_v60  ;;  %v10954_v25 = vor.u32 %v12109_v43, %v10953_v0  ;;  %v10985_v50 = vld [vmem:[#allocation2 + $0x1028] sm:$0xf]  ;;  %v12149_v55 = vld [vmem:[#allocation2 + $0x1134] sm:$0xf0] }
 0x748   :  { %v10777_v56 = vld [vmem:[#allocation2 + $0xe88] sm:$0xf]  ;;  %v12065_v24 = vld [vmem:[#allocation2 + $0xe94] sm:$0xf0]  ;;  %v10986_v43 = vor.u32 %v12117_v26, %v10985_v50  ;;  %v11687_v50 = vld [vmem:[#allocation2 + $0x2cc] sm:$0xf] }
 0x749   :  { %7131 = vmatpush.bf16.msra.mxu0 %v10234_v49  ;;  %7144 = vmatpush.bf16.msrb.mxu1 %v10362_v5  ;;  %v6953_v49 = vpop.f32.mrf.mxu3  ;;  %v13360_v5 = vpop.f32.mrf.mxu2  ;;  %v10905_v59 = vld [vmem:[#allocation2 + $0xf88] sm:$0xf]  ;;  %v12097_v14 = vld [vmem:[#allocation2 + $0xf94] sm:$0xf0] }
 0x74a   :  { %v12113_v51 = vld [vmem:[#allocation2 + $0x1014] sm:$0xf0]  ;;  %v11097_v13 = vld [vmem:[#allocation2 + $0x1108] sm:$0xf] }
 0x74b   :  { %7205 = vmatpush.bf16.msrb.mxu3 %v11066_v40  ;;  %7218 = vmatpush.bf16.msra.mxu2 %v11194_v38  ;;  %v10810_v40 = vor.u32 %v12073_v21, %v10809_v28  ;;  %v10938_v38 = vor.u32 %v12105_v48, %v10937_v63  ;;  %v12145_v22 = vld [vmem:[#allocation2 + $0x1114] sm:$0xf0]  ;;  %v10761_v27 = vld [vmem:[#allocation2 + $0xe68] sm:$0xf] }
 0x74c   :  { %v12061_v28 = vld [vmem:[#allocation2 + $0xe74] sm:$0xf0]  ;;  %v10889_v63 = vld [vmem:[#allocation2 + $0xf68] sm:$0xf] }
 0x74d   :  { %7132 = vmatpush.bf16.msra.mxu0 %v10218_v6  ;;  %7145 = vmatpush.bf16.msrb.mxu1 %v10346_v47  ;;  %v11002_v6 = vor.u32 %v12121_v20, %v11001_v39  ;;  %v11130_v47 = vor.u32 %v12153_v35, %v11129_v23  ;;  %v12093_v48 = vld [vmem:[#allocation2 + $0xf74] sm:$0xf0]  ;;  %v9419_v39 = vld [vmem:[#allocation2 + $0x3f8] sm:$0xf0]  ;;  %v10762_v23 = vor.u32 %v12061_v28, %v10761_v27  ;;  %v10745_v46 = vld [vmem:[#allocation2 + $0xe48] sm:$0xf] }
 0x74e   :  { %v10890_v35 = vor.u32 %v12093_v48, %v10889_v63  ;;  %v12057_v42 = vld [vmem:[#allocation2 + $0xe54] sm:$0xf0]  ;;  %v9243_v63 = vld [vmem:[#allocation2 + $0x298] sm:$0xf0]  ;;  %v11711_v48 = vld [vmem:[#allocation2 + $0x38c] sm:$0xf] }
 0x74f   :  { %7206 = vmatpush.bf16.msrb.mxu3 %v11050_v54  ;;  %7219 = vmatpush.bf16.msra.mxu2 %v11178_v53  ;;  %v10922_v54 = vor.u32 %v12101_v37, %v10921_v34  ;;  %v11113_v53 = vld [vmem:[#allocation2 + $0x1128] sm:$0xf]  ;;  %v12081_v28 = vld [vmem:[#allocation2 + $0xf14] sm:$0xf0] }
 0x751   :  { %7133 = vmatpush.bf16.msra.mxu0 %v10202_v52  ;;  %7146 = vmatpush.bf16.msrb.mxu1 %v10330_v9  ;;  %v6927_v60 = vpop.f32.mrf.mxu0  ;;  %v6940_v17 = vpop.f32.mrf.mxu1  ;;  %v11114_v52 = vor.u32 %v12149_v55, %v11113_v53  ;;  %v11719_v53 = vld [vmem:[#allocation2 + $0x3cc] sm:$0xf]  ;;  %v9403_v55 = vld [vmem:[#allocation2 + $0x3d8] sm:$0xf0] }
 0x752   :  { %v6928_v0 = vadd.f32 %v6927_v60, %v13356_v31  ;;  %v6955_v9 = vpop.f32.mrf.mxu3  ;;  %v11723_v31 = vld [vmem:[#allocation2 + $0x3ec] sm:$0xf] }
 0x753   :  { %7207 = vmatpush.bf16.msrb.mxu3 %v11034_v2  ;;  %7220 = vmatpush.bf16.msra.mxu2 %v11162_v45  ;;  %v6968_v2 = vpop.f32.mrf.mxu2  ;;  %v10969_v45 = vld [vmem:[#allocation2 + $0x1008] sm:$0xf]  ;;  %v9422_v37 = vor.u32 %v11723_v31, %v9419_v39  ;;  %v11715_v9 = vld [vmem:[#allocation2 + $0x3ac] sm:$0xf]  ;;  %v9035_v31 = vld [vmem:[#allocation2 + $0xf8] sm:$0xf0] }
 0x754   :  { %7134 = vmatmul.bf16.vlgmr.msra.gmra.mxu0 %v13264_v1  ;;  %7147 = vmatmul.bf16.vlgmr.msrb.gmra.mxu1 %v13268_v3  ;;  %v6941_v21 = vadd.f32 %v6940_v17, %v6928_v0  ;;  %v9406_v17 = vor.u32 %v11719_v53, %v9403_v55  ;;  %v10857_v0 = vld [vmem:[#allocation2 + $0xf28] sm:$0xf]  ;;  %v9387_v2 = vld [vmem:[#allocation2 + $0x3b8] sm:$0xf0]  ;;  %v11659_v39 = vld [vmem:[#allocation2 + $0x1ec] sm:$0xf] }
 0x755   :  { %7178 = vmatpush.bf16.msrb.mxu0 %v10826_v44  ;;  %7191 = vmatpush.bf16.msra.mxu1 %v10954_v25  ;;  %v10778_v44 = vor.u32 %v12065_v24, %v10777_v56  ;;  %v10906_v25 = vor.u32 %v12097_v14, %v10905_v59  ;;  %v10746_v56 = vor.u32 %v12057_v42, %v10745_v46  ;;  %v10729_v59 = vld [vmem:[#allocation2 + $0xe28] sm:$0xf]  ;;  %v12053_v14 = vld [vmem:[#allocation2 + $0xe34] sm:$0xf0]  ;;  %v11675_v46 = vld [vmem:[#allocation2 + $0x26c] sm:$0xf] }
 0x756   :  { %v6954_v20 = vadd.f32 %v6953_v49, %v6941_v21  ;;  %v9390_v27 = vor.u32 %v11715_v9, %v9387_v2  ;;  %v11679_v21 = vld [vmem:[#allocation2 + $0x28c] sm:$0xf]  ;;  %v9227_v42 = vld [vmem:[#allocation2 + $0x278] sm:$0xf0] }
 0x757   :  { %7208 = vmatpush.bf16.msrb.mxu3 %v11018_v61  ;;  %7221 = vmatpush.bf16.msra.mxu2 %v11146_v4  ;;  %v11691_v61 = vld [vmem:[#allocation2 + $0x2ec] sm:$0xf]  ;;  %v9291_v4 = vld [vmem:[#allocation2 + $0x2f8] sm:$0xf0] }
 0x758   :  { %v9294_v34 = vor.u32 %v11691_v61, %v9291_v4  ;;  %v13366_v26 = vadd.f32 %v13360_v5, %v6954_v20  ;;  %v12085_v5 = vld [vmem:[#allocation2 + $0xf34] sm:$0xf0]  ;;  %v9371_v61 = vld [vmem:[#allocation2 + $0x398] sm:$0xf0]  ;;  %v11627_v4 = vld [vmem:[#allocation2 + $0xec] sm:$0xf] }
 0x759   :  { %7179 = vmatpush.bf16.msrb.mxu0 %v10810_v40  ;;  %7192 = vmatpush.bf16.msra.mxu1 %v10938_v38  ;;  %v10970_v40 = vor.u32 %v12113_v51, %v10969_v45  ;;  %v11098_v38 = vor.u32 %v12145_v22, %v11097_v13  ;;  %v6942_v49 = vpop.f32.mrf.mxu1  ;;  %v10730_v45 = vor.u32 %v12053_v14, %v10729_v59  ;;  %v10713_v13 = vld [vmem:[#allocation2 + $0xe08] sm:$0xf]  ;;  %v9163_v20 = vld [vmem:[#allocation2 + $0x1f8] sm:$0xf0]  ;;  %v11655_v53 = vld [vmem:[#allocation2 + $0x1cc] sm:$0xf] }
 0x75a   :  { %v10858_v51 = vor.u32 %v12085_v5, %v10857_v0  ;;  %v11623_v49 = vld [vmem:[#allocation2 + $0xcc] sm:$0xf]  ;;  %v9147_v55 = vld [vmem:[#allocation2 + $0x1d8] sm:$0xf0] }
 0x75b   :  { %7209 = vmatpush.bf16.msrb.mxu3 %v11002_v6  ;;  %7222 = vmatpush.bf16.msra.mxu2 %v11130_v47  ;;  %v10873_v6 = vld [vmem:[#allocation2 + $0xf48] sm:$0xf]  ;;  %v12089_v47 = vld [vmem:[#allocation2 + $0xf54] sm:$0xf0]  ;;  %v9339_v9 = vld [vmem:[#allocation2 + $0x358] sm:$0xf0] }
 0x75c   :  { %v10874_v24 = vor.u32 %v12089_v47, %v10873_v6  ;;  %v9166_v6 = vor.u32 %v11659_v39, %v9163_v20  ;;  %v9355_v47 = vld [vmem:[#allocation2 + $0x378] sm:$0xf0]  ;;  %v11619_v2 = vld [vmem:[#allocation2 + $0xac] sm:$0xf] }
 0x75d   :  { %7180 = vmatpush.bf16.msrb.mxu0 %v10794_v18  ;;  %7193 = vmatpush.bf16.msra.mxu1 %v10922_v54  ;;  %v6929_v18 = vpop.f32.mrf.mxu0  ;;  %v9275_v54 = vld [vmem:[#allocation2 + $0x2d8] sm:$0xf0]  ;;  %v11647_v39 = vld [vmem:[#allocation2 + $0x18c] sm:$0xf] }
 0x75e   :  { %v9278_v60 = vor.u32 %v11687_v50, %v9275_v54  ;;  %v12245_v50 = vld [vmem:[#allocation30] sm:$0xf]  ;;  %v9019_v54 = vld [vmem:[#allocation2 + $0xd8] sm:$0xf0] }
 0x75f   :  { %7210 = vmatpush.bf16.msrb.mxu3 %v10986_v43  ;;  %7223 = vmatpush.bf16.msra.mxu2 %v11114_v52  ;;  %v11683_v43 = vld [vmem:[#allocation2 + $0x2ac] sm:$0xf]  ;;  %v9259_v52 = vld [vmem:[#allocation2 + $0x2b8] sm:$0xf0]  ;;  %v3642_v18 = vperm.slane %v12245_v50, 2  ;;  %v9022_v5 = vor.u32 %v11623_v49, %v9019_v54 }
 0x760   :  { %v9262_v22 = vor.u32 %v11683_v43, %v9259_v52  ;;  %v9150_v43 = vor.u32 %v11655_v53, %v9147_v55  ;;  %v11703_v52 = vld [vmem:[#allocation2 + $0x34c] sm:$0xf]  ;;  %v9115_v20 = vld [vmem:[#allocation2 + $0x198] sm:$0xf0] }
 0x761   :  { %7181 = vmatpush.bf16.msrb.mxu0 %v10778_v44  ;;  %7194 = vmatpush.bf16.msra.mxu1 %v10906_v25  ;;  %v12049_v44 = vld [vmem:[#allocation2 + $0xe14] sm:$0xf0]  ;;  %v10841_v25 = vld [vmem:[#allocation2 + $0xf08] sm:$0xf]  ;;  %v9307_v49 = vld [vmem:[#allocation2 + $0x318] sm:$0xf0] }
 0x762   :  { %v11611_v54 = vld [vmem:[#allocation2 + $0x6c] sm:$0xf]  ;;  %v8971_v53 = vld [vmem:[#allocation2 + $0x78] sm:$0xf0] }
 0x763   :  { %7211 = vmatpush.bf16.msrb.mxu3 %v10970_v40  ;;  %7224 = vmatpush.bf16.msra.mxu2 %v11098_v38  ;;  %v10714_v40 = vor.u32 %v12049_v44, %v10713_v13  ;;  %v10842_v38 = vor.u32 %v12081_v28, %v10841_v25  ;;  %v9131_v13 = vld [vmem:[#allocation2 + $0x1b8] sm:$0xf0] }
 0x764   :  { %v9195_v28 = vld [vmem:[#allocation2 + $0x238] sm:$0xf0] }
 0x765   :  { %7182 = vmatpush.bf16.msrb.mxu0 %v10762_v23  ;;  %7195 = vmatpush.bf16.msra.mxu1 %v10890_v35  ;;  %v9246_v23 = vor.u32 %v11679_v21, %v9243_v63  ;;  %v9374_v35 = vor.u32 %v11711_v48, %v9371_v61  ;;  %v11699_v48 = vld [vmem:[#allocation2 + $0x32c] sm:$0xf]  ;;  %v9323_v61 = vld [vmem:[#allocation2 + $0x338] sm:$0xf0] }
 0x766   :  { %7212 = vmatmul.bf16.vlgmr.msrb.gmra.mxu3 %v13278_v29  ;;  %7225 = vmatmul.bf16.vlgmr.msra.gmra.mxu2 %v13282_v30 }
 0x767   :  { %7256 = vmatpush.bf16.msra.mxu3 %v9294_v34  ;;  %7269 = vmatpush.bf16.msrb.mxu2 %v9422_v37  ;;  %v11707_v34 = vld [vmem:[#allocation2 + $0x36c] sm:$0xf]  ;;  %v9038_v37 = vor.u32 %v11627_v4, %v9035_v31  ;;  %v8987_v31 = vld [vmem:[#allocation2 + $0x98] sm:$0xf0] }
 0x768   :  { %v11615_v4 = vld [vmem:[#allocation2 + $0x8c] sm:$0xf] }
 0x769   :  { %7183 = vmatpush.bf16.msrb.mxu0 %v10746_v56  ;;  %7196 = vmatpush.bf16.msra.mxu1 %v10874_v24  ;;  %v9230_v56 = vor.u32 %v11675_v46, %v9227_v42  ;;  %v9358_v24 = vor.u32 %v11707_v34, %v9355_v47  ;;  %v7005_v59 = vpop.f32.mrf.mxu3  ;;  %v7018_v14 = vpop.f32.mrf.mxu2  ;;  %v9326_v46 = vor.u32 %v11699_v48, %v9323_v61  ;;  %v11695_v47 = vld [vmem:[#allocation2 + $0x30c] sm:$0xf] }
 0x76a   :  { %v7006_v0 = vadd.f32 %v7005_v59, %v3642_v18  ;;  %v8990_v50 = vor.u32 %v11615_v4, %v8987_v31  ;;  %v9118_v18 = vor.u32 %v11647_v39, %v9115_v20  ;;  %v11819_v59 = vld [vmem:[#allocation2 + $0x6ec] sm:$0xf]  ;;  %v8939_v31 = vld [vmem:[#allocation2 + $0x38] sm:$0xf0] }
 0x76b   :  { %7257 = vmatpush.bf16.msra.mxu3 %v9278_v60  ;;  %7270 = vmatpush.bf16.msrb.mxu2 %v9406_v17  ;;  %v11671_v60 = vld [vmem:[#allocation2 + $0x24c] sm:$0xf]  ;;  %v9211_v17 = vld [vmem:[#allocation2 + $0x258] sm:$0xf0] }
 0x76c   :  { %v13372_v44 = vadd.f32 %v7018_v14, %v7006_v0  ;;  %v9214_v25 = vor.u32 %v11671_v60, %v9211_v17  ;;  %v11851_v14 = vld [vmem:[#allocation2 + $0x7ec] sm:$0xf]  ;;  %v9931_v60 = vld [vmem:[#allocation2 + $0x7f8] sm:$0xf0]  ;;  %v9310_v0 = vor.u32 %v11695_v47, %v9307_v49 }
 0x76d   :  { %7184 = vmatpush.bf16.msrb.mxu0 %v10730_v45  ;;  %7197 = vmatpush.bf16.msra.mxu1 %v10858_v51  ;;  %v9003_v45 = vld [vmem:[#allocation2 + $0xb8] sm:$0xf0]  ;;  %v11651_v51 = vld [vmem:[#allocation2 + $0x1ac] sm:$0xf] }
 0x76e   :  { %v9006_v21 = vor.u32 %v11619_v2, %v9003_v45  ;;  %v9134_v63 = vor.u32 %v11651_v51, %v9131_v13  ;;  %v9934_v45 = vor.u32 %v11851_v14, %v9931_v60  ;;  %v11639_v51 = vld [vmem:[#allocation2 + $0x14c] sm:$0xf]  ;;  %v9083_v13 = vld [vmem:[#allocation2 + $0x158] sm:$0xf0] }
 0x76f   :  { %7258 = vmatpush.bf16.msra.mxu3 %v9262_v22  ;;  %7271 = vmatpush.bf16.msrb.mxu2 %v9390_v27  ;;  %v9342_v22 = vor.u32 %v11703_v52, %v9339_v9  ;;  %v11667_v27 = vld [vmem:[#allocation2 + $0x22c] sm:$0xf]  ;;  %v8955_v9 = vld [vmem:[#allocation2 + $0x58] sm:$0xf0]  ;;  %v9086_v61 = vor.u32 %v11639_v51, %v9083_v13 }
 0x770   :  { %v11607_v52 = vld [vmem:[#allocation2 + $0x4c] sm:$0xf]  ;;  %v8923_v47 = vld [vmem:[#allocation2 + $0x18] sm:$0xf0] }
 0x771   :  { %7185 = vmatpush.bf16.msrb.mxu0 %v10714_v40  ;;  %7198 = vmatpush.bf16.msra.mxu1 %v10842_v38  ;;  %v6979_v40 = vpop.f32.mrf.mxu0  ;;  %v6992_v38 = vpop.f32.mrf.mxu1  ;;  %v8958_v48 = vor.u32 %v11607_v52, %v8955_v9  ;;  %v11603_v4 = vld [vmem:[#allocation2 + $0x2c] sm:$0xf]  ;;  %v9675_v14 = vld [vmem:[#allocation2 + $0x5f8] sm:$0xf0] }
 0x772   :  { %v7007_v42 = vpop.f32.mrf.mxu3  ;;  %v7020_v34 = vpop.f32.mrf.mxu2  ;;  %v9739_v52 = vld [vmem:[#allocation2 + $0x678] sm:$0xf0]  ;;  %v11751_v13 = vld [vmem:[#allocation2 + $0x4cc] sm:$0xf] }
 0x773   :  { %7259 = vmatpush.bf16.msra.mxu3 %v9246_v23  ;;  %7272 = vmatpush.bf16.msrb.mxu2 %v9374_v35  ;;  %v6980_v23 = vadd.f32 %v6979_v40, %v13366_v26  ;;  %v9198_v35 = vor.u32 %v11667_v27, %v9195_v28  ;;  %v9803_v26 = vld [vmem:[#allocation2 + $0x6f8] sm:$0xf0]  ;;  %v11635_v40 = vld [vmem:[#allocation2 + $0x12c] sm:$0xf]  ;;  %v8942_v34 = vor.u32 %v11603_v4, %v8939_v31 }
 0x774   :  { %7186 = vmatmul.bf16.vlgmr.msrb.gmra.mxu0 %v13288_v15  ;;  %7199 = vmatmul.bf16.vlgmr.msra.gmra.mxu1 %v13292_v36  ;;  %v9806_v2 = vor.u32 %v11819_v59, %v9803_v26  ;;  %v9787_v28 = vld [vmem:[#allocation2 + $0x6d8] sm:$0xf0]  ;;  %v11787_v26 = vld [vmem:[#allocation2 + $0x5ec] sm:$0xf] }
 0x775   :  { %7230 = vmatpush.bf16.msra.mxu0 %v9038_v37  ;;  %7243 = vmatpush.bf16.msrb.mxu1 %v9166_v6  ;;  %v11663_v37 = vld [vmem:[#allocation2 + $0x20c] sm:$0xf]  ;;  %v9179_v6 = vld [vmem:[#allocation2 + $0x218] sm:$0xf0]  ;;  %v13375_v55 = vadd.f32 %v6992_v38, %v6980_v23 }
 0x776   :  { %v9182_v17 = vor.u32 %v11663_v37, %v9179_v6  ;;  %v9067_v38 = vld [vmem:[#allocation2 + $0x138] sm:$0xf0]  ;;  %v11811_v23 = vld [vmem:[#allocation2 + $0x6ac] sm:$0xf] }
 0x777   :  { %7260 = vmatpush.bf16.msra.mxu3 %v9230_v56  ;;  %7273 = vmatpush.bf16.msrb.mxu2 %v9358_v24  ;;  %v11643_v56 = vld [vmem:[#allocation2 + $0x16c] sm:$0xf]  ;;  %v9099_v24 = vld [vmem:[#allocation2 + $0x178] sm:$0xf0]  ;;  %v9070_v37 = vor.u32 %v11635_v40, %v9067_v38  ;;  %vm7465_vm11 = vcmp.gt.f32.partialorder %v13375_v55, 0.0 }
 0x778   :  { %v9899_v42 = vld [vmem:[#allocation2 + $0x7b8] sm:$0xf0]  ;;  %v11599_v6 = vld [vmem:[#allocation2 + $0xc] sm:$0xf] }
 0x779   :  { %7231 = vmatpush.bf16.msra.mxu0 %v9022_v5  ;;  %7244 = vmatpush.bf16.msrb.mxu1 %v9150_v43  ;;  %v8974_v5 = vor.u32 %v11611_v54, %v8971_v53  ;;  %v9102_v43 = vor.u32 %v11643_v56, %v9099_v24  ;;  %v6994_v27 = vpop.f32.mrf.mxu1  ;;  %v9051_v54 = vld [vmem:[#allocation2 + $0x118] sm:$0xf0]  ;;  %v11807_v53 = vld [vmem:[#allocation2 + $0x68c] sm:$0xf]  ;;  %v8926_v60 = vor.u32 %v11599_v6, %v8923_v47 }
 0x77a   :  { %v9755_v56 = vld [vmem:[#allocation2 + $0x698] sm:$0xf0]  ;;  %v11747_v38 = vld [vmem:[#allocation2 + $0x4ac] sm:$0xf] }
 0x77b   :  { %7261 = vmatpush.bf16.msra.mxu3 %v9214_v25  ;;  %7274 = vmatpush.bf16.msrb.mxu2 %v9342_v22  ;;  %v11815_v25 = vld [vmem:[#allocation2 + $0x6cc] sm:$0xf]  ;;  %v6981_v22 = vpop.f32.mrf.mxu0  ;;  %v9883_v24 = vld [vmem:[#allocation2 + $0x798] sm:$0xf0] }
 0x77c   :  { %v9790_v39 = vor.u32 %v11815_v25, %v9787_v28  ;;  %v9547_v59 = vld [vmem:[#allocation2 + $0x4f8] sm:$0xf0]  ;;  %v11783_v22 = vld [vmem:[#allocation2 + $0x5cc] sm:$0xf] }
 0x77d   :  { %7232 = vmatpush.bf16.msra.mxu0 %v9006_v21  ;;  %7245 = vmatpush.bf16.msrb.mxu1 %v9134_v63  ;;  %v11847_v21 = vld [vmem:[#allocation2 + $0x7cc] sm:$0xf]  ;;  %v9915_v63 = vld [vmem:[#allocation2 + $0x7d8] sm:$0xf0] }
 0x77e   :  { %v9918_v20 = vor.u32 %v11847_v21, %v9915_v63  ;;  %v9867_v51 = vld [vmem:[#allocation2 + $0x778] sm:$0xf0] }
 0x77f   :  { %7262 = vmatpush.bf16.msra.mxu3 %v9198_v35  ;;  %7275 = vmatpush.bf16.msrb.mxu2 %v9326_v46  ;;  %v9771_v35 = vld [vmem:[#allocation2 + $0x6b8] sm:$0xf0]  ;;  %v11843_v46 = vld [vmem:[#allocation2 + $0x7ac] sm:$0xf] }
 0x780   :  { %v9902_v49 = vor.u32 %v11843_v46, %v9899_v42  ;;  %v9531_v25 = vld [vmem:[#allocation2 + $0x4d8] sm:$0xf0] }
 0x781   :  { %7233 = vmatpush.bf16.msra.mxu0 %v8990_v50  ;;  %7246 = vmatpush.bf16.msrb.mxu1 %v9118_v18  ;;  %v11631_v50 = vld [vmem:[#allocation2 + $0x10c] sm:$0xf]  ;;  %v9774_v18 = vor.u32 %v11811_v23, %v9771_v35  ;;  %v9659_v27 = vld [vmem:[#allocation2 + $0x5d8] sm:$0xf0]  ;;  %v9534_v31 = vor.u32 %v11751_v13, %v9531_v25 }
 0x782   :  { %v9723_v4 = vld [vmem:[#allocation2 + $0x658] sm:$0xf0]  ;;  %v11779_v35 = vld [vmem:[#allocation2 + $0x5ac] sm:$0xf] }
 0x783   :  { %7263 = vmatpush.bf16.msra.mxu3 %v9182_v17  ;;  %7276 = vmatpush.bf16.msrb.mxu2 %v9310_v0  ;;  %v9054_v17 = vor.u32 %v11631_v50, %v9051_v54  ;;  %v9758_v0 = vor.u32 %v11807_v53, %v9755_v56  ;;  %v9851_v40 = vld [vmem:[#allocation2 + $0x758] sm:$0xf0]  ;;  %v11743_v54 = vld [vmem:[#allocation2 + $0x48c] sm:$0xf] }
 0x784   :  { %v9515_v23 = vld [vmem:[#allocation2 + $0x4b8] sm:$0xf0]  ;;  %v11947_v25 = vld [vmem:[#allocation2 + $0xaec] sm:$0xf] }
 0x785   :  { %7234 = vmatpush.bf16.msra.mxu0 %v8974_v5  ;;  %7247 = vmatpush.bf16.msrb.mxu1 %v9102_v43  ;;  %v11803_v43 = vld [vmem:[#allocation2 + $0x66c] sm:$0xf]  ;;  %v9643_v46 = vld [vmem:[#allocation2 + $0x5b8] sm:$0xf0]  ;;  %v9518_v47 = vor.u32 %v11747_v38, %v9515_v23 }
 0x786   :  { %7264 = vmatmul.bf16.vlgmr.msra.gmra.mxu3 %v13224_v8  ;;  %7277 = vmatmul.bf16.vlgmr.msrb.gmra.mxu2 %v13226_v32  ;;  %v11839_v8 = vld [vmem:[#allocation2 + $0x78c] sm:$0xf]  ;;  %v9742_v28 = vor.u32 %v11803_v43, %v9739_v52  ;;  %v9707_v6 = vld [vmem:[#allocation2 + $0x638] sm:$0xf0]  ;;  %v9646_v50 = vor.u32 %v11779_v35, %v9643_v46 }
 0x787   :  { %7308 = vmatpush.bf16.msrb.mxu3 %v9806_v2  ;;  %7321 = vmatpush.bf16.msra.mxu2 %v9934_v45  ;;  %v11755_v32 = vld [vmem:[#allocation2 + $0x4ec] sm:$0xf]  ;;  %v9886_v5 = vor.u32 %v11839_v8, %v9883_v24  ;;  %v9678_v2 = vor.u32 %v11787_v26, %v9675_v14  ;;  %v9499_v53 = vld [vmem:[#allocation2 + $0x498] sm:$0xf0] }
 0x788   :  { %v9550_v9 = vor.u32 %v11755_v32, %v9547_v59  ;;  %v11835_v45 = vld [vmem:[#allocation2 + $0x76c] sm:$0xf]  ;;  %v9627_v56 = vld [vmem:[#allocation2 + $0x598] sm:$0xf0] }
 0x789   :  { %7235 = vmatpush.bf16.msra.mxu0 %v8958_v48  ;;  %7248 = vmatpush.bf16.msrb.mxu1 %v9086_v61  ;;  %v9870_v21 = vor.u32 %v11835_v45, %v9867_v51  ;;  %v7057_v63 = vpop.f32.mrf.mxu3  ;;  %v13379_v48 = vpop.f32.mrf.mxu2  ;;  %v11799_v61 = vld [vmem:[#allocation2 + $0x64c] sm:$0xf]  ;;  %v9819_v52 = vld [vmem:[#allocation2 + $0x718] sm:$0xf0] }
 0x78a   :  { %v9726_v42 = vor.u32 %v11799_v61, %v9723_v4  ;;  %v11771_v51 = vld [vmem:[#allocation2 + $0x56c] sm:$0xf]  ;;  %v9611_v13 = vld [vmem:[#allocation2 + $0x578] sm:$0xf0] }
 0x78b   :  { %7309 = vmatpush.bf16.msrb.mxu3 %v9790_v39  ;;  %7322 = vmatpush.bf16.msra.mxu2 %v9918_v20  ;;  %v9662_v39 = vor.u32 %v11783_v22, %v9659_v27  ;;  %v11831_v20 = vld [vmem:[#allocation2 + $0x74c] sm:$0xf]  ;;  %v10315_v22 = vld [vmem:[#allocation2 + $0xaf8] sm:$0xf0] }
 0x78c   :  { %v10443_v27 = vld [vmem:[#allocation2 + $0xbf8] sm:$0xf0]  ;;  %v11767_v23 = vld [vmem:[#allocation2 + $0x54c] sm:$0xf] }
 0x78d   :  { %7236 = vmatpush.bf16.msra.mxu0 %v8942_v34  ;;  %7249 = vmatpush.bf16.msrb.mxu1 %v9070_v37  ;;  %v9854_v34 = vor.u32 %v11831_v20, %v9851_v40  ;;  %v11795_v37 = vld [vmem:[#allocation2 + $0x62c] sm:$0xf]  ;;  %v9467_v20 = vld [vmem:[#allocation2 + $0x458] sm:$0xf0]  ;;  %v10318_v40 = vor.u32 %v11947_v25, %v10315_v22 }
 0x78e   :  { %v9710_v32 = vor.u32 %v11795_v37, %v9707_v6  ;;  %v9595_v35 = vld [vmem:[#allocation2 + $0x558] sm:$0xf0]  ;;  %v11943_v46 = vld [vmem:[#allocation2 + $0xacc] sm:$0xf] }
 0x78f   :  { %7310 = vmatpush.bf16.msrb.mxu3 %v9774_v18  ;;  %7323 = vmatpush.bf16.msra.mxu2 %v9902_v49  ;;  %v11827_v18 = vld [vmem:[#allocation2 + $0x72c] sm:$0xf]  ;;  %v9835_v49 = vld [vmem:[#allocation2 + $0x738] sm:$0xf0] }
 0x790   :  { %v9838_v59 = vor.u32 %v11827_v18, %v9835_v49  ;;  %v10299_v37 = vld [vmem:[#allocation2 + $0xad8] sm:$0xf0]  ;;  %v11975_v6 = vld [vmem:[#allocation2 + $0xbcc] sm:$0xf]  ;;  %v9598_v18 = vor.u32 %v11767_v23, %v9595_v35 }
 0x791   :  { %7237 = vmatpush.bf16.msra.mxu0 %v8926_v60  ;;  %7250 = vmatpush.bf16.msrb.mxu1 %v9054_v17  ;;  %v7044_v8 = vpop.f32.mrf.mxu1  ;;  %v7059_v26 = vpop.f32.mrf.mxu3  ;;  %v11791_v60 = vld [vmem:[#allocation2 + $0x60c] sm:$0xf]  ;;  %v9691_v17 = vld [vmem:[#allocation2 + $0x618] sm:$0xf0] }
 0x792   :  { %v7072_v14 = vpop.f32.mrf.mxu2  ;;  %v11731_v49 = vld [vmem:[#allocation2 + $0x42c] sm:$0xf]  ;;  %v10171_v23 = vld [vmem:[#allocation2 + $0x9d8] sm:$0xf0] }
 0x793   :  { %7311 = vmatpush.bf16.msrb.mxu3 %v9758_v0  ;;  %7324 = vmatpush.bf16.msra.mxu2 %v9886_v5  ;;  %v11823_v0 = vld [vmem:[#allocation2 + $0x70c] sm:$0xf]  ;;  %v9502_v5 = vor.u32 %v11743_v54, %v9499_v53  ;;  %v9451_v54 = vld [vmem:[#allocation2 + $0x438] sm:$0xf0]  ;;  %v10302_v53 = vor.u32 %v11943_v46, %v10299_v37 }
 0x794   :  { %7238 = vmatmul.bf16.vlgmr.msra.gmra.mxu0 %v13218_v41  ;;  %7251 = vmatmul.bf16.vlgmr.msrb.gmra.mxu1 %v13220_v19  ;;  %v11775_v41 = vld [vmem:[#allocation2 + $0x58c] sm:$0xf]  ;;  %v7031_v19 = vpop.f32.mrf.mxu0  ;;  %v9822_v61 = vor.u32 %v11823_v0, %v9819_v52 }
 0x795   :  { %7282 = vmatpush.bf16.msrb.mxu0 %v9550_v9  ;;  %7295 = vmatpush.bf16.msra.mxu1 %v9678_v2  ;;  %v7032_v24 = vadd.f32 %v7031_v19, %v13372_v44  ;;  %v9630_v43 = vor.u32 %v11775_v41, %v9627_v56  ;;  %v11739_v9 = vld [vmem:[#allocation2 + $0x46c] sm:$0xf]  ;;  %v9483_v2 = vld [vmem:[#allocation2 + $0x478] sm:$0xf0] }
 0x796   :  { %v11979_v44 = vld [vmem:[#allocation2 + $0xbec] sm:$0xf]  ;;  %v9486_v4 = vor.u32 %v11739_v9, %v9483_v2  ;;  %v10267_v9 = vld [vmem:[#allocation2 + $0xa98] sm:$0xf0] }
 0x797   :  { %7312 = vmatpush.bf16.msrb.mxu3 %v9742_v28  ;;  %7325 = vmatpush.bf16.msra.mxu2 %v9870_v21  ;;  %v7045_v45 = vadd.f32 %v7044_v8, %v7032_v24  ;;  %v9694_v21 = vor.u32 %v11791_v60, %v9691_v17  ;;  %v10446_v38 = vor.u32 %v11979_v44, %v10443_v27  ;;  %v11763_v56 = vld [vmem:[#allocation2 + $0x52c] sm:$0xf]  ;;  %v10283_v8 = vld [vmem:[#allocation2 + $0xab8] sm:$0xf0] }
 0x798   :  { %v11939_v19 = vld [vmem:[#allocation2 + $0xaac] sm:$0xf]  ;;  %v9435_v60 = vld [vmem:[#allocation2 + $0x418] sm:$0xf0] }
 0x799   :  { %7283 = vmatpush.bf16.msrb.mxu0 %v9534_v31  ;;  %7296 = vmatpush.bf16.msra.mxu1 %v9662_v39  ;;  %v7058_v28 = vadd.f32 %v7057_v63, %v7045_v45  ;;  %v9614_v31 = vor.u32 %v11771_v51, %v9611_v13  ;;  %v11735_v39 = vld [vmem:[#allocation2 + $0x44c] sm:$0xf]  ;;  %v7046_v63 = vpop.f32.mrf.mxu1  ;;  %v10286_v0 = vor.u32 %v11939_v19, %v10283_v8  ;;  %v10395_v2 = vld [vmem:[#allocation2 + $0xb98] sm:$0xf0] }
 0x79a   :  { %v11971_v24 = vld [vmem:[#allocation2 + $0xbac] sm:$0xf]  ;;  %v10059_v45 = vld [vmem:[#allocation2 + $0x8f8] sm:$0xf0] }
 0x79b   :  { %7313 = vmatpush.bf16.msrb.mxu3 %v9726_v42  ;;  %7326 = vmatpush.bf16.msra.mxu2 %v9854_v34  ;;  %v13385_v42 = vadd.f32 %v13379_v48, %v7058_v28  ;;  %v9579_v48 = vld [vmem:[#allocation2 + $0x538] sm:$0xf0]  ;;  %v11727_v14 = vld [vmem:[#allocation2 + $0x40c] sm:$0xf] }
 0x79c   :  { %v7033_v34 = vpop.f32.mrf.mxu0  ;;  %v9582_v26 = vor.u32 %v11763_v56, %v9579_v48  ;;  %v11759_v17 = vld [vmem:[#allocation2 + $0x50c] sm:$0xf]  ;;  %v10187_v13 = vld [vmem:[#allocation2 + $0x9f8] sm:$0xf0]  ;;  %v9438_v25 = vor.u32 %v11727_v14, %v9435_v60 }
 0x79d   :  { %7284 = vmatpush.bf16.msrb.mxu0 %v9518_v47  ;;  %7297 = vmatpush.bf16.msra.mxu1 %v9646_v50  ;;  %v10427_v47 = vld [vmem:[#allocation2 + $0xbd8] sm:$0xf0]  ;;  %v9470_v50 = vor.u32 %v11735_v39, %v9467_v20  ;;  %v11935_v52 = vld [vmem:[#allocation2 + $0xa8c] sm:$0xf] }
 0x79e   :  { %v10430_v41 = vor.u32 %v11975_v6, %v10427_v47  ;;  %v11915_v51 = vld [vmem:[#allocation2 + $0x9ec] sm:$0xf]  ;;  %v10270_v44 = vor.u32 %v11935_v52, %v10267_v9  ;;  %v10379_v39 = vld [vmem:[#allocation2 + $0xb78] sm:$0xf0] }
 0x79f   :  { %7314 = vmatpush.bf16.msrb.mxu3 %v9710_v32  ;;  %7327 = vmatpush.bf16.msra.mxu2 %v9838_v59  ;;  %v10411_v32 = vld [vmem:[#allocation2 + $0xbb8] sm:$0xf0]  ;;  %v9454_v59 = vor.u32 %v11731_v49, %v9451_v54  ;;  %v11931_v28 = vld [vmem:[#allocation2 + $0xa6c] sm:$0xf] }
 0x7a0   :  { %v11879_v20 = vld [vmem:[#allocation2 + $0x8cc] sm:$0xf]  ;;  %v10235_v6 = vld [vmem:[#allocation2 + $0xa58] sm:$0xf0] }
 0x7a1   :  { %7285 = vmatpush.bf16.msrb.mxu0 %v9502_v5  ;;  %7298 = vmatpush.bf16.msra.mxu1 %v9630_v43  ;;  %v10414_v5 = vor.u32 %v11971_v24, %v10411_v32  ;;  %v9563_v43 = vld [vmem:[#allocation2 + $0x518] sm:$0xf0]  ;;  %v11927_v37 = vld [vmem:[#allocation2 + $0xa4c] sm:$0xf] }
 0x7a2   :  { %v9566_v22 = vor.u32 %v11759_v17, %v9563_v43  ;;  %v10363_v49 = vld [vmem:[#allocation2 + $0xb58] sm:$0xf0]  ;;  %v11875_v54 = vld [vmem:[#allocation2 + $0x8ac] sm:$0xf]  ;;  %v10238_v48 = vor.u32 %v11927_v37, %v10235_v6 }
 0x7a3   :  { %7315 = vmatpush.bf16.msrb.mxu3 %v9694_v21  ;;  %7328 = vmatpush.bf16.msra.mxu2 %v9822_v61  ;;  %v10251_v21 = vld [vmem:[#allocation2 + $0xa78] sm:$0xf0]  ;;  %v11923_v8 = vld [vmem:[#allocation2 + $0xa2c] sm:$0xf] }
 0x7a4   :  { %v10254_v35 = vor.u32 %v11931_v28, %v10251_v21  ;;  %v10155_v56 = vld [vmem:[#allocation2 + $0x9b8] sm:$0xf0]  ;;  %v11871_v60 = vld [vmem:[#allocation2 + $0x88c] sm:$0xf] }
 0x7a5   :  { %7286 = vmatpush.bf16.msrb.mxu0 %v9486_v4  ;;  %7299 = vmatpush.bf16.msra.mxu1 %v9614_v31  ;;  %v10190_v4 = vor.u32 %v11915_v51, %v10187_v13  ;;  %v11963_v31 = vld [vmem:[#allocation2 + $0xb6c] sm:$0xf]  ;;  %v10219_v24 = vld [vmem:[#allocation2 + $0xa38] sm:$0xf0] }
 0x7a6   :  { %7316 = vmatmul.bf16.vlgmr.msrb.gmra.mxu3 %v13236_v33  ;;  %7329 = vmatmul.bf16.vlgmr.msra.gmra.mxu2 %v13238_v7  ;;  %v11967_v33 = vld [vmem:[#allocation2 + $0xb8c] sm:$0xf]  ;;  %v10382_v46 = vor.u32 %v11963_v31, %v10379_v39  ;;  %v10347_v14 = vld [vmem:[#allocation2 + $0xb38] sm:$0xf0]  ;;  %v10222_v52 = vor.u32 %v11923_v8, %v10219_v24 }
 0x7a7   :  { %7360 = vmatpush.bf16.msra.mxu3 %v10318_v40  ;;  %7373 = vmatpush.bf16.msrb.mxu2 %v10446_v38  ;;  %v11883_v7 = vld [vmem:[#allocation2 + $0x8ec] sm:$0xf]  ;;  %v10398_v27 = vor.u32 %v11967_v33, %v10395_v2  ;;  %v10043_v40 = vld [vmem:[#allocation2 + $0x8d8] sm:$0xf0] }
 0x7a8   :  { %v10062_v61 = vor.u32 %v11883_v7, %v10059_v45  ;;  %v11911_v38 = vld [vmem:[#allocation2 + $0x9cc] sm:$0xf]  ;;  %v10046_v47 = vor.u32 %v11879_v20, %v10043_v40  ;;  %v10011_v17 = vld [vmem:[#allocation2 + $0x898] sm:$0xf0] }
 0x7a9   :  { %7287 = vmatpush.bf16.msrb.mxu0 %v9470_v50  ;;  %7300 = vmatpush.bf16.msra.mxu1 %v9598_v18  ;;  %v7109_v34 = vpop.f32.mrf.mxu3  ;;  %v13389_v63 = vpop.f32.mrf.mxu2  ;;  %v10174_v50 = vor.u32 %v11911_v38, %v10171_v23  ;;  %v11959_v18 = vld [vmem:[#allocation2 + $0xb4c] sm:$0xf]  ;;  %v10203_v45 = vld [vmem:[#allocation2 + $0xa18] sm:$0xf0]  ;;  %v10014_v13 = vor.u32 %v11871_v60, %v10011_v17 }
 0x7aa   :  { %v10366_v19 = vor.u32 %v11959_v18, %v10363_v49  ;;  %v11919_v7 = vld [vmem:[#allocation2 + $0xa0c] sm:$0xf]  ;;  %v10827_v31 = vld [vmem:[#allocation2 + $0xef8] sm:$0xf0] }
 0x7ab   :  { %7361 = vmatpush.bf16.msra.mxu3 %v10302_v53  ;;  %7374 = vmatpush.bf16.msrb.mxu2 %v10430_v41  ;;  %v10027_v53 = vld [vmem:[#allocation2 + $0x8b8] sm:$0xf0]  ;;  %v11907_v41 = vld [vmem:[#allocation2 + $0x9ac] sm:$0xf]  ;;  %v10206_v40 = vor.u32 %v11919_v7, %v10203_v45 }
 0x7ac   :  { %v10030_v32 = vor.u32 %v11875_v54, %v10027_v53  ;;  %v11951_v51 = vld [vmem:[#allocation2 + $0xb0c] sm:$0xf]  ;;  %v10955_v39 = vld [vmem:[#allocation2 + $0xff8] sm:$0xf0] }
 0x7ad   :  { %7288 = vmatpush.bf16.msrb.mxu0 %v9454_v59  ;;  %7301 = vmatpush.bf16.msra.mxu1 %v9582_v26  ;;  %v10158_v59 = vor.u32 %v11907_v41, %v10155_v56  ;;  %v11955_v26 = vld [vmem:[#allocation2 + $0xb2c] sm:$0xf]  ;;  %v9979_v37 = vld [vmem:[#allocation2 + $0x858] sm:$0xf0] }
 0x7ae   :  { %v10350_v9 = vor.u32 %v11955_v26, %v10347_v14  ;;  %v11899_v21 = vld [vmem:[#allocation2 + $0x96c] sm:$0xf]  ;;  %v10107_v18 = vld [vmem:[#allocation2 + $0x958] sm:$0xf0] }
 0x7af   :  { %7362 = vmatpush.bf16.msra.mxu3 %v10286_v0  ;;  %7375 = vmatpush.bf16.msrb.mxu2 %v10414_v5  ;;  %v10139_v0 = vld [vmem:[#allocation2 + $0x998] sm:$0xf0]  ;;  %v12071_v49 = vld [vmem:[#allocation2 + $0xecc] sm:$0xf] }
 0x7b0   :  { %v10811_v41 = vld [vmem:[#allocation2 + $0xed8] sm:$0xf0]  ;;  %v12103_v56 = vld [vmem:[#allocation2 + $0xfcc] sm:$0xf] }
 0x7b1   :  { %7289 = vmatpush.bf16.msrb.mxu0 %v9438_v25  ;;  %7302 = vmatpush.bf16.msra.mxu1 %v9566_v22  ;;  %v7096_v5 = vpop.f32.mrf.mxu1  ;;  %v7111_v33 = vpop.f32.mrf.mxu3  ;;  %v10331_v22 = vld [vmem:[#allocation2 + $0xb18] sm:$0xf0]  ;;  %v11859_v24 = vld [vmem:[#allocation2 + $0x82c] sm:$0xf] }
 0x7b2   :  { %v7124_v2 = vpop.f32.mrf.mxu2  ;;  %v10334_v38 = vor.u32 %v11951_v51, %v10331_v22  ;;  %v11891_v14 = vld [vmem:[#allocation2 + $0x92c] sm:$0xf]  ;;  %v10795_v17 = vld [vmem:[#allocation2 + $0xeb8] sm:$0xf0] }
 0x7b3   :  { %7363 = vmatpush.bf16.msra.mxu3 %v10270_v44  ;;  %7376 = vmatpush.bf16.msrb.mxu2 %v10398_v27  ;;  %v11867_v44 = vld [vmem:[#allocation2 + $0x86c] sm:$0xf]  ;;  %v9995_v27 = vld [vmem:[#allocation2 + $0x878] sm:$0xf0] }
 0x7b4   :  { %7290 = vmatmul.bf16.vlgmr.msrb.gmra.mxu0 %v13228_v57  ;;  %7303 = vmatmul.bf16.vlgmr.msra.gmra.mxu1 %v13230_v10  ;;  %v11903_v57 = vld [vmem:[#allocation2 + $0x98c] sm:$0xf]  ;;  %v7083_v10 = vpop.f32.mrf.mxu0  ;;  %v9998_v23 = vor.u32 %v11867_v44, %v9995_v27  ;;  %v10075_v7 = vld [vmem:[#allocation2 + $0x918] sm:$0xf0] }
 0x7b5   :  { %7334 = vmatpush.bf16.msra.mxu0 %v10062_v61  ;;  %7347 = vmatpush.bf16.msrb.mxu1 %v10190_v4  ;;  %v7084_v43 = vadd.f32 %v7083_v10, %v13385_v42  ;;  %v10142_v25 = vor.u32 %v11903_v57, %v10139_v0  ;;  %v10123_v61 = vld [vmem:[#allocation2 + $0x978] sm:$0xf0]  ;;  %v12075_v4 = vld [vmem:[#allocation2 + $0xeec] sm:$0xf] }
 0x7b6   :  { %v12107_v42 = vld [vmem:[#allocation2 + $0xfec] sm:$0xf]  ;;  %v10830_v6 = vor.u32 %v12075_v4, %v10827_v31  ;;  %v10923_v0 = vld [vmem:[#allocation2 + $0xfb8] sm:$0xf0] }
 0x7b7   :  { %7364 = vmatpush.bf16.msra.mxu3 %v10254_v35  ;;  %7377 = vmatpush.bf16.msrb.mxu2 %v10382_v46  ;;  %v7097_v28 = vadd.f32 %v7096_v5, %v7084_v43  ;;  %v10126_v35 = vor.u32 %v11899_v21, %v10123_v61  ;;  %v11863_v46 = vld [vmem:[#allocation2 + $0x84c] sm:$0xf]  ;;  %v10779_v51 = vld [vmem:[#allocation2 + $0xe98] sm:$0xf0] }
 0x7b8   :  { %v12067_v60 = vld [vmem:[#allocation2 + $0xeac] sm:$0xf]  ;;  %v10699_v44 = vld [vmem:[#allocation2 + $0xdf8] sm:$0xf0] }
 0x7b9   :  { %7335 = vmatpush.bf16.msra.mxu0 %v10046_v47  ;;  %7348 = vmatpush.bf16.msrb.mxu1 %v10174_v50  ;;  %v7110_v20 = vadd.f32 %v7109_v34, %v7097_v28  ;;  %v10958_v47 = vor.u32 %v12107_v42, %v10955_v39  ;;  %v11895_v50 = vld [vmem:[#allocation2 + $0x94c] sm:$0xf]  ;;  %v7098_v34 = vpop.f32.mrf.mxu1  ;;  %v10798_v33 = vor.u32 %v12067_v60, %v10795_v17  ;;  %v10763_v31 = vld [vmem:[#allocation2 + $0xe78] sm:$0xf0] }
 0x7ba   :  { %v10110_v8 = vor.u32 %v11895_v50, %v10107_v18  ;;  %v12099_v57 = vld [vmem:[#allocation2 + $0xfac] sm:$0xf] }
 0x7bb   :  { %7365 = vmatpush.bf16.msra.mxu3 %v10238_v48  ;;  %7378 = vmatpush.bf16.msrb.mxu2 %v10366_v19  ;;  %v13395_v54 = vadd.f32 %v13389_v63, %v7110_v20  ;;  %v10939_v48 = vld [vmem:[#allocation2 + $0xfd8] sm:$0xf0]  ;;  %v9982_v19 = vor.u32 %v11863_v46, %v9979_v37  ;;  %v11855_v43 = vld [vmem:[#allocation2 + $0x80c] sm:$0xf]  ;;  %v10926_v2 = vor.u32 %v12099_v57, %v10923_v0 }
 0x7bc   :  { %v7085_v53 = vpop.f32.mrf.mxu0  ;;  %v10942_v26 = vor.u32 %v12103_v56, %v10939_v48  ;;  %v10091_v63 = vld [vmem:[#allocation2 + $0x938] sm:$0xf0]  ;;  %v12063_v45 = vld [vmem:[#allocation2 + $0xe8c] sm:$0xf] }
 0x7bd   :  { %7336 = vmatpush.bf16.msra.mxu0 %v10030_v32  ;;  %7349 = vmatpush.bf16.msrb.mxu1 %v10158_v59  ;;  %v9963_v32 = vld [vmem:[#allocation2 + $0x838] sm:$0xf0]  ;;  %v10814_v59 = vor.u32 %v12071_v49, %v10811_v41  ;;  %v10094_v5 = vor.u32 %v11891_v14, %v10091_v63  ;;  %v12043_v22 = vld [vmem:[#allocation2 + $0xdec] sm:$0xf]  ;;  %v10782_v21 = vor.u32 %v12063_v45, %v10779_v51 }
 0x7be   :  { %v9966_v10 = vor.u32 %v11859_v24, %v9963_v32  ;;  %v12059_v4 = vld [vmem:[#allocation2 + $0xe6c] sm:$0xf]  ;;  %v10702_v39 = vor.u32 %v12043_v22, %v10699_v44  ;;  %v10683_v46 = vld [vmem:[#allocation2 + $0xdd8] sm:$0xf0] }
 0x7bf   :  { %7366 = vmatpush.bf16.msra.mxu3 %v10222_v52  ;;  %7379 = vmatpush.bf16.msrb.mxu2 %v10350_v9  ;;  %v9947_v52 = vld [vmem:[#allocation2 + $0x818] sm:$0xf0]  ;;  %v11887_v9 = vld [vmem:[#allocation2 + $0x90c] sm:$0xf]  ;;  %v10766_v37 = vor.u32 %v12059_v4, %v10763_v31 }
 0x7c0   :  { %v9950_v27 = vor.u32 %v11855_v43, %v9947_v52  ;;  %v10078_v28 = vor.u32 %v11887_v9, %v10075_v7  ;;  %v12091_v20 = vld [vmem:[#allocation2 + $0xf6c] sm:$0xf]  ;;  %v10747_v49 = vld [vmem:[#allocation2 + $0xe58] sm:$0xf0] }
 0x7c1   :  { %7337 = vmatpush.bf16.msra.mxu0 %v10014_v13  ;;  %7350 = vmatpush.bf16.msrb.mxu1 %v10142_v25  ;;  %v10907_v13 = vld [vmem:[#allocation2 + $0xf98] sm:$0xf0]  ;;  %v12055_v18 = vld [vmem:[#allocation2 + $0xe4c] sm:$0xf] }
 0x7c2   :  { %v10571_v25 = vld [vmem:[#allocation2 + $0xcf8] sm:$0xf0]  ;;  %v12087_v41 = vld [vmem:[#allocation2 + $0xf4c] sm:$0xf]  ;;  %v10750_v32 = vor.u32 %v12055_v18, %v10747_v49  ;;  %v12180_v49 = vld [vmem:[%s13606_s4 + $0x30] sm:$0xff] }
 0x7c3   :  { %7367 = vmatpush.bf16.msra.mxu3 %v10206_v40  ;;  %7380 = vmatpush.bf16.msrb.mxu2 %v10334_v38  ;;  %v10891_v40 = vld [vmem:[#allocation2 + $0xf78] sm:$0xf0]  ;;  %v12007_v38 = vld [vmem:[#allocation2 + $0xccc] sm:$0xf] }
 0x7c4   :  { %v10875_v56 = vld [vmem:[#allocation2 + $0xf58] sm:$0xf0]  ;;  %v12003_v48 = vld [vmem:[#allocation2 + $0xcac] sm:$0xf] }
 0x7c5   :  { %7338 = vmatpush.bf16.msra.mxu0 %v9998_v23  ;;  %7351 = vmatpush.bf16.msrb.mxu1 %v10126_v35  ;;  %v10555_v23 = vld [vmem:[#allocation2 + $0xcd8] sm:$0xf0]  ;;  %v12039_v35 = vld [vmem:[#allocation2 + $0xdcc] sm:$0xf] }
 0x7c6   :  { %7368 = vmatmul.bf16.vlgmr.msra.gmra.mxu3 %v13264_v1  ;;  %7381 = vmatmul.bf16.vlgmr.msrb.gmra.mxu2 %v13268_v3  ;;  %v12095_v1 = vld [vmem:[#allocation2 + $0xf8c] sm:$0xf]  ;;  %v10558_v53 = vor.u32 %v12007_v38, %v10555_v23  ;;  %v10686_v34 = vor.u32 %v12039_v35, %v10683_v46  ;;  %v10667_v24 = vld [vmem:[#allocation2 + $0xdb8] sm:$0xf0] }
 0x7c7   :  { %7412 = vmatpush.bf16.msrb.mxu3 %v10830_v6  ;;  %7425 = vmatpush.bf16.msra.mxu2 %v10958_v47  ;;  %v12011_v3 = vld [vmem:[#allocation2 + $0xcec] sm:$0xf]  ;;  %v10910_v61 = vor.u32 %v12095_v1, %v10907_v13  ;;  %v10894_v6 = vor.u32 %v12091_v20, %v10891_v40  ;;  %v10731_v14 = vld [vmem:[#allocation2 + $0xe38] sm:$0xf0] }
 0x7c8   :  { %v10574_v42 = vor.u32 %v12011_v3, %v10571_v25  ;;  %v12083_v17 = vld [vmem:[#allocation2 + $0xf2c] sm:$0xf]  ;;  %v10859_v57 = vld [vmem:[#allocation2 + $0xf38] sm:$0xf0] }
 0x7c9   :  { %7339 = vmatpush.bf16.msra.mxu0 %v9982_v19  ;;  %7352 = vmatpush.bf16.msrb.mxu1 %v10110_v8  ;;  %v7161_v47 = vpop.f32.mrf.mxu3  ;;  %v13399_v50 = vpop.f32.mrf.mxu2  ;;  %v10539_v19 = vld [vmem:[#allocation2 + $0xcb8] sm:$0xf0]  ;;  %v12035_v8 = vld [vmem:[#allocation2 + $0xdac] sm:$0xf] }
 0x7ca   :  { %v10542_v63 = vor.u32 %v12003_v48, %v10539_v19  ;;  %v10670_v60 = vor.u32 %v12035_v8, %v10667_v24  ;;  %v11999_v0 = vld [vmem:[#allocation2 + $0xc8c] sm:$0xf]  ;;  %v10715_v51 = vld [vmem:[#allocation2 + $0xe18] sm:$0xf0] }
 0x7cb   :  { %7413 = vmatpush.bf16.msrb.mxu3 %v10814_v59  ;;  %7426 = vmatpush.bf16.msra.mxu2 %v10942_v26  ;;  %v10878_v59 = vor.u32 %v12087_v41, %v10875_v56  ;;  %v12051_v26 = vld [vmem:[#allocation2 + $0xe2c] sm:$0xf]  ;;  %v10843_v25 = vld [vmem:[#allocation2 + $0xf18] sm:$0xf0] }
 0x7cc   :  { %v10734_v9 = vor.u32 %v12051_v26, %v10731_v14  ;;  %v12047_v45 = vld [vmem:[#allocation2 + $0xe0c] sm:$0xf]  ;;  %v12189_v20 = vld [vmem:[%s13606_s4 + $0x78] sm:$0xff] }
 0x7cd   :  { %7340 = vmatpush.bf16.msra.mxu0 %v9966_v10  ;;  %7353 = vmatpush.bf16.msrb.mxu1 %v10094_v5  ;;  %v10523_v10 = vld [vmem:[#allocation2 + $0xc98] sm:$0xf0]  ;;  %v12079_v3 = vld [vmem:[#allocation2 + $0xf0c] sm:$0xf] }
 0x7ce   :  { %v10651_v5 = vld [vmem:[#allocation2 + $0xd98] sm:$0xf0]  ;;  %v10526_v1 = vor.u32 %v11999_v0, %v10523_v10  ;;  %v11995_v22 = vld [vmem:[#allocation2 + $0xc6c] sm:$0xf]  ;;  %v10846_v4 = vor.u32 %v12079_v3, %v10843_v25  ;;  %v12178_v0 = vld [vmem:[%s13606_s4 + $0x20] sm:$0xff] }
 0x7cf   :  { %7414 = vmatpush.bf16.msrb.mxu3 %v10798_v33  ;;  %7427 = vmatpush.bf16.msra.mxu2 %v10926_v2  ;;  %v10862_v33 = vor.u32 %v12083_v17, %v10859_v57  ;;  %v11991_v40 = vld [vmem:[#allocation2 + $0xc4c] sm:$0xf]  ;;  %v10491_v38 = vld [vmem:[#allocation2 + $0xc58] sm:$0xf0]  ;;  %v12186_v10 = vld [vmem:[%s13606_s4 + $0x60] sm:$0xff] }
 0x7d0   :  { %v12023_v23 = vld [vmem:[#allocation2 + $0xd4c] sm:$0xf]  ;;  %v10619_v35 = vld [vmem:[#allocation2 + $0xd58] sm:$0xf0] }
 0x7d1   :  { %7341 = vmatpush.bf16.msra.mxu0 %v9950_v27  ;;  %7354 = vmatpush.bf16.msrb.mxu1 %v10078_v28  ;;  %v7148_v43 = vpop.f32.mrf.mxu1  ;;  %v7163_v2 = vpop.f32.mrf.mxu3  ;;  %v10507_v27 = vld [vmem:[#allocation2 + $0xc78] sm:$0xf0]  ;;  %v12027_v28 = vld [vmem:[#allocation2 + $0xd6c] sm:$0xf]  ;;  %v10622_v18 = vor.u32 %v12023_v23, %v10619_v35 }
 0x7d2   :  { %v7176_v7 = vpop.f32.mrf.mxu2  ;;  %v10510_v31 = vor.u32 %v11995_v22, %v10507_v27  ;;  %v12019_v41 = vld [vmem:[#allocation2 + $0xd2c] sm:$0xf]  ;;  %v10603_v56 = vld [vmem:[#allocation2 + $0xd38] sm:$0xf0] }
 0x7d3   :  { %7415 = vmatpush.bf16.msrb.mxu3 %v10782_v21  ;;  %7428 = vmatpush.bf16.msra.mxu2 %v10910_v61  ;;  %v10635_v21 = vld [vmem:[#allocation2 + $0xd78] sm:$0xf0]  ;;  %v10606_v19 = vor.u32 %v12019_v41, %v10603_v56  ;;  %v12179_v8 = vld [vmem:[%s13606_s4 + $0x28] sm:$0xff] }
 0x7d4   :  { %7342 = vmatmul.bf16.vlgmr.msra.gmra.mxu0 %v13240_v11  ;;  %7355 = vmatmul.bf16.vlgmr.msrb.gmra.mxu1 %v13242_v12  ;;  %v12031_v11 = vld [vmem:[#allocation2 + $0xd8c] sm:$0xf]  ;;  %v7135_v12 = vpop.f32.mrf.mxu0  ;;  %v11195_v2 = vld [vmem:[#allocation2 + $0x11d8] sm:$0xf0] }
 0x7d5   :  { %7386 = vmatpush.bf16.msrb.mxu0 %v10574_v42  ;;  %7399 = vmatpush.bf16.msra.mxu1 %v10702_v39  ;;  %v7136_v52 = vadd.f32 %v7135_v12, %v13395_v54  ;;  %v10654_v13 = vor.u32 %v12031_v11, %v10651_v5  ;;  %v10718_v54 = vor.u32 %v12047_v45, %v10715_v51  ;;  %v12181_v39 = vld [vmem:[%s13606_s4 + $0x38] sm:$0xff]  ;;  %v12187_v24 = vld [vmem:[%s13606_s4 + $0x68] sm:$0xff]  ;;  %v13433_v11 = vld [vmem:[#allocation31] sm:$0xf] }
 0x7d6   :  { %v10638_v42 = vor.u32 %v12027_v28, %v10635_v21  ;;  %v12015_v26 = vld [vmem:[#allocation2 + $0xd0c] sm:$0xf]  ;;  %v13435_v5 = vld [vmem:[#allocation33] sm:$0xf]  ;;  %v7470_v7 = vperm.slane %v13433_v11, 0  ;;  %v7471_v25 = vperm.slane %v13433_v11, 1 }
 0x7d7   :  { %7416 = vmatpush.bf16.msrb.mxu3 %v10766_v37  ;;  %7429 = vmatpush.bf16.msra.mxu2 %v10894_v6  ;;  %v7149_v44 = vadd.f32 %v7148_v43, %v7136_v52  ;;  %v12139_v14 = vld [vmem:[#allocation2 + $0x10ec] sm:$0xf]  ;;  %v7484_v45 = vperm.slane %v13435_v5, 0  ;;  %v12177_v51 = vld [vmem:[%s13606_s4 + $0x18] sm:$0xff]  ;;  %v7485_v22 = vperm.slane %v13435_v5, 1 }
 0x7d8   :  { %v12135_v52 = vld [vmem:[#allocation2 + $0x10cc] sm:$0xf]  ;;  %v11051_v21 = vld [vmem:[#allocation2 + $0x10b8] sm:$0xf0] }
 0x7d9   :  { %7387 = vmatpush.bf16.msrb.mxu0 %v10558_v53  ;;  %7400 = vmatpush.bf16.msra.mxu1 %v10686_v34  ;;  %v7162_v61 = vadd.f32 %v7161_v47, %v7149_v44  ;;  %v7150_v6 = vpop.f32.mrf.mxu1  ;;  %v10494_v47 = vor.u32 %v11991_v40, %v10491_v38  ;;  %v12188_v53 = vld [vmem:[%s13606_s4 + $0x70] sm:$0xff]  ;;  %v11987_v34 = vld [vmem:[#allocation2 + $0xc2c] sm:$0xf]  ;;  %v7479_v38 = vmul.f32 %v7471_v25, %v13375_v55  ;;  %v11035_v35 = vld [vmem:[#allocation2 + $0x1098] sm:$0xf0] }
 0x7da   :  { %v12131_v28 = vld [vmem:[#allocation2 + $0x10ac] sm:$0xf]  ;;  %v7493_v23 = vmul.f32 %v7485_v22, %v13375_v55  ;;  %v11163_v6 = vld [vmem:[#allocation2 + $0x1198] sm:$0xf0] }
 0x7db   :  { %7417 = vmatpush.bf16.msrb.mxu3 %v10750_v32  ;;  %7430 = vmatpush.bf16.msra.mxu2 %v10878_v59  ;;  %v13411_v46 = vadd.f32 %v13399_v50, %v7162_v61  ;;  %v10475_v50 = vld [vmem:[#allocation2 + $0xc38] sm:$0xf0]  ;;  %v11983_v32 = vld [vmem:[#allocation2 + $0xc0c] sm:$0xf] }
 0x7dc   :  { %v7137_v37 = vpop.f32.mrf.mxu0  ;;  %v10478_v48 = vor.u32 %v11987_v34, %v10475_v50  ;;  %v10459_v59 = vld [vmem:[#allocation2 + $0xc18] sm:$0xf0]  ;;  %v12163_v61 = vld [vmem:[#allocation2 + $0x11ac] sm:$0xf] }
 0x7dd   :  { %7388 = vmatpush.bf16.msrb.mxu0 %v10542_v63  ;;  %7401 = vmatpush.bf16.msra.mxu1 %v10670_v60  ;;  %v12171_v63 = vld [vmem:[#allocation2 + $0x11ec] sm:$0xf]  ;;  %v11211_v60 = vld [vmem:[#allocation2 + $0x11f8] sm:$0xf0]  ;;  %v10462_v17 = vor.u32 %v11983_v32, %v10459_v59  ;;  %v7497_v32 = vsel %vm7465_vm11, %v7479_v38, %v7493_v23 }
 0x7de   :  { %v11214_v43 = vor.u32 %v12171_v63, %v11211_v60  ;;  %v12127_v40 = vld [vmem:[#allocation2 + $0x108c] sm:$0xf]  ;;  %v11019_v59 = vld [vmem:[#allocation2 + $0x1078] sm:$0xf0] }
 0x7df   :  { %7418 = vmatpush.bf16.msrb.mxu3 %v10734_v9  ;;  %7431 = vmatpush.bf16.msra.mxu2 %v10862_v33  ;;  %v11067_v9 = vld [vmem:[#allocation2 + $0x10d8] sm:$0xf0]  ;;  %v12167_v33 = vld [vmem:[#allocation2 + $0x11cc] sm:$0xf] }
 0x7e0   :  { %v11070_v44 = vor.u32 %v12135_v52, %v11067_v9  ;;  %v11198_v27 = vor.u32 %v12167_v33, %v11195_v2  ;;  %v12159_v37 = vld [vmem:[#allocation2 + $0x118c] sm:$0xf] }
 0x7e1   :  { %7389 = vmatpush.bf16.msrb.mxu0 %v10526_v1  ;;  %7402 = vmatpush.bf16.msra.mxu1 %v10654_v13  ;;  %v12185_v1 = vld [vmem:[%s13606_s4 + $0x58] sm:$0xff]  ;;  %v12183_v34 = vld [vmem:[%s13606_s4 + $0x48] sm:$0xff] }
 0x7e3   :  { %7419 = vmatpush.bf16.msrb.mxu3 %v10718_v54  ;;  %7432 = vmatpush.bf16.msra.mxu2 %v10846_v4  ;;  %v11179_v54 = vld [vmem:[#allocation2 + $0x11b8] sm:$0xf0]  ;;  %v7478_v4 = vmul.f32 %v7470_v7, %v13327_v58  ;;  %v12115_v7 = vld [vmem:[#allocation2 + $0x102c] sm:$0xf] }
 0x7e5   :  { %7390 = vmatpush.bf16.msrb.mxu0 %v10510_v31  ;;  %7403 = vmatpush.bf16.msra.mxu1 %v10638_v42  ;;  %v12176_v31 = vld [vmem:[%s13606_s4 + $0x10] sm:$0xff] }
 0x7e6   :  { %7420 = vmatmul.bf16.vlgmr.msrb.gmra.mxu3 %v13288_v15  ;;  %7433 = vmatmul.bf16.vlgmr.msra.gmra.mxu2 %v13292_v36  ;;  %v10587_v15 = vld [vmem:[#allocation2 + $0xd18] sm:$0xf0]  ;;  %v12184_v42 = vld [vmem:[%s13606_s4 + $0x50] sm:$0xff] }
 0x7e7   :  { %7778 = vmatpush.bf16.msra.mxu3 %v12181_v39  ;;  %7791 = vmatpush.bf16.msrb.mxu2 %v12189_v20  ;;  %v11083_v36 = vld [vmem:[#allocation2 + $0x10f8] sm:$0xf0]  ;;  %v10590_v57 = vor.u32 %v12015_v26, %v10587_v15  ;;  %v11054_v39 = vor.u32 %v12131_v28, %v11051_v21  ;;  %v11182_v20 = vor.u32 %v12163_v61, %v11179_v54  ;;  %v12155_v26 = vld [vmem:[#allocation2 + $0x116c] sm:$0xf] }
 0x7e8   :  { %v11086_v12 = vor.u32 %v12139_v14, %v11083_v36  ;;  %v11147_v15 = vld [vmem:[#allocation2 + $0x1178] sm:$0xf0]  ;;  %v12182_v36 = vld [vmem:[%s13606_s4 + $0x40] sm:$0xff]  ;;  %v12143_v28 = vld [vmem:[#allocation2 + $0x110c] sm:$0xf] }
 0x7e9   :  { %7391 = vmatpush.bf16.msrb.mxu0 %v10494_v47  ;;  %7404 = vmatpush.bf16.msra.mxu1 %v10622_v18  ;;  %v13445_v13 = vpop.f32.mrf.mxu3  ;;  %v13447_v3 = vpop.f32.mrf.mxu2  ;;  %v11150_v55 = vor.u32 %v12155_v26, %v11147_v15  ;;  %v11099_v21 = vld [vmem:[#allocation2 + $0x1118] sm:$0xf0]  ;;  %v12190_v26 = vld [vmem:[%s13606_s4 + $0x80] sm:$0xff] }
 0x7ea   :  { %v11102_v54 = vor.u32 %v12143_v28, %v11099_v21  ;;  %v12202_v28 = vld [vmem:[%s13606_s4 + $0xe0] sm:$0xff] }
 0x7eb   :  { %7779 = vmatpush.bf16.msra.mxu3 %v12180_v49  ;;  %7792 = vmatpush.bf16.msrb.mxu2 %v12188_v53  ;;  %v12175_v53 = vld [vmem:[%s13606_s4 + $0x8] sm:$0xff] }
 0x7ed   :  { %7392 = vmatpush.bf16.msrb.mxu0 %v10478_v48  ;;  %7405 = vmatpush.bf16.msra.mxu1 %v10606_v19  ;;  %v11038_v19 = vor.u32 %v12127_v40, %v11035_v35  ;;  %v12246_v40 = vld [vmem:[#allocation30] sm:$0xf] }
 0x7ee   :  { %v3643_v38 = vperm.slane %v12246_v40, 3 }
 0x7ef   :  { %7780 = vmatpush.bf16.msra.mxu3 %v12179_v8  ;;  %7793 = vmatpush.bf16.msrb.mxu2 %v12187_v24  ;;  %v11166_v8 = vor.u32 %v12159_v37, %v11163_v6  ;;  %v12123_v24 = vld [vmem:[#allocation2 + $0x106c] sm:$0xf] }
 0x7f0   :  { %v11022_v60 = vor.u32 %v12123_v24, %v11019_v59 }
 0x7f1   :  { %7393 = vmatpush.bf16.msrb.mxu0 %v10462_v17  ;;  %7406 = vmatpush.bf16.msra.mxu1 %v10590_v57  ;;  %v13467_v47 = vpop.f32.mrf.mxu0  ;;  %v13469_v18 = vpop.f32.mrf.mxu1  ;;  %v12119_v17 = vld [vmem:[#allocation2 + $0x104c] sm:$0xf]  ;;  %v11003_v57 = vld [vmem:[#allocation2 + $0x1058] sm:$0xf0] }
 0x7f2   :  { %v7215_v50 = vpop.f32.mrf.mxu3  ;;  %v7228_v41 = vpop.f32.mrf.mxu2  ;;  %v11006_v33 = vor.u32 %v12119_v17, %v11003_v57 }
 0x7f3   :  { %7781 = vmatpush.bf16.msra.mxu3 %v12178_v0  ;;  %7794 = vmatpush.bf16.msrb.mxu2 %v12186_v10  ;;  %v12151_v0 = vld [vmem:[#allocation2 + $0x114c] sm:$0xf]  ;;  %v11131_v10 = vld [vmem:[#allocation2 + $0x1158] sm:$0xf0]  ;;  %v7472_v50 = vperm.slane %v13433_v11, 2  ;;  %v7486_v41 = vperm.slane %v13435_v5, 2 }
 0x7f4   :  { %7394 = vmatmul.bf16.vlgmr.msrb.gmra.mxu0 %v13252_v62  ;;  %7407 = vmatmul.bf16.vlgmr.msra.gmra.mxu1 %v13254_v16  ;;  %v7492_v62 = vmul.f32 %v7484_v45, %v13327_v58  ;;  %v13462_v16 = vld [vmem:[#allocation34] sm:$0xf]  ;;  %v12174_v58 = vld [vmem:[%s13606_s4] sm:$0xff]  ;;  %v11134_v2 = vor.u32 %v12151_v0, %v11131_v10 }
 0x7f5   :  { %7438 = vmatpush.bf16.msra.mxu0 %v11086_v12  ;;  %7451 = vmatpush.bf16.msrb.mxu1 %v11214_v43  ;;  %v7502_v49 = vperm.slane %v13462_v16, 0  ;;  %v7503_v48 = vperm.slane %v13462_v16, 1  ;;  %v10987_v45 = vld [vmem:[#allocation2 + $0x1038] sm:$0xf0] }
 0x7f6   :  { %v7496_v56 = vsel %vm7464_vm0, %v7478_v4, %v7492_v62  ;;  %v10990_v25 = vor.u32 %v12115_v7, %v10987_v45  ;;  %v12197_v4 = vld [vmem:[%s13606_s4 + $0xb8] sm:$0xff]  ;;  %v12196_v62 = vld [vmem:[%s13606_s4 + $0xb0] sm:$0xff] }
 0x7f7   :  { %7782 = vmatpush.bf16.msra.mxu3 %v12177_v51  ;;  %7795 = vmatpush.bf16.msrb.mxu2 %v12185_v1  ;;  %v7510_v14 = vadd.f32 %v7502_v49, %v7496_v56  ;;  %v7511_v63 = vadd.f32 %v7503_v48, %v7497_v32  ;;  %v12147_v51 = vld [vmem:[#allocation2 + $0x112c] sm:$0xf]  ;;  %v11115_v1 = vld [vmem:[#allocation2 + $0x1138] sm:$0xf0]  ;;  %v7504_v32 = vperm.slane %v13462_v16, 2 }
 0x7f8   :  { %v11118_v22 = vor.u32 %v12147_v51, %v11115_v1  ;;  %v12205_v1 = vld [vmem:[%s13606_s4 + $0xf8] sm:$0xff] }
 0x7f9   :  { %7439 = vmatpush.bf16.msra.mxu0 %v11070_v44  ;;  %7452 = vmatpush.bf16.msrb.mxu1 %v11198_v27  ;;  %v7189_v12 = vpop.f32.mrf.mxu0  ;;  %v7202_v43 = vpop.f32.mrf.mxu1  ;;  %v7514_v52 = vpack.c.bf16 %v7510_v14, %v7510_v14  ;;  %v7515_v9 = vpack.c.bf16 %v7511_v63, %v7511_v63  ;;  %v12111_v44 = vld [vmem:[#allocation2 + $0x100c] sm:$0xf]  ;;  %v10971_v27 = vld [vmem:[#allocation2 + $0x1018] sm:$0xf0] }
 0x7fa   :  { %v10974_v61 = vor.u32 %v12111_v44, %v10971_v27  ;;  %v12204_v44 = vld [vmem:[%s13606_s4 + $0xf0] sm:$0xff]  ;;  %v12203_v27 = vld [vmem:[%s13606_s4 + $0xe8] sm:$0xff] }
 0x7fb   :  { %7783 = vmatpush.bf16.msra.mxu3 %v12176_v31  ;;  %7796 = vmatpush.bf16.msrb.mxu2 %v12184_v42 }
 0x7fd   :  { %7440 = vmatpush.bf16.msra.mxu0 %v11054_v39  ;;  %7453 = vmatpush.bf16.msrb.mxu1 %v11182_v20  ;;  %v7188_v39 = vadd.f32 %v13467_v47, %v13411_v46  ;;  %v12195_v20 = vld [vmem:[%s13606_s4 + $0xa8] sm:$0xff] }
 0x7ff   :  { %7784 = vmatpush.bf16.msra.mxu3 %v12175_v53  ;;  %7797 = vmatpush.bf16.msrb.mxu2 %v12183_v34  ;;  %v7201_v23 = vadd.f32 %v13469_v18, %v7188_v39  ;;  %v12193_v34 = vld [vmem:[%s13606_s4 + $0x98] sm:$0xff] }
 0x801   :  { %7441 = vmatpush.bf16.msra.mxu0 %v11038_v19  ;;  %7454 = vmatpush.bf16.msrb.mxu1 %v11166_v8 }
 0x803   :  { %7785 = vmatpush.bf16.msra.mxu3 %v12174_v58  ;;  %7798 = vmatpush.bf16.msrb.mxu2 %v12182_v36 }
 0x805   :  { %7442 = vmatpush.bf16.msra.mxu0 %v11022_v60  ;;  %7455 = vmatpush.bf16.msrb.mxu1 %v11150_v55 }
 0x806   :  { %7786 = vmatmul.bf16.vlgmr.msra.gmra.mxu3 %v7514_v52  ;;  %7799 = vmatmul.bf16.vlgmr.msrb.gmra.mxu2 %v7515_v9 }
 0x809   :  { %7443 = vmatpush.bf16.msra.mxu0 %v11006_v33  ;;  %7456 = vmatpush.bf16.msrb.mxu1 %v11134_v2  ;;  %v7265_v31 = vpop.f32.mrf.mxu3  ;;  %v7278_v42 = vpop.f32.mrf.mxu2 }
 0x80d   :  { %7444 = vmatpush.bf16.msra.mxu0 %v10990_v25  ;;  %7457 = vmatpush.bf16.msrb.mxu1 %v11118_v22 }
 0x811   :  { %7445 = vmatpush.bf16.msra.mxu0 %v10974_v61  ;;  %7458 = vmatpush.bf16.msrb.mxu1 %v11102_v54  ;;  %v7239_v35 = vpop.f32.mrf.mxu0  ;;  %v7252_v37 = vpop.f32.mrf.mxu1  ;;  %v12201_v54 = vld [vmem:[%s13606_s4 + $0xd8] sm:$0xff] }
 0x812   :  { %v7240_v6 = vadd.f32 %v7239_v35, %v3643_v38  ;;  %v7267_v49 = vpop.f32.mrf.mxu3  ;;  %v7280_v53 = vpop.f32.mrf.mxu2  ;;  %v12198_v38 = vld [vmem:[%s13606_s4 + $0xc0] sm:$0xff] }
 0x814   :  { %7446 = vmatmul.bf16.vlgmr.msra.gmra.mxu0 %v13278_v29  ;;  %7459 = vmatmul.bf16.vlgmr.msrb.gmra.mxu1 %v13282_v30  ;;  %v12194_v29 = vld [vmem:[%s13606_s4 + $0xa0] sm:$0xff]  ;;  %v7214_v30 = vadd.f32 %v13445_v13, %v7201_v23  ;;  %v7253_v46 = vadd.f32 %v7252_v37, %v7240_v6  ;;  %v12192_v13 = vld [vmem:[%s13606_s4 + $0x90] sm:$0xff] }
 0x815   :  { %7804 = vmatpush.bf16.msrb.mxu0 %v12197_v4  ;;  %7817 = vmatpush.bf16.msra.mxu1 %v12205_v1  ;;  %v12200_v4 = vld [vmem:[%s13606_s4 + $0xd0] sm:$0xff] }
 0x816   :  { %v7266_v47 = vadd.f32 %v7265_v31, %v7253_v46  ;;  %v7227_v18 = vadd.f32 %v13447_v3, %v7214_v30  ;;  %v12191_v3 = vld [vmem:[%s13606_s4 + $0x88] sm:$0xff] }
 0x818   :  { %v7279_v56 = vadd.f32 %v7278_v42, %v7266_v47  ;;  %v7480_v8 = vmul.f32 %v7472_v50, %v7227_v18  ;;  %v7494_v24 = vmul.f32 %v7486_v41, %v7227_v18  ;;  %vm7466_vm12 = vcmp.gt.f32.partialorder %v7227_v18, 0.0 }
 0x819   :  { %7805 = vmatpush.bf16.msrb.mxu0 %v12196_v62  ;;  %v7241_v48 = vpop.f32.mrf.mxu0  ;;  %v7254_v19 = vpop.f32.mrf.mxu1  ;;  %7818 = vmatpush.bf16.msra.mxu1 %v12204_v44 }
 0x81a   :  { %v7498_v59 = vsel %vm7466_vm12, %v7480_v8, %v7494_v24  ;;  %v7487_v8 = vperm.slane %v13435_v5, 3 }
 0x81b   :  { %v7512_v15 = vadd.f32 %v7504_v32, %v7498_v59  ;;  %v7505_v59 = vperm.slane %v13462_v16, 3 }
 0x81d   :  { %7806 = vmatpush.bf16.msrb.mxu0 %v12195_v20  ;;  %v7516_v14 = vpack.c.bf16 %v7512_v15, %v7512_v15  ;;  %7819 = vmatpush.bf16.msra.mxu1 %v12203_v27  ;;  %v12199_v20 = vld [vmem:[%s13606_s4 + $0xc8] sm:$0xff] }
 0x821   :  { %7807 = vmatpush.bf16.msrb.mxu0 %v12194_v29  ;;  %7820 = vmatpush.bf16.msra.mxu1 %v12202_v28  ;;  %v12239_v29 = vld [vmem:[#allocation4] ss:$0 sm:$0xff] }
 0x825   :  { %7808 = vmatpush.bf16.msrb.mxu0 %v12193_v34  ;;  %7821 = vmatpush.bf16.msra.mxu1 %v12201_v54 }
 0x829   :  { %7809 = vmatpush.bf16.msrb.mxu0 %v12192_v13  ;;  %v7317_v58 = vpop.f32.mrf.mxu3  ;;  %v7330_v36 = vpop.f32.mrf.mxu2  ;;  %7822 = vmatpush.bf16.msra.mxu1 %v12200_v4  ;;  %v7473_v13 = vperm.slane %v13433_v11, 3 }
 0x82d   :  { %7810 = vmatpush.bf16.msrb.mxu0 %v12191_v3  ;;  %7823 = vmatpush.bf16.msra.mxu1 %v12199_v20 }
 0x831   :  { %7811 = vmatpush.bf16.msrb.mxu0 %v12190_v26  ;;  %v7291_v63 = vpop.f32.mrf.mxu0  ;;  %v7304_v60 = vpop.f32.mrf.mxu1  ;;  %7824 = vmatpush.bf16.msra.mxu1 %v12198_v38 }
 0x832   :  { %v7292_v55 = vadd.f32 %v7291_v63, %v7279_v56  ;;  %v7319_v17 = vpop.f32.mrf.mxu3  ;;  %v7332_v57 = vpop.f32.mrf.mxu2 }
 0x834   :  { %7812 = vmatmul.bf16.vlgmr.msrb.gmra.mxu0 %v7516_v14  ;;  %v7305_v0 = vadd.f32 %v7304_v60, %v7292_v55 }
 0x836   :  { %v7318_v10 = vadd.f32 %v7317_v58, %v7305_v0 }
 0x838   :  { %v7331_v12 = vadd.f32 %v7330_v36, %v7318_v10 }
 0x839   :  { %v7293_v43 = vpop.f32.mrf.mxu0  ;;  %v7306_v52 = vpop.f32.mrf.mxu1 }
 0x849   :  { %v7369_v9 = vpop.f32.mrf.mxu3  ;;  %v7382_v33 = vpop.f32.mrf.mxu2 }
 0x851   :  { %v7343_v2 = vpop.f32.mrf.mxu0  ;;  %v7356_v7 = vpop.f32.mrf.mxu1 }
 0x852   :  { %v7371_v45 = vpop.f32.mrf.mxu3  ;;  %v7384_v51 = vpop.f32.mrf.mxu2  ;;  %v7344_v40 = vadd.f32 %v7343_v2, %v7331_v12 }
 0x854   :  { %v7357_v23 = vadd.f32 %v7356_v7, %v7344_v40 }
 0x856   :  { %v7370_v6 = vadd.f32 %v7369_v9, %v7357_v23 }
 0x858   :  { %v7383_v49 = vadd.f32 %v7382_v33, %v7370_v6 }
 0x859   :  { %v7345_v25 = vpop.f32.mrf.mxu0  ;;  %v7358_v22 = vpop.f32.mrf.mxu1 }
 0x869   :  { %v7421_v21 = vpop.f32.mrf.mxu3  ;;  %v7434_v61 = vpop.f32.mrf.mxu2 }
 0x871   :  { %v7395_v31 = vpop.f32.mrf.mxu0  ;;  %v7408_v42 = vpop.f32.mrf.mxu1 }
 0x872   :  { %v7423_v62 = vpop.f32.mrf.mxu3  ;;  %v7436_v39 = vpop.f32.mrf.mxu2  ;;  %v7396_v53 = vadd.f32 %v7395_v31, %v7383_v49 }
 0x874   :  { %v7409_v30 = vadd.f32 %v7408_v42, %v7396_v53 }
 0x876   :  { %v7422_v18 = vadd.f32 %v7421_v21, %v7409_v30 }
 0x878   :  { %v7435_v41 = vadd.f32 %v7434_v61, %v7422_v18 }
 0x879   :  { %v7397_v35 = vpop.f32.mrf.mxu0  ;;  %v7410_v37 = vpop.f32.mrf.mxu1 }
 0x889   :  { %v7787_v46 = vpop.f32.mrf.mxu3  ;;  %v7800_v47 = vpop.f32.mrf.mxu2 }
 0x88a   :  { %v7788_v34 = vadd.f32 %v12239_v29, %v7787_v46 }
 0x88c   :  { %v7801_v50 = vadd.f32 %v7800_v47, %v7788_v34 }
 0x891   :  { %v7447_v56 = vpop.f32.mrf.mxu0  ;;  %v7460_v48 = vpop.f32.mrf.mxu1 }
 0x892   :  { %v7448_v19 = vadd.f32 %v7447_v56, %v7435_v41  ;;  %v7789_v24 = vpop.f32.mrf.mxu3  ;;  %v7802_v3 = vpop.f32.mrf.mxu2 }
 0x894   :  { %v7461_v32 = vadd.f32 %v7460_v48, %v7448_v19 }
 0x896   :  { %vm7467_vm13 = vcmp.gt.f32.partialorder %v7461_v32, 0.0  ;;  %v7481_v26 = vmul.f32 %v7473_v13, %v7461_v32  ;;  %v7495_v15 = vmul.f32 %v7487_v8, %v7461_v32 }
 0x898   :  { %v7499_v14 = vsel %vm7467_vm13, %v7481_v26, %v7495_v15 }
 0x899   :  { %v7513_v58 = vadd.f32 %v7505_v59, %v7499_v14  ;;  %v7449_v36 = vpop.f32.mrf.mxu0  ;;  %v7462_v63 = vpop.f32.mrf.mxu1 }
 0x89b   :  { %v7517_v60 = vpack.c.bf16 %v7513_v58, %v7513_v58 }
 0x89d   :  { %7825 = vmatmul.bf16.vlgmr.msra.gmra.mxu1 %v7517_v60 }
 0x8b1   :  { %v7813_v55 = vpop.f32.mrf.mxu0 }
 0x8b2   :  { %v7814_v17 = vadd.f32 %v7813_v55, %v7801_v50 }
 0x8b9   :  { %v7815_v57 = vpop.f32.mrf.mxu0 }
 0x91a   :  { %v7826_v11 = vpop.f32.mrf.mxu1 }
 0x91b   :  { %v7827_v0 = vadd.f32 %v7826_v11, %v7814_v17 }
 0x91d   :  { %v7830_v5 = vsub.f32 0.0, %v7827_v0 }
 0x91f   :  { %v7831_v10 = vmul.f32 1.442695, %v7830_v5 }
 0x921   :  { %12240 = vpow2.f32 %v7831_v10 }
 0x922   :  { %v7828_v12 = vpop.f32.mrf.mxu1 }
 0x927   :  { %v12241_v43 = vpop.eup %12240 }
 0x928   :  { %v7833_v16 = vadd.f32 1.0, %v12241_v43 }
 0x92a   :  { %12242 = vrcp.f32 %v7833_v16  ;;  %v7845_v2 = vand.u32 2147483648, %v7833_v16  ;;  %v7843_v45 = vand.u32 2147483647, %v7833_v16  ;;  %vm7839_vm15 = vweird.f32 %v7833_v16 }
 0x92c   :  { %v7846_v1 = vor.u32 1.1754944e-38, %v7845_v2  ;;  %vm7844_vm3 = vcmp.eq.f32.partialorder %v7843_v45, 8.507059e+37 }
 0x930   :  { %v12243_v52 = vpop.eup %12242 }
 0x931   :  { %v7835_v9 = vmul.f32 %v12243_v52, %v7833_v16  ;;  %vm7840_vm14 = vweird.f32 %v12243_v52 }
 0x932   :  { %vm7841_vm1 = vmor %vm7839_vm15, %vm7840_vm14 }
 0x933   :  { %v7836_v33 = vsub.f32 1.0, %v7835_v9 }
 0x935   :  { %v7837_v7 = vmul.f32 %v12243_v52, %v7836_v33 }
 0x937   :  { %v7838_v51 = vadd.f32 %v12243_v52, %v7837_v7 }
 0x939   :  { %v7842_v25 = vsel %vm7841_vm1, %v12243_v52, %v7838_v51 }
 0x93a   :  { %v7847_v22 = vsel %vm7844_vm3, %v7846_v1, %v7842_v25 }
 0x93b   :  { %7850 = vst.msk [vmem:[%s13607_s30] sm:$0xff] %vm7849_vm2, %v7847_v22 }
 0x93c   :  { %7855 = vsyncpa [#allocation6], 1 }
 0x93d   :  { %7856 = vsyncpa [#allocation8], 1 }
 0x93e   :  { %7857 = vsyncpa [#allocation11], 1 }
 0x93f   :  { %7858 = vsyncpa [#allocation14], 1 }
 0x940   :  { %7859 = vsyncpa [#allocation17], 1 }
 0x941   :  { %7860 = vsyncpa [#allocation20], 1 }
 0x942   :  { %7861 = vsyncpa [#allocation23], 1 }
 0x943   :  { %7862 = vsyncpa [#allocation26], 1 }
 0x944   :  { %7863 = vsyncpa [#allocation29], 1 }
 0x945   :  { %7864 = vsyncpa [#allocation32], 1 }
 0x946   :  { %7865 = vsyncpa [#allocation35], 1 }
 0x947   :  { %7866 = vsyncmov [#allocation3] }
 0x94a   :  { %s7867_s2 = vpop.sfrf %7866 }
 0x94b   :  { %p11343_p0 = scmp.ne.s32.totalorder %s7867_s2, 0 }
 0x94d   :  { %7871 = shalt.err (%p11343_p0)  }

</bundles_post_ra>
